<compile_context>
chip_gen: v5e
topology: v5e:2x2
jax: 0.10.0
libtpu: 0.0.40
codegen_flags: <defaults>
</compile_context>

<pallas_src>
import functools
import math

import jax
import jax.numpy as jnp
from jax.experimental import pallas as pl
from jax.experimental.pallas import tpu as pltpu


_TINY_ELEMS = 65536  # below this, launch/grid overhead dwarfs the math


def _round_up(x, m):
    return ((x + m - 1) // m) * m


def _cdiv(a, b):
    return -(-a // b)


def _device_kind():
    try:
        return jax.devices()[0].device_kind.lower()
    except Exception:
        return ""


def _masked_mse_jnp(inp, tgt, reduction):
    """Plain-JAX NaN-masked MSE (tiny-input fast path and reference)."""
    valid = jnp.logical_not(jnp.isnan(tgt))
    diff = jnp.where(valid, inp.astype(jnp.float32) - tgt.astype(jnp.float32),
                     jnp.float32(0.0))
    s = jnp.sum(diff * diff)
    if reduction == "mean":
        return s / jnp.sum(valid.astype(jnp.float32))
    return s


def _mtl_mse_kernel(x_ref, t_ref, sum_ref, cnt_ref, *,
                    n_rows, block_rows, inner_steps, n_blocks):
    """Accumulate masked squared error + valid count into resident (8, C) blocks."""
    s = pl.program_id(0)   # 'parallel' split (one per TensorCore on v7x)
    k = pl.program_id(1)   # inner reduction step

    @pl.when(k == 0)
    def _():
        sum_ref[...] = jnp.zeros_like(sum_ref)
        cnt_ref[...] = jnp.zeros_like(cnt_ref)

    ncols = x_ref.shape[1]

    def accumulate(extra_invalid):
        x = x_ref[...].astype(jnp.float32)
        t = t_ref[...].astype(jnp.float32)
        # VALU-trimmed: one compare + two selects + sub + mul per element.
        invalid = jnp.isnan(t)
        if extra_invalid is not None:
            invalid = jnp.logical_or(invalid, extra_invalid)
        diff = jnp.where(invalid, jnp.float32(0.0), x - t)
        cnt = jnp.where(invalid, jnp.float32(0.0), jnp.float32(1.0))
        sq = diff * diff
        # Fold block rows onto 8 sublanes with pure elementwise vreg adds
        # (sublane-aligned reshape, no cross-lane XLU work); the final tiny
        # (8, C) -> scalar reduce happens in the JAX wrapper.
        sum_ref[...] += jnp.sum(sq.reshape(block_rows // 8, 8, ncols), axis=0)
        cnt_ref[...] += jnp.sum(cnt.reshape(block_rows // 8, 8, ncols), axis=0)

    edge_idx = n_blocks - 1
    tail = n_rows - edge_idx * block_rows   # valid rows in the last block (static)

    def accumulate_edge():
        # Pallas does not zero-fill partial edge blocks: rows >= `tail` of the
        # last block hold undefined data, so mask them before accumulating.
        oob = (jax.lax.broadcasted_iota(jnp.int32, (block_rows, ncols), 0)
               >= tail)
        accumulate(oob)

    if tail == block_rows:          # rows tile exactly -> never any row mask
        accumulate(None)
    elif n_blocks == 1:             # single (partial) block
        accumulate_edge()
    else:
        lin = s * inner_steps + k   # linear row-block index
        @pl.when(lin != edge_idx)
        def _():
            accumulate(None)
        @pl.when(lin == edge_idx)
        def _():
            accumulate_edge()


def multi_task_mse_loss(inp, tgt, reduction="mean"):
    """NaN-masked MSE loss (MultiTaskMSELoss). Scalar for 'mean'/'sum'."""
    if reduction not in ("mean", "sum", "none"):
        raise ValueError("Invalid reduction method")
    if reduction == "none":
        # TODO(synk): reduction='none' returns a data-dependent-length 1-D
        # tensor (compacted valid entries) with no static-shape Pallas
        # equivalent; only 'mean' and 'sum' are implemented.
        raise NotImplementedError("reduction='none' is not supported")
    assert inp.shape == tgt.shape, (inp.shape, tgt.shape)

    total = math.prod(inp.shape)

    # Tiny-input fast path: launch/grid overhead dwarfs the arithmetic.
    if total <= _TINY_ELEMS:
        return _masked_mse_jnp(inp, tgt, reduction)

    # 2-D view with the ORIGINAL last dim as the lane axis.  Collapsing leading
    # dims is a free (layout-preserving) reshape; no full-array pad/copy.
    if inp.ndim == 1:
        inp2, tgt2 = inp.reshape(1, -1), tgt.reshape(1, -1)
    elif inp.ndim == 2:
        inp2, tgt2 = inp, tgt
    else:
        inp2 = inp.reshape(-1, inp.shape[-1])
        tgt2 = tgt.reshape(-1, tgt.shape[-1])
    n_rows, n_cols = inp2.shape

    itemsize = max(jnp.dtype(inp.dtype).itemsize, jnp.dtype(tgt.dtype).itemsize)
    kind = _device_kind()
    is_v7x = ("v7" in kind) or ("7x" in kind)

    # bf16/fp16 inputs need 16-row (packed-sublane) alignment; f32 needs 8.
    row_align = 16 if itemsize < 4 else 8
    c_vmem = _round_up(n_cols, 128)              # VMEM footprint is lane-padded
    # v7x (3.2 TB/s HBM): ~4 MiB/input/step amortizes the ~0.35us step cost;
    # v5e/v6e are already near roofline at ~2 MiB.
    target_block_bytes = (4 if is_v7x else 2) * 1024 * 1024
    max_block_rows = (target_block_bytes // (c_vmem * itemsize)) // row_align * row_align
    if max_block_rows < row_align:
        # TODO(synk): last dim too wide for an 8-row VMEM block; would need a
        # second (column) grid axis -- fall back to plain jnp for this rare shape.
        return _masked_mse_jnp(inp, tgt, reduction)

    # Tight row tiling: grid covers exactly ceil(n_rows / block_rows) blocks;
    # only the last block may be partial (masked in-kernel).
    splits = 2 if is_v7x else 1                  # v7x: 2 TCs; v5e/v6e: 1 TC
    rows_per_split = _cdiv(n_rows, splits)
    inner_guess = max(1, _cdiv(rows_per_split, max_block_rows))
    block_rows = min(max_block_rows,
                     _round_up(_cdiv(rows_per_split, inner_guess), row_align))
    n_blocks = _cdiv(n_rows, block_rows)
    if splits > 1 and n_blocks % splits == 0:
        inner_steps = n_blocks // splits
    else:
        splits, inner_steps = 1, n_blocks

    kernel = functools.partial(
        _mtl_mse_kernel, n_rows=n_rows, block_rows=block_rows,
        inner_steps=inner_steps, n_blocks=n_blocks)

    in_map = lambda s, k, _n=inner_steps: (s * _n + k, 0)
    out_map = lambda s, k: (s, 0)

    out_sum, out_cnt = pl.pallas_call(
        kernel,
        out_shape=(
            jax.ShapeDtypeStruct((splits * 8, n_cols), jnp.float32),
            jax.ShapeDtypeStruct((splits * 8, n_cols), jnp.float32),
        ),
        grid_spec=pltpu.PrefetchScalarGridSpec(
            num_scalar_prefetch=0,
            grid=(splits, inner_steps),
            in_specs=[
                pl.BlockSpec((block_rows, n_cols), in_map),
                pl.BlockSpec((block_rows, n_cols), in_map),
            ],
            out_specs=(
                pl.BlockSpec((8, n_cols), out_map),
                pl.BlockSpec((8, n_cols), out_map),
            ),
        ),
        compiler_params=pltpu.CompilerParams(
            dimension_semantics=("parallel", "arbitrary"),
            vmem_limit_bytes=(48 if is_v7x else 40) * 1024 * 1024,
        ),
    )(inp2, tgt2)

    # f32 count/sum cells stay exact below 2^24 accumulated elements per cell
    # (~134M rows per split) -- far beyond realistic loss-input sizes.
    total_sum = jnp.sum(out_sum)
    total_cnt = jnp.sum(out_cnt)
    if reduction == "mean":
        # 0/0 -> NaN, matching torch's mse_loss over an empty selection.
        return total_sum / total_cnt
    return total_sum


def _make_case(key, shape, dtype=jnp.float32, nan_frac=0.25):
    k_in, k_tg, k_nan = jax.random.split(key, 3)
    inp = jax.random.normal(k_in, shape, dtype=jnp.float32).astype(dtype)
    tgt = jax.random.normal(k_tg, shape, dtype=jnp.float32).astype(dtype)
    nan_mask = jax.random.uniform(k_nan, shape) < nan_frac
    tgt = jnp.where(nan_mask, jnp.array(jnp.nan, dtype), tgt)
    return inp, tgt


if __name__ == "__main__":
    key = jax.random.PRNGKey(0)
    keys = jax.random.split(key, 4)

    cases = [
        _make_case(keys[0], (16, 24)),                  # tiny fast path (jnp)
        _make_case(keys[1], (384, 512)),                # single aligned block
        _make_case(keys[2], (2500, 300)),               # multi-block + partial edge block
        _make_case(keys[3], (512, 384), jnp.bfloat16),  # bf16 inputs (halved HBM bytes)
    ]

    for inp, tgt in cases:
        loss_mean = multi_task_mse_loss(inp, tgt, reduction="mean")
        loss_sum = multi_task_mse_loss(inp, tgt, reduction="sum")
        jax.block_until_ready((loss_mean, loss_sum))
        ref_mean = _masked_mse_jnp(inp, tgt, "mean")
        ref_sum = _masked_mse_jnp(inp, tgt, "sum")
        assert jnp.allclose(loss_mean, ref_mean, rtol=1e-3, atol=1e-5), (
            inp.shape, loss_mean, ref_mean)
        assert jnp.allclose(loss_sum, ref_sum, rtol=1e-3, atol=1e-2), (
            inp.shape, loss_sum, ref_sum)

    print("KERNEL_OK")
</pallas_src>

<mosaic_0001>
module attributes {stable_mosaic.version = 11 : i64} {
  func.func @_mtl_mse_kernel(%arg0: i32, %arg1: i32, %arg2: memref<384x512xf32, #tpu.memory_space<vmem>>, %arg3: memref<384x512xf32, #tpu.memory_space<vmem>>, %arg4: memref<8x512xf32, #tpu.memory_space<vmem>>, %arg5: memref<8x512xf32, #tpu.memory_space<vmem>>) attributes {dimension_semantics = [#tpu.dimension_semantics<parallel>, #tpu.dimension_semantics<arbitrary>], iteration_bounds = array<i64: 1, 1>, scalar_prefetch = 0 : i64, scratch_operands = 0 : i64, tpu.core_type = #tpu.core_type<tc>, window_params = [{transform_indices = @transform_0, window_bounds = array<i64: 384, 512>}, {transform_indices = @transform_1, window_bounds = array<i64: 384, 512>}, {transform_indices = @transform_2, window_bounds = array<i64: 8, 512>}, {transform_indices = @transform_3, window_bounds = array<i64: 8, 512>}]} {
    %c0_i32 = arith.constant 0 : i32
    %0 = arith.cmpi eq, %arg1, %c0_i32 : i32
    %1 = arith.extui %0 : i1 to i32
    %c0_i32_0 = arith.constant 0 : i32
    %2 = arith.cmpi ne, %1, %c0_i32_0 : i32
    scf.if %2 {
      %cst_16 = arith.constant 0.000000e+00 : f32
      %23 = vector.broadcast %cst_16 : f32 to vector<8x512xf32>
      %c0_17 = arith.constant 0 : index
      %c0_18 = arith.constant 0 : index
      %24 = vector.load %arg4[%c0_17, %c0_18] : memref<8x512xf32, #tpu.memory_space<vmem>>, vector<8x512xf32>
      tpu.vector_store %arg4[%c0_17, %c0_18], %23 {strides = array<i32>} : memref<8x512xf32, #tpu.memory_space<vmem>>, vector<8x512xf32>,
      %cst_19 = arith.constant 0.000000e+00 : f32
      %25 = vector.broadcast %cst_19 : f32 to vector<8x512xf32>
      %c0_20 = arith.constant 0 : index
      %c0_21 = arith.constant 0 : index
      %26 = vector.load %arg5[%c0_20, %c0_21] : memref<8x512xf32, #tpu.memory_space<vmem>>, vector<8x512xf32>
      tpu.vector_store %arg5[%c0_20, %c0_21], %25 {strides = array<i32>} : memref<8x512xf32, #tpu.memory_space<vmem>>, vector<8x512xf32>,
    } else {
    }
    %c0 = arith.constant 0 : index
    %c0_1 = arith.constant 0 : index
    %3 = vector.load %arg2[%c0, %c0_1] : memref<384x512xf32, #tpu.memory_space<vmem>>, vector<384x512xf32>
    %c0_2 = arith.constant 0 : index
    %c0_3 = arith.constant 0 : index
    %4 = vector.load %arg3[%c0_2, %c0_3] : memref<384x512xf32, #tpu.memory_space<vmem>>, vector<384x512xf32>
    %5 = arith.cmpf one, %4, %4 : vector<384x512xf32>
    %6 = arith.subf %3, %4 : vector<384x512xf32>
    %cst = arith.constant 0.000000e+00 : f32
    %7 = vector.broadcast %cst : f32 to vector<384x512xf32>
    %8 = arith.select %5, %7, %6 : vector<384x512xi1>, vector<384x512xf32>
    %cst_4 = arith.constant 0.000000e+00 : f32
    %cst_5 = arith.constant 1.000000e+00 : f32
    %9 = vector.broadcast %cst_4 : f32 to vector<384x512xf32>
    %10 = vector.broadcast %cst_5 : f32 to vector<384x512xf32>
    %11 = arith.select %5, %9, %10 : vector<384x512xi1>, vector<384x512xf32>
    %12 = arith.mulf %8, %8 : vector<384x512xf32>
    %c0_6 = arith.constant 0 : index
    %c0_7 = arith.constant 0 : index
    %13 = vector.load %arg4[%c0_6, %c0_7] : memref<8x512xf32, #tpu.memory_space<vmem>>, vector<8x512xf32>
    %14 = vector.shape_cast %12 : vector<384x512xf32> to vector<48x8x512xf32>
    %cst_8 = arith.constant dense<0.000000e+00> : vector<8x512xf32>
    %15 = vector.multi_reduction <add>, %14, %cst_8 [0] : vector<48x8x512xf32> to vector<8x512xf32>
    %16 = arith.addf %13, %15 : vector<8x512xf32>
    %c0_9 = arith.constant 0 : index
    %c0_10 = arith.constant 0 : index
    %17 = vector.load %arg4[%c0_9, %c0_10] : memref<8x512xf32, #tpu.memory_space<vmem>>, vector<8x512xf32>
    tpu.vector_store %arg4[%c0_9, %c0_10], %16 {strides = array<i32>} : memref<8x512xf32, #tpu.memory_space<vmem>>, vector<8x512xf32>,
    %c0_11 = arith.constant 0 : index
    %c0_12 = arith.constant 0 : index
    %18 = vector.load %arg5[%c0_11, %c0_12] : memref<8x512xf32, #tpu.memory_space<vmem>>, vector<8x512xf32>
    %19 = vector.shape_cast %11 : vector<384x512xf32> to vector<48x8x512xf32>
    %cst_13 = arith.constant dense<0.000000e+00> : vector<8x512xf32>
    %20 = vector.multi_reduction <add>, %19, %cst_13 [0] : vector<48x8x512xf32> to vector<8x512xf32>
    %21 = arith.addf %18, %20 : vector<8x512xf32>
    %c0_14 = arith.constant 0 : index
    %c0_15 = arith.constant 0 : index
    %22 = vector.load %arg5[%c0_14, %c0_15] : memref<8x512xf32, #tpu.memory_space<vmem>>, vector<8x512xf32>
    tpu.vector_store %arg5[%c0_14, %c0_15], %21 {strides = array<i32>} : memref<8x512xf32, #tpu.memory_space<vmem>>, vector<8x512xf32>,
    return
  }
  func.func @transform_0(%arg0: i32, %arg1: i32) -> (i32, i32) {
    %c1_i32 = arith.constant 1 : i32
    %0 = arith.muli %arg0, %c1_i32 : i32
    %1 = arith.addi %0, %arg1 : i32
    %c0_i32 = arith.constant 0 : i32
    %c0_i32_0 = arith.constant 0 : i32
    return %1, %c0_i32 : i32, i32
  }
  func.func @transform_1(%arg0: i32, %arg1: i32) -> (i32, i32) {
    %c1_i32 = arith.constant 1 : i32
    %0 = arith.muli %arg0, %c1_i32 : i32
    %1 = arith.addi %0, %arg1 : i32
    %c0_i32 = arith.constant 0 : i32
    %c0_i32_0 = arith.constant 0 : i32
    return %1, %c0_i32 : i32, i32
  }
  func.func @transform_2(%arg0: i32, %arg1: i32) -> (i32, i32) {
    %c0_i32 = arith.constant 0 : i32
    %c0_i32_0 = arith.constant 0 : i32
    return %arg0, %c0_i32 : i32, i32
  }
  func.func @transform_3(%arg0: i32, %arg1: i32) -> (i32, i32) {
    %c0_i32 = arith.constant 0 : i32
    %c0_i32_0 = arith.constant 0 : i32
    return %arg0, %c0_i32 : i32, i32
  }
}

</mosaic_0001>

<bundles_post_ra>
// kernel: tpu_custom_call.1
= control target key start
LH: loop header
LB: loop body
LE: loop exit
PB: predicated region body
PF: predicated region fallthrough
CT: control target
= control target key end

     0   :  { %9 = vsyncpa [#allocation3], 0  ;;  %s7450_s0 = inlined_call_operand.hbm [shape: f32[384,512], index: 0, kind: input, shape index: {}]   ;;  %s7451_s1 = inlined_call_operand.hbm [shape: f32[384,512], index: 1, kind: input, shape index: {}]   ;;  %s7452_s2 = inlined_call_operand.hbm [shape: f32[8,512], index: 2, kind: output, shape index: {0}]   ;;  %s7453_s3 = inlined_call_operand.hbm [shape: f32[8,512], index: 3, kind: output, shape index: {1}]  }
   0x1   :  { %10 = vsyncpa [#allocation6], 0 }
   0x2   :  { %11 = vsyncpa [#allocation4], 0 }
   0x3   :  { %12 = vsyncpa [#allocation9], 0  ;;  %s22_s14 = sshll.u32 %s7450_s0, 4  ;;  %s1987_s15 = smov [#allocation2]   ;;  %s23_s14 = int_to_ptr.hbm [resolvable:$true] %s22_s14 }
   0x4   :  { %s24_s16 = sshll.u32 %s1987_s15, 4  ;;  %s40_s19 = sshll.u32 %s7451_s1, 4  ;;  %s25_s16 = int_to_ptr.vmem [resolvable:$true] %s24_s16  ;;  %s41_s19 = int_to_ptr.hbm [resolvable:$true] %s40_s19 }
   0x5   :  { %s1988_s20 = smov 512   ;;  %s1989_s21 = smov 32  }
   0x6   :  { %30 = dma.hbm_to_vmem [thread:$0]  %s23_s14, 24576, %s25_s16, [#allocation3], %s1988_s20, %s1988_s20, %s1989_s21  }
   0x7   :  { %s1990_s22 = smov [#allocation5]  }
   0x8   :  { %s42_s23 = sshll.u32 %s1990_s22, 4  ;;  %s43_s23 = int_to_ptr.vmem [resolvable:$true] %s42_s23 }
   0x9   :  { %48 = dma.hbm_to_vmem [thread:$0]  %s41_s19, 24576, %s43_s23, [#allocation6], %s1988_s20, %s1988_s20, %s1989_s21  }
   0xa   :  { %1979 = dma.done.wait [#allocation3], 24576  }
   0xb   :  { %1980 = vsyncadd [#allocation3], 4294942720 }
   0xc   :  { %1981 = dma.done.wait [#allocation6], 24576  }
   0xd   :  { %1982 = vsyncadd [#allocation6], 4294942720  ;;  %v2020_v0 = vld [vmem:[#allocation2] sm:$0xff]  ;;  %v2022_v1 = vld [vmem:[#allocation2 + $0x8] sm:$0xff]  ;;  %s1992_s0 = smov [#allocation7]   ;;  %s1824_s26 = sshll.u32 %s7452_s2, 4  ;;  %s1825_s26 = int_to_ptr.hbm [resolvable:$true] %s1824_s26 }
   0xe   :  { %8198 = vst [vmem:[#allocation14_spill] sm:$0xff] %v2020_v0  ;;  %v2024_v2 = vld [vmem:[#allocation2 + $0x10] sm:$0xff]  ;;  %v2026_v3 = vld [vmem:[#allocation2 + $0x18] sm:$0xff]  ;;  %v2028_v4 = vld [vmem:[#allocation5] sm:$0xff]  ;;  %s1822_s1 = sshll.u32 %s1992_s0, 4  ;;  %s1993_s27 = smov [#allocation8]   ;;  %s1823_s1 = int_to_ptr.vmem [resolvable:$true] %s1822_s1 }
   0xf   :  { %8199 = vst [vmem:[#allocation15_spill] sm:$0xff] %v2022_v1  ;;  %v2030_v5 = vld [vmem:[#allocation5 + $0x8] sm:$0xff]  ;;  %v2032_v6 = vld [vmem:[#allocation5 + $0x10] sm:$0xff]  ;;  %v2034_v7 = vld [vmem:[#allocation5 + $0x18] sm:$0xff]  ;;  %vm7971_vm0 = vcmp.ne.f32.partialorder %v2028_v4, %v2028_v4  ;;  %s1833_s28 = sshll.u32 %s1993_s27, 4  ;;  %s1835_s4 = sshll.u32 %s7453_s3, 4  ;;  %s1834_s28 = int_to_ptr.vmem [resolvable:$true] %s1833_s28  ;;  %s1836_s4 = int_to_ptr.hbm [resolvable:$true] %s1835_s4 }
  0x10   :  { %8200 = vst [vmem:[#allocation16_spill] sm:$0xff] %v2024_v2  ;;  %v2036_v8 = vld [vmem:[#allocation2 + $0x20] sm:$0xff]  ;;  %v2038_v9 = vld [vmem:[#allocation2 + $0x28] sm:$0xff]  ;;  %v2040_v10 = vld [vmem:[#allocation2 + $0x30] sm:$0xff]  ;;  %vm7970_vm1 = vcmp.ne.f32.partialorder %v2030_v5, %v2030_v5  ;;  %vm7974_vm2 = vcmp.ne.f32.partialorder %v2032_v6, %v2032_v6  ;;  %vm7981_vm3 = vcmp.ne.f32.partialorder %v2034_v7, %v2034_v7 }
  0x11   :  { %8201 = vst [vmem:[#allocation17_spill] sm:$0xff] %v2026_v3  ;;  %v2042_v11 = vld [vmem:[#allocation2 + $0x38] sm:$0xff]  ;;  %v2044_v12 = vld [vmem:[#allocation5 + $0x20] sm:$0xff]  ;;  %v2046_v13 = vld [vmem:[#allocation5 + $0x28] sm:$0xff] }
  0x12   :  { %8202 = vst [vmem:[#allocation18_spill] sm:$0xff] %v2028_v4  ;;  %v2048_v14 = vld [vmem:[#allocation5 + $0x30] sm:$0xff]  ;;  %v2050_v15 = vld [vmem:[#allocation5 + $0x38] sm:$0xff]  ;;  %v2052_v16 = vld [vmem:[#allocation2 + $0x40] sm:$0xff]  ;;  %vm7980_vm4 = vcmp.ne.f32.partialorder %v2044_v12, %v2044_v12  ;;  %vm7979_vm5 = vcmp.ne.f32.partialorder %v2046_v13, %v2046_v13 }
  0x13   :  { %8203 = vst [vmem:[#allocation19_spill] sm:$0xff] %v2030_v5  ;;  %v2054_v17 = vld [vmem:[#allocation2 + $0x48] sm:$0xff]  ;;  %v2056_v18 = vld [vmem:[#allocation2 + $0x50] sm:$0xff]  ;;  %v2058_v19 = vld [vmem:[#allocation2 + $0x58] sm:$0xff]  ;;  %vm7982_vm6 = vcmp.ne.f32.partialorder %v2048_v14, %v2048_v14 }
  0x14   :  { %8204 = vst [vmem:[#allocation20_spill] sm:$0xff] %v2032_v6  ;;  %v2060_v20 = vld [vmem:[#allocation5 + $0x40] sm:$0xff]  ;;  %v2062_v21 = vld [vmem:[#allocation5 + $0x48] sm:$0xff]  ;;  %v2064_v22 = vld [vmem:[#allocation5 + $0x50] sm:$0xff] }
  0x15   :  { %8205 = vst [vmem:[#allocation21_spill] sm:$0xff] %v2034_v7  ;;  %v2066_v23 = vld [vmem:[#allocation5 + $0x58] sm:$0xff]  ;;  %v2068_v24 = vld [vmem:[#allocation2 + $0x60] sm:$0xff]  ;;  %v2070_v25 = vld [vmem:[#allocation2 + $0x68] sm:$0xff] }
  0x16   :  { %8206 = vst [vmem:[#allocation22_spill] sm:$0xff] %v2036_v8  ;;  %v2072_v26 = vld [vmem:[#allocation2 + $0x70] sm:$0xff]  ;;  %v2074_v27 = vld [vmem:[#allocation2 + $0x78] sm:$0xff]  ;;  %v2076_v28 = vld [vmem:[#allocation5 + $0x60] sm:$0xff] }
  0x17   :  { %8207 = vst [vmem:[#allocation23_spill] sm:$0xff] %v2038_v9  ;;  %v2078_v29 = vld [vmem:[#allocation5 + $0x68] sm:$0xff]  ;;  %v2080_v30 = vld [vmem:[#allocation5 + $0x70] sm:$0xff]  ;;  %v2082_v31 = vld [vmem:[#allocation5 + $0x78] sm:$0xff] }
  0x18   :  { %8208 = vst [vmem:[#allocation24_spill] sm:$0xff] %v2040_v10  ;;  %v2084_v32 = vld [vmem:[#allocation2 + $0x80] sm:$0xff]  ;;  %v2086_v33 = vld [vmem:[#allocation2 + $0x88] sm:$0xff]  ;;  %v2088_v34 = vld [vmem:[#allocation2 + $0x90] sm:$0xff] }
  0x19   :  { %8209 = vst [vmem:[#allocation25_spill] sm:$0xff] %v2042_v11  ;;  %v2090_v35 = vld [vmem:[#allocation2 + $0x98] sm:$0xff]  ;;  %v2092_v36 = vld [vmem:[#allocation5 + $0x80] sm:$0xff]  ;;  %v2094_v37 = vld [vmem:[#allocation5 + $0x88] sm:$0xff] }
  0x1a   :  { %8210 = vst [vmem:[#allocation26_spill] sm:$0xff] %v2044_v12  ;;  %v2096_v38 = vld [vmem:[#allocation5 + $0x90] sm:$0xff]  ;;  %v2098_v39 = vld [vmem:[#allocation5 + $0x98] sm:$0xff]  ;;  %v2100_v40 = vld [vmem:[#allocation2 + $0xa0] sm:$0xff] }
  0x1b   :  { %8211 = vst [vmem:[#allocation27_spill] sm:$0xff] %v2046_v13  ;;  %v2102_v41 = vld [vmem:[#allocation2 + $0xa8] sm:$0xff]  ;;  %v2104_v42 = vld [vmem:[#allocation2 + $0xb0] sm:$0xff]  ;;  %v2106_v43 = vld [vmem:[#allocation2 + $0xb8] sm:$0xff] }
  0x1c   :  { %8212 = vst [vmem:[#allocation28_spill] sm:$0xff] %v2048_v14  ;;  %v2108_v44 = vld [vmem:[#allocation5 + $0xa0] sm:$0xff]  ;;  %v2110_v45 = vld [vmem:[#allocation5 + $0xa8] sm:$0xff]  ;;  %v2112_v46 = vld [vmem:[#allocation5 + $0xb0] sm:$0xff] }
  0x1d   :  { %8213 = vst [vmem:[#allocation29_spill] sm:$0xff] %v2050_v15  ;;  %v2114_v47 = vld [vmem:[#allocation5 + $0xb8] sm:$0xff]  ;;  %v2124_v52 = vld [vmem:[#allocation2 + $0xc0] sm:$0xff]  ;;  %v2126_v53 = vld [vmem:[#allocation2 + $0xc8] sm:$0xff] }
  0x1e   :  { %8214 = vst [vmem:[#allocation30_spill] sm:$0xff] %v2052_v16  ;;  %v2128_v54 = vld [vmem:[#allocation2 + $0xd0] sm:$0xff]  ;;  %v2130_v55 = vld [vmem:[#allocation2 + $0xd8] sm:$0xff]  ;;  %v2132_v56 = vld [vmem:[#allocation5 + $0xc0] sm:$0xff] }
  0x1f   :  { %8215 = vst [vmem:[#allocation31_spill] sm:$0xff] %v2054_v17  ;;  %v2134_v57 = vld [vmem:[#allocation5 + $0xc8] sm:$0xff]  ;;  %v2136_v58 = vld [vmem:[#allocation5 + $0xd0] sm:$0xff]  ;;  %v2138_v59 = vld [vmem:[#allocation5 + $0xd8] sm:$0xff] }
  0x20   :  { %8216 = vst [vmem:[#allocation32_spill] sm:$0xff] %v2056_v18  ;;  %v2148_v51 = vld [vmem:[#allocation2 + $0xe0] sm:$0xff]  ;;  %v2150_v50 = vld [vmem:[#allocation2 + $0xe8] sm:$0xff]  ;;  %v2152_v49 = vld [vmem:[#allocation2 + $0xf0] sm:$0xff] }
  0x21   :  { %8217 = vst [vmem:[#allocation33_spill] sm:$0xff] %v2058_v19  ;;  %v2154_v48 = vld [vmem:[#allocation2 + $0xf8] sm:$0xff]  ;;  %v2156_v3 = vld [vmem:[#allocation5 + $0xe0] sm:$0xff]  ;;  %v2158_v60 = vld [vmem:[#allocation5 + $0xe8] sm:$0xff] }
  0x22   :  { %8218 = vst [vmem:[#allocation34_spill] sm:$0xff] %v2060_v20  ;;  %v2160_v8 = vld [vmem:[#allocation5 + $0xf0] sm:$0xff]  ;;  %v2162_v61 = vld [vmem:[#allocation5 + $0xf8] sm:$0xff]  ;;  %v2172_v9 = vld [vmem:[#allocation2 + $0x100] sm:$0xff] }
  0x23   :  { %8219 = vst [vmem:[#allocation35_spill] sm:$0xff] %v2062_v21  ;;  %v2174_v2 = vld [vmem:[#allocation2 + $0x108] sm:$0xff]  ;;  %v2176_v1 = vld [vmem:[#allocation2 + $0x110] sm:$0xff]  ;;  %v2178_v0 = vld [vmem:[#allocation2 + $0x118] sm:$0xff] }
  0x24   :  { %8220 = vst [vmem:[#allocation36_spill] sm:$0xff] %v2064_v22  ;;  %v2180_v15 = vld [vmem:[#allocation5 + $0x100] sm:$0xff]  ;;  %v2182_v62 = vld [vmem:[#allocation5 + $0x108] sm:$0xff]  ;;  %v2184_v16 = vld [vmem:[#allocation5 + $0x110] sm:$0xff] }
  0x25   :  { %8221 = vst [vmem:[#allocation37_spill] sm:$0xff] %v2066_v23  ;;  %v2186_v63 = vld [vmem:[#allocation5 + $0x118] sm:$0xff]  ;;  %v2196_v17 = vld [vmem:[#allocation2 + $0x120] sm:$0xff]  ;;  %v2198_v23 = vld [vmem:[#allocation2 + $0x128] sm:$0xff] }
  0x26   :  { %8222 = vst [vmem:[#allocation38_spill] sm:$0xff] %v2068_v24  ;;  %v2200_v22 = vld [vmem:[#allocation2 + $0x130] sm:$0xff]  ;;  %v2202_v21 = vld [vmem:[#allocation2 + $0x138] sm:$0xff]  ;;  %v2204_v20 = vld [vmem:[#allocation5 + $0x120] sm:$0xff] }
  0x27   :  { %8223 = vst [vmem:[#allocation39_spill] sm:$0xff] %v2070_v25  ;;  %v2206_v11 = vld [vmem:[#allocation5 + $0x128] sm:$0xff]  ;;  %v2208_v24 = vld [vmem:[#allocation5 + $0x130] sm:$0xff]  ;;  %v2210_v10 = vld [vmem:[#allocation5 + $0x138] sm:$0xff] }
  0x28   :  { %8224 = vst [vmem:[#allocation40_spill] sm:$0xff] %v2072_v26  ;;  %v2220_v25 = vld [vmem:[#allocation2 + $0x140] sm:$0xff]  ;;  %v2230_v19 = vld [vmem:[#allocation5 + $0x148] sm:$0xff]  ;;  %v2234_v18 = vld [vmem:[#allocation5 + $0x158] sm:$0xff] }
  0x29   :  { %8225 = vst [vmem:[#allocation41_spill] sm:$0xff] %v2074_v27  ;;  %v2254_v27 = vld [vmem:[#allocation5 + $0x168] sm:$0xff]  ;;  %v2258_v26 = vld [vmem:[#allocation5 + $0x178] sm:$0xff] }
  0x2a   :  { %8226 = vst [vmem:[#allocation42_spill] sm:$0xff] %v2076_v28  ;;  %v2228_v28 = vld [vmem:[#allocation5 + $0x140] sm:$0xff] }
  0x2b   :  { %8227 = vst [vmem:[#allocation43_spill] sm:$0xff] %v2078_v29  ;;  %v2226_v29 = vld [vmem:[#allocation2 + $0x158] sm:$0xff] }
  0x2c   :  { %8228 = vst [vmem:[#allocation44_spill] sm:$0xff] %v2080_v30  ;;  %v2224_v30 = vld [vmem:[#allocation2 + $0x150] sm:$0xff] }
  0x2d   :  { %8229 = vst [vmem:[#allocation45_spill] sm:$0xff] %v2082_v31  ;;  %v2222_v31 = vld [vmem:[#allocation2 + $0x148] sm:$0xff] }
  0x2e   :  { %8230 = vst [vmem:[#allocation46_spill] sm:$0xff] %v2084_v32  ;;  %v2252_v32 = vld [vmem:[#allocation5 + $0x160] sm:$0xff] }
  0x2f   :  { %8231 = vst [vmem:[#allocation47_spill] sm:$0xff] %v2086_v33  ;;  %v2250_v33 = vld [vmem:[#allocation2 + $0x178] sm:$0xff] }
  0x30   :  { %8232 = vst [vmem:[#allocation48_spill] sm:$0xff] %v2088_v34  ;;  %v2246_v34 = vld [vmem:[#allocation2 + $0x168] sm:$0xff] }
  0x31   :  { %8233 = vst [vmem:[#allocation49_spill] sm:$0xff] %v2090_v35  ;;  %v2282_v35 = vld [vmem:[#allocation5 + $0x198] sm:$0xff] }
  0x32   :  { %8234 = vst [vmem:[#allocation50_spill] sm:$0xff] %v2092_v36  ;;  %v2232_v36 = vld [vmem:[#allocation5 + $0x150] sm:$0xff] }
  0x33   :  { %8235 = vst [vmem:[#allocation51_spill] sm:$0xff] %v2094_v37  ;;  %v2248_v37 = vld [vmem:[#allocation2 + $0x170] sm:$0xff] }
  0x34   :  { %8236 = vst [vmem:[#allocation52_spill] sm:$0xff] %v2096_v38  ;;  %v2244_v38 = vld [vmem:[#allocation2 + $0x160] sm:$0xff] }
  0x35   :  { %8237 = vst [vmem:[#allocation53_spill] sm:$0xff] %v2098_v39  ;;  %v2278_v39 = vld [vmem:[#allocation5 + $0x188] sm:$0xff] }
  0x36   :  { %8238 = vst [vmem:[#allocation54_spill] sm:$0xff] %v2100_v40  ;;  %v2276_v40 = vld [vmem:[#allocation5 + $0x180] sm:$0xff] }
  0x37   :  { %8239 = vst [vmem:[#allocation55_spill] sm:$0xff] %v2102_v41  ;;  %v2274_v41 = vld [vmem:[#allocation2 + $0x198] sm:$0xff] }
  0x38   :  { %8240 = vst [vmem:[#allocation56_spill] sm:$0xff] %v2104_v42  ;;  %v2270_v42 = vld [vmem:[#allocation2 + $0x188] sm:$0xff] }
  0x39   :  { %8241 = vst [vmem:[#allocation57_spill] sm:$0xff] %v2106_v43  ;;  %v2306_v43 = vld [vmem:[#allocation5 + $0x1b8] sm:$0xff] }
  0x3a   :  { %8242 = vst [vmem:[#allocation58_spill] sm:$0xff] %v2108_v44  ;;  %v2256_v44 = vld [vmem:[#allocation5 + $0x170] sm:$0xff] }
  0x3b   :  { %8243 = vst [vmem:[#allocation59_spill] sm:$0xff] %v2110_v45  ;;  %v2272_v45 = vld [vmem:[#allocation2 + $0x190] sm:$0xff] }
  0x3c   :  { %8244 = vst [vmem:[#allocation60_spill] sm:$0xff] %v2112_v46  ;;  %v2268_v46 = vld [vmem:[#allocation2 + $0x180] sm:$0xff] }
  0x3d   :  { %8245 = vst [vmem:[#allocation61_spill] sm:$0xff] %v2114_v47  ;;  %v2302_v47 = vld [vmem:[#allocation5 + $0x1a8] sm:$0xff] }
  0x3e   :  { %8246 = vst [vmem:[#allocation62_spill] sm:$0xff] %v2124_v52  ;;  %v2300_v52 = vld [vmem:[#allocation5 + $0x1a0] sm:$0xff] }
  0x3f   :  { %8247 = vst [vmem:[#allocation63_spill] sm:$0xff] %v2126_v53  ;;  %v2298_v53 = vld [vmem:[#allocation2 + $0x1b8] sm:$0xff] }
  0x40   :  { %8248 = vst [vmem:[#allocation64_spill] sm:$0xff] %v2128_v54  ;;  %v2294_v54 = vld [vmem:[#allocation2 + $0x1a8] sm:$0xff] }
  0x41   :  { %8249 = vst [vmem:[#allocation65_spill] sm:$0xff] %v2130_v55  ;;  %v2330_v55 = vld [vmem:[#allocation5 + $0x1d8] sm:$0xff] }
  0x42   :  { %8250 = vst [vmem:[#allocation66_spill] sm:$0xff] %v2132_v56  ;;  %v2280_v56 = vld [vmem:[#allocation5 + $0x190] sm:$0xff] }
  0x43   :  { %8251 = vst [vmem:[#allocation67_spill] sm:$0xff] %v2134_v57  ;;  %v2296_v57 = vld [vmem:[#allocation2 + $0x1b0] sm:$0xff] }
  0x44   :  { %8252 = vst [vmem:[#allocation68_spill] sm:$0xff] %v2136_v58  ;;  %v2292_v58 = vld [vmem:[#allocation2 + $0x1a0] sm:$0xff] }
  0x45   :  { %8253 = vst [vmem:[#allocation69_spill] sm:$0xff] %v2138_v59  ;;  %v2326_v59 = vld [vmem:[#allocation5 + $0x1c8] sm:$0xff] }
  0x46   :  { %8254 = vst [vmem:[#allocation70_spill] sm:$0xff] %v2148_v51  ;;  %v2324_v51 = vld [vmem:[#allocation5 + $0x1c0] sm:$0xff] }
  0x47   :  { %8255 = vst [vmem:[#allocation71_spill] sm:$0xff] %v2150_v50  ;;  %v2322_v50 = vld [vmem:[#allocation2 + $0x1d8] sm:$0xff] }
  0x48   :  { %8256 = vst [vmem:[#allocation72_spill] sm:$0xff] %v2152_v49  ;;  %v2318_v49 = vld [vmem:[#allocation2 + $0x1c8] sm:$0xff] }
  0x49   :  { %8257 = vst [vmem:[#allocation73_spill] sm:$0xff] %v2154_v48  ;;  %v2354_v48 = vld [vmem:[#allocation5 + $0x1f8] sm:$0xff] }
  0x4a   :  { %8258 = vst [vmem:[#allocation74_spill] sm:$0xff] %v2156_v3  ;;  %v2304_v3 = vld [vmem:[#allocation5 + $0x1b0] sm:$0xff] }
  0x4b   :  { %8259 = vst [vmem:[#allocation75_spill] sm:$0xff] %v2158_v60  ;;  %v2320_v60 = vld [vmem:[#allocation2 + $0x1d0] sm:$0xff] }
  0x4c   :  { %8260 = vst [vmem:[#allocation76_spill] sm:$0xff] %v2160_v8  ;;  %v2316_v8 = vld [vmem:[#allocation2 + $0x1c0] sm:$0xff] }
  0x4d   :  { %8261 = vst [vmem:[#allocation77_spill] sm:$0xff] %v2162_v61  ;;  %v2350_v61 = vld [vmem:[#allocation5 + $0x1e8] sm:$0xff] }
  0x4e   :  { %8262 = vst [vmem:[#allocation78_spill] sm:$0xff] %v2172_v9  ;;  %v2348_v9 = vld [vmem:[#allocation5 + $0x1e0] sm:$0xff] }
  0x4f   :  { %8263 = vst [vmem:[#allocation79_spill] sm:$0xff] %v2174_v2  ;;  %v2346_v2 = vld [vmem:[#allocation2 + $0x1f8] sm:$0xff] }
  0x50   :  { %8264 = vst [vmem:[#allocation80_spill] sm:$0xff] %v2176_v1  ;;  %v2342_v1 = vld [vmem:[#allocation2 + $0x1e8] sm:$0xff] }
  0x51   :  { %8265 = vst [vmem:[#allocation81_spill] sm:$0xff] %v2178_v0  ;;  %v2378_v0 = vld [vmem:[#allocation5 + $0x218] sm:$0xff] }
  0x52   :  { %8266 = vst [vmem:[#allocation82_spill] sm:$0xff] %v2180_v15  ;;  %v2328_v15 = vld [vmem:[#allocation5 + $0x1d0] sm:$0xff] }
  0x53   :  { %8267 = vst [vmem:[#allocation83_spill] sm:$0xff] %v2182_v62  ;;  %v2344_v62 = vld [vmem:[#allocation2 + $0x1f0] sm:$0xff] }
  0x54   :  { %8268 = vst [vmem:[#allocation84_spill] sm:$0xff] %v2184_v16  ;;  %v2340_v16 = vld [vmem:[#allocation2 + $0x1e0] sm:$0xff] }
  0x55   :  { %8269 = vst [vmem:[#allocation85_spill] sm:$0xff] %v2186_v63  ;;  %v2374_v63 = vld [vmem:[#allocation5 + $0x208] sm:$0xff] }
  0x56   :  { %8270 = vst [vmem:[#allocation86_spill] sm:$0xff] %v2196_v17  ;;  %v2372_v17 = vld [vmem:[#allocation5 + $0x200] sm:$0xff] }
  0x57   :  { %8271 = vst [vmem:[#allocation87_spill] sm:$0xff] %v2198_v23  ;;  %v2370_v23 = vld [vmem:[#allocation2 + $0x218] sm:$0xff] }
  0x58   :  { %8272 = vst [vmem:[#allocation88_spill] sm:$0xff] %v2200_v22  ;;  %v2366_v22 = vld [vmem:[#allocation2 + $0x208] sm:$0xff] }
  0x59   :  { %8273 = vst [vmem:[#allocation89_spill] sm:$0xff] %v2202_v21  ;;  %v2402_v21 = vld [vmem:[#allocation5 + $0x238] sm:$0xff] }
  0x5a   :  { %8274 = vst [vmem:[#allocation90_spill] sm:$0xff] %v2204_v20  ;;  %v2352_v20 = vld [vmem:[#allocation5 + $0x1f0] sm:$0xff] }
  0x5b   :  { %8275 = vst [vmem:[#allocation91_spill] sm:$0xff] %v2206_v11  ;;  %v2368_v11 = vld [vmem:[#allocation2 + $0x210] sm:$0xff] }
  0x5c   :  { %8276 = vst [vmem:[#allocation92_spill] sm:$0xff] %v2208_v24  ;;  %v2364_v24 = vld [vmem:[#allocation2 + $0x200] sm:$0xff] }
  0x5d   :  { %8277 = vst [vmem:[#allocation93_spill] sm:$0xff] %v2210_v10  ;;  %v2398_v10 = vld [vmem:[#allocation5 + $0x228] sm:$0xff] }
  0x5e   :  { %8278 = vst [vmem:[#allocation94_spill] sm:$0xff] %v2220_v25  ;;  %v2376_v25 = vld [vmem:[#allocation5 + $0x210] sm:$0xff] }
  0x5f   :  { %8279 = vst [vmem:[#allocation95_spill] sm:$0xff] %v2222_v31  ;;  %v2388_v31 = vld [vmem:[#allocation2 + $0x220] sm:$0xff] }
  0x60   :  { %8280 = vst [vmem:[#allocation96_spill] sm:$0xff] %v2224_v30  ;;  %v2426_v30 = vld [vmem:[#allocation5 + $0x258] sm:$0xff] }
  0x61   :  { %8281 = vst [vmem:[#allocation97_spill] sm:$0xff] %v2226_v29  ;;  %v2422_v29 = vld [vmem:[#allocation5 + $0x248] sm:$0xff] }
  0x62   :  { %8282 = vst [vmem:[#allocation98_spill] sm:$0xff] %v2228_v28  ;;  %v2396_v28 = vld [vmem:[#allocation5 + $0x220] sm:$0xff] }
  0x63   :  { %8283 = vst [vmem:[#allocation99_spill] sm:$0xff] %v2230_v19  ;;  %v2394_v19 = vld [vmem:[#allocation2 + $0x238] sm:$0xff] }
  0x64   :  { %8284 = vst [vmem:[#allocation100_spill] sm:$0xff] %v2232_v36  ;;  %v2392_v36 = vld [vmem:[#allocation2 + $0x230] sm:$0xff] }
  0x65   :  { %8285 = vst [vmem:[#allocation101_spill] sm:$0xff] %v2234_v18  ;;  %v2390_v18 = vld [vmem:[#allocation2 + $0x228] sm:$0xff] }
  0x66   :  { %8286 = vst [vmem:[#allocation102_spill] sm:$0xff] %v2244_v38  ;;  %v2400_v38 = vld [vmem:[#allocation5 + $0x230] sm:$0xff] }
  0x67   :  { %8287 = vst [vmem:[#allocation103_spill] sm:$0xff] %v2246_v34  ;;  %v2412_v34 = vld [vmem:[#allocation2 + $0x240] sm:$0xff] }
  0x68   :  { %8288 = vst [vmem:[#allocation104_spill] sm:$0xff] %v2248_v37  ;;  %v2450_v37 = vld [vmem:[#allocation5 + $0x278] sm:$0xff] }
  0x69   :  { %8289 = vst [vmem:[#allocation105_spill] sm:$0xff] %v2250_v33  ;;  %v2446_v33 = vld [vmem:[#allocation5 + $0x268] sm:$0xff] }
  0x6a   :  { %8290 = vst [vmem:[#allocation106_spill] sm:$0xff] %v2252_v32  ;;  %v2420_v32 = vld [vmem:[#allocation5 + $0x240] sm:$0xff] }
  0x6b   :  { %8291 = vst [vmem:[#allocation107_spill] sm:$0xff] %v2254_v27  ;;  %v2418_v27 = vld [vmem:[#allocation2 + $0x258] sm:$0xff] }
  0x6c   :  { %8292 = vst [vmem:[#allocation108_spill] sm:$0xff] %v2256_v44  ;;  %v2416_v44 = vld [vmem:[#allocation2 + $0x250] sm:$0xff] }
  0x6d   :  { %8293 = vst [vmem:[#allocation109_spill] sm:$0xff] %v2258_v26  ;;  %v2414_v26 = vld [vmem:[#allocation2 + $0x248] sm:$0xff] }
  0x6e   :  { %8294 = vst [vmem:[#allocation110_spill] sm:$0xff] %v2268_v46  ;;  %v2424_v46 = vld [vmem:[#allocation5 + $0x250] sm:$0xff] }
  0x6f   :  { %8295 = vst [vmem:[#allocation111_spill] sm:$0xff] %v2270_v42  ;;  %v2436_v42 = vld [vmem:[#allocation2 + $0x260] sm:$0xff] }
  0x70   :  { %8296 = vst [vmem:[#allocation112_spill] sm:$0xff] %v2272_v45  ;;  %v2474_v45 = vld [vmem:[#allocation5 + $0x298] sm:$0xff] }
  0x71   :  { %8297 = vst [vmem:[#allocation113_spill] sm:$0xff] %v2274_v41  ;;  %v2470_v41 = vld [vmem:[#allocation5 + $0x288] sm:$0xff] }
  0x72   :  { %8298 = vst [vmem:[#allocation114_spill] sm:$0xff] %v2276_v40  ;;  %v2444_v40 = vld [vmem:[#allocation5 + $0x260] sm:$0xff] }
  0x73   :  { %8299 = vst [vmem:[#allocation115_spill] sm:$0xff] %v2278_v39  ;;  %v2442_v39 = vld [vmem:[#allocation2 + $0x278] sm:$0xff] }
  0x74   :  { %8300 = vst [vmem:[#allocation116_spill] sm:$0xff] %v2280_v56  ;;  %v2440_v56 = vld [vmem:[#allocation2 + $0x270] sm:$0xff] }
  0x75   :  { %8301 = vst [vmem:[#allocation117_spill] sm:$0xff] %v2282_v35  ;;  %v2438_v35 = vld [vmem:[#allocation2 + $0x268] sm:$0xff] }
  0x76   :  { %8302 = vst [vmem:[#allocation118_spill] sm:$0xff] %v2292_v58  ;;  %v2448_v58 = vld [vmem:[#allocation5 + $0x270] sm:$0xff] }
  0x77   :  { %8303 = vst [vmem:[#allocation119_spill] sm:$0xff] %v2294_v54  ;;  %v2460_v54 = vld [vmem:[#allocation2 + $0x280] sm:$0xff] }
  0x78   :  { %8304 = vst [vmem:[#allocation120_spill] sm:$0xff] %v2296_v57  ;;  %v2498_v57 = vld [vmem:[#allocation5 + $0x2b8] sm:$0xff] }
  0x79   :  { %8305 = vst [vmem:[#allocation121_spill] sm:$0xff] %v2298_v53  ;;  %v2494_v53 = vld [vmem:[#allocation5 + $0x2a8] sm:$0xff] }
  0x7a   :  { %8306 = vst [vmem:[#allocation122_spill] sm:$0xff] %v2300_v52  ;;  %v2468_v52 = vld [vmem:[#allocation5 + $0x280] sm:$0xff] }
  0x7b   :  { %8307 = vst [vmem:[#allocation123_spill] sm:$0xff] %v2302_v47  ;;  %v2466_v47 = vld [vmem:[#allocation2 + $0x298] sm:$0xff] }
  0x7c   :  { %8308 = vst [vmem:[#allocation124_spill] sm:$0xff] %v2304_v3  ;;  %v2464_v3 = vld [vmem:[#allocation2 + $0x290] sm:$0xff] }
  0x7d   :  { %8309 = vst [vmem:[#allocation125_spill] sm:$0xff] %v2306_v43  ;;  %v2462_v43 = vld [vmem:[#allocation2 + $0x288] sm:$0xff] }
  0x7e   :  { %8310 = vst [vmem:[#allocation126_spill] sm:$0xff] %v2316_v8  ;;  %v2472_v8 = vld [vmem:[#allocation5 + $0x290] sm:$0xff] }
  0x7f   :  { %8311 = vst [vmem:[#allocation127_spill] sm:$0xff] %v2318_v49  ;;  %v2484_v49 = vld [vmem:[#allocation2 + $0x2a0] sm:$0xff] }
  0x80   :  { %8312 = vst [vmem:[#allocation128_spill] sm:$0xff] %v2320_v60  ;;  %v2522_v60 = vld [vmem:[#allocation5 + $0x2d8] sm:$0xff] }
  0x81   :  { %8313 = vst [vmem:[#allocation129_spill] sm:$0xff] %v2322_v50  ;;  %v2518_v50 = vld [vmem:[#allocation5 + $0x2c8] sm:$0xff] }
  0x82   :  { %8314 = vst [vmem:[#allocation130_spill] sm:$0xff] %v2324_v51  ;;  %v2492_v51 = vld [vmem:[#allocation5 + $0x2a0] sm:$0xff] }
  0x83   :  { %8315 = vst [vmem:[#allocation131_spill] sm:$0xff] %v2326_v59  ;;  %v2490_v59 = vld [vmem:[#allocation2 + $0x2b8] sm:$0xff] }
  0x84   :  { %8316 = vst [vmem:[#allocation132_spill] sm:$0xff] %v2328_v15  ;;  %v2488_v15 = vld [vmem:[#allocation2 + $0x2b0] sm:$0xff] }
  0x85   :  { %8317 = vst [vmem:[#allocation133_spill] sm:$0xff] %v2330_v55  ;;  %v2486_v55 = vld [vmem:[#allocation2 + $0x2a8] sm:$0xff] }
  0x86   :  { %8318 = vst [vmem:[#allocation134_spill] sm:$0xff] %v2340_v16  ;;  %v2496_v16 = vld [vmem:[#allocation5 + $0x2b0] sm:$0xff] }
  0x87   :  { %8319 = vst [vmem:[#allocation135_spill] sm:$0xff] %v2342_v1  ;;  %v2508_v1 = vld [vmem:[#allocation2 + $0x2c0] sm:$0xff] }
  0x88   :  { %8320 = vst [vmem:[#allocation136_spill] sm:$0xff] %v2344_v62  ;;  %v2546_v62 = vld [vmem:[#allocation5 + $0x2f8] sm:$0xff] }
  0x89   :  { %8321 = vst [vmem:[#allocation137_spill] sm:$0xff] %v2346_v2  ;;  %v2542_v2 = vld [vmem:[#allocation5 + $0x2e8] sm:$0xff] }
  0x8a   :  { %8322 = vst [vmem:[#allocation138_spill] sm:$0xff] %v2348_v9  ;;  %v2516_v9 = vld [vmem:[#allocation5 + $0x2c0] sm:$0xff] }
  0x8b   :  { %8323 = vst [vmem:[#allocation139_spill] sm:$0xff] %v2350_v61  ;;  %v2514_v61 = vld [vmem:[#allocation2 + $0x2d8] sm:$0xff] }
  0x8c   :  { %8324 = vst [vmem:[#allocation140_spill] sm:$0xff] %v2352_v20  ;;  %v2512_v20 = vld [vmem:[#allocation2 + $0x2d0] sm:$0xff] }
  0x8d   :  { %8325 = vst [vmem:[#allocation141_spill] sm:$0xff] %v2354_v48  ;;  %v2510_v48 = vld [vmem:[#allocation2 + $0x2c8] sm:$0xff] }
  0x8e   :  { %8326 = vst [vmem:[#allocation142_spill] sm:$0xff] %v2364_v24  ;;  %v2520_v24 = vld [vmem:[#allocation5 + $0x2d0] sm:$0xff] }
  0x8f   :  { %8327 = vst [vmem:[#allocation143_spill] sm:$0xff] %v2366_v22  ;;  %v2532_v22 = vld [vmem:[#allocation2 + $0x2e0] sm:$0xff] }
  0x90   :  { %8328 = vst [vmem:[#allocation144_spill] sm:$0xff] %v2368_v11  ;;  %v2570_v11 = vld [vmem:[#allocation5 + $0x318] sm:$0xff] }
  0x91   :  { %8329 = vst [vmem:[#allocation145_spill] sm:$0xff] %v2370_v23  ;;  %v2566_v23 = vld [vmem:[#allocation5 + $0x308] sm:$0xff] }
  0x92   :  { %8330 = vst [vmem:[#allocation146_spill] sm:$0xff] %v2372_v17  ;;  %v2540_v17 = vld [vmem:[#allocation5 + $0x2e0] sm:$0xff] }
  0x93   :  { %8331 = vst [vmem:[#allocation147_spill] sm:$0xff] %v2374_v63  ;;  %v2538_v63 = vld [vmem:[#allocation2 + $0x2f8] sm:$0xff] }
  0x94   :  { %8332 = vst [vmem:[#allocation148_spill] sm:$0xff] %v2376_v25  ;;  %v2536_v25 = vld [vmem:[#allocation2 + $0x2f0] sm:$0xff] }
  0x95   :  { %8333 = vst [vmem:[#allocation149_spill] sm:$0xff] %v2378_v0  ;;  %v2534_v0 = vld [vmem:[#allocation2 + $0x2e8] sm:$0xff] }
  0x96   :  { %8334 = vst [vmem:[#allocation150_spill] sm:$0xff] %v2388_v31  ;;  %v2544_v31 = vld [vmem:[#allocation5 + $0x2f0] sm:$0xff] }
  0x97   :  { %8335 = vst [vmem:[#allocation151_spill] sm:$0xff] %v2390_v18  ;;  %v2556_v18 = vld [vmem:[#allocation2 + $0x300] sm:$0xff] }
  0x98   :  { %8336 = vst [vmem:[#allocation152_spill] sm:$0xff] %v2392_v36  ;;  %v2594_v36 = vld [vmem:[#allocation5 + $0x338] sm:$0xff] }
  0x99   :  { %8337 = vst [vmem:[#allocation153_spill] sm:$0xff] %v2394_v19  ;;  %v2590_v19 = vld [vmem:[#allocation5 + $0x328] sm:$0xff] }
  0x9a   :  { %8338 = vst [vmem:[#allocation154_spill] sm:$0xff] %v2396_v28  ;;  %v2564_v28 = vld [vmem:[#allocation5 + $0x300] sm:$0xff] }
  0x9b   :  { %8339 = vst [vmem:[#allocation155_spill] sm:$0xff] %v2398_v10  ;;  %v2562_v10 = vld [vmem:[#allocation2 + $0x318] sm:$0xff] }
  0x9c   :  { %8340 = vst [vmem:[#allocation156_spill] sm:$0xff] %v2400_v38  ;;  %v2560_v38 = vld [vmem:[#allocation2 + $0x310] sm:$0xff] }
  0x9d   :  { %8341 = vst [vmem:[#allocation157_spill] sm:$0xff] %v2402_v21  ;;  %v2558_v21 = vld [vmem:[#allocation2 + $0x308] sm:$0xff] }
  0x9e   :  { %8342 = vst [vmem:[#allocation158_spill] sm:$0xff] %v2412_v34  ;;  %v2568_v34 = vld [vmem:[#allocation5 + $0x310] sm:$0xff] }
  0x9f   :  { %8343 = vst [vmem:[#allocation159_spill] sm:$0xff] %v2414_v26  ;;  %v2580_v26 = vld [vmem:[#allocation2 + $0x320] sm:$0xff] }
  0xa0   :  { %8344 = vst [vmem:[#allocation160_spill] sm:$0xff] %v2416_v44  ;;  %v2618_v44 = vld [vmem:[#allocation5 + $0x358] sm:$0xff] }
  0xa1   :  { %8345 = vst [vmem:[#allocation161_spill] sm:$0xff] %v2418_v27  ;;  %v2614_v27 = vld [vmem:[#allocation5 + $0x348] sm:$0xff] }
  0xa2   :  { %8346 = vst [vmem:[#allocation162_spill] sm:$0xff] %v2420_v32  ;;  %v2588_v32 = vld [vmem:[#allocation5 + $0x320] sm:$0xff] }
  0xa3   :  { %8347 = vst [vmem:[#allocation163_spill] sm:$0xff] %v2422_v29  ;;  %v2586_v29 = vld [vmem:[#allocation2 + $0x338] sm:$0xff] }
  0xa4   :  { %8348 = vst [vmem:[#allocation164_spill] sm:$0xff] %v2424_v46  ;;  %v2584_v46 = vld [vmem:[#allocation2 + $0x330] sm:$0xff] }
  0xa5   :  { %8349 = vst [vmem:[#allocation165_spill] sm:$0xff] %v2426_v30  ;;  %v2582_v30 = vld [vmem:[#allocation2 + $0x328] sm:$0xff] }
  0xa6   :  { %8350 = vst [vmem:[#allocation166_spill] sm:$0xff] %v2436_v42  ;;  %v2592_v42 = vld [vmem:[#allocation5 + $0x330] sm:$0xff] }
  0xa7   :  { %8351 = vst [vmem:[#allocation167_spill] sm:$0xff] %v2438_v35  ;;  %v2604_v35 = vld [vmem:[#allocation2 + $0x340] sm:$0xff] }
  0xa8   :  { %8352 = vst [vmem:[#allocation168_spill] sm:$0xff] %v2440_v56  ;;  %v2642_v56 = vld [vmem:[#allocation5 + $0x378] sm:$0xff] }
  0xa9   :  { %8353 = vst [vmem:[#allocation169_spill] sm:$0xff] %v2442_v39  ;;  %v2638_v39 = vld [vmem:[#allocation5 + $0x368] sm:$0xff] }
  0xaa   :  { %8354 = vst [vmem:[#allocation170_spill] sm:$0xff] %v2444_v40  ;;  %v2612_v40 = vld [vmem:[#allocation5 + $0x340] sm:$0xff] }
  0xab   :  { %8355 = vst [vmem:[#allocation171_spill] sm:$0xff] %v2446_v33  ;;  %v2610_v33 = vld [vmem:[#allocation2 + $0x358] sm:$0xff] }
  0xac   :  { %8356 = vst [vmem:[#allocation172_spill] sm:$0xff] %v2448_v58  ;;  %v2608_v58 = vld [vmem:[#allocation2 + $0x350] sm:$0xff] }
  0xad   :  { %8357 = vst [vmem:[#allocation173_spill] sm:$0xff] %v2450_v37  ;;  %v2606_v37 = vld [vmem:[#allocation2 + $0x348] sm:$0xff] }
  0xae   :  { %8358 = vst [vmem:[#allocation174_spill] sm:$0xff] %v2460_v54  ;;  %v2616_v54 = vld [vmem:[#allocation5 + $0x350] sm:$0xff] }
  0xaf   :  { %8359 = vst [vmem:[#allocation175_spill] sm:$0xff] %v2462_v43  ;;  %v2628_v43 = vld [vmem:[#allocation2 + $0x360] sm:$0xff] }
  0xb0   :  { %8360 = vst [vmem:[#allocation176_spill] sm:$0xff] %v2464_v3  ;;  %v2666_v3 = vld [vmem:[#allocation5 + $0x398] sm:$0xff] }
  0xb1   :  { %8361 = vst [vmem:[#allocation177_spill] sm:$0xff] %v2466_v47  ;;  %v2662_v47 = vld [vmem:[#allocation5 + $0x388] sm:$0xff] }
  0xb2   :  { %8362 = vst [vmem:[#allocation178_spill] sm:$0xff] %v2468_v52  ;;  %v2636_v52 = vld [vmem:[#allocation5 + $0x360] sm:$0xff] }
  0xb3   :  { %8363 = vst [vmem:[#allocation179_spill] sm:$0xff] %v2470_v41  ;;  %v2634_v41 = vld [vmem:[#allocation2 + $0x378] sm:$0xff] }
  0xb4   :  { %8364 = vst [vmem:[#allocation180_spill] sm:$0xff] %v2472_v8  ;;  %v2632_v8 = vld [vmem:[#allocation2 + $0x370] sm:$0xff] }
  0xb5   :  { %8365 = vst [vmem:[#allocation181_spill] sm:$0xff] %v2474_v45  ;;  %v2630_v45 = vld [vmem:[#allocation2 + $0x368] sm:$0xff] }
  0xb6   :  { %8366 = vst [vmem:[#allocation182_spill] sm:$0xff] %v2484_v49  ;;  %v2640_v49 = vld [vmem:[#allocation5 + $0x370] sm:$0xff] }
  0xb7   :  { %8367 = vst [vmem:[#allocation183_spill] sm:$0xff] %v2486_v55  ;;  %v2652_v55 = vld [vmem:[#allocation2 + $0x380] sm:$0xff] }
  0xb8   :  { %8368 = vst [vmem:[#allocation184_spill] sm:$0xff] %v2488_v15  ;;  %v2690_v15 = vld [vmem:[#allocation5 + $0x3b8] sm:$0xff] }
  0xb9   :  { %8369 = vst [vmem:[#allocation185_spill] sm:$0xff] %v2490_v59  ;;  %v2686_v59 = vld [vmem:[#allocation5 + $0x3a8] sm:$0xff] }
  0xba   :  { %8370 = vst [vmem:[#allocation186_spill] sm:$0xff] %v2492_v51  ;;  %v2660_v51 = vld [vmem:[#allocation5 + $0x380] sm:$0xff] }
  0xbb   :  { %8371 = vst [vmem:[#allocation187_spill] sm:$0xff] %v2494_v53  ;;  %v2658_v53 = vld [vmem:[#allocation2 + $0x398] sm:$0xff] }
  0xbc   :  { %8372 = vst [vmem:[#allocation188_spill] sm:$0xff] %v2496_v16  ;;  %v2656_v16 = vld [vmem:[#allocation2 + $0x390] sm:$0xff] }
  0xbd   :  { %8373 = vst [vmem:[#allocation189_spill] sm:$0xff] %v2498_v57  ;;  %v2654_v57 = vld [vmem:[#allocation2 + $0x388] sm:$0xff] }
  0xbe   :  { %8374 = vst [vmem:[#allocation190_spill] sm:$0xff] %v2508_v1  ;;  %v2664_v1 = vld [vmem:[#allocation5 + $0x390] sm:$0xff] }
  0xbf   :  { %8375 = vst [vmem:[#allocation191_spill] sm:$0xff] %v2510_v48  ;;  %v2676_v48 = vld [vmem:[#allocation2 + $0x3a0] sm:$0xff] }
  0xc0   :  { %8376 = vst [vmem:[#allocation192_spill] sm:$0xff] %v2512_v20  ;;  %v2714_v20 = vld [vmem:[#allocation5 + $0x3d8] sm:$0xff] }
  0xc1   :  { %8377 = vst [vmem:[#allocation193_spill] sm:$0xff] %v2514_v61  ;;  %v2710_v61 = vld [vmem:[#allocation5 + $0x3c8] sm:$0xff] }
  0xc2   :  { %8378 = vst [vmem:[#allocation194_spill] sm:$0xff] %v2516_v9  ;;  %v2684_v9 = vld [vmem:[#allocation5 + $0x3a0] sm:$0xff] }
  0xc3   :  { %8379 = vst [vmem:[#allocation195_spill] sm:$0xff] %v2518_v50  ;;  %v2682_v50 = vld [vmem:[#allocation2 + $0x3b8] sm:$0xff] }
  0xc4   :  { %8380 = vst [vmem:[#allocation196_spill] sm:$0xff] %v2520_v24  ;;  %v2680_v24 = vld [vmem:[#allocation2 + $0x3b0] sm:$0xff] }
  0xc5   :  { %8381 = vst [vmem:[#allocation197_spill] sm:$0xff] %v2522_v60  ;;  %v2678_v60 = vld [vmem:[#allocation2 + $0x3a8] sm:$0xff] }
  0xc6   :  { %8382 = vst [vmem:[#allocation198_spill] sm:$0xff] %v2532_v22  ;;  %v2688_v22 = vld [vmem:[#allocation5 + $0x3b0] sm:$0xff] }
  0xc7   :  { %8383 = vst [vmem:[#allocation199_spill] sm:$0xff] %v2534_v0  ;;  %v2700_v0 = vld [vmem:[#allocation2 + $0x3c0] sm:$0xff] }
  0xc8   :  { %8384 = vst [vmem:[#allocation200_spill] sm:$0xff] %v2536_v25  ;;  %v2738_v25 = vld [vmem:[#allocation5 + $0x3f8] sm:$0xff] }
  0xc9   :  { %8385 = vst [vmem:[#allocation201_spill] sm:$0xff] %v2538_v63  ;;  %v2734_v63 = vld [vmem:[#allocation5 + $0x3e8] sm:$0xff] }
  0xca   :  { %8386 = vst [vmem:[#allocation202_spill] sm:$0xff] %v2540_v17  ;;  %v2708_v17 = vld [vmem:[#allocation5 + $0x3c0] sm:$0xff] }
  0xcb   :  { %8387 = vst [vmem:[#allocation203_spill] sm:$0xff] %v2542_v2  ;;  %v2706_v2 = vld [vmem:[#allocation2 + $0x3d8] sm:$0xff] }
  0xcc   :  { %8388 = vst [vmem:[#allocation204_spill] sm:$0xff] %v2544_v31  ;;  %v2704_v31 = vld [vmem:[#allocation2 + $0x3d0] sm:$0xff] }
  0xcd   :  { %8389 = vst [vmem:[#allocation205_spill] sm:$0xff] %v2546_v62  ;;  %v2702_v62 = vld [vmem:[#allocation2 + $0x3c8] sm:$0xff] }
  0xce   :  { %8390 = vst [vmem:[#allocation206_spill] sm:$0xff] %v2556_v18  ;;  %v2712_v18 = vld [vmem:[#allocation5 + $0x3d0] sm:$0xff] }
  0xcf   :  { %8391 = vst [vmem:[#allocation207_spill] sm:$0xff] %v2558_v21  ;;  %v2724_v21 = vld [vmem:[#allocation2 + $0x3e0] sm:$0xff] }
  0xd0   :  { %8392 = vst [vmem:[#allocation208_spill] sm:$0xff] %v2560_v38  ;;  %v2762_v38 = vld [vmem:[#allocation5 + $0x418] sm:$0xff] }
  0xd1   :  { %8393 = vst [vmem:[#allocation209_spill] sm:$0xff] %v2562_v10  ;;  %v2758_v10 = vld [vmem:[#allocation5 + $0x408] sm:$0xff] }
  0xd2   :  { %8394 = vst [vmem:[#allocation210_spill] sm:$0xff] %v2564_v28  ;;  %v2732_v28 = vld [vmem:[#allocation5 + $0x3e0] sm:$0xff] }
  0xd3   :  { %8395 = vst [vmem:[#allocation211_spill] sm:$0xff] %v2566_v23  ;;  %v2730_v23 = vld [vmem:[#allocation2 + $0x3f8] sm:$0xff] }
  0xd4   :  { %8396 = vst [vmem:[#allocation212_spill] sm:$0xff] %v2568_v34  ;;  %v2728_v34 = vld [vmem:[#allocation2 + $0x3f0] sm:$0xff] }
  0xd5   :  { %8397 = vst [vmem:[#allocation213_spill] sm:$0xff] %v2570_v11  ;;  %v2726_v11 = vld [vmem:[#allocation2 + $0x3e8] sm:$0xff] }
  0xd6   :  { %8398 = vst [vmem:[#allocation214_spill] sm:$0xff] %v2580_v26  ;;  %v2736_v26 = vld [vmem:[#allocation5 + $0x3f0] sm:$0xff] }
  0xd7   :  { %8399 = vst [vmem:[#allocation215_spill] sm:$0xff] %v2582_v30  ;;  %v2748_v30 = vld [vmem:[#allocation2 + $0x400] sm:$0xff] }
  0xd8   :  { %8400 = vst [vmem:[#allocation216_spill] sm:$0xff] %v2584_v46  ;;  %v2786_v46 = vld [vmem:[#allocation5 + $0x438] sm:$0xff] }
  0xd9   :  { %8401 = vst [vmem:[#allocation217_spill] sm:$0xff] %v2586_v29  ;;  %v2782_v29 = vld [vmem:[#allocation5 + $0x428] sm:$0xff] }
  0xda   :  { %8402 = vst [vmem:[#allocation218_spill] sm:$0xff] %v2588_v32  ;;  %v2756_v32 = vld [vmem:[#allocation5 + $0x400] sm:$0xff] }
  0xdb   :  { %8403 = vst [vmem:[#allocation219_spill] sm:$0xff] %v2590_v19  ;;  %v2754_v19 = vld [vmem:[#allocation2 + $0x418] sm:$0xff] }
  0xdc   :  { %8404 = vst [vmem:[#allocation220_spill] sm:$0xff] %v2592_v42  ;;  %v2752_v42 = vld [vmem:[#allocation2 + $0x410] sm:$0xff] }
  0xdd   :  { %8405 = vst [vmem:[#allocation221_spill] sm:$0xff] %v2594_v36  ;;  %v2750_v36 = vld [vmem:[#allocation2 + $0x408] sm:$0xff] }
  0xde   :  { %8406 = vst [vmem:[#allocation222_spill] sm:$0xff] %v2604_v35  ;;  %v2760_v35 = vld [vmem:[#allocation5 + $0x410] sm:$0xff] }
  0xdf   :  { %8407 = vst [vmem:[#allocation223_spill] sm:$0xff] %v2606_v37  ;;  %v2772_v37 = vld [vmem:[#allocation2 + $0x420] sm:$0xff] }
  0xe0   :  { %8408 = vst [vmem:[#allocation224_spill] sm:$0xff] %v2608_v58  ;;  %v2810_v58 = vld [vmem:[#allocation5 + $0x458] sm:$0xff] }
  0xe1   :  { %8409 = vst [vmem:[#allocation225_spill] sm:$0xff] %v2610_v33  ;;  %v2806_v33 = vld [vmem:[#allocation5 + $0x448] sm:$0xff] }
  0xe2   :  { %8410 = vst [vmem:[#allocation226_spill] sm:$0xff] %v2612_v40  ;;  %v2780_v40 = vld [vmem:[#allocation5 + $0x420] sm:$0xff] }
  0xe3   :  { %8411 = vst [vmem:[#allocation227_spill] sm:$0xff] %v2614_v27  ;;  %v2778_v27 = vld [vmem:[#allocation2 + $0x438] sm:$0xff] }
  0xe4   :  { %8412 = vst [vmem:[#allocation228_spill] sm:$0xff] %v2616_v54  ;;  %v2776_v54 = vld [vmem:[#allocation2 + $0x430] sm:$0xff] }
  0xe5   :  { %8413 = vst [vmem:[#allocation229_spill] sm:$0xff] %v2618_v44  ;;  %v2774_v44 = vld [vmem:[#allocation2 + $0x428] sm:$0xff] }
  0xe6   :  { %8414 = vst [vmem:[#allocation230_spill] sm:$0xff] %v2628_v43  ;;  %v2784_v43 = vld [vmem:[#allocation5 + $0x430] sm:$0xff] }
  0xe7   :  { %8415 = vst [vmem:[#allocation231_spill] sm:$0xff] %v2630_v45  ;;  %v2796_v45 = vld [vmem:[#allocation2 + $0x440] sm:$0xff] }
  0xe8   :  { %8416 = vst [vmem:[#allocation232_spill] sm:$0xff] %v2632_v8  ;;  %v2834_v8 = vld [vmem:[#allocation5 + $0x478] sm:$0xff] }
  0xe9   :  { %8417 = vst [vmem:[#allocation233_spill] sm:$0xff] %v2634_v41  ;;  %v2830_v41 = vld [vmem:[#allocation5 + $0x468] sm:$0xff] }
  0xea   :  { %8418 = vst [vmem:[#allocation234_spill] sm:$0xff] %v2636_v52  ;;  %v2804_v52 = vld [vmem:[#allocation5 + $0x440] sm:$0xff] }
  0xeb   :  { %8419 = vst [vmem:[#allocation235_spill] sm:$0xff] %v2638_v39  ;;  %v2802_v39 = vld [vmem:[#allocation2 + $0x458] sm:$0xff] }
  0xec   :  { %8420 = vst [vmem:[#allocation236_spill] sm:$0xff] %v2640_v49  ;;  %v2800_v49 = vld [vmem:[#allocation2 + $0x450] sm:$0xff] }
  0xed   :  { %8421 = vst [vmem:[#allocation237_spill] sm:$0xff] %v2642_v56  ;;  %v2798_v56 = vld [vmem:[#allocation2 + $0x448] sm:$0xff] }
  0xee   :  { %8422 = vst [vmem:[#allocation238_spill] sm:$0xff] %v2652_v55  ;;  %v2808_v55 = vld [vmem:[#allocation5 + $0x450] sm:$0xff] }
  0xef   :  { %8423 = vst [vmem:[#allocation239_spill] sm:$0xff] %v2654_v57  ;;  %v2820_v57 = vld [vmem:[#allocation2 + $0x460] sm:$0xff] }
  0xf0   :  { %8424 = vst [vmem:[#allocation240_spill] sm:$0xff] %v2656_v16  ;;  %v2858_v16 = vld [vmem:[#allocation5 + $0x498] sm:$0xff] }
  0xf1   :  { %8425 = vst [vmem:[#allocation241_spill] sm:$0xff] %v2658_v53  ;;  %v2854_v53 = vld [vmem:[#allocation5 + $0x488] sm:$0xff] }
  0xf2   :  { %8426 = vst [vmem:[#allocation242_spill] sm:$0xff] %v2660_v51  ;;  %v2828_v51 = vld [vmem:[#allocation5 + $0x460] sm:$0xff] }
  0xf3   :  { %8427 = vst [vmem:[#allocation243_spill] sm:$0xff] %v2662_v47  ;;  %v2826_v47 = vld [vmem:[#allocation2 + $0x478] sm:$0xff] }
  0xf4   :  { %8428 = vst [vmem:[#allocation244_spill] sm:$0xff] %v2664_v1  ;;  %v2824_v1 = vld [vmem:[#allocation2 + $0x470] sm:$0xff] }
  0xf5   :  { %8429 = vst [vmem:[#allocation245_spill] sm:$0xff] %v2666_v3  ;;  %v2822_v3 = vld [vmem:[#allocation2 + $0x468] sm:$0xff] }
  0xf6   :  { %8430 = vst [vmem:[#allocation246_spill] sm:$0xff] %v2676_v48  ;;  %v2832_v48 = vld [vmem:[#allocation5 + $0x470] sm:$0xff] }
  0xf7   :  { %8431 = vst [vmem:[#allocation247_spill] sm:$0xff] %v2678_v60  ;;  %v2844_v60 = vld [vmem:[#allocation2 + $0x480] sm:$0xff] }
  0xf8   :  { %8432 = vst [vmem:[#allocation248_spill] sm:$0xff] %v2680_v24  ;;  %v2882_v24 = vld [vmem:[#allocation5 + $0x4b8] sm:$0xff] }
  0xf9   :  { %8433 = vst [vmem:[#allocation249_spill] sm:$0xff] %v2682_v50  ;;  %v2878_v50 = vld [vmem:[#allocation5 + $0x4a8] sm:$0xff] }
  0xfa   :  { %8434 = vst [vmem:[#allocation250_spill] sm:$0xff] %v2684_v9  ;;  %v2852_v9 = vld [vmem:[#allocation5 + $0x480] sm:$0xff] }
  0xfb   :  { %8435 = vst [vmem:[#allocation251_spill] sm:$0xff] %v2686_v59  ;;  %v2850_v59 = vld [vmem:[#allocation2 + $0x498] sm:$0xff] }
  0xfc   :  { %8436 = vst [vmem:[#allocation252_spill] sm:$0xff] %v2688_v22  ;;  %v2848_v22 = vld [vmem:[#allocation2 + $0x490] sm:$0xff] }
  0xfd   :  { %8437 = vst [vmem:[#allocation253_spill] sm:$0xff] %v2690_v15  ;;  %v2846_v15 = vld [vmem:[#allocation2 + $0x488] sm:$0xff] }
  0xfe   :  { %8438 = vst [vmem:[#allocation254_spill] sm:$0xff] %v2700_v0  ;;  %v2856_v0 = vld [vmem:[#allocation5 + $0x490] sm:$0xff] }
  0xff   :  { %8439 = vst [vmem:[#allocation255_spill] sm:$0xff] %v2702_v62  ;;  %v2868_v62 = vld [vmem:[#allocation2 + $0x4a0] sm:$0xff] }
 0x100   :  { %8440 = vst [vmem:[#allocation256_spill] sm:$0xff] %v2704_v31  ;;  %v2906_v31 = vld [vmem:[#allocation5 + $0x4d8] sm:$0xff] }
 0x101   :  { %8441 = vst [vmem:[#allocation257_spill] sm:$0xff] %v2706_v2  ;;  %v2902_v2 = vld [vmem:[#allocation5 + $0x4c8] sm:$0xff] }
 0x102   :  { %8442 = vst [vmem:[#allocation258_spill] sm:$0xff] %v2708_v17  ;;  %v2876_v17 = vld [vmem:[#allocation5 + $0x4a0] sm:$0xff] }
 0x103   :  { %8443 = vst [vmem:[#allocation259_spill] sm:$0xff] %v2710_v61  ;;  %v2874_v61 = vld [vmem:[#allocation2 + $0x4b8] sm:$0xff] }
 0x104   :  { %8444 = vst [vmem:[#allocation260_spill] sm:$0xff] %v2712_v18  ;;  %v2872_v18 = vld [vmem:[#allocation2 + $0x4b0] sm:$0xff] }
 0x105   :  { %8445 = vst [vmem:[#allocation261_spill] sm:$0xff] %v2714_v20  ;;  %v2870_v20 = vld [vmem:[#allocation2 + $0x4a8] sm:$0xff] }
 0x106   :  { %8446 = vst [vmem:[#allocation262_spill] sm:$0xff] %v2724_v21  ;;  %v2880_v21 = vld [vmem:[#allocation5 + $0x4b0] sm:$0xff] }
 0x107   :  { %8447 = vst [vmem:[#allocation263_spill] sm:$0xff] %v2726_v11  ;;  %v2892_v11 = vld [vmem:[#allocation2 + $0x4c0] sm:$0xff] }
 0x108   :  { %8448 = vst [vmem:[#allocation264_spill] sm:$0xff] %v2728_v34  ;;  %v2930_v34 = vld [vmem:[#allocation5 + $0x4f8] sm:$0xff] }
 0x109   :  { %8449 = vst [vmem:[#allocation265_spill] sm:$0xff] %v2730_v23  ;;  %v2926_v23 = vld [vmem:[#allocation5 + $0x4e8] sm:$0xff] }
 0x10a   :  { %8450 = vst [vmem:[#allocation266_spill] sm:$0xff] %v2732_v28  ;;  %v2900_v28 = vld [vmem:[#allocation5 + $0x4c0] sm:$0xff] }
 0x10b   :  { %8451 = vst [vmem:[#allocation267_spill] sm:$0xff] %v2734_v63  ;;  %v2898_v63 = vld [vmem:[#allocation2 + $0x4d8] sm:$0xff] }
 0x10c   :  { %8452 = vst [vmem:[#allocation268_spill] sm:$0xff] %v2736_v26  ;;  %v2896_v26 = vld [vmem:[#allocation2 + $0x4d0] sm:$0xff] }
 0x10d   :  { %8453 = vst [vmem:[#allocation269_spill] sm:$0xff] %v2738_v25  ;;  %v2894_v25 = vld [vmem:[#allocation2 + $0x4c8] sm:$0xff] }
 0x10e   :  { %8454 = vst [vmem:[#allocation270_spill] sm:$0xff] %v2748_v30  ;;  %v2904_v30 = vld [vmem:[#allocation5 + $0x4d0] sm:$0xff] }
 0x10f   :  { %8455 = vst [vmem:[#allocation271_spill] sm:$0xff] %v2750_v36  ;;  %v2916_v36 = vld [vmem:[#allocation2 + $0x4e0] sm:$0xff] }
 0x110   :  { %8456 = vst [vmem:[#allocation272_spill] sm:$0xff] %v2752_v42  ;;  %v2954_v42 = vld [vmem:[#allocation5 + $0x518] sm:$0xff] }
 0x111   :  { %8457 = vst [vmem:[#allocation273_spill] sm:$0xff] %v2754_v19  ;;  %v2950_v19 = vld [vmem:[#allocation5 + $0x508] sm:$0xff] }
 0x112   :  { %8458 = vst [vmem:[#allocation274_spill] sm:$0xff] %v2756_v32  ;;  %v2924_v32 = vld [vmem:[#allocation5 + $0x4e0] sm:$0xff] }
 0x113   :  { %8459 = vst [vmem:[#allocation275_spill] sm:$0xff] %v2758_v10  ;;  %v2922_v10 = vld [vmem:[#allocation2 + $0x4f8] sm:$0xff] }
 0x114   :  { %8460 = vst [vmem:[#allocation276_spill] sm:$0xff] %v2760_v35  ;;  %v2920_v35 = vld [vmem:[#allocation2 + $0x4f0] sm:$0xff] }
 0x115   :  { %8461 = vst [vmem:[#allocation277_spill] sm:$0xff] %v2762_v38  ;;  %v2918_v38 = vld [vmem:[#allocation2 + $0x4e8] sm:$0xff] }
 0x116   :  { %8462 = vst [vmem:[#allocation278_spill] sm:$0xff] %v2772_v37  ;;  %v2928_v37 = vld [vmem:[#allocation5 + $0x4f0] sm:$0xff] }
 0x117   :  { %8463 = vst [vmem:[#allocation279_spill] sm:$0xff] %v2774_v44  ;;  %v2940_v44 = vld [vmem:[#allocation2 + $0x500] sm:$0xff] }
 0x118   :  { %8464 = vst [vmem:[#allocation280_spill] sm:$0xff] %v2776_v54  ;;  %v2978_v54 = vld [vmem:[#allocation5 + $0x538] sm:$0xff] }
 0x119   :  { %8465 = vst [vmem:[#allocation281_spill] sm:$0xff] %v2778_v27  ;;  %v2974_v27 = vld [vmem:[#allocation5 + $0x528] sm:$0xff] }
 0x11a   :  { %8466 = vst [vmem:[#allocation282_spill] sm:$0xff] %v2780_v40  ;;  %v2948_v40 = vld [vmem:[#allocation5 + $0x500] sm:$0xff] }
 0x11b   :  { %8467 = vst [vmem:[#allocation283_spill] sm:$0xff] %v2782_v29  ;;  %v2946_v29 = vld [vmem:[#allocation2 + $0x518] sm:$0xff] }
 0x11c   :  { %8468 = vst [vmem:[#allocation284_spill] sm:$0xff] %v2784_v43  ;;  %v2944_v43 = vld [vmem:[#allocation2 + $0x510] sm:$0xff] }
 0x11d   :  { %8469 = vst [vmem:[#allocation285_spill] sm:$0xff] %v2786_v46  ;;  %v2942_v46 = vld [vmem:[#allocation2 + $0x508] sm:$0xff] }
 0x11e   :  { %8470 = vst [vmem:[#allocation286_spill] sm:$0xff] %v2796_v45  ;;  %v2952_v45 = vld [vmem:[#allocation5 + $0x510] sm:$0xff] }
 0x11f   :  { %8471 = vst [vmem:[#allocation287_spill] sm:$0xff] %v2798_v56  ;;  %v2964_v56 = vld [vmem:[#allocation2 + $0x520] sm:$0xff] }
 0x120   :  { %8472 = vst [vmem:[#allocation288_spill] sm:$0xff] %v2800_v49  ;;  %v3058_v49 = vld [vmem:[#allocation5 + $0x578] sm:$0xff] }
 0x121   :  { %8473 = vst [vmem:[#allocation289_spill] sm:$0xff] %v2802_v39  ;;  %v2998_v39 = vld [vmem:[#allocation5 + $0x548] sm:$0xff] }
 0x122   :  { %8474 = vst [vmem:[#allocation290_spill] sm:$0xff] %v2804_v52  ;;  %v2972_v52 = vld [vmem:[#allocation5 + $0x520] sm:$0xff] }
 0x123   :  { %8475 = vst [vmem:[#allocation291_spill] sm:$0xff] %v2806_v33  ;;  %v2970_v33 = vld [vmem:[#allocation2 + $0x538] sm:$0xff] }
 0x124   :  { %8476 = vst [vmem:[#allocation292_spill] sm:$0xff] %v2808_v55  ;;  %v2968_v55 = vld [vmem:[#allocation2 + $0x530] sm:$0xff] }
 0x125   :  { %8477 = vst [vmem:[#allocation293_spill] sm:$0xff] %v2810_v58  ;;  %v2966_v58 = vld [vmem:[#allocation2 + $0x528] sm:$0xff] }
 0x126   :  { %8478 = vst [vmem:[#allocation294_spill] sm:$0xff] %v2820_v57  ;;  %v2976_v57 = vld [vmem:[#allocation5 + $0x530] sm:$0xff] }
 0x127   :  { %8479 = vst [vmem:[#allocation295_spill] sm:$0xff] %v2822_v3  ;;  %v2988_v3 = vld [vmem:[#allocation2 + $0x540] sm:$0xff] }
 0x128   :  { %8480 = vst [vmem:[#allocation296_spill] sm:$0xff] %v2824_v1  ;;  %v3028_v1 = vld [vmem:[#allocation5 + $0x560] sm:$0xff] }
 0x129   :  { %8481 = vst [vmem:[#allocation297_spill] sm:$0xff] %v2826_v47  ;;  %v8551_v47 = vld [vmem:[#allocation34_spill] sm:$0xff] }
 0x12a   :  { %8482 = vst [vmem:[#allocation298_spill] sm:$0xff] %v2828_v51  ;;  %v2996_v51 = vld [vmem:[#allocation5 + $0x540] sm:$0xff]  ;;  %vm7994_vm8 = vcmp.ne.f32.partialorder %v8551_v47, %v8551_v47 }
 0x12b   :  { %8483 = vst [vmem:[#allocation299_spill] sm:$0xff] %v2830_v41  ;;  %v2994_v41 = vld [vmem:[#allocation2 + $0x558] sm:$0xff] }
 0x12c   :  { %8484 = vst [vmem:[#allocation300_spill] sm:$0xff] %v2832_v48  ;;  %v2992_v48 = vld [vmem:[#allocation2 + $0x550] sm:$0xff] }
 0x12d   :  { %8485 = vst [vmem:[#allocation301_spill] sm:$0xff] %v2834_v8  ;;  %v2990_v8 = vld [vmem:[#allocation2 + $0x548] sm:$0xff] }
 0x12e   :  { %8486 = vst [vmem:[#allocation302_spill] sm:$0xff] %v2844_v60  ;;  %v3000_v60 = vld [vmem:[#allocation5 + $0x550] sm:$0xff] }
 0x12f   :  { %8487 = vst [vmem:[#allocation303_spill] sm:$0xff] %v2846_v15  ;;  %v3020_v15 = vld [vmem:[#allocation2 + $0x568] sm:$0xff] }
 0x130   :  { %8488 = vst [vmem:[#allocation304_spill] sm:$0xff] %v2848_v22  ;;  %v3018_v22 = vld [vmem:[#allocation2 + $0x560] sm:$0xff] }
 0x131   :  { %8489 = vst [vmem:[#allocation305_spill] sm:$0xff] %v2850_v59  ;;  %v8545_v59 = vld [vmem:[#allocation29_spill] sm:$0xff] }
 0x132   :  { %8490 = vst [vmem:[#allocation306_spill] sm:$0xff] %v2852_v9  ;;  %vm7995_vm7 = vcmp.ne.f32.partialorder %v8545_v59, %v8545_v59  ;;  %v3082_v9 = vld [vmem:[#allocation2 + $0x5b0] sm:$0xff] }
 0x133   :  { %8491 = vst [vmem:[#allocation307_spill] sm:$0xff] %v2854_v53  ;;  %v3026_v53 = vld [vmem:[#allocation5 + $0x558] sm:$0xff] }
 0x134   :  { %8492 = vst [vmem:[#allocation308_spill] sm:$0xff] %v2856_v0  ;;  %v3024_v0 = vld [vmem:[#allocation2 + $0x578] sm:$0xff] }
 0x135   :  { %8493 = vst [vmem:[#allocation309_spill] sm:$0xff] %v2858_v16  ;;  %v3022_v16 = vld [vmem:[#allocation2 + $0x570] sm:$0xff] }
 0x136   :  { %8494 = vst [vmem:[#allocation310_spill] sm:$0xff] %v2868_v62  ;;  %v3030_v62 = vld [vmem:[#allocation5 + $0x568] sm:$0xff] }
 0x137   :  { %8495 = vst [vmem:[#allocation311_spill] sm:$0xff] %v2870_v20  ;;  %v3048_v20 = vld [vmem:[#allocation2 + $0x580] sm:$0xff] }
 0x138   :  { %8496 = vst [vmem:[#allocation312_spill] sm:$0xff] %v2872_v18  ;;  %v8553_v18 = vld [vmem:[#allocation36_spill] sm:$0xff] }
 0x139   :  { %8497 = vst [vmem:[#allocation313_spill] sm:$0xff] %v2874_v61  ;;  %v8552_v61 = vld [vmem:[#allocation35_spill] sm:$0xff]  ;;  %vm7996_vm10 = vcmp.ne.f32.partialorder %v8553_v18, %v8553_v18  ;;  %v3084_v18 = vld [vmem:[#allocation2 + $0x5b8] sm:$0xff] }
 0x13a   :  { %8498 = vst [vmem:[#allocation314_spill] sm:$0xff] %v2876_v17  ;;  %v3056_v17 = vld [vmem:[#allocation5 + $0x570] sm:$0xff]  ;;  %vm7993_vm9 = vcmp.ne.f32.partialorder %v8552_v61, %v8552_v61 }
 0x13b   :  { %8499 = vst [vmem:[#allocation315_spill] sm:$0xff] %v2878_v50  ;;  %v3054_v50 = vld [vmem:[#allocation2 + $0x598] sm:$0xff] }
 0x13c   :  { %8500 = vst [vmem:[#allocation316_spill] sm:$0xff] %v2880_v21  ;;  %v3052_v21 = vld [vmem:[#allocation2 + $0x590] sm:$0xff] }
 0x13d   :  { %8501 = vst [vmem:[#allocation317_spill] sm:$0xff] %v2882_v24  ;;  %v3050_v24 = vld [vmem:[#allocation2 + $0x588] sm:$0xff] }
 0x13e   :  { %8502 = vst [vmem:[#allocation318_spill] sm:$0xff] %v2892_v11  ;;  %v3060_v11 = vld [vmem:[#allocation5 + $0x580] sm:$0xff] }
 0x13f   :  { %8503 = vst [vmem:[#allocation319_spill] sm:$0xff] %v2894_v25  ;;  %v8562_v25 = vld [vmem:[#allocation42_spill] sm:$0xff] }
 0x140   :  { %8504 = vst [vmem:[#allocation320_spill] sm:$0xff] %v2896_v26  ;;  %v3088_v26 = vld [vmem:[#allocation5 + $0x590] sm:$0xff] }
 0x141   :  { %8505 = vst [vmem:[#allocation321_spill] sm:$0xff] %v2898_v63  ;;  %v8554_v63 = vld [vmem:[#allocation37_spill] sm:$0xff] }
 0x142   :  { %8506 = vst [vmem:[#allocation322_spill] sm:$0xff] %v2900_v28  ;;  %vm7998_vm11 = vcmp.ne.f32.partialorder %v8554_v63, %v8554_v63  ;;  %v3080_v28 = vld [vmem:[#allocation2 + $0x5a8] sm:$0xff] }
 0x143   :  { %8507 = vst [vmem:[#allocation323_spill] sm:$0xff] %v2902_v2  ;;  %v3078_v2 = vld [vmem:[#allocation2 + $0x5a0] sm:$0xff]  ;;  %v3086_v63 = vld [vmem:[#allocation5 + $0x588] sm:$0xff] }
 0x144   :  { %8508 = vst [vmem:[#allocation324_spill] sm:$0xff] %v2904_v30  ;;  %v3112_v30 = vld [vmem:[#allocation2 + $0x5d0] sm:$0xff] }
 0x145   :  { %8509 = vst [vmem:[#allocation325_spill] sm:$0xff] %v2906_v31  ;;  %v3114_v31 = vld [vmem:[#allocation2 + $0x5d8] sm:$0xff] }
 0x146   :  { %8510 = vst [vmem:[#allocation326_spill] sm:$0xff] %v2916_v36  ;;  %v3090_v36 = vld [vmem:[#allocation5 + $0x598] sm:$0xff] }
 0x147   :  { %8511 = vst [vmem:[#allocation327_spill] sm:$0xff] %v2918_v38  ;;  %v3122_v38 = vld [vmem:[#allocation5 + $0x80] sm:$0xff] }
 0x148   :  { %8512 = vst [vmem:[#allocation328_spill] sm:$0xff] %v2920_v35  ;;  %v3118_v35 = vld [vmem:[#allocation5 + $0x5a8] sm:$0xff] }
 0x149   :  { %8513 = vst [vmem:[#allocation329_spill] sm:$0xff] %v2922_v10  ;;  %v3116_v10 = vld [vmem:[#allocation5 + $0x5a0] sm:$0xff] }
 0x14a   :  { %8514 = vst [vmem:[#allocation330_spill] sm:$0xff] %v2924_v32  ;;  %v3110_v32 = vld [vmem:[#allocation2 + $0x5c8] sm:$0xff] }
 0x14b   :  { %8515 = vst [vmem:[#allocation331_spill] sm:$0xff] %v2926_v23  ;;  %v3108_v23 = vld [vmem:[#allocation2 + $0x5c0] sm:$0xff] }
 0x14c   :  { %8516 = vst [vmem:[#allocation332_spill] sm:$0xff] %v2928_v37  ;;  %v3126_v37 = vld [vmem:[#allocation5 + $0x88] sm:$0xff] }
 0x14d   :  { %8517 = vst [vmem:[#allocation333_spill] sm:$0xff] %v2930_v34  ;;  %v3130_v34 = vld [vmem:[#allocation5 + $0x90] sm:$0xff] }
 0x14e   :  { %8518 = vst [vmem:[#allocation334_spill] sm:$0xff] %v2940_v44  ;;  %v3120_v44 = vld [vmem:[#allocation5 + $0x5b0] sm:$0xff] }
 0x14f   :  { %8519 = vst [vmem:[#allocation335_spill] sm:$0xff] %v2942_v46  ;;  %v3160_v46 = vld [vmem:[#allocation5 + $0xa0] sm:$0xff] }
 0x150   :  { %8520 = vst [vmem:[#allocation336_spill] sm:$0xff] %v2944_v43  ;;  %v3156_v43 = vld [vmem:[#allocation5 + $0x5c0] sm:$0xff] }
 0x151   :  { %8521 = vst [vmem:[#allocation337_spill] sm:$0xff] %v2946_v29  ;;  %v3134_v29 = vld [vmem:[#allocation5 + $0x98] sm:$0xff] }
 0x152   :  { %8522 = vst [vmem:[#allocation338_spill] sm:$0xff] %v2948_v40  ;;  %v3148_v40 = vld [vmem:[#allocation2 + $0x5e8] sm:$0xff] }
 0x153   :  { %8523 = vst [vmem:[#allocation339_spill] sm:$0xff] %v2950_v19  ;;  %v3146_v19 = vld [vmem:[#allocation2 + $0x5e0] sm:$0xff] }
 0x154   :  { %8524 = vst [vmem:[#allocation340_spill] sm:$0xff] %v2952_v45  ;;  %v3164_v45 = vld [vmem:[#allocation5 + $0xa8] sm:$0xff] }
 0x155   :  { %8525 = vst [vmem:[#allocation341_spill] sm:$0xff] %v2954_v42  ;;  %v3168_v42 = vld [vmem:[#allocation5 + $0xb0] sm:$0xff] }
 0x156   :  { %8526 = vst [vmem:[#allocation342_spill] sm:$0xff] %v2964_v56  ;;  %v3158_v56 = vld [vmem:[#allocation5 + $0x5c8] sm:$0xff] }
 0x157   :  { %8527 = vst [vmem:[#allocation343_spill] sm:$0xff] %v2966_v58  ;;  %v3224_v58 = vld [vmem:[#allocation5 + $0xe8] sm:$0xff] }
 0x158   :  { %8528 = vst [vmem:[#allocation344_spill] sm:$0xff] %v2968_v55  ;;  %v3194_v55 = vld [vmem:[#allocation5 + $0xc8] sm:$0xff] }
 0x159   :  { %8529 = vst [vmem:[#allocation345_spill] sm:$0xff] %v2970_v33  ;;  %v3172_v33 = vld [vmem:[#allocation5 + $0xb8] sm:$0xff] }
 0x15a   :  { %8530 = vst [vmem:[#allocation346_spill] sm:$0xff] %v2972_v52  ;;  %v3186_v52 = vld [vmem:[#allocation5 + $0x5d8] sm:$0xff] }
 0x15b   :  { %8531 = vst [vmem:[#allocation347_spill] sm:$0xff] %v2974_v27  ;;  %v3184_v27 = vld [vmem:[#allocation5 + $0x5d0] sm:$0xff] }
 0x15c   :  { %8532 = vst [vmem:[#allocation348_spill] sm:$0xff] %v2976_v57  ;;  %v3202_v57 = vld [vmem:[#allocation5 + $0xd8] sm:$0xff] }
 0x15d   :  { %8533 = vst [vmem:[#allocation349_spill] sm:$0xff] %v2978_v54  ;;  %v3198_v54 = vld [vmem:[#allocation5 + $0xd0] sm:$0xff] }
 0x15e   :  { %8534 = vst [vmem:[#allocation350_spill] sm:$0xff] %v2988_v3  ;;  %v3214_v3 = vld [vmem:[#allocation5 + $0x5e8] sm:$0xff] }
 0x15f   :  { %8535 = vst [vmem:[#allocation351_spill] sm:$0xff] %v2990_v8  ;;  %v3232_v8 = vld [vmem:[#allocation5 + $0xf8] sm:$0xff] }
 0x160   :  { %8536 = vst [vmem:[#allocation352_spill] sm:$0xff] %v2992_v48  ;;  %v3228_v48 = vld [vmem:[#allocation5 + $0xf0] sm:$0xff] }
 0x161   :  { %8537 = vst [vmem:[#allocation353_spill] sm:$0xff] %v2994_v41  ;;  %v3252_v41 = vld [vmem:[#allocation5 + $0x110] sm:$0xff] }
 0x162   :  { %8538 = vst [vmem:[#allocation354_spill] sm:$0xff] %v2998_v39  ;;  %v3220_v39 = vld [vmem:[#allocation5 + $0xe0] sm:$0xff] }
 0x163   :  { %8539 = vst [vmem:[#allocation355_spill] sm:$0xff] %v3000_v60  ;;  %v3218_v60 = vld [vmem:[#allocation5 + $0x5f8] sm:$0xff] }
 0x164   :  { %8540 = vst [vmem:[#allocation356_spill] sm:$0xff] %v3018_v22  ;;  %v3244_v22 = vld [vmem:[#allocation5 + $0x100] sm:$0xff] }
 0x165   :  { %8541 = vst [vmem:[#allocation357_spill] sm:$0xff] %v3020_v15  ;;  %v3276_v15 = vld [vmem:[#allocation5 + $0x130] sm:$0xff] }
 0x166   :  { %8542 = vst [vmem:[#allocation358_spill] sm:$0xff] %v3022_v16  ;;  %v3280_v16 = vld [vmem:[#allocation5 + $0x138] sm:$0xff] }
 0x167   :  { %8543 = vst [vmem:[#allocation359_spill] sm:$0xff] %v3024_v0  ;;  %v3256_v0 = vld [vmem:[#allocation5 + $0x118] sm:$0xff] }
 0x168   :  { %8544 = vst [vmem:[#allocation360_spill] sm:$0xff] %v3026_v53  ;;  %v3216_v53 = vld [vmem:[#allocation5 + $0x5f0] sm:$0xff] }
 0x169   :  { %8546 = vst [vmem:[#allocation361_spill] sm:$0xff] %v3048_v20  ;;  %v3272_v20 = vld [vmem:[#allocation5 + $0x128] sm:$0xff] }
 0x16a   :  { %8547 = vst [vmem:[#allocation362_spill] sm:$0xff] %v3050_v24  ;;  %v3268_v24 = vld [vmem:[#allocation5 + $0x120] sm:$0xff] }
 0x16b   :  { %8548 = vst [vmem:[#allocation363_spill] sm:$0xff] %v3052_v21  ;;  %v8619_v21 = vld [vmem:[#allocation15_spill] sm:$0xff] }
 0x16c   :  { %8549 = vst [vmem:[#allocation364_spill] sm:$0xff] %v3054_v50  ;;  %v8616_v50 = vld [vmem:[#allocation14_spill] sm:$0xff] }
 0x16d   :  { %8550 = vst [vmem:[#allocation365_spill] sm:$0xff] %v3058_v49  ;;  %v3248_v49 = vld [vmem:[#allocation5 + $0x108] sm:$0xff] }
 0x16e   :  { %8555 = vst [vmem:[#allocation366_spill] sm:$0xff] %v3078_v2  ;;  %v8609_v2 = vld [vmem:[#allocation99_spill] sm:$0xff] }
 0x16f   :  { %8556 = vst [vmem:[#allocation367_spill] sm:$0xff] %v3080_v28  ;;  %v8608_v28 = vld [vmem:[#allocation98_spill] sm:$0xff] }
 0x170   :  { %8557 = vst [vmem:[#allocation368_spill] sm:$0xff] %v3082_v9 }
 0x171   :  { %8558 = vst [vmem:[#allocation369_spill] sm:$0xff] %v3084_v18  ;;  %v8617_v18 = vsub.f32 %v8616_v50, %v2028_v4  ;;  %v8628_v4 = vld [vmem:[#allocation114_spill] sm:$0xff] }
 0x172   :  { %8559 = vst [vmem:[#allocation370_spill] sm:$0xff] %v3086_v63 }
 0x173   :  { %8560 = vst [vmem:[#allocation371_spill] sm:$0xff] %v3088_v26  ;;  %v3322_v9 = vsel %vm7971_vm0, 0.0, %v8617_v18 }
 0x174   :  { %8561 = vst [vmem:[#allocation372_spill] sm:$0xff] %v3090_v36  ;;  %v8728_v36 = vld [vmem:[#allocation60_spill] sm:$0xff] }
 0x175   :  { %8566 = vst [vmem:[#allocation373_spill] sm:$0xff] %v3108_v23  ;;  %v8615_v23 = vld [vmem:[#allocation109_spill] sm:$0xff] }
 0x176   :  { %8567 = vst [vmem:[#allocation374_spill] sm:$0xff] %v3110_v32  ;;  %v8614_v32 = vld [vmem:[#allocation108_spill] sm:$0xff] }
 0x177   :  { %8568 = vst [vmem:[#allocation375_spill] sm:$0xff] %v3112_v30  ;;  %v8613_v30 = vld [vmem:[#allocation107_spill] sm:$0xff]  ;;  %vm8072_vm13 = vcmp.ne.f32.partialorder %v8614_v32, %v8614_v32 }
 0x178   :  { %8569 = vst [vmem:[#allocation376_spill] sm:$0xff] %v3114_v31  ;;  %v8612_v31 = vld [vmem:[#allocation106_spill] sm:$0xff]  ;;  %vm8070_vm14 = vcmp.ne.f32.partialorder %v8613_v30, %v8613_v30 }
 0x179   :  { %8570 = vst [vmem:[#allocation377_spill] sm:$0xff] %v3116_v10  ;;  %vm8071_vm12 = vcmp.ne.f32.partialorder %v8612_v31, %v8612_v31 }
 0x17a   :  { %8571 = vst [vmem:[#allocation378_spill] sm:$0xff] %v3118_v35 }
 0x17b   :  { %8572 = vst [vmem:[#allocation379_spill] sm:$0xff] %v3120_v44  ;;  %v8611_v44 = vld [vmem:[#allocation101_spill] sm:$0xff] }
 0x17c   :  { %8573 = vst [vmem:[#allocation380_spill] sm:$0xff] %v3122_v38 }
 0x17d   :  { %8574 = vst [vmem:[#allocation381_spill] sm:$0xff] %v3126_v37  ;;  %v3152_v37 = vld [vmem:[#allocation2 + $0x5f8] sm:$0xff] }
 0x17e   :  { %8575 = vst [vmem:[#allocation382_spill] sm:$0xff] %v3130_v34  ;;  %v3150_v34 = vld [vmem:[#allocation2 + $0x5f0] sm:$0xff] }
 0x17f   :  { %8576 = vst [vmem:[#allocation383_spill] sm:$0xff] %v3134_v29  ;;  %v3154_v29 = vld [vmem:[#allocation5 + $0x5b8] sm:$0xff] }
 0x180   :  { %8577 = vst [vmem:[#allocation384_spill] sm:$0xff] %v3146_v19 }
 0x181   :  { %8578 = vst [vmem:[#allocation385_spill] sm:$0xff] %v3148_v40  ;;  %v8622_v40 = vld [vmem:[#allocation16_spill] sm:$0xff] }
 0x182   :  { %8579 = vst [vmem:[#allocation386_spill] sm:$0xff] %v3150_v34  ;;  %v8623_v19 = vsub.f32 %v8622_v40, %v2032_v6  ;;  %v8630_v40 = vld [vmem:[#allocation116_spill] sm:$0xff]  ;;  %v8631_v6 = vld [vmem:[#allocation117_spill] sm:$0xff] }
 0x183   :  { %8580 = vst [vmem:[#allocation387_spill] sm:$0xff] %v3152_v37  ;;  %v8620_v37 = vsub.f32 %v8619_v21, %v2030_v5  ;;  %vm8079_vm15 = vcmp.ne.f32.partialorder %v8630_v40, %v8630_v40 }
 0x184   :  { %8581 = vst [vmem:[#allocation388_spill] sm:$0xff] %v3154_v29  ;;  %v8610_v29 = vld [vmem:[#allocation100_spill] sm:$0xff]  ;;  %v3338_v50 = vsel %vm7974_vm2, 0.0, %v8623_v19  ;;  %vm8086_vm2 = vcmp.ne.f32.partialorder %v8631_v6, %v8631_v6  ;;  %v8632_v19 = vld [vmem:[#allocation22_spill] sm:$0xff] }
 0x185   :  { %8582 = vst [vmem:[#allocation389_spill] sm:$0xff] %v3156_v43  ;;  %v3330_v34 = vsel %vm7970_vm1, 0.0, %v8620_v37  ;;  %vm8078_vm1 = vcmp.ne.f32.partialorder %v8628_v4, %v8628_v4  ;;  %v8629_v37 = vld [vmem:[#allocation115_spill] sm:$0xff]  ;;  %v8701_v43 = vld [vmem:[#allocation52_spill] sm:$0xff]  ;;  %v8703_v10 = vld [vmem:[#allocation382_spill] sm:$0xff] }
 0x186   :  { %8583 = vst [vmem:[#allocation390_spill] sm:$0xff] %v3158_v56  ;;  %vm8077_vm0 = vcmp.ne.f32.partialorder %v8629_v37, %v8629_v37  ;;  %v8700_v56 = vld [vmem:[#allocation48_spill] sm:$0xff] }
 0x187   :  { %8584 = vst [vmem:[#allocation391_spill] sm:$0xff] %v3160_v46  ;;  %v8702_v35 = vsub.f32 %v8700_v56, %v8701_v43  ;;  %v8714_v43 = vld [vmem:[#allocation148_spill] sm:$0xff]  ;;  %v8715_v56 = vld [vmem:[#allocation149_spill] sm:$0xff] }
 0x188   :  { %8585 = vst [vmem:[#allocation392_spill] sm:$0xff] %v3164_v45  ;;  %v3190_v45 = vld [vmem:[#allocation5 + $0xc0] sm:$0xff] }
 0x189   :  { %8586 = vst [vmem:[#allocation393_spill] sm:$0xff] %v3168_v42  ;;  %v3188_v42 = vld [vmem:[#allocation5 + $0x5e0] sm:$0xff] }
 0x18a   :  { %8587 = vst [vmem:[#allocation394_spill] sm:$0xff] %v3172_v33 }
 0x18b   :  { %8588 = vst [vmem:[#allocation395_spill] sm:$0xff] %v3184_v27 }
 0x18c   :  { %8589 = vst [vmem:[#allocation396_spill] sm:$0xff] %v3186_v52  ;;  %v8680_v52 = vld [vmem:[#allocation41_spill] sm:$0xff] }
 0x18d   :  { %8590 = vst [vmem:[#allocation397_spill] sm:$0xff] %v3188_v42 }
 0x18e   :  { %8591 = vst [vmem:[#allocation398_spill] sm:$0xff] %v3190_v45 }
 0x18f   :  { %8592 = vst [vmem:[#allocation399_spill] sm:$0xff] %v3194_v55 }
 0x190   :  { %8593 = vst [vmem:[#allocation400_spill] sm:$0xff] %v3198_v54  ;;  %v8730_v63 = vld [vmem:[#allocation393_spill] sm:$0xff] }
 0x191   :  { %8594 = vst [vmem:[#allocation401_spill] sm:$0xff] %v3202_v57 }
 0x192   :  { %8595 = vst [vmem:[#allocation402_spill] sm:$0xff] %v3214_v3  ;;  %v8676_v3 = vld [vmem:[#allocation44_spill] sm:$0xff] }
 0x193   :  { %8596 = vst [vmem:[#allocation403_spill] sm:$0xff] %v3216_v53  ;;  %v8658_v53 = vld [vmem:[#allocation33_spill] sm:$0xff] }
 0x194   :  { %8597 = vst [vmem:[#allocation404_spill] sm:$0xff] %v3218_v60  ;;  %v8625_v60 = vld [vmem:[#allocation17_spill] sm:$0xff] }
 0x195   :  { %8598 = vst [vmem:[#allocation405_spill] sm:$0xff] %v3220_v39  ;;  %v8626_v18 = vsub.f32 %v8625_v60, %v2034_v7  ;;  %v8633_v60 = vsub.f32 %v8632_v19, %v2044_v12 }
 0x196   :  { %8599 = vst [vmem:[#allocation406_spill] sm:$0xff] %v3224_v58 }
 0x197   :  { %8600 = vst [vmem:[#allocation407_spill] sm:$0xff] %v3228_v48  ;;  %v3346_v21 = vsel %vm7981_vm3, 0.0, %v8626_v18  ;;  %v3362_v18 = vsel %vm7980_vm4, 0.0, %v8633_v60 }
 0x198   :  { %8601 = vst [vmem:[#allocation408_spill] sm:$0xff] %v3232_v8 }
 0x199   :  { %8602 = vst [vmem:[#allocation409_spill] sm:$0xff] %v3244_v22 }
 0x19a   :  { %8603 = vst [vmem:[#allocation410_spill] sm:$0xff] %v3248_v49 }
 0x19b   :  { %8604 = vst [vmem:[#allocation411_spill] sm:$0xff] %v3252_v41 }
 0x19c   :  { %8605 = vst [vmem:[#allocation412_spill] sm:$0xff] %v3256_v0 }
 0x19d   :  { %8606 = vst [vmem:[#allocation413_spill] sm:$0xff] %v3268_v24 }
 0x19e   :  { %8607 = vst [vmem:[#allocation414_spill] sm:$0xff] %v3280_v16 }
 0x19f   :  { %8618 = vst [vmem:[#allocation14_spill] sm:$0xff] %v3322_v9  ;;  %v8641_v9 = vld [vmem:[#allocation25_spill] sm:$0xff] }
 0x1a0   :  { %8621 = vst [vmem:[#allocation15_spill] sm:$0xff] %v3330_v34  ;;  %v8642_v60 = vsub.f32 %v8641_v9, %v8545_v59 }
 0x1a1   :  { %8624 = vst [vmem:[#allocation16_spill] sm:$0xff] %v3338_v50  ;;  %v8638_v50 = vld [vmem:[#allocation24_spill] sm:$0xff] }
 0x1a2   :  { %8627 = vst [vmem:[#allocation17_spill] sm:$0xff] %v3346_v21  ;;  %v8635_v21 = vld [vmem:[#allocation23_spill] sm:$0xff]  ;;  %v8639_v34 = vsub.f32 %v8638_v50, %v2048_v14  ;;  %v8646_v50 = vld [vmem:[#allocation124_spill] sm:$0xff] }
 0x1a3   :  { %8634 = vst [vmem:[#allocation22_spill] sm:$0xff] %v3362_v18  ;;  %v8636_v7 = vsub.f32 %v8635_v21, %v2046_v13  ;;  %v3386_v21 = vsel %vm7995_vm7, 0.0, %v8642_v60  ;;  %v8644_v18 = vld [vmem:[#allocation122_spill] sm:$0xff]  ;;  %vm8087_vm3 = vcmp.ne.f32.partialorder %v8646_v50, %v8646_v50  ;;  %v8654_v14 = vld [vmem:[#allocation32_spill] sm:$0xff] }
 0x1a4   :  { %v3378_v19 = vsel %vm7982_vm6, 0.0, %v8639_v34  ;;  %8643 = vst [vmem:[#allocation25_spill] sm:$0xff] %v3386_v21  ;;  %v8648_v34 = vld [vmem:[#allocation30_spill] sm:$0xff]  ;;  %v8651_v21 = vld [vmem:[#allocation31_spill] sm:$0xff]  ;;  %v8655_v13 = vld [vmem:[#allocation36_spill] sm:$0xff]  ;;  %vm8668_vm6 = vcmp.ne.f32.partialorder %v8562_v25, %v8562_v25 }
 0x1a5   :  { %v3370_v5 = vsel %vm7979_vm5, 0.0, %v8636_v7  ;;  %8640 = vst [vmem:[#allocation24_spill] sm:$0xff] %v3378_v19  ;;  %vm8084_vm5 = vcmp.ne.f32.partialorder %v8644_v18, %v8644_v18  ;;  %v8645_v7 = vld [vmem:[#allocation123_spill] sm:$0xff]  ;;  %v8649_v9 = vsub.f32 %v8648_v34, %v8551_v47  ;;  %v8652_v19 = vsub.f32 %v8651_v21, %v8552_v61  ;;  %v8659_v47 = vld [vmem:[#allocation37_spill] sm:$0xff]  ;;  %v8675_v61 = vld [vmem:[#allocation40_spill] sm:$0xff] }
 0x1a6   :  { %8637 = vst [vmem:[#allocation23_spill] sm:$0xff] %v3370_v5  ;;  %vm8085_vm4 = vcmp.ne.f32.partialorder %v8645_v7, %v8645_v7  ;;  %v8647_v5 = vld [vmem:[#allocation125_spill] sm:$0xff]  ;;  %v8656_v12 = vsub.f32 %v8654_v14, %v8655_v13  ;;  %v8664_v14 = vld [vmem:[#allocation132_spill] sm:$0xff]  ;;  %v8677_v42 = vsub.f32 %v8675_v61, %v8676_v3 }
 0x1a7   :  { %v3402_v60 = vsel %vm7994_vm8, 0.0, %v8649_v9  ;;  %v3410_v59 = vsel %vm7993_vm9, 0.0, %v8652_v19  ;;  %v8660_v9 = vsub.f32 %v8658_v53, %v8659_v47  ;;  %v8663_v19 = vld [vmem:[#allocation131_spill] sm:$0xff]  ;;  %v8687_v61 = vld [vmem:[#allocation140_spill] sm:$0xff]  ;;  %vm8692_vm9 = vcmp.ne.f32.partialorder %v3122_v38, %v3122_v38  ;;  %v8707_v38 = vld [vmem:[#allocation53_spill] sm:$0xff] }
 0x1a8   :  { %8650 = vst [vmem:[#allocation30_spill] sm:$0xff] %v3402_v60  ;;  %v3418_v34 = vsel %vm7996_vm10, 0.0, %v8656_v12  ;;  %v8662_v60 = vld [vmem:[#allocation130_spill] sm:$0xff]  ;;  %vm8678_vm10 = vcmp.ne.f32.partialorder %v8676_v3, %v8676_v3 }
 0x1a9   :  { %8653 = vst [vmem:[#allocation31_spill] sm:$0xff] %v3410_v59  ;;  %v3426_v21 = vsel %vm7998_vm11, 0.0, %v8660_v9  ;;  %v8665_v59 = vld [vmem:[#allocation133_spill] sm:$0xff]  ;;  %v8666_v12 = vld [vmem:[#allocation38_spill] sm:$0xff] }
 0x1aa   :  { %8657 = vst [vmem:[#allocation32_spill] sm:$0xff] %v3418_v34  ;;  %v8667_v53 = vsub.f32 %v8666_v12, %v8562_v25  ;;  %v8671_v34 = vld [vmem:[#allocation43_spill] sm:$0xff]  ;;  %v3458_v12 = vsel %vm8678_vm10, 0.0, %v8677_v42  ;;  %v8681_v25 = vld [vmem:[#allocation45_spill] sm:$0xff]  ;;  %v8689_v42 = vld [vmem:[#allocation46_spill] sm:$0xff]  ;;  %vm8704_vm10 = vcmp.ne.f32.partialorder %v8703_v10, %v8703_v10 }
 0x1ab   :  { %8661 = vst [vmem:[#allocation33_spill] sm:$0xff] %v3426_v21  ;;  %v8670_v21 = vld [vmem:[#allocation39_spill] sm:$0xff]  ;;  %vm8673_vm11 = vcmp.ne.f32.partialorder %v8671_v34, %v8671_v34 }
 0x1ac   :  { %v3442_v9 = vsel %vm8668_vm6, 0.0, %v8667_v53  ;;  %v8672_v47 = vsub.f32 %v8670_v21, %v8671_v34  ;;  %8679 = vst [vmem:[#allocation40_spill] sm:$0xff] %v3458_v12  ;;  %v8682_v53 = vsub.f32 %v8680_v52, %v8681_v25  ;;  %vm8683_vm6 = vcmp.ne.f32.partialorder %v8681_v25, %v8681_v25  ;;  %v8690_v12 = vld [vmem:[#allocation50_spill] sm:$0xff]  ;;  %v8695_v25 = vld [vmem:[#allocation51_spill] sm:$0xff]  ;;  %v8697_v34 = vld [vmem:[#allocation381_spill] sm:$0xff] }
 0x1ad   :  { %8669 = vst [vmem:[#allocation38_spill] sm:$0xff] %v3442_v9  ;;  %v8685_v9 = vld [vmem:[#allocation138_spill] sm:$0xff]  ;;  %v8691_v52 = vsub.f32 %v8689_v42, %v8690_v12  ;;  %v3498_v12 = vsel %vm8704_vm10, 0.0, %v8702_v35  ;;  %v8706_v42 = vld [vmem:[#allocation49_spill] sm:$0xff]  ;;  %vm8731_vm10 = vcmp.ne.f32.partialorder %v8730_v63, %v8730_v63  ;;  %v8753_v63 = vld [vmem:[#allocation68_spill] sm:$0xff] }
 0x1ae   :  { %v3450_v13 = vsel %vm8673_vm11, 0.0, %v8672_v47  ;;  %v3466_v21 = vsel %vm8683_vm6, 0.0, %v8682_v53  ;;  %v8686_v47 = vld [vmem:[#allocation139_spill] sm:$0xff]  ;;  %vm8698_vm6 = vcmp.ne.f32.partialorder %v8697_v34, %v8697_v34  ;;  %v8716_v35 = vld [vmem:[#allocation54_spill] sm:$0xff]  ;;  %vm8719_vm11 = vcmp.ne.f32.partialorder %v3160_v46, %v3160_v46  ;;  %v8727_v34 = vld [vmem:[#allocation56_spill] sm:$0xff] }
 0x1af   :  { %8674 = vst [vmem:[#allocation39_spill] sm:$0xff] %v3450_v13  ;;  %v8688_v13 = vld [vmem:[#allocation141_spill] sm:$0xff]  ;;  %v3482_v53 = vsel %vm8692_vm9, 0.0, %v8691_v52  ;;  %v8708_v52 = vsub.f32 %v8706_v42, %v8707_v38  ;;  %v8729_v26 = vsub.f32 %v8727_v34, %v8728_v36  ;;  %v8740_v36 = vld [vmem:[#allocation156_spill] sm:$0xff] }
 0x1b0   :  { %8684 = vst [vmem:[#allocation41_spill] sm:$0xff] %v3466_v21  ;;  %v8694_v21 = vld [vmem:[#allocation47_spill] sm:$0xff]  ;;  %v8734_v46 = vld [vmem:[#allocation61_spill] sm:$0xff] }
 0x1b1   :  { %8693 = vst [vmem:[#allocation46_spill] sm:$0xff] %v3482_v53  ;;  %v8696_v3 = vsub.f32 %v8694_v21, %v8695_v25  ;;  %v8709_v53 = vld [vmem:[#allocation383_spill] sm:$0xff]  ;;  %v8712_v21 = vld [vmem:[#allocation146_spill] sm:$0xff]  ;;  %v8741_v34 = vld [vmem:[#allocation157_spill] sm:$0xff] }
 0x1b2   :  { %8705 = vst [vmem:[#allocation47_spill] sm:$0xff] %v3498_v12  ;;  %vm8710_vm9 = vcmp.ne.f32.partialorder %v8709_v53, %v8709_v53  ;;  %v8717_v12 = vld [vmem:[#allocation58_spill] sm:$0xff]  ;;  %v8724_v53 = vld [vmem:[#allocation392_spill] sm:$0xff] }
 0x1b3   :  { %v3490_v27 = vsel %vm8698_vm6, 0.0, %v8696_v3  ;;  %v3506_v25 = vsel %vm8710_vm9, 0.0, %v8708_v52  ;;  %v8713_v3 = vld [vmem:[#allocation147_spill] sm:$0xff]  ;;  %v8718_v38 = vsub.f32 %v8716_v35, %v8717_v12  ;;  %vm8725_vm9 = vcmp.ne.f32.partialorder %v8724_v53, %v8724_v53  ;;  %v8733_v35 = vld [vmem:[#allocation57_spill] sm:$0xff] }
 0x1b4   :  { %8699 = vst [vmem:[#allocation50_spill] sm:$0xff] %v3490_v27  ;;  %v8721_v52 = vld [vmem:[#allocation55_spill] sm:$0xff]  ;;  %v3538_v12 = vsel %vm8731_vm10, 0.0, %v8729_v26  ;;  %v8742_v26 = vld [vmem:[#allocation62_spill] sm:$0xff]  ;;  %vm8745_vm6 = vcmp.ne.f32.partialorder %v3190_v45, %v3190_v45  ;;  %vm8755_vm10 = vcmp.ne.f32.partialorder %v3198_v54, %v3198_v54  ;;  %v8758_v45 = vld [vmem:[#allocation69_spill] sm:$0xff] }
 0x1b5   :  { %8711 = vst [vmem:[#allocation51_spill] sm:$0xff] %v3506_v25  ;;  %v3522_v42 = vsel %vm8719_vm11, 0.0, %v8718_v38  ;;  %v8722_v25 = vld [vmem:[#allocation59_spill] sm:$0xff]  ;;  %v8735_v38 = vsub.f32 %v8733_v35, %v8734_v46  ;;  %vm8736_vm11 = vcmp.ne.f32.partialorder %v3172_v33, %v3172_v33  ;;  %v8752_v33 = vld [vmem:[#allocation64_spill] sm:$0xff] }
 0x1b6   :  { %8720 = vst [vmem:[#allocation48_spill] sm:$0xff] %v3522_v42  ;;  %v8723_v27 = vsub.f32 %v8721_v52, %v8722_v25  ;;  %v8738_v52 = vld [vmem:[#allocation154_spill] sm:$0xff]  ;;  %v8754_v53 = vsub.f32 %v8752_v33, %v8753_v63  ;;  %v8764_v33 = vld [vmem:[#allocation164_spill] sm:$0xff]  ;;  %v8765_v63 = vld [vmem:[#allocation165_spill] sm:$0xff] }
 0x1b7   :  { %8732 = vst [vmem:[#allocation49_spill] sm:$0xff] %v3538_v12  ;;  %v3546_v25 = vsel %vm8736_vm11, 0.0, %v8735_v38  ;;  %v8743_v12 = vld [vmem:[#allocation66_spill] sm:$0xff]  ;;  %v8747_v38 = vld [vmem:[#allocation63_spill] sm:$0xff]  ;;  %vm8750_vm11 = vcmp.ne.f32.partialorder %v3194_v55, %v3194_v55  ;;  %v8777_v54 = vld [vmem:[#allocation76_spill] sm:$0xff] }
 0x1b8   :  { %v3530_v10 = vsel %vm8725_vm9, 0.0, %v8723_v27  ;;  %8737 = vst [vmem:[#allocation53_spill] sm:$0xff] %v3546_v25  ;;  %v8739_v27 = vld [vmem:[#allocation155_spill] sm:$0xff]  ;;  %v8744_v46 = vsub.f32 %v8742_v26, %v8743_v12  ;;  %v3578_v12 = vsel %vm8755_vm10, 0.0, %v8754_v53  ;;  %v8757_v26 = vld [vmem:[#allocation65_spill] sm:$0xff]  ;;  %v8766_v53 = vld [vmem:[#allocation70_spill] sm:$0xff]  ;;  %vm8769_vm9 = vcmp.ne.f32.partialorder %v3220_v39, %v3220_v39 }
 0x1b9   :  { %8726 = vst [vmem:[#allocation52_spill] sm:$0xff] %v3530_v10  ;;  %v8748_v25 = vld [vmem:[#allocation67_spill] sm:$0xff]  ;;  %vm8779_vm10 = vcmp.ne.f32.partialorder %v3228_v48, %v3228_v48  ;;  %v8782_v39 = vld [vmem:[#allocation77_spill] sm:$0xff]  ;;  %v8801_v48 = vld [vmem:[#allocation84_spill] sm:$0xff] }
 0x1ba   :  { %v3562_v35 = vsel %vm8745_vm6, 0.0, %v8744_v46  ;;  %v8749_v10 = vsub.f32 %v8747_v38, %v8748_v25  ;;  %8756 = vst [vmem:[#allocation55_spill] sm:$0xff] %v3578_v12  ;;  %v8759_v46 = vsub.f32 %v8757_v26, %v8758_v45  ;;  %vm8760_vm6 = vcmp.ne.f32.partialorder %v3202_v57, %v3202_v57  ;;  %v8762_v38 = vld [vmem:[#allocation162_spill] sm:$0xff]  ;;  %v8776_v57 = vld [vmem:[#allocation72_spill] sm:$0xff] }
 0x1bb   :  { %8746 = vst [vmem:[#allocation54_spill] sm:$0xff] %v3562_v35  ;;  %v8767_v12 = vld [vmem:[#allocation74_spill] sm:$0xff]  ;;  %v8778_v55 = vsub.f32 %v8776_v57, %v8777_v54  ;;  %v8788_v54 = vld [vmem:[#allocation172_spill] sm:$0xff]  ;;  %v8789_v57 = vld [vmem:[#allocation173_spill] sm:$0xff] }
 0x1bc   :  { %v3570_v42 = vsel %vm8750_vm11, 0.0, %v8749_v10  ;;  %v3586_v25 = vsel %vm8760_vm6, 0.0, %v8759_v46  ;;  %v8763_v10 = vld [vmem:[#allocation163_spill] sm:$0xff]  ;;  %v8768_v45 = vsub.f32 %v8766_v53, %v8767_v12  ;;  %vm8774_vm6 = vcmp.ne.f32.partialorder %v3224_v58, %v3224_v58  ;;  %v8781_v53 = vld [vmem:[#allocation73_spill] sm:$0xff] }
 0x1bd   :  { %8751 = vst [vmem:[#allocation58_spill] sm:$0xff] %v3570_v42  ;;  %v8771_v46 = vld [vmem:[#allocation71_spill] sm:$0xff]  ;;  %v3618_v12 = vsel %vm8779_vm10, 0.0, %v8778_v55  ;;  %v8790_v55 = vld [vmem:[#allocation78_spill] sm:$0xff]  ;;  %vm8793_vm11 = vcmp.ne.f32.partialorder %v3244_v22, %v3244_v22  ;;  %vm8803_vm10 = vcmp.ne.f32.partialorder %v3252_v41, %v3252_v41  ;;  %v8806_v22 = vld [vmem:[#allocation85_spill] sm:$0xff] }
 0x1be   :  { %8761 = vst [vmem:[#allocation59_spill] sm:$0xff] %v3586_v25  ;;  %v3602_v26 = vsel %vm8769_vm9, 0.0, %v8768_v45  ;;  %v8772_v25 = vld [vmem:[#allocation75_spill] sm:$0xff]  ;;  %v8783_v45 = vsub.f32 %v8781_v53, %v8782_v39  ;;  %vm8784_vm9 = vcmp.ne.f32.partialorder %v3232_v8, %v3232_v8  ;;  %v8800_v8 = vld [vmem:[#allocation80_spill] sm:$0xff] }
 0x1bf   :  { %8770 = vst [vmem:[#allocation56_spill] sm:$0xff] %v3602_v26  ;;  %v8773_v42 = vsub.f32 %v8771_v46, %v8772_v25  ;;  %v8786_v46 = vld [vmem:[#allocation170_spill] sm:$0xff]  ;;  %v8802_v58 = vsub.f32 %v8800_v8, %v8801_v48  ;;  %v8812_v8 = vld [vmem:[#allocation180_spill] sm:$0xff]  ;;  %v8813_v48 = vld [vmem:[#allocation181_spill] sm:$0xff] }
 0x1c0   :  { %8780 = vst [vmem:[#allocation57_spill] sm:$0xff] %v3618_v12  ;;  %v3626_v25 = vsel %vm8784_vm9, 0.0, %v8783_v45  ;;  %v8791_v12 = vld [vmem:[#allocation82_spill] sm:$0xff]  ;;  %v8795_v45 = vld [vmem:[#allocation79_spill] sm:$0xff]  ;;  %vm8798_vm9 = vcmp.ne.f32.partialorder %v3248_v49, %v3248_v49  ;;  %v8825_v41 = vld [vmem:[#allocation92_spill] sm:$0xff] }
 0x1c1   :  { %v3610_v35 = vsel %vm8774_vm6, 0.0, %v8773_v42  ;;  %8785 = vst [vmem:[#allocation61_spill] sm:$0xff] %v3626_v25  ;;  %v8787_v42 = vld [vmem:[#allocation171_spill] sm:$0xff]  ;;  %v8792_v39 = vsub.f32 %v8790_v55, %v8791_v12  ;;  %v3658_v12 = vsel %vm8803_vm10, 0.0, %v8802_v58  ;;  %v8805_v55 = vld [vmem:[#allocation81_spill] sm:$0xff]  ;;  %v8814_v58 = vld [vmem:[#allocation86_spill] sm:$0xff]  ;;  %vm8817_vm6 = vcmp.ne.f32.partialorder %v3268_v24, %v3268_v24 }
 0x1c2   :  { %8775 = vst [vmem:[#allocation60_spill] sm:$0xff] %v3610_v35  ;;  %v8796_v25 = vld [vmem:[#allocation83_spill] sm:$0xff]  ;;  %vm8827_vm10 = vcmp.ne.f32.partialorder %v3276_v15, %v3276_v15  ;;  %v8830_v24 = vld [vmem:[#allocation93_spill] sm:$0xff] }
 0x1c3   :  { %v3642_v53 = vsel %vm8793_vm11, 0.0, %v8792_v39  ;;  %v8797_v35 = vsub.f32 %v8795_v45, %v8796_v25  ;;  %8804 = vst [vmem:[#allocation63_spill] sm:$0xff] %v3658_v12  ;;  %v8807_v39 = vsub.f32 %v8805_v55, %v8806_v22  ;;  %vm8808_vm11 = vcmp.ne.f32.partialorder %v3256_v0, %v3256_v0  ;;  %v8810_v45 = vld [vmem:[#allocation178_spill] sm:$0xff]  ;;  %v8824_v0 = vld [vmem:[#allocation88_spill] sm:$0xff] }
 0x1c4   :  { %8794 = vst [vmem:[#allocation62_spill] sm:$0xff] %v3642_v53  ;;  %v8815_v12 = vld [vmem:[#allocation90_spill] sm:$0xff]  ;;  %v8826_v49 = vsub.f32 %v8824_v0, %v8825_v41  ;;  %v8836_v0 = vld [vmem:[#allocation188_spill] sm:$0xff]  ;;  %v8837_v41 = vld [vmem:[#allocation189_spill] sm:$0xff] }
 0x1c5   :  { %v3650_v26 = vsel %vm8798_vm9, 0.0, %v8797_v35  ;;  %v3666_v25 = vsel %vm8808_vm11, 0.0, %v8807_v39  ;;  %v8811_v35 = vld [vmem:[#allocation179_spill] sm:$0xff]  ;;  %v8816_v22 = vsub.f32 %v8814_v58, %v8815_v12  ;;  %vm8822_vm11 = vcmp.ne.f32.partialorder %v3272_v20, %v3272_v20  ;;  %v8829_v58 = vld [vmem:[#allocation89_spill] sm:$0xff] }
 0x1c6   :  { %8799 = vst [vmem:[#allocation66_spill] sm:$0xff] %v3650_v26  ;;  %v8819_v39 = vld [vmem:[#allocation87_spill] sm:$0xff]  ;;  %v3698_v12 = vsel %vm8827_vm10, 0.0, %v8826_v49  ;;  %v8838_v49 = vld [vmem:[#allocation94_spill] sm:$0xff]  ;;  %vm8840_vm9 = vcmp.ne.f32.partialorder %v8608_v28, %v8608_v28  ;;  %vm8848_vm10 = vcmp.ne.f32.partialorder %v8610_v29, %v8610_v29 }
 0x1c7   :  { %8809 = vst [vmem:[#allocation67_spill] sm:$0xff] %v3666_v25  ;;  %v3682_v55 = vsel %vm8817_vm6, 0.0, %v8816_v22  ;;  %v8820_v25 = vld [vmem:[#allocation91_spill] sm:$0xff]  ;;  %v8831_v22 = vsub.f32 %v8829_v58, %v8830_v24  ;;  %vm8832_vm6 = vcmp.ne.f32.partialorder %v3280_v16, %v3280_v16  ;;  %v8839_v24 = vsub.f32 %v8838_v49, %v8608_v28  ;;  %v8850_v16 = vld [vmem:[#allocation97_spill] sm:$0xff] }
 0x1c8   :  { %8818 = vst [vmem:[#allocation64_spill] sm:$0xff] %v3682_v55  ;;  %v8821_v26 = vsub.f32 %v8819_v39, %v8820_v25  ;;  %v8834_v39 = vld [vmem:[#allocation186_spill] sm:$0xff]  ;;  %v8867_v28 = vld [vmem:[#allocation105_spill] sm:$0xff] }
 0x1c9   :  { %8828 = vst [vmem:[#allocation65_spill] sm:$0xff] %v3698_v12  ;;  %v3706_v25 = vsel %vm8832_vm6, 0.0, %v8831_v22  ;;  %v3722_v58 = vsel %vm8840_vm9, 0.0, %v8839_v24  ;;  %v8842_v22 = vld [vmem:[#allocation95_spill] sm:$0xff]  ;;  %vm8844_vm6 = vcmp.ne.f32.partialorder %v8609_v2, %v8609_v2  ;;  %v8851_v24 = vsub.f32 %v8850_v16, %v8611_v44 }
 0x1ca   :  { %v3690_v53 = vsel %vm8822_vm11, 0.0, %v8821_v26  ;;  %8833 = vst [vmem:[#allocation69_spill] sm:$0xff] %v3706_v25  ;;  %vm8120_vm11 = vcmp.ne.f32.partialorder %v8834_v39, %v8834_v39  ;;  %v8835_v26 = vld [vmem:[#allocation187_spill] sm:$0xff]  ;;  %v8843_v25 = vsub.f32 %v8842_v22, %v8609_v2  ;;  %vm8852_vm9 = vcmp.ne.f32.partialorder %v8611_v44, %v8611_v44 }
 0x1cb   :  { %8823 = vst [vmem:[#allocation68_spill] sm:$0xff] %v3690_v53  ;;  %v8846_v53 = vld [vmem:[#allocation96_spill] sm:$0xff]  ;;  %v3746_v22 = vsel %vm8852_vm9, 0.0, %v8851_v24  ;;  %vm8869_vm9 = vcmp.ne.f32.partialorder %v8615_v23, %v8615_v23 }
 0x1cc   :  { %8841 = vst [vmem:[#allocation70_spill] sm:$0xff] %v3722_v58  ;;  %v3730_v12 = vsel %vm8844_vm6, 0.0, %v8843_v25  ;;  %v8847_v55 = vsub.f32 %v8846_v53, %v8610_v29  ;;  %v8854_v58 = vld [vmem:[#allocation194_spill] sm:$0xff]  ;;  %v8855_v25 = vld [vmem:[#allocation195_spill] sm:$0xff]  ;;  %v8856_v53 = vld [vmem:[#allocation196_spill] sm:$0xff] }
 0x1cd   :  { %8845 = vst [vmem:[#allocation74_spill] sm:$0xff] %v3730_v12  ;;  %vm8126_vm6 = vcmp.ne.f32.partialorder %v8854_v58, %v8854_v58  ;;  %vm8125_vm8 = vcmp.ne.f32.partialorder %v8855_v25, %v8855_v25  ;;  %vm8127_vm7 = vcmp.ne.f32.partialorder %v8856_v53, %v8856_v53  ;;  %v8857_v12 = vld [vmem:[#allocation197_spill] sm:$0xff]  ;;  %v8864_v29 = vld [vmem:[#allocation104_spill] sm:$0xff] }
 0x1ce   :  { %v3738_v49 = vsel %vm8848_vm10, 0.0, %v8847_v55  ;;  %8853 = vst [vmem:[#allocation75_spill] sm:$0xff] %v3746_v22  ;;  %v8858_v55 = vld [vmem:[#allocation102_spill] sm:$0xff]  ;;  %v8861_v22 = vld [vmem:[#allocation103_spill] sm:$0xff]  ;;  %v8865_v2 = vsub.f32 %v8864_v29, %v8614_v32  ;;  %v8873_v29 = vld [vmem:[#allocation204_spill] sm:$0xff] }
 0x1cf   :  { %8849 = vst [vmem:[#allocation71_spill] sm:$0xff] %v3738_v49  ;;  %v8859_v16 = vsub.f32 %v8858_v55, %v8612_v31  ;;  %v8862_v49 = vsub.f32 %v8861_v22, %v8613_v30  ;;  %vm8134_vm10 = vcmp.ne.f32.partialorder %v8873_v29, %v8873_v29  ;;  %v8881_v32 = vld [vmem:[#allocation112_spill] sm:$0xff]  ;;  %v8884_v31 = vld [vmem:[#allocation113_spill] sm:$0xff] }
 0x1d0   :  { %v3778_v55 = vsel %vm8072_vm13, 0.0, %v8865_v2  ;;  %v8875_v2 = vld [vmem:[#allocation110_spill] sm:$0xff]  ;;  %v8882_v30 = vsub.f32 %v8881_v32, %v8630_v40  ;;  %v8889_v32 = vld [vmem:[#allocation212_spill] sm:$0xff] }
 0x1d1   :  { %v3762_v24 = vsel %vm8071_vm12, 0.0, %v8859_v16  ;;  %v3770_v44 = vsel %vm8070_vm14, 0.0, %v8862_v49  ;;  %8866 = vst [vmem:[#allocation73_spill] sm:$0xff] %v3778_v55  ;;  %v8868_v16 = vsub.f32 %v8867_v28, %v8615_v23  ;;  %v8872_v49 = vld [vmem:[#allocation203_spill] sm:$0xff]  ;;  %v8876_v28 = vsub.f32 %v8875_v2, %v8628_v4  ;;  %v8897_v40 = vld [vmem:[#allocation120_spill] sm:$0xff]  ;;  %v8900_v4 = vld [vmem:[#allocation121_spill] sm:$0xff] }
 0x1d2   :  { %8860 = vst [vmem:[#allocation72_spill] sm:$0xff] %v3762_v24  ;;  %v8871_v24 = vld [vmem:[#allocation202_spill] sm:$0xff]  ;;  %vm8132_vm12 = vcmp.ne.f32.partialorder %v8872_v49, %v8872_v49  ;;  %v3818_v2 = vsel %vm8079_vm15, 0.0, %v8882_v30 }
 0x1d3   :  { %8863 = vst [vmem:[#allocation76_spill] sm:$0xff] %v3770_v44  ;;  %v3786_v22 = vsel %vm8869_vm9, 0.0, %v8868_v16  ;;  %vm8133_vm14 = vcmp.ne.f32.partialorder %v8871_v24, %v8871_v24  ;;  %v8874_v44 = vld [vmem:[#allocation205_spill] sm:$0xff]  ;;  %v3802_v16 = vsel %vm8078_vm1, 0.0, %v8876_v28  ;;  %v8885_v28 = vsub.f32 %v8884_v31, %v8631_v6  ;;  %v8891_v30 = vld [vmem:[#allocation118_spill] sm:$0xff] }
 0x1d4   :  { %8870 = vst [vmem:[#allocation77_spill] sm:$0xff] %v3786_v22  ;;  %vm8138_vm13 = vcmp.ne.f32.partialorder %v8874_v44, %v8874_v44  ;;  %v8878_v22 = vld [vmem:[#allocation111_spill] sm:$0xff]  ;;  %v8892_v31 = vsub.f32 %v8891_v30, %v8644_v18  ;;  %vm8910_vm1 = vcmp.ne.f32.partialorder %v8662_v60, %v8662_v60  ;;  %v8920_v18 = vld [vmem:[#allocation129_spill] sm:$0xff] }
 0x1d5   :  { %8877 = vst [vmem:[#allocation78_spill] sm:$0xff] %v3802_v16  ;;  %v8879_v55 = vsub.f32 %v8878_v22, %v8629_v37  ;;  %v3826_v22 = vsel %vm8086_vm2, 0.0, %v8885_v28  ;;  %v8887_v16 = vld [vmem:[#allocation210_spill] sm:$0xff]  ;;  %v8898_v37 = vsub.f32 %v8897_v40, %v8646_v50  ;;  %v8906_v40 = vld [vmem:[#allocation220_spill] sm:$0xff] }
 0x1d6   :  { %8883 = vst [vmem:[#allocation79_spill] sm:$0xff] %v3818_v2  ;;  %vm8140_vm9 = vcmp.ne.f32.partialorder %v8887_v16, %v8887_v16  ;;  %v3842_v28 = vsel %vm8084_vm5, 0.0, %v8892_v31  ;;  %v8901_v31 = vsub.f32 %v8900_v4, %v8647_v5  ;;  %vm8902_vm5 = vcmp.ne.f32.partialorder %v8647_v5, %v8647_v5  ;;  %v8916_v50 = vld [vmem:[#allocation128_spill] sm:$0xff] }
 0x1d7   :  { %v3810_v23 = vsel %vm8077_vm0, 0.0, %v8879_v55  ;;  %8886 = vst [vmem:[#allocation83_spill] sm:$0xff] %v3826_v22  ;;  %v8888_v55 = vld [vmem:[#allocation211_spill] sm:$0xff]  ;;  %v3858_v30 = vsel %vm8087_vm3, 0.0, %v8898_v37  ;;  %v8908_v37 = vld [vmem:[#allocation126_spill] sm:$0xff]  ;;  %vm8918_vm3 = vcmp.ne.f32.partialorder %v8664_v14, %v8664_v14 }
 0x1d8   :  { %8880 = vst [vmem:[#allocation82_spill] sm:$0xff] %v3810_v23  ;;  %vm8141_vm0 = vcmp.ne.f32.partialorder %v8888_v55, %v8888_v55  ;;  %v8890_v23 = vld [vmem:[#allocation213_spill] sm:$0xff]  ;;  %v8894_v22 = vld [vmem:[#allocation119_spill] sm:$0xff]  ;;  %v8909_v4 = vsub.f32 %v8908_v37, %v8662_v60 }
 0x1d9   :  { %8893 = vst [vmem:[#allocation80_spill] sm:$0xff] %v3842_v28  ;;  %v8895_v2 = vsub.f32 %v8894_v22, %v8645_v7  ;;  %v3866_v22 = vsel %vm8902_vm5, 0.0, %v8901_v31  ;;  %v8904_v28 = vld [vmem:[#allocation218_spill] sm:$0xff]  ;;  %vm8914_vm5 = vcmp.ne.f32.partialorder %v8663_v19, %v8663_v19  ;;  %v8917_v7 = vsub.f32 %v8916_v50, %v8664_v14  ;;  %v8926_v50 = vld [vmem:[#allocation228_spill] sm:$0xff]  ;;  %v8940_v60 = vld [vmem:[#allocation137_spill] sm:$0xff] }
 0x1da   :  { %8899 = vst [vmem:[#allocation81_spill] sm:$0xff] %v3858_v30  ;;  %v3882_v31 = vsel %vm8910_vm1, 0.0, %v8909_v4  ;;  %v8921_v4 = vsub.f32 %v8920_v18, %v8665_v59  ;;  %vm8922_vm1 = vcmp.ne.f32.partialorder %v8665_v59, %v8665_v59  ;;  %v8936_v14 = vld [vmem:[#allocation136_spill] sm:$0xff] }
 0x1db   :  { %v3850_v6 = vsel %vm8085_vm4, 0.0, %v8895_v2  ;;  %8903 = vst [vmem:[#allocation85_spill] sm:$0xff] %v3866_v22  ;;  %v8905_v2 = vld [vmem:[#allocation219_spill] sm:$0xff]  ;;  %v3898_v37 = vsel %vm8918_vm3, 0.0, %v8917_v7  ;;  %v8928_v7 = vld [vmem:[#allocation134_spill] sm:$0xff]  ;;  %vm8930_vm4 = vcmp.ne.f32.partialorder %v8685_v9, %v8685_v9  ;;  %vm8938_vm3 = vcmp.ne.f32.partialorder %v8687_v61, %v8687_v61 }
 0x1dc   :  { %8896 = vst [vmem:[#allocation84_spill] sm:$0xff] %v3850_v6  ;;  %v8907_v6 = vld [vmem:[#allocation221_spill] sm:$0xff]  ;;  %v8912_v22 = vld [vmem:[#allocation127_spill] sm:$0xff]  ;;  %v8929_v18 = vsub.f32 %v8928_v7, %v8685_v9 }
 0x1dd   :  { %8911 = vst [vmem:[#allocation86_spill] sm:$0xff] %v3882_v31  ;;  %v8913_v30 = vsub.f32 %v8912_v22, %v8663_v19  ;;  %v3906_v22 = vsel %vm8922_vm1, 0.0, %v8921_v4  ;;  %v8924_v31 = vld [vmem:[#allocation226_spill] sm:$0xff]  ;;  %vm8934_vm1 = vcmp.ne.f32.partialorder %v8686_v47, %v8686_v47  ;;  %v8937_v19 = vsub.f32 %v8936_v14, %v8687_v61  ;;  %v8946_v14 = vld [vmem:[#allocation236_spill] sm:$0xff]  ;;  %v8960_v9 = vld [vmem:[#allocation145_spill] sm:$0xff] }
 0x1de   :  { %8919 = vst [vmem:[#allocation87_spill] sm:$0xff] %v3898_v37  ;;  %v3922_v4 = vsel %vm8930_vm4, 0.0, %v8929_v18  ;;  %v8941_v18 = vsub.f32 %v8940_v60, %v8688_v13  ;;  %vm8942_vm4 = vcmp.ne.f32.partialorder %v8688_v13, %v8688_v13  ;;  %v8956_v61 = vld [vmem:[#allocation144_spill] sm:$0xff] }
 0x1df   :  { %v3890_v5 = vsel %vm8914_vm5, 0.0, %v8913_v30  ;;  %8923 = vst [vmem:[#allocation91_spill] sm:$0xff] %v3906_v22  ;;  %v8925_v30 = vld [vmem:[#allocation227_spill] sm:$0xff]  ;;  %v3938_v7 = vsel %vm8938_vm3, 0.0, %v8937_v19  ;;  %v8948_v19 = vld [vmem:[#allocation142_spill] sm:$0xff]  ;;  %vm8950_vm5 = vcmp.ne.f32.partialorder %v8712_v21, %v8712_v21  ;;  %vm8958_vm3 = vcmp.ne.f32.partialorder %v8714_v43, %v8714_v43 }
 0x1e0   :  { %8915 = vst [vmem:[#allocation90_spill] sm:$0xff] %v3890_v5  ;;  %v8927_v5 = vld [vmem:[#allocation229_spill] sm:$0xff]  ;;  %v8932_v22 = vld [vmem:[#allocation135_spill] sm:$0xff]  ;;  %v8949_v60 = vsub.f32 %v8948_v19, %v8712_v21 }
 0x1e1   :  { %8931 = vst [vmem:[#allocation88_spill] sm:$0xff] %v3922_v4  ;;  %v8933_v37 = vsub.f32 %v8932_v22, %v8686_v47  ;;  %v3946_v22 = vsel %vm8942_vm4, 0.0, %v8941_v18  ;;  %v8944_v4 = vld [vmem:[#allocation234_spill] sm:$0xff]  ;;  %vm8954_vm4 = vcmp.ne.f32.partialorder %v8713_v3, %v8713_v3  ;;  %v8957_v47 = vsub.f32 %v8956_v61, %v8714_v43  ;;  %v8966_v61 = vld [vmem:[#allocation244_spill] sm:$0xff]  ;;  %v8980_v21 = vld [vmem:[#allocation153_spill] sm:$0xff] }
 0x1e2   :  { %8939 = vst [vmem:[#allocation89_spill] sm:$0xff] %v3938_v7  ;;  %v3962_v18 = vsel %vm8950_vm5, 0.0, %v8949_v60  ;;  %v8961_v60 = vsub.f32 %v8960_v9, %v8715_v56  ;;  %vm8962_vm5 = vcmp.ne.f32.partialorder %v8715_v56, %v8715_v56  ;;  %v8976_v43 = vld [vmem:[#allocation152_spill] sm:$0xff] }
 0x1e3   :  { %v3930_v59 = vsel %vm8934_vm1, 0.0, %v8933_v37  ;;  %8943 = vst [vmem:[#allocation93_spill] sm:$0xff] %v3946_v22  ;;  %v8945_v37 = vld [vmem:[#allocation235_spill] sm:$0xff]  ;;  %v3978_v19 = vsel %vm8958_vm3, 0.0, %v8957_v47  ;;  %v8968_v47 = vld [vmem:[#allocation150_spill] sm:$0xff]  ;;  %vm8970_vm1 = vcmp.ne.f32.partialorder %v8738_v52, %v8738_v52  ;;  %vm8978_vm3 = vcmp.ne.f32.partialorder %v8740_v36, %v8740_v36 }
 0x1e4   :  { %8935 = vst [vmem:[#allocation92_spill] sm:$0xff] %v3930_v59  ;;  %v8947_v59 = vld [vmem:[#allocation237_spill] sm:$0xff]  ;;  %v8952_v22 = vld [vmem:[#allocation143_spill] sm:$0xff]  ;;  %v8969_v9 = vsub.f32 %v8968_v47, %v8738_v52 }
 0x1e5   :  { %8951 = vst [vmem:[#allocation94_spill] sm:$0xff] %v3962_v18  ;;  %v8953_v7 = vsub.f32 %v8952_v22, %v8713_v3  ;;  %v3986_v22 = vsel %vm8962_vm5, 0.0, %v8961_v60  ;;  %v8964_v18 = vld [vmem:[#allocation242_spill] sm:$0xff]  ;;  %vm8974_vm5 = vcmp.ne.f32.partialorder %v8739_v27, %v8739_v27  ;;  %v8977_v3 = vsub.f32 %v8976_v43, %v8740_v36  ;;  %v8986_v43 = vld [vmem:[#allocation252_spill] sm:$0xff]  ;;  %v9000_v52 = vld [vmem:[#allocation161_spill] sm:$0xff] }
 0x1e6   :  { %8959 = vst [vmem:[#allocation96_spill] sm:$0xff] %v3978_v19  ;;  %v4002_v60 = vsel %vm8970_vm1, 0.0, %v8969_v9  ;;  %v8981_v9 = vsub.f32 %v8980_v21, %v8741_v34  ;;  %vm8982_vm1 = vcmp.ne.f32.partialorder %v8741_v34, %v8741_v34  ;;  %v8996_v36 = vld [vmem:[#allocation160_spill] sm:$0xff] }
 0x1e7   :  { %v3970_v13 = vsel %vm8954_vm4, 0.0, %v8953_v7  ;;  %8963 = vst [vmem:[#allocation97_spill] sm:$0xff] %v3986_v22  ;;  %v8965_v7 = vld [vmem:[#allocation243_spill] sm:$0xff]  ;;  %v4018_v47 = vsel %vm8978_vm3, 0.0, %v8977_v3  ;;  %v8988_v3 = vld [vmem:[#allocation158_spill] sm:$0xff]  ;;  %vm8990_vm4 = vcmp.ne.f32.partialorder %v8762_v38, %v8762_v38  ;;  %vm8998_vm3 = vcmp.ne.f32.partialorder %v8764_v33, %v8764_v33 }
 0x1e8   :  { %8955 = vst [vmem:[#allocation95_spill] sm:$0xff] %v3970_v13  ;;  %v8967_v13 = vld [vmem:[#allocation245_spill] sm:$0xff]  ;;  %v8972_v22 = vld [vmem:[#allocation151_spill] sm:$0xff]  ;;  %v8989_v21 = vsub.f32 %v8988_v3, %v8762_v38 }
 0x1e9   :  { %8971 = vst [vmem:[#allocation102_spill] sm:$0xff] %v4002_v60  ;;  %v8973_v19 = vsub.f32 %v8972_v22, %v8739_v27  ;;  %v4026_v22 = vsel %vm8982_vm1, 0.0, %v8981_v9  ;;  %v8984_v60 = vld [vmem:[#allocation250_spill] sm:$0xff]  ;;  %vm8994_vm1 = vcmp.ne.f32.partialorder %v8763_v10, %v8763_v10  ;;  %v8997_v27 = vsub.f32 %v8996_v36, %v8764_v33  ;;  %v9006_v36 = vld [vmem:[#allocation260_spill] sm:$0xff]  ;;  %v9020_v38 = vld [vmem:[#allocation169_spill] sm:$0xff] }
 0x1ea   :  { %8979 = vst [vmem:[#allocation104_spill] sm:$0xff] %v4018_v47  ;;  %v4042_v9 = vsel %vm8990_vm4, 0.0, %v8989_v21  ;;  %v9001_v21 = vsub.f32 %v9000_v52, %v8765_v63  ;;  %vm9002_vm4 = vcmp.ne.f32.partialorder %v8765_v63, %v8765_v63  ;;  %v9016_v33 = vld [vmem:[#allocation168_spill] sm:$0xff] }
 0x1eb   :  { %v4010_v56 = vsel %vm8974_vm5, 0.0, %v8973_v19  ;;  %8983 = vst [vmem:[#allocation105_spill] sm:$0xff] %v4026_v22  ;;  %v8985_v19 = vld [vmem:[#allocation251_spill] sm:$0xff]  ;;  %v4058_v3 = vsel %vm8998_vm3, 0.0, %v8997_v27  ;;  %v9008_v27 = vld [vmem:[#allocation166_spill] sm:$0xff]  ;;  %vm9010_vm5 = vcmp.ne.f32.partialorder %v8786_v46, %v8786_v46  ;;  %vm9018_vm3 = vcmp.ne.f32.partialorder %v8788_v54, %v8788_v54 }
 0x1ec   :  { %8975 = vst [vmem:[#allocation103_spill] sm:$0xff] %v4010_v56  ;;  %v8987_v56 = vld [vmem:[#allocation253_spill] sm:$0xff]  ;;  %v8992_v22 = vld [vmem:[#allocation159_spill] sm:$0xff]  ;;  %v9009_v52 = vsub.f32 %v9008_v27, %v8786_v46 }
 0x1ed   :  { %8991 = vst [vmem:[#allocation110_spill] sm:$0xff] %v4042_v9  ;;  %v8993_v47 = vsub.f32 %v8992_v22, %v8763_v10  ;;  %v4066_v22 = vsel %vm9002_vm4, 0.0, %v9001_v21  ;;  %v9004_v9 = vld [vmem:[#allocation258_spill] sm:$0xff]  ;;  %vm9014_vm4 = vcmp.ne.f32.partialorder %v8787_v42, %v8787_v42  ;;  %v9017_v10 = vsub.f32 %v9016_v33, %v8788_v54  ;;  %v9026_v33 = vld [vmem:[#allocation268_spill] sm:$0xff]  ;;  %v9040_v46 = vld [vmem:[#allocation177_spill] sm:$0xff] }
 0x1ee   :  { %8999 = vst [vmem:[#allocation112_spill] sm:$0xff] %v4058_v3  ;;  %v4082_v21 = vsel %vm9010_vm5, 0.0, %v9009_v52  ;;  %v9021_v52 = vsub.f32 %v9020_v38, %v8789_v57  ;;  %vm9022_vm5 = vcmp.ne.f32.partialorder %v8789_v57, %v8789_v57  ;;  %v9036_v54 = vld [vmem:[#allocation176_spill] sm:$0xff] }
 0x1ef   :  { %v4050_v34 = vsel %vm8994_vm1, 0.0, %v8993_v47  ;;  %9003 = vst [vmem:[#allocation113_spill] sm:$0xff] %v4066_v22  ;;  %v9005_v47 = vld [vmem:[#allocation259_spill] sm:$0xff]  ;;  %v4098_v27 = vsel %vm9018_vm3, 0.0, %v9017_v10  ;;  %v9028_v10 = vld [vmem:[#allocation174_spill] sm:$0xff]  ;;  %vm9030_vm1 = vcmp.ne.f32.partialorder %v8810_v45, %v8810_v45  ;;  %vm9038_vm3 = vcmp.ne.f32.partialorder %v8812_v8, %v8812_v8 }
 0x1f0   :  { %8995 = vst [vmem:[#allocation111_spill] sm:$0xff] %v4050_v34  ;;  %v9007_v34 = vld [vmem:[#allocation261_spill] sm:$0xff]  ;;  %v9012_v22 = vld [vmem:[#allocation167_spill] sm:$0xff]  ;;  %v9029_v38 = vsub.f32 %v9028_v10, %v8810_v45 }
 0x1f1   :  { %9011 = vst [vmem:[#allocation118_spill] sm:$0xff] %v4082_v21  ;;  %v9013_v3 = vsub.f32 %v9012_v22, %v8787_v42  ;;  %v4106_v22 = vsel %vm9022_vm5, 0.0, %v9021_v52  ;;  %v9024_v21 = vld [vmem:[#allocation266_spill] sm:$0xff]  ;;  %vm9034_vm5 = vcmp.ne.f32.partialorder %v8811_v35, %v8811_v35  ;;  %v9037_v42 = vsub.f32 %v9036_v54, %v8812_v8  ;;  %v9046_v54 = vld [vmem:[#allocation276_spill] sm:$0xff]  ;;  %v9059_v45 = vld [vmem:[#allocation185_spill] sm:$0xff] }
 0x1f2   :  { %9019 = vst [vmem:[#allocation120_spill] sm:$0xff] %v4098_v27  ;;  %v4122_v52 = vsel %vm9030_vm1, 0.0, %v9029_v38  ;;  %v9041_v38 = vsub.f32 %v9040_v46, %v8813_v48  ;;  %vm9042_vm1 = vcmp.ne.f32.partialorder %v8813_v48, %v8813_v48  ;;  %v9055_v8 = vld [vmem:[#allocation184_spill] sm:$0xff] }
 0x1f3   :  { %v4090_v63 = vsel %vm9014_vm4, 0.0, %v9013_v3  ;;  %9023 = vst [vmem:[#allocation121_spill] sm:$0xff] %v4106_v22  ;;  %vm8169_vm4 = vcmp.ne.f32.partialorder %v9024_v21, %v9024_v21  ;;  %v9025_v3 = vld [vmem:[#allocation267_spill] sm:$0xff]  ;;  %v4138_v10 = vsel %vm9038_vm3, 0.0, %v9037_v42  ;;  %v9048_v42 = vld [vmem:[#allocation182_spill] sm:$0xff]  ;;  %vm9057_vm3 = vcmp.ne.f32.partialorder %v8836_v0, %v8836_v0 }
 0x1f4   :  { %9015 = vst [vmem:[#allocation119_spill] sm:$0xff] %v4090_v63  ;;  %v9027_v63 = vld [vmem:[#allocation269_spill] sm:$0xff]  ;;  %v9032_v22 = vld [vmem:[#allocation175_spill] sm:$0xff]  ;;  %v9049_v46 = vsub.f32 %v9048_v42, %v8834_v39 }
 0x1f5   :  { %9031 = vst [vmem:[#allocation126_spill] sm:$0xff] %v4122_v52  ;;  %v9033_v27 = vsub.f32 %v9032_v22, %v8811_v35  ;;  %v4146_v22 = vsel %vm9042_vm1, 0.0, %v9041_v38  ;;  %v9044_v52 = vld [vmem:[#allocation274_spill] sm:$0xff]  ;;  %vm9053_vm1 = vcmp.ne.f32.partialorder %v8835_v26, %v8835_v26  ;;  %v9056_v35 = vsub.f32 %v9055_v8, %v8836_v0  ;;  %v9065_v8 = vld [vmem:[#allocation284_spill] sm:$0xff]  ;;  %v9076_v39 = vld [vmem:[#allocation193_spill] sm:$0xff] }
 0x1f6   :  { %9039 = vst [vmem:[#allocation128_spill] sm:$0xff] %v4138_v10  ;;  %v4162_v38 = vsel %vm8120_vm11, 0.0, %v9049_v46  ;;  %v9060_v46 = vsub.f32 %v9059_v45, %v8837_v41  ;;  %vm9061_vm11 = vcmp.ne.f32.partialorder %v8837_v41, %v8837_v41  ;;  %vm8177_vm15 = vcmp.ne.f32.partialorder %v9065_v8, %v9065_v8  ;;  %v9073_v0 = vld [vmem:[#allocation192_spill] sm:$0xff] }
 0x1f7   :  { %v4130_v57 = vsel %vm9034_vm5, 0.0, %v9033_v27  ;;  %9043 = vst [vmem:[#allocation129_spill] sm:$0xff] %v4146_v22  ;;  %vm8171_vm5 = vcmp.ne.f32.partialorder %v9044_v52, %v9044_v52  ;;  %v9045_v27 = vld [vmem:[#allocation275_spill] sm:$0xff]  ;;  %v4178_v42 = vsel %vm9057_vm3, 0.0, %v9056_v35  ;;  %v9067_v35 = vld [vmem:[#allocation190_spill] sm:$0xff] }
 0x1f8   :  { %9035 = vst [vmem:[#allocation127_spill] sm:$0xff] %v4130_v57  ;;  %v9047_v57 = vld [vmem:[#allocation277_spill] sm:$0xff]  ;;  %v9051_v22 = vld [vmem:[#allocation183_spill] sm:$0xff]  ;;  %v9068_v45 = vsub.f32 %v9067_v35, %v8854_v58 }
 0x1f9   :  { %9050 = vst [vmem:[#allocation134_spill] sm:$0xff] %v4162_v38  ;;  %v9052_v10 = vsub.f32 %v9051_v22, %v8835_v26  ;;  %v4186_v22 = vsel %vm9061_vm11, 0.0, %v9060_v46  ;;  %v9063_v38 = vld [vmem:[#allocation282_spill] sm:$0xff]  ;;  %v9074_v26 = vsub.f32 %v9073_v0, %v8856_v53  ;;  %vm9078_vm11 = vcmp.ne.f32.partialorder %v8857_v12, %v8857_v12  ;;  %v9082_v0 = vld [vmem:[#allocation292_spill] sm:$0xff]  ;;  %v9093_v58 = vld [vmem:[#allocation201_spill] sm:$0xff] }
 0x1fa   :  { %9058 = vst [vmem:[#allocation136_spill] sm:$0xff] %v4178_v42  ;;  %v4202_v46 = vsel %vm8126_vm6, 0.0, %v9068_v45  ;;  %v9077_v45 = vsub.f32 %v9076_v39, %v8857_v12  ;;  %vm8184_vm3 = vcmp.ne.f32.partialorder %v9082_v0, %v9082_v0  ;;  %v9090_v53 = vld [vmem:[#allocation200_spill] sm:$0xff] }
 0x1fb   :  { %v4170_v48 = vsel %vm9053_vm1, 0.0, %v9052_v10  ;;  %9062 = vst [vmem:[#allocation137_spill] sm:$0xff] %v4186_v22  ;;  %vm8176_vm1 = vcmp.ne.f32.partialorder %v9063_v38, %v9063_v38  ;;  %v9064_v10 = vld [vmem:[#allocation283_spill] sm:$0xff]  ;;  %v4218_v35 = vsel %vm8127_vm7, 0.0, %v9074_v26  ;;  %v9084_v26 = vld [vmem:[#allocation198_spill] sm:$0xff] }
 0x1fc   :  { %9054 = vst [vmem:[#allocation135_spill] sm:$0xff] %v4170_v48  ;;  %vm8175_vm2 = vcmp.ne.f32.partialorder %v9064_v10, %v9064_v10  ;;  %v9066_v48 = vld [vmem:[#allocation285_spill] sm:$0xff]  ;;  %v9070_v22 = vld [vmem:[#allocation191_spill] sm:$0xff]  ;;  %v9085_v39 = vsub.f32 %v9084_v26, %v8871_v24 }
 0x1fd   :  { %9069 = vst [vmem:[#allocation142_spill] sm:$0xff] %v4202_v46  ;;  %v9071_v42 = vsub.f32 %v9070_v22, %v8855_v25  ;;  %v4226_v22 = vsel %vm9078_vm11, 0.0, %v9077_v45  ;;  %v9080_v46 = vld [vmem:[#allocation290_spill] sm:$0xff]  ;;  %v9091_v25 = vsub.f32 %v9090_v53, %v8873_v29  ;;  %v9098_v53 = vld [vmem:[#allocation300_spill] sm:$0xff]  ;;  %v9110_v24 = vld [vmem:[#allocation209_spill] sm:$0xff] }
 0x1fe   :  { %9075 = vst [vmem:[#allocation144_spill] sm:$0xff] %v4218_v35  ;;  %v4242_v45 = vsel %vm8133_vm14, 0.0, %v9085_v39  ;;  %v9094_v39 = vsub.f32 %v9093_v58, %v8874_v44  ;;  %v9106_v29 = vld [vmem:[#allocation208_spill] sm:$0xff] }
 0x1ff   :  { %v4210_v41 = vsel %vm8125_vm8, 0.0, %v9071_v42  ;;  %9079 = vst [vmem:[#allocation145_spill] sm:$0xff] %v4226_v22  ;;  %vm8183_vm8 = vcmp.ne.f32.partialorder %v9080_v46, %v9080_v46  ;;  %v9081_v42 = vld [vmem:[#allocation291_spill] sm:$0xff]  ;;  %v4258_v26 = vsel %vm8134_vm10, 0.0, %v9091_v25  ;;  %v9100_v25 = vld [vmem:[#allocation206_spill] sm:$0xff] }
 0x200   :  { %9072 = vst [vmem:[#allocation143_spill] sm:$0xff] %v4210_v41  ;;  %vm8182_vm6 = vcmp.ne.f32.partialorder %v9081_v42, %v9081_v42  ;;  %v9083_v41 = vld [vmem:[#allocation293_spill] sm:$0xff]  ;;  %v9087_v22 = vld [vmem:[#allocation199_spill] sm:$0xff]  ;;  %v9101_v58 = vsub.f32 %v9100_v25, %v8887_v16 }
 0x201   :  { %vm8185_vm7 = vcmp.ne.f32.partialorder %v9083_v41, %v9083_v41  ;;  %9086 = vst [vmem:[#allocation150_spill] sm:$0xff] %v4242_v45  ;;  %v9088_v35 = vsub.f32 %v9087_v22, %v8872_v49  ;;  %v4266_v22 = vsel %vm8138_vm13, 0.0, %v9094_v39  ;;  %v9096_v45 = vld [vmem:[#allocation298_spill] sm:$0xff]  ;;  %v9107_v49 = vsub.f32 %v9106_v29, %v8889_v32  ;;  %v9116_v29 = vld [vmem:[#allocation308_spill] sm:$0xff]  ;;  %v9130_v16 = vld [vmem:[#allocation217_spill] sm:$0xff] }
 0x202   :  { %9092 = vst [vmem:[#allocation152_spill] sm:$0xff] %v4258_v26  ;;  %vm8190_vm11 = vcmp.ne.f32.partialorder %v9096_v45, %v9096_v45  ;;  %v4282_v39 = vsel %vm8140_vm9, 0.0, %v9101_v58  ;;  %vm9108_vm13 = vcmp.ne.f32.partialorder %v8889_v32, %v8889_v32  ;;  %v9111_v58 = vsub.f32 %v9110_v24, %v8890_v23  ;;  %v9126_v32 = vld [vmem:[#allocation216_spill] sm:$0xff] }
 0x203   :  { %v4250_v12 = vsel %vm8132_vm12, 0.0, %v9088_v35  ;;  %9095 = vst [vmem:[#allocation153_spill] sm:$0xff] %v4266_v22  ;;  %v9097_v35 = vld [vmem:[#allocation299_spill] sm:$0xff]  ;;  %v4298_v25 = vsel %vm9108_vm13, 0.0, %v9107_v49  ;;  %vm9112_vm9 = vcmp.ne.f32.partialorder %v8890_v23, %v8890_v23  ;;  %v9118_v49 = vld [vmem:[#allocation214_spill] sm:$0xff]  ;;  %vm9120_vm12 = vcmp.ne.f32.partialorder %v8904_v28, %v8904_v28 }
 0x204   :  { %9089 = vst [vmem:[#allocation151_spill] sm:$0xff] %v4250_v12  ;;  %v9099_v12 = vld [vmem:[#allocation301_spill] sm:$0xff]  ;;  %v9103_v22 = vld [vmem:[#allocation207_spill] sm:$0xff]  ;;  %v9119_v24 = vsub.f32 %v9118_v49, %v8904_v28  ;;  %vm9128_vm13 = vcmp.ne.f32.partialorder %v8906_v40, %v8906_v40 }
 0x205   :  { %9102 = vst [vmem:[#allocation158_spill] sm:$0xff] %v4282_v39  ;;  %v9104_v26 = vsub.f32 %v9103_v22, %v8888_v55  ;;  %v4306_v22 = vsel %vm9112_vm9, 0.0, %v9111_v58  ;;  %v9114_v39 = vld [vmem:[#allocation306_spill] sm:$0xff]  ;;  %vm9124_vm9 = vcmp.ne.f32.partialorder %v8905_v2, %v8905_v2  ;;  %v9127_v55 = vsub.f32 %v9126_v32, %v8906_v40  ;;  %v9136_v32 = vld [vmem:[#allocation316_spill] sm:$0xff]  ;;  %v9150_v28 = vld [vmem:[#allocation225_spill] sm:$0xff] }
 0x206   :  { %9109 = vst [vmem:[#allocation160_spill] sm:$0xff] %v4298_v25  ;;  %v4322_v58 = vsel %vm9120_vm12, 0.0, %v9119_v24  ;;  %v9131_v24 = vsub.f32 %v9130_v16, %v8907_v6  ;;  %vm9132_vm12 = vcmp.ne.f32.partialorder %v8907_v6, %v8907_v6  ;;  %v9146_v40 = vld [vmem:[#allocation224_spill] sm:$0xff] }
 0x207   :  { %v4290_v44 = vsel %vm8141_vm0, 0.0, %v9104_v26  ;;  %9113 = vst [vmem:[#allocation161_spill] sm:$0xff] %v4306_v22  ;;  %v9115_v26 = vld [vmem:[#allocation307_spill] sm:$0xff]  ;;  %v4338_v49 = vsel %vm9128_vm13, 0.0, %v9127_v55  ;;  %v9138_v55 = vld [vmem:[#allocation222_spill] sm:$0xff]  ;;  %vm9140_vm0 = vcmp.ne.f32.partialorder %v8924_v31, %v8924_v31  ;;  %vm9148_vm13 = vcmp.ne.f32.partialorder %v8926_v50, %v8926_v50 }
 0x208   :  { %9105 = vst [vmem:[#allocation159_spill] sm:$0xff] %v4290_v44  ;;  %v9117_v44 = vld [vmem:[#allocation309_spill] sm:$0xff]  ;;  %v9122_v22 = vld [vmem:[#allocation215_spill] sm:$0xff]  ;;  %v9139_v16 = vsub.f32 %v9138_v55, %v8924_v31 }
 0x209   :  { %9121 = vst [vmem:[#allocation258_spill] sm:$0xff] %v4322_v58  ;;  %v9123_v25 = vsub.f32 %v9122_v22, %v8905_v2  ;;  %v4346_v22 = vsel %vm9132_vm12, 0.0, %v9131_v24  ;;  %v9134_v58 = vld [vmem:[#allocation314_spill] sm:$0xff]  ;;  %vm9144_vm12 = vcmp.ne.f32.partialorder %v8925_v30, %v8925_v30  ;;  %v9147_v2 = vsub.f32 %v9146_v40, %v8926_v50  ;;  %v9156_v40 = vld [vmem:[#allocation324_spill] sm:$0xff]  ;;  %v9170_v31 = vld [vmem:[#allocation233_spill] sm:$0xff] }
 0x20a   :  { %9129 = vst [vmem:[#allocation167_spill] sm:$0xff] %v4338_v49  ;;  %v4362_v24 = vsel %vm9140_vm0, 0.0, %v9139_v16  ;;  %v9151_v16 = vsub.f32 %v9150_v28, %v8927_v5  ;;  %vm9152_vm0 = vcmp.ne.f32.partialorder %v8927_v5, %v8927_v5  ;;  %v9166_v50 = vld [vmem:[#allocation232_spill] sm:$0xff] }
 0x20b   :  { %v4330_v23 = vsel %vm9124_vm9, 0.0, %v9123_v25  ;;  %9133 = vst [vmem:[#allocation168_spill] sm:$0xff] %v4346_v22  ;;  %v9135_v25 = vld [vmem:[#allocation315_spill] sm:$0xff]  ;;  %v4378_v55 = vsel %vm9148_vm13, 0.0, %v9147_v2  ;;  %v9158_v2 = vld [vmem:[#allocation230_spill] sm:$0xff]  ;;  %vm9160_vm9 = vcmp.ne.f32.partialorder %v8944_v4, %v8944_v4  ;;  %vm9168_vm13 = vcmp.ne.f32.partialorder %v8946_v14, %v8946_v14 }
 0x20c   :  { %9125 = vst [vmem:[#allocation166_spill] sm:$0xff] %v4330_v23  ;;  %v9137_v23 = vld [vmem:[#allocation317_spill] sm:$0xff]  ;;  %v9142_v22 = vld [vmem:[#allocation223_spill] sm:$0xff]  ;;  %v9159_v28 = vsub.f32 %v9158_v2, %v8944_v4 }
 0x20d   :  { %9141 = vst [vmem:[#allocation169_spill] sm:$0xff] %v4362_v24  ;;  %v9143_v49 = vsub.f32 %v9142_v22, %v8925_v30  ;;  %v4386_v22 = vsel %vm9152_vm0, 0.0, %v9151_v16  ;;  %v9154_v24 = vld [vmem:[#allocation322_spill] sm:$0xff]  ;;  %vm9164_vm0 = vcmp.ne.f32.partialorder %v8945_v37, %v8945_v37  ;;  %v9167_v30 = vsub.f32 %v9166_v50, %v8946_v14  ;;  %v9176_v50 = vld [vmem:[#allocation332_spill] sm:$0xff]  ;;  %v9190_v4 = vld [vmem:[#allocation241_spill] sm:$0xff] }
 0x20e   :  { %9149 = vst [vmem:[#allocation267_spill] sm:$0xff] %v4378_v55  ;;  %v4402_v16 = vsel %vm9160_vm9, 0.0, %v9159_v28  ;;  %v9171_v28 = vsub.f32 %v9170_v31, %v8947_v59  ;;  %vm9172_vm9 = vcmp.ne.f32.partialorder %v8947_v59, %v8947_v59  ;;  %v9186_v14 = vld [vmem:[#allocation240_spill] sm:$0xff] }
 0x20f   :  { %v4370_v6 = vsel %vm9144_vm12, 0.0, %v9143_v49  ;;  %9153 = vst [vmem:[#allocation268_spill] sm:$0xff] %v4386_v22  ;;  %v9155_v49 = vld [vmem:[#allocation323_spill] sm:$0xff]  ;;  %v4418_v2 = vsel %vm9168_vm13, 0.0, %v9167_v30  ;;  %v9178_v30 = vld [vmem:[#allocation238_spill] sm:$0xff]  ;;  %vm9180_vm12 = vcmp.ne.f32.partialorder %v8964_v18, %v8964_v18  ;;  %vm9188_vm13 = vcmp.ne.f32.partialorder %v8966_v61, %v8966_v61 }
 0x210   :  { %9145 = vst [vmem:[#allocation266_spill] sm:$0xff] %v4370_v6  ;;  %v9157_v6 = vld [vmem:[#allocation325_spill] sm:$0xff]  ;;  %v9162_v22 = vld [vmem:[#allocation231_spill] sm:$0xff]  ;;  %v9179_v31 = vsub.f32 %v9178_v30, %v8964_v18 }
 0x211   :  { %9161 = vst [vmem:[#allocation174_spill] sm:$0xff] %v4402_v16  ;;  %v9163_v55 = vsub.f32 %v9162_v22, %v8945_v37  ;;  %v4426_v22 = vsel %vm9172_vm9, 0.0, %v9171_v28  ;;  %v9174_v16 = vld [vmem:[#allocation330_spill] sm:$0xff]  ;;  %vm9184_vm9 = vcmp.ne.f32.partialorder %v8965_v7, %v8965_v7  ;;  %v9187_v37 = vsub.f32 %v9186_v14, %v8966_v61  ;;  %v9196_v14 = vld [vmem:[#allocation340_spill] sm:$0xff]  ;;  %v9210_v18 = vld [vmem:[#allocation249_spill] sm:$0xff] }
 0x212   :  { %9169 = vst [vmem:[#allocation176_spill] sm:$0xff] %v4418_v2  ;;  %v4442_v28 = vsel %vm9180_vm12, 0.0, %v9179_v31  ;;  %v9191_v31 = vsub.f32 %v9190_v4, %v8967_v13  ;;  %vm9192_vm12 = vcmp.ne.f32.partialorder %v8967_v13, %v8967_v13  ;;  %v9206_v61 = vld [vmem:[#allocation248_spill] sm:$0xff] }
 0x213   :  { %v4410_v5 = vsel %vm9164_vm0, 0.0, %v9163_v55  ;;  %9173 = vst [vmem:[#allocation177_spill] sm:$0xff] %v4426_v22  ;;  %v9175_v55 = vld [vmem:[#allocation331_spill] sm:$0xff]  ;;  %v4458_v30 = vsel %vm9188_vm13, 0.0, %v9187_v37  ;;  %v9198_v37 = vld [vmem:[#allocation246_spill] sm:$0xff]  ;;  %vm9200_vm0 = vcmp.ne.f32.partialorder %v8984_v60, %v8984_v60  ;;  %vm9208_vm13 = vcmp.ne.f32.partialorder %v8986_v43, %v8986_v43 }
 0x214   :  { %9165 = vst [vmem:[#allocation175_spill] sm:$0xff] %v4410_v5  ;;  %v9177_v5 = vld [vmem:[#allocation333_spill] sm:$0xff]  ;;  %v9182_v22 = vld [vmem:[#allocation239_spill] sm:$0xff]  ;;  %v9199_v4 = vsub.f32 %v9198_v37, %v8984_v60 }
 0x215   :  { %9181 = vst [vmem:[#allocation274_spill] sm:$0xff] %v4442_v28  ;;  %v9183_v2 = vsub.f32 %v9182_v22, %v8965_v7  ;;  %v4466_v22 = vsel %vm9192_vm12, 0.0, %v9191_v31  ;;  %v9194_v28 = vld [vmem:[#allocation338_spill] sm:$0xff]  ;;  %vm9204_vm12 = vcmp.ne.f32.partialorder %v8985_v19, %v8985_v19  ;;  %v9207_v7 = vsub.f32 %v9206_v61, %v8986_v43  ;;  %v9216_v61 = vld [vmem:[#allocation348_spill] sm:$0xff]  ;;  %v9230_v60 = vld [vmem:[#allocation257_spill] sm:$0xff] }
 0x216   :  { %9189 = vst [vmem:[#allocation183_spill] sm:$0xff] %v4458_v30  ;;  %v4482_v31 = vsel %vm9200_vm0, 0.0, %v9199_v4  ;;  %v9211_v4 = vsub.f32 %v9210_v18, %v8987_v56  ;;  %vm9212_vm0 = vcmp.ne.f32.partialorder %v8987_v56, %v8987_v56  ;;  %v9226_v43 = vld [vmem:[#allocation256_spill] sm:$0xff] }
 0x217   :  { %v4450_v59 = vsel %vm9184_vm9, 0.0, %v9183_v2  ;;  %9193 = vst [vmem:[#allocation184_spill] sm:$0xff] %v4466_v22  ;;  %v9195_v2 = vld [vmem:[#allocation339_spill] sm:$0xff]  ;;  %v4498_v37 = vsel %vm9208_vm13, 0.0, %v9207_v7  ;;  %v9218_v7 = vld [vmem:[#allocation254_spill] sm:$0xff]  ;;  %vm9220_vm9 = vcmp.ne.f32.partialorder %v9004_v9, %v9004_v9  ;;  %vm9228_vm13 = vcmp.ne.f32.partialorder %v9006_v36, %v9006_v36 }
 0x218   :  { %9185 = vst [vmem:[#allocation182_spill] sm:$0xff] %v4450_v59  ;;  %v9197_v59 = vld [vmem:[#allocation341_spill] sm:$0xff]  ;;  %v9202_v22 = vld [vmem:[#allocation247_spill] sm:$0xff]  ;;  %v9219_v18 = vsub.f32 %v9218_v7, %v9004_v9 }
 0x219   :  { %9201 = vst [vmem:[#allocation185_spill] sm:$0xff] %v4482_v31  ;;  %v9203_v30 = vsub.f32 %v9202_v22, %v8985_v19  ;;  %v4506_v22 = vsel %vm9212_vm0, 0.0, %v9211_v4  ;;  %v9214_v31 = vld [vmem:[#allocation346_spill] sm:$0xff]  ;;  %vm9224_vm0 = vcmp.ne.f32.partialorder %v9005_v47, %v9005_v47  ;;  %v9227_v19 = vsub.f32 %v9226_v43, %v9006_v36  ;;  %v9235_v43 = vld [vmem:[#allocation355_spill] sm:$0xff] }
 0x21a   :  { %9209 = vst [vmem:[#allocation191_spill] sm:$0xff] %v4498_v37  ;;  %v4522_v4 = vsel %vm9220_vm9, 0.0, %v9219_v18  ;;  %v9231_v18 = vsub.f32 %v9230_v60, %v9007_v34  ;;  %vm9232_vm9 = vcmp.ne.f32.partialorder %v9007_v34, %v9007_v34  ;;  %v9244_v34 = vld [vmem:[#allocation264_spill] sm:$0xff] }
 0x21b   :  { %v4490_v13 = vsel %vm9204_vm12, 0.0, %v9203_v30  ;;  %9213 = vst [vmem:[#allocation192_spill] sm:$0xff] %v4506_v22  ;;  %vm621_vm12 = vcmp.ne.f32.partialorder %v9214_v31, %v9214_v31  ;;  %v9215_v30 = vld [vmem:[#allocation347_spill] sm:$0xff]  ;;  %v4538_v7 = vsel %vm9228_vm13, 0.0, %v9227_v19  ;;  %v9237_v19 = vld [vmem:[#allocation262_spill] sm:$0xff]  ;;  %v9245_v36 = vsub.f32 %v9244_v34, %v9026_v33  ;;  %v9252_v34 = vld [vmem:[#allocation365_spill] sm:$0xff] }
 0x21c   :  { %9205 = vst [vmem:[#allocation190_spill] sm:$0xff] %v4490_v13  ;;  %v9217_v13 = vld [vmem:[#allocation349_spill] sm:$0xff]  ;;  %v9222_v22 = vld [vmem:[#allocation255_spill] sm:$0xff]  ;;  %v9238_v60 = vsub.f32 %v9237_v19, %v9024_v21  ;;  %vm9246_vm13 = vcmp.ne.f32.partialorder %v9026_v33, %v9026_v33 }
 0x21d   :  { %9221 = vst [vmem:[#allocation193_spill] sm:$0xff] %v4522_v4  ;;  %v9223_v37 = vsub.f32 %v9222_v22, %v9005_v47  ;;  %v4546_v22 = vsel %vm9232_vm9, 0.0, %v9231_v18  ;;  %vm9242_vm9 = vcmp.ne.f32.partialorder %v9025_v3, %v9025_v3  ;;  %v4578_v19 = vsel %vm9246_vm13, 0.0, %v9245_v36  ;;  %v9248_v47 = vld [vmem:[#allocation265_spill] sm:$0xff]  ;;  %v9253_v36 = vld [vmem:[#allocation270_spill] sm:$0xff] }
 0x21e   :  { %9229 = vst [vmem:[#allocation199_spill] sm:$0xff] %v4538_v7  ;;  %v4562_v18 = vsel %vm8169_vm4, 0.0, %v9238_v60  ;;  %v9249_v60 = vsub.f32 %v9248_v47, %v9027_v63  ;;  %vm9250_vm4 = vcmp.ne.f32.partialorder %v9027_v63, %v9027_v63  ;;  %v9254_v47 = vsub.f32 %v9253_v36, %v9044_v52  ;;  %v9264_v63 = vld [vmem:[#allocation273_spill] sm:$0xff] }
 0x21f   :  { %v4530_v56 = vsel %vm9224_vm0, 0.0, %v9223_v37  ;;  %9233 = vst [vmem:[#allocation200_spill] sm:$0xff] %v4546_v22  ;;  %vm625_vm0 = vcmp.ne.f32.partialorder %v2996_v51, %v2996_v51  ;;  %v9234_v37 = vld [vmem:[#allocation354_spill] sm:$0xff]  ;;  %v9240_v22 = vld [vmem:[#allocation263_spill] sm:$0xff]  ;;  %vm9262_vm13 = vcmp.ne.f32.partialorder %v9046_v54, %v9046_v54 }
 0x220   :  { %9225 = vst [vmem:[#allocation198_spill] sm:$0xff] %v4530_v56  ;;  %v9236_v56 = vld [vmem:[#allocation360_spill] sm:$0xff]  ;;  %v9241_v7 = vsub.f32 %v9240_v22, %v9025_v3  ;;  %v4586_v22 = vsel %vm9250_vm4, 0.0, %v9249_v60  ;;  %v9256_v60 = vld [vmem:[#allocation271_spill] sm:$0xff]  ;;  %vm9258_vm4 = vcmp.ne.f32.partialorder %v9045_v27, %v9045_v27 }
 0x221   :  { %9239 = vst [vmem:[#allocation201_spill] sm:$0xff] %v4562_v18 }
 0x222   :  { %v4570_v4 = vsel %vm9242_vm9, 0.0, %v9241_v7  ;;  %9247 = vst [vmem:[#allocation207_spill] sm:$0xff] %v4578_v19  ;;  %vm629_vm9 = vcmp.ne.f32.partialorder %v3028_v1, %v3028_v1  ;;  %v4602_v7 = vsel %vm8171_vm5, 0.0, %v9254_v47  ;;  %v9265_v47 = vsub.f32 %v9264_v63, %v9047_v57 }
 0x223   :  { %9243 = vst [vmem:[#allocation206_spill] sm:$0xff] %v4570_v4  ;;  %v9260_v4 = vld [vmem:[#allocation272_spill] sm:$0xff]  ;;  %vm9266_vm5 = vcmp.ne.f32.partialorder %v9047_v57, %v9047_v57 }
 0x224   :  { %9251 = vst [vmem:[#allocation208_spill] sm:$0xff] %v4586_v22  ;;  %v9257_v22 = vsub.f32 %v9256_v60, %v9045_v27  ;;  %v9261_v18 = vsub.f32 %v9260_v4, %v9046_v54  ;;  %v4626_v60 = vsel %vm9266_vm5, 0.0, %v9265_v47  ;;  %v9269_v4 = vld [vmem:[#allocation371_spill] sm:$0xff]  ;;  %v9277_v57 = vld [vmem:[#allocation280_spill] sm:$0xff]  ;;  %v9280_v27 = vld [vmem:[#allocation281_spill] sm:$0xff]  ;;  %vm9282_vm5 = vcmp.ne.f32.partialorder %v9066_v48, %v9066_v48 }
 0x225   :  { %9255 = vst [vmem:[#allocation209_spill] sm:$0xff] %v4602_v7  ;;  %vm635_vm14 = vcmp.ne.f32.partialorder %v9269_v4, %v9269_v4  ;;  %v9278_v54 = vsub.f32 %v9277_v57, %v9065_v8  ;;  %v9286_v57 = vld [vmem:[#allocation379_spill] sm:$0xff]  ;;  %v9294_v8 = vld [vmem:[#allocation288_spill] sm:$0xff] }
 0x226   :  { %v4610_v19 = vsel %vm9258_vm4, 0.0, %v9257_v22  ;;  %v4618_v36 = vsel %vm9262_vm13, 0.0, %v9261_v18  ;;  %9267 = vst [vmem:[#allocation308_spill] sm:$0xff] %v4626_v60  ;;  %vm633_vm4 = vcmp.ne.f32.partialorder %v3060_v11, %v3060_v11  ;;  %v9268_v22 = vld [vmem:[#allocation370_spill] sm:$0xff]  ;;  %v9274_v60 = vld [vmem:[#allocation279_spill] sm:$0xff]  ;;  %vm639_vm13 = vcmp.ne.f32.partialorder %v9286_v57, %v9286_v57 }
 0x227   :  { %9259 = vst [vmem:[#allocation306_spill] sm:$0xff] %v4610_v19  ;;  %vm634_vm10 = vcmp.ne.f32.partialorder %v9268_v22, %v9268_v22  ;;  %v9270_v19 = vld [vmem:[#allocation372_spill] sm:$0xff]  ;;  %v9271_v18 = vld [vmem:[#allocation278_spill] sm:$0xff] }
 0x228   :  { %9263 = vst [vmem:[#allocation307_spill] sm:$0xff] %v4618_v36  ;;  %v9272_v63 = vsub.f32 %v9271_v18, %v9063_v38  ;;  %v9275_v36 = vsub.f32 %v9274_v60, %v9064_v10  ;;  %v4658_v18 = vsel %vm8177_vm15, 0.0, %v9278_v54  ;;  %v9288_v54 = vld [vmem:[#allocation286_spill] sm:$0xff]  ;;  %v9295_v10 = vsub.f32 %v9294_v8, %v9082_v0  ;;  %v9297_v38 = vld [vmem:[#allocation289_spill] sm:$0xff]  ;;  %v9302_v8 = vld [vmem:[#allocation395_spill] sm:$0xff] }
 0x229   :  { %9279 = vst [vmem:[#allocation215_spill] sm:$0xff] %v4658_v18  ;;  %v9311_v0 = vld [vmem:[#allocation296_spill] sm:$0xff] }
 0x22a   :  { %v4642_v47 = vsel %vm8176_vm1, 0.0, %v9272_v63  ;;  %v4650_v7 = vsel %vm8175_vm2, 0.0, %v9275_v36  ;;  %v9281_v63 = vsub.f32 %v9280_v27, %v9066_v48  ;;  %v9285_v36 = vld [vmem:[#allocation378_spill] sm:$0xff]  ;;  %v9289_v27 = vsub.f32 %v9288_v54, %v9080_v46  ;;  %v9315_v46 = vld [vmem:[#allocation297_spill] sm:$0xff] }
 0x22b   :  { %9273 = vst [vmem:[#allocation309_spill] sm:$0xff] %v4642_v47  ;;  %v9284_v47 = vld [vmem:[#allocation377_spill] sm:$0xff]  ;;  %vm638_vm1 = vcmp.ne.f32.partialorder %v9285_v36, %v9285_v36  ;;  %v4698_v54 = vsel %vm8184_vm3, 0.0, %v9295_v10  ;;  %v9304_v10 = vld [vmem:[#allocation294_spill] sm:$0xff]  ;;  %vm9313_vm3 = vcmp.ne.f32.partialorder %v9098_v53, %v9098_v53 }
 0x22c   :  { %9276 = vst [vmem:[#allocation214_spill] sm:$0xff] %v4650_v7  ;;  %v4666_v60 = vsel %vm9282_vm5, 0.0, %v9281_v63  ;;  %vm637_vm2 = vcmp.ne.f32.partialorder %v9284_v47, %v9284_v47  ;;  %v9287_v7 = vld [vmem:[#allocation388_spill] sm:$0xff]  ;;  %v4682_v63 = vsel %vm8183_vm8, 0.0, %v9289_v27  ;;  %v9298_v27 = vsub.f32 %v9297_v38, %v9083_v41 }
 0x22d   :  { %9283 = vst [vmem:[#allocation216_spill] sm:$0xff] %v4666_v60  ;;  %vm640_vm15 = vcmp.ne.f32.partialorder %v9287_v7, %v9287_v7  ;;  %v9291_v60 = vld [vmem:[#allocation287_spill] sm:$0xff]  ;;  %v9305_v38 = vsub.f32 %v9304_v10, %v9096_v45  ;;  %vm9325_vm5 = vcmp.ne.f32.partialorder %v9114_v39, %v9114_v39  ;;  %v9335_v45 = vld [vmem:[#allocation305_spill] sm:$0xff] }
 0x22e   :  { %9290 = vst [vmem:[#allocation217_spill] sm:$0xff] %v4682_v63  ;;  %v9292_v18 = vsub.f32 %v9291_v60, %v9081_v42  ;;  %v4706_v60 = vsel %vm8185_vm7, 0.0, %v9298_v27  ;;  %v9300_v63 = vld [vmem:[#allocation389_spill] sm:$0xff]  ;;  %vm9309_vm7 = vcmp.ne.f32.partialorder %v9097_v35, %v9097_v35  ;;  %v9312_v42 = vsub.f32 %v9311_v0, %v9098_v53  ;;  %v9321_v0 = vld [vmem:[#allocation403_spill] sm:$0xff]  ;;  %v9331_v53 = vld [vmem:[#allocation304_spill] sm:$0xff] }
 0x22f   :  { %9296 = vst [vmem:[#allocation315_spill] sm:$0xff] %v4698_v54  ;;  %v4722_v27 = vsel %vm8190_vm11, 0.0, %v9305_v38  ;;  %v9316_v38 = vsub.f32 %v9315_v46, %v9099_v12  ;;  %vm9317_vm11 = vcmp.ne.f32.partialorder %v9099_v12, %v9099_v12 }
 0x230   :  { %v4690_v48 = vsel %vm8182_vm6, 0.0, %v9292_v18  ;;  %9299 = vst [vmem:[#allocation316_spill] sm:$0xff] %v4706_v60  ;;  %v9301_v18 = vld [vmem:[#allocation390_spill] sm:$0xff]  ;;  %v9307_v60 = vld [vmem:[#allocation295_spill] sm:$0xff]  ;;  %v4738_v10 = vsel %vm9313_vm3, 0.0, %v9312_v42  ;;  %vm8197_vm6 = vcmp.ne.f32.partialorder %v9321_v0, %v9321_v0  ;;  %vm9333_vm3 = vcmp.ne.f32.partialorder %v9116_v29, %v9116_v29 }
 0x231   :  { %9293 = vst [vmem:[#allocation314_spill] sm:$0xff] %v4690_v48  ;;  %v9303_v48 = vld [vmem:[#allocation396_spill] sm:$0xff]  ;;  %v9308_v54 = vsub.f32 %v9307_v60, %v9097_v35  ;;  %v4746_v60 = vsel %vm9317_vm11, 0.0, %v9316_v38  ;;  %v9323_v42 = vld [vmem:[#allocation302_spill] sm:$0xff]  ;;  %vm9329_vm11 = vcmp.ne.f32.partialorder %v9115_v26, %v9115_v26  ;;  %v9332_v35 = vsub.f32 %v9331_v53, %v9116_v29 }
 0x232   :  { %9306 = vst [vmem:[#allocation317_spill] sm:$0xff] %v4722_v27  ;;  %v9319_v27 = vld [vmem:[#allocation397_spill] sm:$0xff]  ;;  %v9324_v46 = vsub.f32 %v9323_v42, %v9114_v39 }
 0x233   :  { %v4730_v41 = vsel %vm9309_vm7, 0.0, %v9308_v54  ;;  %9314 = vst [vmem:[#allocation223_spill] sm:$0xff] %v4738_v10  ;;  %vm645_vm7 = vcmp.ne.f32.partialorder %v9319_v27, %v9319_v27  ;;  %v9320_v54 = vld [vmem:[#allocation402_spill] sm:$0xff]  ;;  %v4778_v42 = vsel %vm9333_vm3, 0.0, %v9332_v35  ;;  %vm9345_vm3 = vcmp.ne.f32.partialorder %v9135_v25, %v9135_v25 }
 0x234   :  { %9310 = vst [vmem:[#allocation222_spill] sm:$0xff] %v4730_v41  ;;  %vm646_vm8 = vcmp.ne.f32.partialorder %v9320_v54, %v9320_v54  ;;  %v9322_v41 = vld [vmem:[#allocation404_spill] sm:$0xff]  ;;  %v4762_v38 = vsel %vm9325_vm5, 0.0, %v9324_v46  ;;  %v9336_v46 = vsub.f32 %v9335_v45, %v9117_v44  ;;  %vm9337_vm5 = vcmp.ne.f32.partialorder %v9117_v44, %v9117_v44 }
 0x235   :  { %9318 = vst [vmem:[#allocation224_spill] sm:$0xff] %v4746_v60  ;;  %v9327_v60 = vld [vmem:[#allocation303_spill] sm:$0xff] }
 0x236   :  { %9326 = vst [vmem:[#allocation225_spill] sm:$0xff] %v4762_v38  ;;  %v9328_v10 = vsub.f32 %v9327_v60, %v9115_v26  ;;  %v4786_v60 = vsel %vm9337_vm5, 0.0, %v9336_v46  ;;  %v9339_v38 = vld [vmem:[#allocation310_spill] sm:$0xff]  ;;  %vm9349_vm5 = vcmp.ne.f32.partialorder %v9136_v32, %v9136_v32 }
 0x237   :  { %9334 = vst [vmem:[#allocation323_spill] sm:$0xff] %v4778_v42  ;;  %v9347_v42 = vld [vmem:[#allocation312_spill] sm:$0xff] }
 0x238   :  { %v4770_v12 = vsel %vm9329_vm11, 0.0, %v9328_v10  ;;  %9338 = vst [vmem:[#allocation324_spill] sm:$0xff] %v4786_v60  ;;  %v9340_v10 = vsub.f32 %v9339_v38, %v9134_v58  ;;  %vm9341_vm11 = vcmp.ne.f32.partialorder %v9134_v58, %v9134_v58  ;;  %v9348_v46 = vsub.f32 %v9347_v42, %v9136_v32  ;;  %v9351_v60 = vld [vmem:[#allocation313_spill] sm:$0xff] }
 0x239   :  { %9330 = vst [vmem:[#allocation322_spill] sm:$0xff] %v4770_v12  ;;  %v9343_v12 = vld [vmem:[#allocation311_spill] sm:$0xff] }
 0x23a   :  { %v4794_v53 = vsel %vm9341_vm11, 0.0, %v9340_v10  ;;  %v9344_v35 = vsub.f32 %v9343_v12, %v9135_v25  ;;  %v4810_v38 = vsel %vm9349_vm5, 0.0, %v9348_v46  ;;  %v9352_v10 = vsub.f32 %v9351_v60, %v9137_v23 }
 0x23b   :  { %9342 = vst [vmem:[#allocation325_spill] sm:$0xff] %v4794_v53  ;;  %vm9353_vm11 = vcmp.ne.f32.partialorder %v9137_v23, %v9137_v23  ;;  %v9355_v53 = vld [vmem:[#allocation318_spill] sm:$0xff]  ;;  %vm9361_vm5 = vcmp.ne.f32.partialorder %v9155_v49, %v9155_v49 }
 0x23c   :  { %v4802_v45 = vsel %vm9345_vm3, 0.0, %v9344_v35  ;;  %9350 = vst [vmem:[#allocation231_spill] sm:$0xff] %v4810_v38  ;;  %v4818_v12 = vsel %vm9353_vm11, 0.0, %v9352_v10  ;;  %v9356_v35 = vsub.f32 %v9355_v53, %v9154_v24  ;;  %vm9357_vm3 = vcmp.ne.f32.partialorder %v9154_v24, %v9154_v24  ;;  %v9363_v38 = vld [vmem:[#allocation320_spill] sm:$0xff] }
 0x23d   :  { %9346 = vst [vmem:[#allocation230_spill] sm:$0xff] %v4802_v45  ;;  %v9359_v45 = vld [vmem:[#allocation319_spill] sm:$0xff]  ;;  %v9364_v10 = vsub.f32 %v9363_v38, %v9156_v40  ;;  %vm9365_vm11 = vcmp.ne.f32.partialorder %v9156_v40, %v9156_v40 }
 0x23e   :  { %9354 = vst [vmem:[#allocation232_spill] sm:$0xff] %v4818_v12  ;;  %v4826_v42 = vsel %vm9357_vm3, 0.0, %v9356_v35  ;;  %v9360_v46 = vsub.f32 %v9359_v45, %v9155_v49  ;;  %v9367_v12 = vld [vmem:[#allocation321_spill] sm:$0xff]  ;;  %vm9369_vm3 = vcmp.ne.f32.partialorder %v9157_v6, %v9157_v6 }
 0x23f   :  { %9358 = vst [vmem:[#allocation233_spill] sm:$0xff] %v4826_v42  ;;  %v4842_v53 = vsel %vm9365_vm11, 0.0, %v9364_v10  ;;  %v9368_v35 = vsub.f32 %v9367_v12, %v9157_v6  ;;  %v9371_v42 = vld [vmem:[#allocation326_spill] sm:$0xff]  ;;  %vm9377_vm11 = vcmp.ne.f32.partialorder %v9175_v55, %v9175_v55 }
 0x240   :  { %v4834_v60 = vsel %vm9361_vm5, 0.0, %v9360_v46  ;;  %9366 = vst [vmem:[#allocation331_spill] sm:$0xff] %v4842_v53  ;;  %v9372_v46 = vsub.f32 %v9371_v42, %v9174_v16  ;;  %vm9373_vm5 = vcmp.ne.f32.partialorder %v9174_v16, %v9174_v16  ;;  %v9379_v53 = vld [vmem:[#allocation328_spill] sm:$0xff] }
 0x241   :  { %9362 = vst [vmem:[#allocation330_spill] sm:$0xff] %v4834_v60  ;;  %v4850_v45 = vsel %vm9369_vm3, 0.0, %v9368_v35  ;;  %v9375_v60 = vld [vmem:[#allocation327_spill] sm:$0xff]  ;;  %v9380_v35 = vsub.f32 %v9379_v53, %v9176_v50  ;;  %vm9381_vm3 = vcmp.ne.f32.partialorder %v9176_v50, %v9176_v50 }
 0x242   :  { %9370 = vst [vmem:[#allocation332_spill] sm:$0xff] %v4850_v45  ;;  %v4858_v38 = vsel %vm9373_vm5, 0.0, %v9372_v46  ;;  %v9376_v10 = vsub.f32 %v9375_v60, %v9175_v55  ;;  %v9383_v45 = vld [vmem:[#allocation329_spill] sm:$0xff]  ;;  %vm9385_vm5 = vcmp.ne.f32.partialorder %v9177_v5, %v9177_v5 }
 0x243   :  { %9374 = vst [vmem:[#allocation333_spill] sm:$0xff] %v4858_v38  ;;  %v4874_v42 = vsel %vm9381_vm3, 0.0, %v9380_v35  ;;  %v9384_v46 = vsub.f32 %v9383_v45, %v9177_v5  ;;  %v9387_v38 = vld [vmem:[#allocation334_spill] sm:$0xff]  ;;  %vm9393_vm3 = vcmp.ne.f32.partialorder %v9195_v2, %v9195_v2 }
 0x244   :  { %v4866_v12 = vsel %vm9377_vm11, 0.0, %v9376_v10  ;;  %9382 = vst [vmem:[#allocation239_spill] sm:$0xff] %v4874_v42  ;;  %v9388_v10 = vsub.f32 %v9387_v38, %v9194_v28  ;;  %vm9389_vm11 = vcmp.ne.f32.partialorder %v9194_v28, %v9194_v28  ;;  %v9395_v42 = vld [vmem:[#allocation336_spill] sm:$0xff] }
 0x245   :  { %9378 = vst [vmem:[#allocation238_spill] sm:$0xff] %v4866_v12  ;;  %v4882_v60 = vsel %vm9385_vm5, 0.0, %v9384_v46  ;;  %v9391_v12 = vld [vmem:[#allocation335_spill] sm:$0xff]  ;;  %v9396_v46 = vsub.f32 %v9395_v42, %v9196_v14  ;;  %vm9397_vm5 = vcmp.ne.f32.partialorder %v9196_v14, %v9196_v14 }
 0x246   :  { %9386 = vst [vmem:[#allocation240_spill] sm:$0xff] %v4882_v60  ;;  %v4890_v53 = vsel %vm9389_vm11, 0.0, %v9388_v10  ;;  %v9392_v35 = vsub.f32 %v9391_v12, %v9195_v2  ;;  %v9399_v60 = vld [vmem:[#allocation337_spill] sm:$0xff]  ;;  %vm9401_vm11 = vcmp.ne.f32.partialorder %v9197_v59, %v9197_v59 }
 0x247   :  { %9390 = vst [vmem:[#allocation241_spill] sm:$0xff] %v4890_v53  ;;  %v4906_v38 = vsel %vm9397_vm5, 0.0, %v9396_v46  ;;  %v9400_v10 = vsub.f32 %v9399_v60, %v9197_v59  ;;  %v9403_v53 = vld [vmem:[#allocation342_spill] sm:$0xff]  ;;  %vm9412_vm5 = vcmp.ne.f32.partialorder %v9216_v61, %v9216_v61 }
 0x248   :  { %v4898_v45 = vsel %vm9393_vm3, 0.0, %v9392_v35  ;;  %9398 = vst [vmem:[#allocation339_spill] sm:$0xff] %v4906_v38  ;;  %v9404_v35 = vsub.f32 %v9403_v53, %v9214_v31  ;;  %vm9408_vm3 = vcmp.ne.f32.partialorder %v9215_v30, %v9215_v30  ;;  %v9410_v38 = vld [vmem:[#allocation344_spill] sm:$0xff] }
 0x249   :  { %9394 = vst [vmem:[#allocation338_spill] sm:$0xff] %v4898_v45  ;;  %v4914_v12 = vsel %vm9401_vm11, 0.0, %v9400_v10  ;;  %v9406_v45 = vld [vmem:[#allocation343_spill] sm:$0xff]  ;;  %v9411_v10 = vsub.f32 %v9410_v38, %v9216_v61  ;;  %vm9416_vm11 = vcmp.ne.f32.partialorder %v9217_v13, %v9217_v13 }
 0x24a   :  { %9402 = vst [vmem:[#allocation340_spill] sm:$0xff] %v4914_v12  ;;  %v4922_v42 = vsel %vm621_vm12, 0.0, %v9404_v35  ;;  %v9407_v46 = vsub.f32 %v9406_v45, %v9215_v30  ;;  %v9414_v12 = vld [vmem:[#allocation345_spill] sm:$0xff] }
 0x24b   :  { %9405 = vst [vmem:[#allocation341_spill] sm:$0xff] %v4922_v42  ;;  %v4938_v53 = vsel %vm9412_vm5, 0.0, %v9411_v10  ;;  %v9415_v35 = vsub.f32 %v9414_v12, %v9217_v13  ;;  %v9418_v42 = vld [vmem:[#allocation350_spill] sm:$0xff]  ;;  %vm9427_vm5 = vcmp.ne.f32.partialorder %v9235_v43, %v9235_v43 }
 0x24c   :  { %v4930_v60 = vsel %vm9408_vm3, 0.0, %v9407_v46  ;;  %9413 = vst [vmem:[#allocation247_spill] sm:$0xff] %v4938_v53  ;;  %v9419_v46 = vsub.f32 %v9418_v42, %v2996_v51  ;;  %vm9423_vm3 = vcmp.ne.f32.partialorder %v9234_v37, %v9234_v37  ;;  %v9425_v53 = vld [vmem:[#allocation352_spill] sm:$0xff] }
 0x24d   :  { %9409 = vst [vmem:[#allocation246_spill] sm:$0xff] %v4930_v60  ;;  %v4946_v45 = vsel %vm9416_vm11, 0.0, %v9415_v35  ;;  %v9421_v60 = vld [vmem:[#allocation351_spill] sm:$0xff]  ;;  %v9426_v35 = vsub.f32 %v9425_v53, %v9235_v43  ;;  %vm9431_vm11 = vcmp.ne.f32.partialorder %v9236_v56, %v9236_v56 }
 0x24e   :  { %9417 = vst [vmem:[#allocation248_spill] sm:$0xff] %v4946_v45  ;;  %v4954_v38 = vsel %vm625_vm0, 0.0, %v9419_v46  ;;  %v9422_v10 = vsub.f32 %v9421_v60, %v9234_v37  ;;  %v9429_v45 = vld [vmem:[#allocation353_spill] sm:$0xff] }
 0x24f   :  { %9420 = vst [vmem:[#allocation249_spill] sm:$0xff] %v4954_v38  ;;  %v4970_v42 = vsel %vm9427_vm5, 0.0, %v9426_v35  ;;  %v9430_v46 = vsub.f32 %v9429_v45, %v9236_v56  ;;  %v9433_v38 = vld [vmem:[#allocation356_spill] sm:$0xff]  ;;  %vm9442_vm5 = vcmp.ne.f32.partialorder %v3056_v17, %v3056_v17 }
 0x250   :  { %v4962_v12 = vsel %vm9423_vm3, 0.0, %v9422_v10  ;;  %9428 = vst [vmem:[#allocation347_spill] sm:$0xff] %v4970_v42  ;;  %v9434_v10 = vsub.f32 %v9433_v38, %v3028_v1  ;;  %vm9438_vm3 = vcmp.ne.f32.partialorder %v3030_v62, %v3030_v62  ;;  %v9440_v42 = vld [vmem:[#allocation358_spill] sm:$0xff] }
 0x251   :  { %9424 = vst [vmem:[#allocation346_spill] sm:$0xff] %v4962_v12  ;;  %v4978_v60 = vsel %vm9431_vm11, 0.0, %v9430_v46  ;;  %v9436_v12 = vld [vmem:[#allocation357_spill] sm:$0xff]  ;;  %v9441_v46 = vsub.f32 %v9440_v42, %v3056_v17  ;;  %vm9446_vm11 = vcmp.ne.f32.partialorder %v9252_v34, %v9252_v34 }
 0x252   :  { %9432 = vst [vmem:[#allocation348_spill] sm:$0xff] %v4978_v60  ;;  %v4986_v53 = vsel %vm629_vm9, 0.0, %v9434_v10  ;;  %v9437_v35 = vsub.f32 %v9436_v12, %v3030_v62  ;;  %v9444_v60 = vld [vmem:[#allocation359_spill] sm:$0xff] }
 0x253   :  { %9435 = vst [vmem:[#allocation349_spill] sm:$0xff] %v4986_v53  ;;  %v5002_v38 = vsel %vm9442_vm5, 0.0, %v9441_v46  ;;  %v9445_v10 = vsub.f32 %v9444_v60, %v9252_v34  ;;  %v9448_v53 = vld [vmem:[#allocation361_spill] sm:$0xff]  ;;  %vm9475_vm5 = vcmp.ne.f32.partialorder %v9300_v63, %v9300_v63 }
 0x254   :  { %v4994_v45 = vsel %vm9438_vm3, 0.0, %v9437_v35  ;;  %9443 = vst [vmem:[#allocation255_spill] sm:$0xff] %v5002_v38  ;;  %v9449_v35 = vsub.f32 %v9448_v53, %v3060_v11  ;;  %v9454_v38 = vld [vmem:[#allocation363_spill] sm:$0xff]  ;;  %vm9459_vm3 = vcmp.ne.f32.partialorder %v9270_v19, %v9270_v19 }
 0x255   :  { %9439 = vst [vmem:[#allocation254_spill] sm:$0xff] %v4994_v45  ;;  %v5010_v12 = vsel %vm9446_vm11, 0.0, %v9445_v10  ;;  %v9451_v45 = vld [vmem:[#allocation362_spill] sm:$0xff]  ;;  %v9455_v10 = vsub.f32 %v9454_v38, %v9269_v4  ;;  %vm9479_vm11 = vcmp.ne.f32.partialorder %v9301_v18, %v9301_v18 }
 0x256   :  { %9447 = vst [vmem:[#allocation256_spill] sm:$0xff] %v5010_v12  ;;  %v5018_v42 = vsel %vm633_vm4, 0.0, %v9449_v35  ;;  %v9452_v46 = vsub.f32 %v9451_v45, %v9268_v22  ;;  %v9457_v12 = vld [vmem:[#allocation364_spill] sm:$0xff] }
 0x257   :  { %9450 = vst [vmem:[#allocation257_spill] sm:$0xff] %v5018_v42  ;;  %v5034_v53 = vsel %vm635_vm14, 0.0, %v9455_v10  ;;  %v9458_v35 = vsub.f32 %v9457_v12, %v9270_v19  ;;  %v9461_v42 = vld [vmem:[#allocation366_spill] sm:$0xff] }
 0x258   :  { %v5026_v60 = vsel %vm634_vm10, 0.0, %v9452_v46  ;;  %9456 = vst [vmem:[#allocation355_spill] sm:$0xff] %v5034_v53  ;;  %v9462_v46 = vsub.f32 %v9461_v42, %v9284_v47  ;;  %v9467_v53 = vld [vmem:[#allocation368_spill] sm:$0xff] }
 0x259   :  { %9453 = vst [vmem:[#allocation354_spill] sm:$0xff] %v5026_v60  ;;  %v5042_v45 = vsel %vm9459_vm3, 0.0, %v9458_v35  ;;  %v9464_v60 = vld [vmem:[#allocation367_spill] sm:$0xff]  ;;  %v9468_v35 = vsub.f32 %v9467_v53, %v9286_v57  ;;  %vm9483_vm3 = vcmp.ne.f32.partialorder %v9302_v8, %v9302_v8 }
 0x25a   :  { %9460 = vst [vmem:[#allocation360_spill] sm:$0xff] %v5042_v45  ;;  %v5050_v38 = vsel %vm637_vm2, 0.0, %v9462_v46  ;;  %v9465_v10 = vsub.f32 %v9464_v60, %v9285_v36  ;;  %v9470_v45 = vld [vmem:[#allocation369_spill] sm:$0xff] }
 0x25b   :  { %9463 = vst [vmem:[#allocation262_spill] sm:$0xff] %v5050_v38  ;;  %v5066_v42 = vsel %vm639_vm13, 0.0, %v9468_v35  ;;  %v9471_v46 = vsub.f32 %v9470_v45, %v9287_v7  ;;  %v9473_v38 = vld [vmem:[#allocation373_spill] sm:$0xff] }
 0x25c   :  { %v5058_v12 = vsel %vm638_vm1, 0.0, %v9465_v10  ;;  %9469 = vst [vmem:[#allocation264_spill] sm:$0xff] %v5066_v42  ;;  %v9474_v10 = vsub.f32 %v9473_v38, %v9300_v63  ;;  %v9481_v42 = vld [vmem:[#allocation375_spill] sm:$0xff] }
 0x25d   :  { %9466 = vst [vmem:[#allocation263_spill] sm:$0xff] %v5058_v12  ;;  %v5074_v60 = vsel %vm640_vm15, 0.0, %v9471_v46  ;;  %v9477_v12 = vld [vmem:[#allocation374_spill] sm:$0xff]  ;;  %v9482_v46 = vsub.f32 %v9481_v42, %v9302_v8 }
 0x25e   :  { %9472 = vst [vmem:[#allocation265_spill] sm:$0xff] %v5074_v60  ;;  %v5082_v53 = vsel %vm9475_vm5, 0.0, %v9474_v10  ;;  %v9478_v35 = vsub.f32 %v9477_v12, %v9301_v18  ;;  %v9485_v60 = vld [vmem:[#allocation376_spill] sm:$0xff]  ;;  %vm9487_vm5 = vcmp.ne.f32.partialorder %v9303_v48, %v9303_v48 }
 0x25f   :  { %9476 = vst [vmem:[#allocation365_spill] sm:$0xff] %v5082_v53  ;;  %v5098_v38 = vsel %vm9483_vm3, 0.0, %v9482_v46  ;;  %v9486_v10 = vsub.f32 %v9485_v60, %v9303_v48  ;;  %v9489_v53 = vld [vmem:[#allocation384_spill] sm:$0xff] }
 0x260   :  { %v5090_v45 = vsel %vm9479_vm11, 0.0, %v9478_v35  ;;  %9484 = vst [vmem:[#allocation271_spill] sm:$0xff] %v5098_v38  ;;  %v9490_v35 = vsub.f32 %v9489_v53, %v9319_v27  ;;  %v9495_v38 = vld [vmem:[#allocation386_spill] sm:$0xff]  ;;  %vm9500_vm11 = vcmp.ne.f32.partialorder %v9322_v41, %v9322_v41  ;;  %v10015_v27 = vld [vmem:[#allocation17_spill] sm:$0xff] }
 0x261   :  { %9480 = vst [vmem:[#allocation270_spill] sm:$0xff] %v5090_v45  ;;  %v5106_v12 = vsel %vm9487_vm5, 0.0, %v9486_v10  ;;  %v9492_v45 = vld [vmem:[#allocation385_spill] sm:$0xff]  ;;  %v9496_v10 = vsub.f32 %v9495_v38, %v9321_v0 }
 0x262   :  { %9488 = vst [vmem:[#allocation272_spill] sm:$0xff] %v5106_v12  ;;  %v5114_v42 = vsel %vm645_vm7, 0.0, %v9490_v35  ;;  %v9493_v46 = vsub.f32 %v9492_v45, %v9320_v54  ;;  %v9498_v12 = vld [vmem:[#allocation387_spill] sm:$0xff]  ;;  %v9504_v54 = vld [vmem:[#allocation16_spill] sm:$0xff] }
 0x263   :  { %9491 = vst [vmem:[#allocation273_spill] sm:$0xff] %v5114_v42  ;;  %v5130_v53 = vsel %vm8197_vm6, 0.0, %v9496_v10  ;;  %v9499_v35 = vsub.f32 %v9498_v12, %v9322_v41  ;;  %v9501_v42 = vld [vmem:[#allocation14_spill] sm:$0xff]  ;;  %v5150_v10 = vmul.f32 %v9504_v54, %v9504_v54  ;;  %v9515_v54 = vld [vmem:[#allocation21_spill] sm:$0xff] }
 0x264   :  { %v5122_v60 = vsel %vm646_vm8, 0.0, %v9493_v46  ;;  %9497 = vst [vmem:[#allocation371_spill] sm:$0xff] %v5130_v53  ;;  %v5142_v46 = vmul.f32 %v9501_v42, %v9501_v42  ;;  %v1991_v53 = vmov 1.0   ;;  %v9506_v12 = vld [vmem:[#allocation18_spill] sm:$0xff]  ;;  %vm9516_vm6 = vcmp.ne.f32.partialorder %v9515_v54, %v9515_v54  ;;  %v9527_v54 = vld [vmem:[#allocation29_spill] sm:$0xff] }
 0x265   :  { %9494 = vst [vmem:[#allocation370_spill] sm:$0xff] %v5122_v60  ;;  %v5138_v45 = vsel %vm9500_vm11, 0.0, %v9499_v35  ;;  %v9502_v60 = vld [vmem:[#allocation15_spill] sm:$0xff]  ;;  %vm9507_vm3 = vcmp.ne.f32.partialorder %v9506_v12, %v9506_v12  ;;  %v9518_v12 = vld [vmem:[#allocation26_spill] sm:$0xff]  ;;  %v6164_v31 = vsel %vm625_vm0, 0.0, %v1991_v53  ;;  %v6188_v51 = vsel %vm629_vm9, 0.0, %v1991_v53 }
 0x266   :  { %v5146_v38 = vmul.f32 %v9502_v60, %v9502_v60  ;;  %9505 = vst [vmem:[#allocation278_spill] sm:$0xff] %v5150_v10  ;;  %v5156_v41 = vsel %vm9507_vm3, 0.0, %v1991_v53  ;;  %v9509_v35 = vld [vmem:[#allocation19_spill] sm:$0xff]  ;;  %v9512_v60 = vld [vmem:[#allocation20_spill] sm:$0xff]  ;;  %v5174_v10 = vsel %vm9516_vm6, 0.0, %v1991_v53  ;;  %vm9519_vm3 = vcmp.ne.f32.partialorder %v9518_v12, %v9518_v12  ;;  %v9530_v12 = vld [vmem:[#allocation34_spill] sm:$0xff] }
 0x267   :  { %9508 = vst [vmem:[#allocation279_spill] sm:$0xff] %v5156_v41  ;;  %vm9510_vm5 = vcmp.ne.f32.partialorder %v9509_v35, %v9509_v35  ;;  %vm9513_vm11 = vcmp.ne.f32.partialorder %v9512_v60, %v9512_v60  ;;  %v5180_v41 = vsel %vm9519_vm3, 0.0, %v1991_v53  ;;  %v9521_v35 = vld [vmem:[#allocation27_spill] sm:$0xff]  ;;  %v9524_v60 = vld [vmem:[#allocation28_spill] sm:$0xff]  ;;  %vm9528_vm6 = vcmp.ne.f32.partialorder %v9527_v54, %v9527_v54  ;;  %v9539_v54 = vld [vmem:[#allocation37_spill] sm:$0xff] }
 0x268   :  { %9503 = vst [vmem:[#allocation372_spill] sm:$0xff] %v5146_v38  ;;  %v5162_v42 = vsel %vm9510_vm5, 0.0, %v1991_v53  ;;  %v5168_v38 = vsel %vm9513_vm11, 0.0, %v1991_v53  ;;  %vm9522_vm5 = vcmp.ne.f32.partialorder %v9521_v35, %v9521_v35  ;;  %vm9525_vm11 = vcmp.ne.f32.partialorder %v9524_v60, %v9524_v60  ;;  %v9533_v35 = vld [vmem:[#allocation35_spill] sm:$0xff]  ;;  %v9536_v60 = vld [vmem:[#allocation36_spill] sm:$0xff] }
 0x269   :  { %9511 = vst [vmem:[#allocation280_spill] sm:$0xff] %v5162_v42  ;;  %v5186_v42 = vsel %vm9522_vm5, 0.0, %v1991_v53  ;;  %vm9531_vm3 = vcmp.ne.f32.partialorder %v9530_v12, %v9530_v12  ;;  %vm9534_vm5 = vcmp.ne.f32.partialorder %v9533_v35, %v9533_v35  ;;  %v9542_v12 = vld [vmem:[#allocation42_spill] sm:$0xff]  ;;  %v9545_v35 = vld [vmem:[#allocation43_spill] sm:$0xff]  ;;  %vm9984_vm0 = vcmp.ne.f32.partialorder %v3030_v62, %v3030_v62 }
 0x26a   :  { %9514 = vst [vmem:[#allocation281_spill] sm:$0xff] %v5168_v38  ;;  %v5192_v38 = vsel %vm9525_vm11, 0.0, %v1991_v53  ;;  %vm9537_vm11 = vcmp.ne.f32.partialorder %v9536_v60, %v9536_v60  ;;  %v9548_v60 = vld [vmem:[#allocation44_spill] sm:$0xff]  ;;  %v6212_v1 = vsel %vm633_vm4, 0.0, %v1991_v53  ;;  %v6218_v62 = vsel %vm634_vm10, 0.0, %v1991_v53 }
 0x26b   :  { %9517 = vst [vmem:[#allocation377_spill] sm:$0xff] %v5174_v10  ;;  %v5198_v10 = vsel %vm9528_vm6, 0.0, %v1991_v53  ;;  %vm9540_vm6 = vcmp.ne.f32.partialorder %v9539_v54, %v9539_v54  ;;  %v9551_v54 = vld [vmem:[#allocation45_spill] sm:$0xff]  ;;  %vm9993_vm9 = vcmp.ne.f32.partialorder %v9270_v19, %v9270_v19  ;;  %v6236_v11 = vsel %vm637_vm2, 0.0, %v1991_v53 }
 0x26c   :  { %9520 = vst [vmem:[#allocation378_spill] sm:$0xff] %v5180_v41  ;;  %v5204_v41 = vsel %vm9531_vm3, 0.0, %v1991_v53  ;;  %vm9543_vm3 = vcmp.ne.f32.partialorder %v9542_v12, %v9542_v12  ;;  %v9554_v12 = vld [vmem:[#allocation380_spill] sm:$0xff]  ;;  %v6242_v22 = vsel %vm638_vm1, 0.0, %v1991_v53  ;;  %v6248_v4 = vsel %vm639_vm13, 0.0, %v1991_v53 }
 0x26d   :  { %9523 = vst [vmem:[#allocation379_spill] sm:$0xff] %v5186_v42  ;;  %v5210_v42 = vsel %vm9534_vm5, 0.0, %v1991_v53  ;;  %vm9546_vm5 = vcmp.ne.f32.partialorder %v9545_v35, %v9545_v35  ;;  %v9557_v35 = vld [vmem:[#allocation381_spill] sm:$0xff]  ;;  %v6254_v19 = vsel %vm640_vm15, 0.0, %v1991_v53  ;;  %vm9999_vm2 = vcmp.ne.f32.partialorder %v9300_v63, %v9300_v63 }
 0x26e   :  { %9526 = vst [vmem:[#allocation388_spill] sm:$0xff] %v5192_v38  ;;  %v5216_v38 = vsel %vm9537_vm11, 0.0, %v1991_v53  ;;  %vm9549_vm11 = vcmp.ne.f32.partialorder %v9548_v60, %v9548_v60  ;;  %v9560_v60 = vld [vmem:[#allocation382_spill] sm:$0xff]  ;;  %v6260_v47 = vsel %vm9999_vm2, 0.0, %v1991_v53  ;;  %vm10003_vm10 = vcmp.ne.f32.partialorder %v9302_v8, %v9302_v8 }
 0x26f   :  { %9529 = vst [vmem:[#allocation286_spill] sm:$0xff] %v5198_v10  ;;  %v5222_v10 = vsel %vm9540_vm6, 0.0, %v1991_v53  ;;  %vm9552_vm6 = vcmp.ne.f32.partialorder %v9551_v54, %v9551_v54  ;;  %v9563_v54 = vld [vmem:[#allocation383_spill] sm:$0xff]  ;;  %v6272_v57 = vsel %vm10003_vm10, 0.0, %v1991_v53  ;;  %vm10005_vm15 = vcmp.ne.f32.partialorder %v9303_v48, %v9303_v48  ;;  %v10012_v48 = vld [vmem:[#allocation404_spill] sm:$0xff] }
 0x270   :  { %9532 = vst [vmem:[#allocation287_spill] sm:$0xff] %v5204_v41  ;;  %v5228_v41 = vsel %vm9543_vm3, 0.0, %v1991_v53  ;;  %vm9555_vm3 = vcmp.ne.f32.partialorder %v9554_v12, %v9554_v12  ;;  %v9566_v12 = vld [vmem:[#allocation391_spill] sm:$0xff]  ;;  %v6278_v7 = vsel %vm10005_vm15, 0.0, %v1991_v53  ;;  %v6284_v63 = vsel %vm645_vm7, 0.0, %v1991_v53 }
 0x271   :  { %9535 = vst [vmem:[#allocation288_spill] sm:$0xff] %v5210_v42  ;;  %v5234_v42 = vsel %vm9546_vm5, 0.0, %v1991_v53  ;;  %vm9558_vm5 = vcmp.ne.f32.partialorder %v9557_v35, %v9557_v35  ;;  %v9569_v35 = vld [vmem:[#allocation392_spill] sm:$0xff]  ;;  %vm10010_vm1 = vcmp.ne.f32.partialorder %v9321_v0, %v9321_v0  ;;  %vm10013_vm4 = vcmp.ne.f32.partialorder %v10012_v48, %v10012_v48  ;;  %v10020_v48 = vld [vmem:[#allocation30_spill] sm:$0xff] }
 0x272   :  { %9538 = vst [vmem:[#allocation289_spill] sm:$0xff] %v5216_v38  ;;  %v5240_v38 = vsel %vm9549_vm11, 0.0, %v1991_v53  ;;  %vm9561_vm11 = vcmp.ne.f32.partialorder %v9560_v60, %v9560_v60  ;;  %v9572_v60 = vld [vmem:[#allocation393_spill] sm:$0xff]  ;;  %v6296_v8 = vsel %vm10010_vm1, 0.0, %v1991_v53  ;;  %v10018_v0 = vld [vmem:[#allocation24_spill] sm:$0xff] }
 0x273   :  { %9541 = vst [vmem:[#allocation389_spill] sm:$0xff] %v5222_v10  ;;  %v5246_v10 = vsel %vm9552_vm6, 0.0, %v1991_v53  ;;  %vm9564_vm6 = vcmp.ne.f32.partialorder %v9563_v54, %v9563_v54  ;;  %v9575_v54 = vld [vmem:[#allocation394_spill] sm:$0xff] }
 0x274   :  { %9544 = vst [vmem:[#allocation390_spill] sm:$0xff] %v5228_v41  ;;  %v5252_v41 = vsel %vm9555_vm3, 0.0, %v1991_v53  ;;  %vm9567_vm3 = vcmp.ne.f32.partialorder %v9566_v12, %v9566_v12  ;;  %v9578_v12 = vld [vmem:[#allocation398_spill] sm:$0xff] }
 0x275   :  { %9547 = vst [vmem:[#allocation395_spill] sm:$0xff] %v5234_v42  ;;  %v5258_v42 = vsel %vm9558_vm5, 0.0, %v1991_v53  ;;  %vm9570_vm5 = vcmp.ne.f32.partialorder %v9569_v35, %v9569_v35  ;;  %v9581_v35 = vld [vmem:[#allocation399_spill] sm:$0xff] }
 0x276   :  { %9550 = vst [vmem:[#allocation396_spill] sm:$0xff] %v5240_v38  ;;  %v5264_v38 = vsel %vm9561_vm11, 0.0, %v1991_v53  ;;  %vm9573_vm11 = vcmp.ne.f32.partialorder %v9572_v60, %v9572_v60  ;;  %v9584_v60 = vld [vmem:[#allocation400_spill] sm:$0xff] }
 0x277   :  { %9553 = vst [vmem:[#allocation294_spill] sm:$0xff] %v5246_v10  ;;  %v5270_v10 = vsel %vm9564_vm6, 0.0, %v1991_v53  ;;  %vm9576_vm6 = vcmp.ne.f32.partialorder %v9575_v54, %v9575_v54  ;;  %v9587_v54 = vld [vmem:[#allocation401_spill] sm:$0xff] }
 0x278   :  { %9556 = vst [vmem:[#allocation295_spill] sm:$0xff] %v5252_v41  ;;  %v5276_v41 = vsel %vm9567_vm3, 0.0, %v1991_v53  ;;  %vm9579_vm3 = vcmp.ne.f32.partialorder %v9578_v12, %v9578_v12  ;;  %v9590_v12 = vld [vmem:[#allocation405_spill] sm:$0xff] }
 0x279   :  { %9559 = vst [vmem:[#allocation296_spill] sm:$0xff] %v5258_v42  ;;  %v5282_v42 = vsel %vm9570_vm5, 0.0, %v1991_v53  ;;  %vm9582_vm5 = vcmp.ne.f32.partialorder %v9581_v35, %v9581_v35  ;;  %v9593_v35 = vld [vmem:[#allocation406_spill] sm:$0xff] }
 0x27a   :  { %9562 = vst [vmem:[#allocation297_spill] sm:$0xff] %v5264_v38  ;;  %v5288_v38 = vsel %vm9573_vm11, 0.0, %v1991_v53  ;;  %vm9585_vm11 = vcmp.ne.f32.partialorder %v9584_v60, %v9584_v60  ;;  %v9596_v60 = vld [vmem:[#allocation407_spill] sm:$0xff] }
 0x27b   :  { %9565 = vst [vmem:[#allocation397_spill] sm:$0xff] %v5270_v10  ;;  %v5294_v10 = vsel %vm9576_vm6, 0.0, %v1991_v53  ;;  %vm9588_vm6 = vcmp.ne.f32.partialorder %v9587_v54, %v9587_v54  ;;  %v9599_v54 = vld [vmem:[#allocation408_spill] sm:$0xff] }
 0x27c   :  { %9568 = vst [vmem:[#allocation403_spill] sm:$0xff] %v5276_v41  ;;  %v5300_v41 = vsel %vm9579_vm3, 0.0, %v1991_v53  ;;  %vm9591_vm3 = vcmp.ne.f32.partialorder %v9590_v12, %v9590_v12  ;;  %v9602_v12 = vld [vmem:[#allocation409_spill] sm:$0xff] }
 0x27d   :  { %9571 = vst [vmem:[#allocation302_spill] sm:$0xff] %v5282_v42  ;;  %v5306_v42 = vsel %vm9582_vm5, 0.0, %v1991_v53  ;;  %vm9594_vm5 = vcmp.ne.f32.partialorder %v9593_v35, %v9593_v35  ;;  %v9605_v35 = vld [vmem:[#allocation410_spill] sm:$0xff] }
 0x27e   :  { %9574 = vst [vmem:[#allocation303_spill] sm:$0xff] %v5288_v38  ;;  %v5312_v38 = vsel %vm9585_vm11, 0.0, %v1991_v53  ;;  %vm9597_vm11 = vcmp.ne.f32.partialorder %v9596_v60, %v9596_v60  ;;  %v9607_v60 = vld [vmem:[#allocation411_spill] sm:$0xff] }
 0x27f   :  { %9577 = vst [vmem:[#allocation304_spill] sm:$0xff] %v5294_v10  ;;  %v5318_v10 = vsel %vm9588_vm6, 0.0, %v1991_v53  ;;  %vm9600_vm6 = vcmp.ne.f32.partialorder %v9599_v54, %v9599_v54  ;;  %v9609_v54 = vld [vmem:[#allocation412_spill] sm:$0xff] }
 0x280   :  { %9580 = vst [vmem:[#allocation305_spill] sm:$0xff] %v5300_v41  ;;  %v5324_v41 = vsel %vm9591_vm3, 0.0, %v1991_v53  ;;  %vm9603_vm3 = vcmp.ne.f32.partialorder %v9602_v12, %v9602_v12  ;;  %v9612_v12 = vld [vmem:[#allocation413_spill] sm:$0xff] }
 0x281   :  { %9583 = vst [vmem:[#allocation310_spill] sm:$0xff] %v5306_v42  ;;  %v5330_v42 = vsel %vm9594_vm5, 0.0, %v1991_v53  ;;  %vm9606_vm5 = vcmp.ne.f32.partialorder %v9605_v35, %v9605_v35 }
 0x282   :  { %9586 = vst [vmem:[#allocation311_spill] sm:$0xff] %v5312_v38  ;;  %v5336_v38 = vsel %vm9597_vm11, 0.0, %v1991_v53  ;;  %vm9608_vm11 = vcmp.ne.f32.partialorder %v9607_v60, %v9607_v60 }
 0x283   :  { %9589 = vst [vmem:[#allocation312_spill] sm:$0xff] %v5318_v10  ;;  %v5342_v10 = vsel %vm9600_vm6, 0.0, %v1991_v53  ;;  %vm9610_vm6 = vcmp.ne.f32.partialorder %v9609_v54, %v9609_v54  ;;  %v9619_v54 = vld [vmem:[#allocation414_spill] sm:$0xff] }
 0x284   :  { %9592 = vst [vmem:[#allocation313_spill] sm:$0xff] %v5324_v41  ;;  %v5348_v41 = vsel %vm9603_vm3, 0.0, %v1991_v53  ;;  %vm9613_vm3 = vcmp.ne.f32.partialorder %v9612_v12, %v9612_v12  ;;  %v9622_v12 = vld [vmem:[#allocation98_spill] sm:$0xff] }
 0x285   :  { %9595 = vst [vmem:[#allocation318_spill] sm:$0xff] %v5330_v42  ;;  %v5354_v42 = vsel %vm9606_vm5, 0.0, %v1991_v53  ;;  %vm9615_vm5 = vcmp.ne.f32.partialorder %v3272_v20, %v3272_v20  ;;  %v9625_v20 = vld [vmem:[#allocation99_spill] sm:$0xff] }
 0x286   :  { %9598 = vst [vmem:[#allocation319_spill] sm:$0xff] %v5336_v38  ;;  %v5360_v38 = vsel %vm9608_vm11, 0.0, %v1991_v53  ;;  %v5378_v35 = vsel %vm9615_vm5, 0.0, %v1991_v53  ;;  %vm9617_vm11 = vcmp.ne.f32.partialorder %v3276_v15, %v3276_v15  ;;  %vm9626_vm5 = vcmp.ne.f32.partialorder %v9625_v20, %v9625_v20  ;;  %v9628_v15 = vld [vmem:[#allocation100_spill] sm:$0xff]  ;;  %v9637_v20 = vld [vmem:[#allocation107_spill] sm:$0xff] }
 0x287   :  { %9601 = vst [vmem:[#allocation320_spill] sm:$0xff] %v5342_v10  ;;  %v5366_v10 = vsel %vm9610_vm6, 0.0, %v1991_v53  ;;  %v5384_v60 = vsel %vm9617_vm11, 0.0, %v1991_v53  ;;  %vm9620_vm6 = vcmp.ne.f32.partialorder %v9619_v54, %v9619_v54  ;;  %vm9629_vm11 = vcmp.ne.f32.partialorder %v9628_v15, %v9628_v15  ;;  %v9631_v54 = vld [vmem:[#allocation101_spill] sm:$0xff]  ;;  %v9640_v15 = vld [vmem:[#allocation108_spill] sm:$0xff] }
 0x288   :  { %9604 = vst [vmem:[#allocation321_spill] sm:$0xff] %v5348_v41  ;;  %v5372_v41 = vsel %vm9613_vm3, 0.0, %v1991_v53  ;;  %vm9623_vm3 = vcmp.ne.f32.partialorder %v9622_v12, %v9622_v12  ;;  %v9634_v12 = vld [vmem:[#allocation106_spill] sm:$0xff] }
 0x289   :  { %9611 = vst [vmem:[#allocation326_spill] sm:$0xff] %v5366_v10  ;;  %v5390_v10 = vsel %vm9620_vm6, 0.0, %v1991_v53  ;;  %vm9632_vm6 = vcmp.ne.f32.partialorder %v9631_v54, %v9631_v54  ;;  %v9643_v54 = vld [vmem:[#allocation109_spill] sm:$0xff] }
 0x28a   :  { %9614 = vst [vmem:[#allocation327_spill] sm:$0xff] %v5372_v41  ;;  %v5396_v41 = vsel %vm9623_vm3, 0.0, %v1991_v53  ;;  %vm9635_vm3 = vcmp.ne.f32.partialorder %v9634_v12, %v9634_v12  ;;  %v9646_v12 = vld [vmem:[#allocation114_spill] sm:$0xff] }
 0x28b   :  { %9616 = vst [vmem:[#allocation328_spill] sm:$0xff] %v5378_v35  ;;  %v5402_v35 = vsel %vm9626_vm5, 0.0, %v1991_v53  ;;  %vm9638_vm5 = vcmp.ne.f32.partialorder %v9637_v20, %v9637_v20  ;;  %v9649_v20 = vld [vmem:[#allocation115_spill] sm:$0xff] }
 0x28c   :  { %9618 = vst [vmem:[#allocation329_spill] sm:$0xff] %v5384_v60  ;;  %v5408_v60 = vsel %vm9629_vm11, 0.0, %v1991_v53  ;;  %vm9641_vm11 = vcmp.ne.f32.partialorder %v9640_v15, %v9640_v15  ;;  %v9652_v15 = vld [vmem:[#allocation116_spill] sm:$0xff] }
 0x28d   :  { %9621 = vst [vmem:[#allocation334_spill] sm:$0xff] %v5390_v10  ;;  %v5414_v10 = vsel %vm9632_vm6, 0.0, %v1991_v53  ;;  %vm9644_vm6 = vcmp.ne.f32.partialorder %v9643_v54, %v9643_v54  ;;  %v9655_v54 = vld [vmem:[#allocation117_spill] sm:$0xff] }
 0x28e   :  { %9624 = vst [vmem:[#allocation335_spill] sm:$0xff] %v5396_v41  ;;  %v5420_v41 = vsel %vm9635_vm3, 0.0, %v1991_v53  ;;  %vm9647_vm3 = vcmp.ne.f32.partialorder %v9646_v12, %v9646_v12  ;;  %v9658_v12 = vld [vmem:[#allocation122_spill] sm:$0xff] }
 0x28f   :  { %9627 = vst [vmem:[#allocation336_spill] sm:$0xff] %v5402_v35  ;;  %v5426_v35 = vsel %vm9638_vm5, 0.0, %v1991_v53  ;;  %vm9650_vm5 = vcmp.ne.f32.partialorder %v9649_v20, %v9649_v20  ;;  %v9661_v20 = vld [vmem:[#allocation123_spill] sm:$0xff] }
 0x290   :  { %9630 = vst [vmem:[#allocation337_spill] sm:$0xff] %v5408_v60  ;;  %v5432_v60 = vsel %vm9641_vm11, 0.0, %v1991_v53  ;;  %vm9653_vm11 = vcmp.ne.f32.partialorder %v9652_v15, %v9652_v15  ;;  %v9664_v15 = vld [vmem:[#allocation124_spill] sm:$0xff] }
 0x291   :  { %9633 = vst [vmem:[#allocation342_spill] sm:$0xff] %v5414_v10  ;;  %v5438_v10 = vsel %vm9644_vm6, 0.0, %v1991_v53  ;;  %vm9656_vm6 = vcmp.ne.f32.partialorder %v9655_v54, %v9655_v54  ;;  %v9667_v54 = vld [vmem:[#allocation125_spill] sm:$0xff] }
 0x292   :  { %9636 = vst [vmem:[#allocation343_spill] sm:$0xff] %v5420_v41  ;;  %v5444_v41 = vsel %vm9647_vm3, 0.0, %v1991_v53  ;;  %vm9659_vm3 = vcmp.ne.f32.partialorder %v9658_v12, %v9658_v12  ;;  %v9670_v12 = vld [vmem:[#allocation130_spill] sm:$0xff] }
 0x293   :  { %9639 = vst [vmem:[#allocation344_spill] sm:$0xff] %v5426_v35  ;;  %v5450_v35 = vsel %vm9650_vm5, 0.0, %v1991_v53  ;;  %vm9662_vm5 = vcmp.ne.f32.partialorder %v9661_v20, %v9661_v20  ;;  %v9673_v20 = vld [vmem:[#allocation131_spill] sm:$0xff] }
 0x294   :  { %9642 = vst [vmem:[#allocation345_spill] sm:$0xff] %v5432_v60  ;;  %v5456_v60 = vsel %vm9653_vm11, 0.0, %v1991_v53  ;;  %vm9665_vm11 = vcmp.ne.f32.partialorder %v9664_v15, %v9664_v15  ;;  %v9676_v15 = vld [vmem:[#allocation132_spill] sm:$0xff] }
 0x295   :  { %9645 = vst [vmem:[#allocation350_spill] sm:$0xff] %v5438_v10  ;;  %v5462_v10 = vsel %vm9656_vm6, 0.0, %v1991_v53  ;;  %vm9668_vm6 = vcmp.ne.f32.partialorder %v9667_v54, %v9667_v54  ;;  %v9679_v54 = vld [vmem:[#allocation133_spill] sm:$0xff] }
 0x296   :  { %9648 = vst [vmem:[#allocation351_spill] sm:$0xff] %v5444_v41  ;;  %v5468_v41 = vsel %vm9659_vm3, 0.0, %v1991_v53  ;;  %vm9671_vm3 = vcmp.ne.f32.partialorder %v9670_v12, %v9670_v12  ;;  %v9682_v12 = vld [vmem:[#allocation138_spill] sm:$0xff] }
 0x297   :  { %9651 = vst [vmem:[#allocation352_spill] sm:$0xff] %v5450_v35  ;;  %v5474_v35 = vsel %vm9662_vm5, 0.0, %v1991_v53  ;;  %vm9674_vm5 = vcmp.ne.f32.partialorder %v9673_v20, %v9673_v20  ;;  %v9685_v20 = vld [vmem:[#allocation139_spill] sm:$0xff] }
 0x298   :  { %9654 = vst [vmem:[#allocation353_spill] sm:$0xff] %v5456_v60  ;;  %v5480_v60 = vsel %vm9665_vm11, 0.0, %v1991_v53  ;;  %vm9677_vm11 = vcmp.ne.f32.partialorder %v9676_v15, %v9676_v15  ;;  %v9688_v15 = vld [vmem:[#allocation140_spill] sm:$0xff] }
 0x299   :  { %9657 = vst [vmem:[#allocation356_spill] sm:$0xff] %v5462_v10  ;;  %v5486_v10 = vsel %vm9668_vm6, 0.0, %v1991_v53  ;;  %vm9680_vm6 = vcmp.ne.f32.partialorder %v9679_v54, %v9679_v54  ;;  %v9691_v54 = vld [vmem:[#allocation141_spill] sm:$0xff] }
 0x29a   :  { %9660 = vst [vmem:[#allocation357_spill] sm:$0xff] %v5468_v41  ;;  %v5492_v41 = vsel %vm9671_vm3, 0.0, %v1991_v53  ;;  %vm9683_vm3 = vcmp.ne.f32.partialorder %v9682_v12, %v9682_v12  ;;  %v9694_v12 = vld [vmem:[#allocation146_spill] sm:$0xff] }
 0x29b   :  { %9663 = vst [vmem:[#allocation358_spill] sm:$0xff] %v5474_v35  ;;  %v5498_v35 = vsel %vm9674_vm5, 0.0, %v1991_v53  ;;  %vm9686_vm5 = vcmp.ne.f32.partialorder %v9685_v20, %v9685_v20  ;;  %v9697_v20 = vld [vmem:[#allocation147_spill] sm:$0xff] }
 0x29c   :  { %9666 = vst [vmem:[#allocation359_spill] sm:$0xff] %v5480_v60  ;;  %v5504_v60 = vsel %vm9677_vm11, 0.0, %v1991_v53  ;;  %vm9689_vm11 = vcmp.ne.f32.partialorder %v9688_v15, %v9688_v15  ;;  %v9700_v15 = vld [vmem:[#allocation148_spill] sm:$0xff] }
 0x29d   :  { %9669 = vst [vmem:[#allocation361_spill] sm:$0xff] %v5486_v10  ;;  %v5510_v10 = vsel %vm9680_vm6, 0.0, %v1991_v53  ;;  %vm9692_vm6 = vcmp.ne.f32.partialorder %v9691_v54, %v9691_v54  ;;  %v9703_v54 = vld [vmem:[#allocation149_spill] sm:$0xff] }
 0x29e   :  { %9672 = vst [vmem:[#allocation362_spill] sm:$0xff] %v5492_v41  ;;  %v5516_v41 = vsel %vm9683_vm3, 0.0, %v1991_v53  ;;  %vm9695_vm3 = vcmp.ne.f32.partialorder %v9694_v12, %v9694_v12  ;;  %v9706_v12 = vld [vmem:[#allocation154_spill] sm:$0xff] }
 0x29f   :  { %9675 = vst [vmem:[#allocation363_spill] sm:$0xff] %v5498_v35  ;;  %v5522_v35 = vsel %vm9686_vm5, 0.0, %v1991_v53  ;;  %vm9698_vm5 = vcmp.ne.f32.partialorder %v9697_v20, %v9697_v20  ;;  %v9709_v20 = vld [vmem:[#allocation155_spill] sm:$0xff] }
 0x2a0   :  { %9678 = vst [vmem:[#allocation364_spill] sm:$0xff] %v5504_v60  ;;  %v5528_v60 = vsel %vm9689_vm11, 0.0, %v1991_v53  ;;  %vm9701_vm11 = vcmp.ne.f32.partialorder %v9700_v15, %v9700_v15  ;;  %v9712_v15 = vld [vmem:[#allocation156_spill] sm:$0xff] }
 0x2a1   :  { %9681 = vst [vmem:[#allocation366_spill] sm:$0xff] %v5510_v10  ;;  %v5534_v10 = vsel %vm9692_vm6, 0.0, %v1991_v53  ;;  %vm9704_vm6 = vcmp.ne.f32.partialorder %v9703_v54, %v9703_v54  ;;  %v9715_v54 = vld [vmem:[#allocation157_spill] sm:$0xff] }
 0x2a2   :  { %9684 = vst [vmem:[#allocation367_spill] sm:$0xff] %v5516_v41  ;;  %v5540_v41 = vsel %vm9695_vm3, 0.0, %v1991_v53  ;;  %vm9707_vm3 = vcmp.ne.f32.partialorder %v9706_v12, %v9706_v12  ;;  %v9718_v12 = vld [vmem:[#allocation162_spill] sm:$0xff] }
 0x2a3   :  { %9687 = vst [vmem:[#allocation368_spill] sm:$0xff] %v5522_v35  ;;  %v5546_v35 = vsel %vm9698_vm5, 0.0, %v1991_v53  ;;  %vm9710_vm5 = vcmp.ne.f32.partialorder %v9709_v20, %v9709_v20  ;;  %v9721_v20 = vld [vmem:[#allocation163_spill] sm:$0xff] }
 0x2a4   :  { %9690 = vst [vmem:[#allocation369_spill] sm:$0xff] %v5528_v60  ;;  %v5552_v60 = vsel %vm9701_vm11, 0.0, %v1991_v53  ;;  %vm9713_vm11 = vcmp.ne.f32.partialorder %v9712_v15, %v9712_v15  ;;  %v9724_v15 = vld [vmem:[#allocation164_spill] sm:$0xff] }
 0x2a5   :  { %9693 = vst [vmem:[#allocation373_spill] sm:$0xff] %v5534_v10  ;;  %v5558_v10 = vsel %vm9704_vm6, 0.0, %v1991_v53  ;;  %vm9716_vm6 = vcmp.ne.f32.partialorder %v9715_v54, %v9715_v54  ;;  %v9727_v54 = vld [vmem:[#allocation165_spill] sm:$0xff] }
 0x2a6   :  { %9696 = vst [vmem:[#allocation374_spill] sm:$0xff] %v5540_v41  ;;  %v5564_v41 = vsel %vm9707_vm3, 0.0, %v1991_v53  ;;  %vm9719_vm3 = vcmp.ne.f32.partialorder %v9718_v12, %v9718_v12  ;;  %v9730_v12 = vld [vmem:[#allocation170_spill] sm:$0xff] }
 0x2a7   :  { %9699 = vst [vmem:[#allocation375_spill] sm:$0xff] %v5546_v35  ;;  %v5570_v35 = vsel %vm9710_vm5, 0.0, %v1991_v53  ;;  %vm9722_vm5 = vcmp.ne.f32.partialorder %v9721_v20, %v9721_v20  ;;  %v9733_v20 = vld [vmem:[#allocation171_spill] sm:$0xff] }
 0x2a8   :  { %9702 = vst [vmem:[#allocation376_spill] sm:$0xff] %v5552_v60  ;;  %v5576_v60 = vsel %vm9713_vm11, 0.0, %v1991_v53  ;;  %vm9725_vm11 = vcmp.ne.f32.partialorder %v9724_v15, %v9724_v15  ;;  %v9736_v15 = vld [vmem:[#allocation172_spill] sm:$0xff] }
 0x2a9   :  { %9705 = vst [vmem:[#allocation384_spill] sm:$0xff] %v5558_v10  ;;  %v5582_v10 = vsel %vm9716_vm6, 0.0, %v1991_v53  ;;  %vm9728_vm6 = vcmp.ne.f32.partialorder %v9727_v54, %v9727_v54  ;;  %v9739_v54 = vld [vmem:[#allocation173_spill] sm:$0xff] }
 0x2aa   :  { %9708 = vst [vmem:[#allocation385_spill] sm:$0xff] %v5564_v41  ;;  %v5588_v41 = vsel %vm9719_vm3, 0.0, %v1991_v53  ;;  %vm9731_vm3 = vcmp.ne.f32.partialorder %v9730_v12, %v9730_v12  ;;  %v9742_v12 = vld [vmem:[#allocation178_spill] sm:$0xff] }
 0x2ab   :  { %9711 = vst [vmem:[#allocation386_spill] sm:$0xff] %v5570_v35  ;;  %v5594_v35 = vsel %vm9722_vm5, 0.0, %v1991_v53  ;;  %vm9734_vm5 = vcmp.ne.f32.partialorder %v9733_v20, %v9733_v20  ;;  %v9745_v20 = vld [vmem:[#allocation179_spill] sm:$0xff] }
 0x2ac   :  { %9714 = vst [vmem:[#allocation387_spill] sm:$0xff] %v5576_v60  ;;  %v5600_v60 = vsel %vm9725_vm11, 0.0, %v1991_v53  ;;  %vm9737_vm11 = vcmp.ne.f32.partialorder %v9736_v15, %v9736_v15  ;;  %v9748_v15 = vld [vmem:[#allocation180_spill] sm:$0xff] }
 0x2ad   :  { %9717 = vst [vmem:[#allocation14_spill] sm:$0xff] %v5582_v10  ;;  %v5606_v10 = vsel %vm9728_vm6, 0.0, %v1991_v53  ;;  %vm9740_vm6 = vcmp.ne.f32.partialorder %v9739_v54, %v9739_v54  ;;  %v9751_v54 = vld [vmem:[#allocation181_spill] sm:$0xff] }
 0x2ae   :  { %9720 = vst [vmem:[#allocation15_spill] sm:$0xff] %v5588_v41  ;;  %v5612_v41 = vsel %vm9731_vm3, 0.0, %v1991_v53  ;;  %vm9743_vm3 = vcmp.ne.f32.partialorder %v9742_v12, %v9742_v12  ;;  %v9754_v12 = vld [vmem:[#allocation186_spill] sm:$0xff] }
 0x2af   :  { %9723 = vst [vmem:[#allocation16_spill] sm:$0xff] %v5594_v35  ;;  %v5618_v35 = vsel %vm9734_vm5, 0.0, %v1991_v53  ;;  %vm9746_vm5 = vcmp.ne.f32.partialorder %v9745_v20, %v9745_v20  ;;  %v9757_v20 = vld [vmem:[#allocation187_spill] sm:$0xff] }
 0x2b0   :  { %9726 = vst [vmem:[#allocation18_spill] sm:$0xff] %v5600_v60  ;;  %v5624_v60 = vsel %vm9737_vm11, 0.0, %v1991_v53  ;;  %vm9749_vm11 = vcmp.ne.f32.partialorder %v9748_v15, %v9748_v15  ;;  %v9760_v15 = vld [vmem:[#allocation188_spill] sm:$0xff] }
 0x2b1   :  { %9729 = vst [vmem:[#allocation19_spill] sm:$0xff] %v5606_v10  ;;  %v5630_v10 = vsel %vm9740_vm6, 0.0, %v1991_v53  ;;  %vm9752_vm6 = vcmp.ne.f32.partialorder %v9751_v54, %v9751_v54  ;;  %v9763_v54 = vld [vmem:[#allocation189_spill] sm:$0xff] }
 0x2b2   :  { %9732 = vst [vmem:[#allocation20_spill] sm:$0xff] %v5612_v41  ;;  %v5636_v41 = vsel %vm9743_vm3, 0.0, %v1991_v53  ;;  %vm9755_vm3 = vcmp.ne.f32.partialorder %v9754_v12, %v9754_v12  ;;  %v9766_v12 = vld [vmem:[#allocation194_spill] sm:$0xff] }
 0x2b3   :  { %9735 = vst [vmem:[#allocation21_spill] sm:$0xff] %v5618_v35  ;;  %v5642_v35 = vsel %vm9746_vm5, 0.0, %v1991_v53  ;;  %vm9758_vm5 = vcmp.ne.f32.partialorder %v9757_v20, %v9757_v20  ;;  %v9769_v20 = vld [vmem:[#allocation195_spill] sm:$0xff] }
 0x2b4   :  { %9738 = vst [vmem:[#allocation26_spill] sm:$0xff] %v5624_v60  ;;  %v5648_v60 = vsel %vm9749_vm11, 0.0, %v1991_v53  ;;  %vm9761_vm11 = vcmp.ne.f32.partialorder %v9760_v15, %v9760_v15  ;;  %v9772_v15 = vld [vmem:[#allocation196_spill] sm:$0xff] }
 0x2b5   :  { %9741 = vst [vmem:[#allocation27_spill] sm:$0xff] %v5630_v10  ;;  %v5654_v10 = vsel %vm9752_vm6, 0.0, %v1991_v53  ;;  %vm9764_vm6 = vcmp.ne.f32.partialorder %v9763_v54, %v9763_v54  ;;  %v9775_v54 = vld [vmem:[#allocation197_spill] sm:$0xff] }
 0x2b6   :  { %9744 = vst [vmem:[#allocation28_spill] sm:$0xff] %v5636_v41  ;;  %v5660_v41 = vsel %vm9755_vm3, 0.0, %v1991_v53  ;;  %vm9767_vm3 = vcmp.ne.f32.partialorder %v9766_v12, %v9766_v12  ;;  %v9778_v12 = vld [vmem:[#allocation202_spill] sm:$0xff] }
 0x2b7   :  { %9747 = vst [vmem:[#allocation29_spill] sm:$0xff] %v5642_v35  ;;  %v5666_v35 = vsel %vm9758_vm5, 0.0, %v1991_v53  ;;  %vm9770_vm5 = vcmp.ne.f32.partialorder %v9769_v20, %v9769_v20  ;;  %v9781_v20 = vld [vmem:[#allocation203_spill] sm:$0xff] }
 0x2b8   :  { %9750 = vst [vmem:[#allocation34_spill] sm:$0xff] %v5648_v60  ;;  %v5672_v60 = vsel %vm9761_vm11, 0.0, %v1991_v53  ;;  %vm9773_vm11 = vcmp.ne.f32.partialorder %v9772_v15, %v9772_v15  ;;  %v9784_v15 = vld [vmem:[#allocation204_spill] sm:$0xff] }
 0x2b9   :  { %9753 = vst [vmem:[#allocation35_spill] sm:$0xff] %v5654_v10  ;;  %v5678_v10 = vsel %vm9764_vm6, 0.0, %v1991_v53  ;;  %vm9776_vm6 = vcmp.ne.f32.partialorder %v9775_v54, %v9775_v54  ;;  %v9787_v54 = vld [vmem:[#allocation205_spill] sm:$0xff] }
 0x2ba   :  { %9756 = vst [vmem:[#allocation36_spill] sm:$0xff] %v5660_v41  ;;  %v5684_v41 = vsel %vm9767_vm3, 0.0, %v1991_v53  ;;  %vm9779_vm3 = vcmp.ne.f32.partialorder %v9778_v12, %v9778_v12  ;;  %v9790_v12 = vld [vmem:[#allocation210_spill] sm:$0xff] }
 0x2bb   :  { %9759 = vst [vmem:[#allocation37_spill] sm:$0xff] %v5666_v35  ;;  %v5690_v35 = vsel %vm9770_vm5, 0.0, %v1991_v53  ;;  %vm9782_vm5 = vcmp.ne.f32.partialorder %v9781_v20, %v9781_v20  ;;  %v9793_v20 = vld [vmem:[#allocation211_spill] sm:$0xff] }
 0x2bc   :  { %9762 = vst [vmem:[#allocation42_spill] sm:$0xff] %v5672_v60  ;;  %v5696_v60 = vsel %vm9773_vm11, 0.0, %v1991_v53  ;;  %vm9785_vm11 = vcmp.ne.f32.partialorder %v9784_v15, %v9784_v15  ;;  %v9796_v15 = vld [vmem:[#allocation212_spill] sm:$0xff] }
 0x2bd   :  { %9765 = vst [vmem:[#allocation43_spill] sm:$0xff] %v5678_v10  ;;  %v5702_v10 = vsel %vm9776_vm6, 0.0, %v1991_v53  ;;  %vm9788_vm6 = vcmp.ne.f32.partialorder %v9787_v54, %v9787_v54  ;;  %v9799_v54 = vld [vmem:[#allocation213_spill] sm:$0xff] }
 0x2be   :  { %9768 = vst [vmem:[#allocation44_spill] sm:$0xff] %v5684_v41  ;;  %v5708_v41 = vsel %vm9779_vm3, 0.0, %v1991_v53  ;;  %vm9791_vm3 = vcmp.ne.f32.partialorder %v9790_v12, %v9790_v12  ;;  %v9802_v12 = vld [vmem:[#allocation218_spill] sm:$0xff] }
 0x2bf   :  { %9771 = vst [vmem:[#allocation45_spill] sm:$0xff] %v5690_v35  ;;  %v5714_v35 = vsel %vm9782_vm5, 0.0, %v1991_v53  ;;  %vm9794_vm5 = vcmp.ne.f32.partialorder %v9793_v20, %v9793_v20  ;;  %v9805_v20 = vld [vmem:[#allocation219_spill] sm:$0xff] }
 0x2c0   :  { %9774 = vst [vmem:[#allocation380_spill] sm:$0xff] %v5696_v60  ;;  %v5720_v60 = vsel %vm9785_vm11, 0.0, %v1991_v53  ;;  %vm9797_vm11 = vcmp.ne.f32.partialorder %v9796_v15, %v9796_v15  ;;  %v9808_v15 = vld [vmem:[#allocation220_spill] sm:$0xff] }
 0x2c1   :  { %9777 = vst [vmem:[#allocation381_spill] sm:$0xff] %v5702_v10  ;;  %v5726_v10 = vsel %vm9788_vm6, 0.0, %v1991_v53  ;;  %vm9800_vm6 = vcmp.ne.f32.partialorder %v9799_v54, %v9799_v54  ;;  %v9811_v54 = vld [vmem:[#allocation221_spill] sm:$0xff] }
 0x2c2   :  { %9780 = vst [vmem:[#allocation382_spill] sm:$0xff] %v5708_v41  ;;  %v5732_v41 = vsel %vm9791_vm3, 0.0, %v1991_v53  ;;  %vm9803_vm3 = vcmp.ne.f32.partialorder %v9802_v12, %v9802_v12  ;;  %v9814_v12 = vld [vmem:[#allocation226_spill] sm:$0xff] }
 0x2c3   :  { %9783 = vst [vmem:[#allocation383_spill] sm:$0xff] %v5714_v35  ;;  %v5738_v35 = vsel %vm9794_vm5, 0.0, %v1991_v53  ;;  %vm9806_vm5 = vcmp.ne.f32.partialorder %v9805_v20, %v9805_v20  ;;  %v9817_v20 = vld [vmem:[#allocation227_spill] sm:$0xff] }
 0x2c4   :  { %9786 = vst [vmem:[#allocation391_spill] sm:$0xff] %v5720_v60  ;;  %v5744_v60 = vsel %vm9797_vm11, 0.0, %v1991_v53  ;;  %vm9809_vm11 = vcmp.ne.f32.partialorder %v9808_v15, %v9808_v15  ;;  %v9820_v15 = vld [vmem:[#allocation228_spill] sm:$0xff] }
 0x2c5   :  { %9789 = vst [vmem:[#allocation392_spill] sm:$0xff] %v5726_v10  ;;  %v5750_v10 = vsel %vm9800_vm6, 0.0, %v1991_v53  ;;  %vm9812_vm6 = vcmp.ne.f32.partialorder %v9811_v54, %v9811_v54  ;;  %v9823_v54 = vld [vmem:[#allocation229_spill] sm:$0xff] }
 0x2c6   :  { %9792 = vst [vmem:[#allocation393_spill] sm:$0xff] %v5732_v41  ;;  %v5756_v41 = vsel %vm9803_vm3, 0.0, %v1991_v53  ;;  %vm9815_vm3 = vcmp.ne.f32.partialorder %v9814_v12, %v9814_v12  ;;  %v9826_v12 = vld [vmem:[#allocation234_spill] sm:$0xff] }
 0x2c7   :  { %9795 = vst [vmem:[#allocation394_spill] sm:$0xff] %v5738_v35  ;;  %v5762_v35 = vsel %vm9806_vm5, 0.0, %v1991_v53  ;;  %vm9818_vm5 = vcmp.ne.f32.partialorder %v9817_v20, %v9817_v20  ;;  %v9829_v20 = vld [vmem:[#allocation235_spill] sm:$0xff] }
 0x2c8   :  { %9798 = vst [vmem:[#allocation398_spill] sm:$0xff] %v5744_v60  ;;  %v5768_v60 = vsel %vm9809_vm11, 0.0, %v1991_v53  ;;  %vm9821_vm11 = vcmp.ne.f32.partialorder %v9820_v15, %v9820_v15  ;;  %v9832_v15 = vld [vmem:[#allocation236_spill] sm:$0xff] }
 0x2c9   :  { %9801 = vst [vmem:[#allocation399_spill] sm:$0xff] %v5750_v10  ;;  %v5774_v10 = vsel %vm9812_vm6, 0.0, %v1991_v53  ;;  %vm9824_vm6 = vcmp.ne.f32.partialorder %v9823_v54, %v9823_v54  ;;  %v9835_v54 = vld [vmem:[#allocation237_spill] sm:$0xff] }
 0x2ca   :  { %9804 = vst [vmem:[#allocation400_spill] sm:$0xff] %v5756_v41  ;;  %v5780_v41 = vsel %vm9815_vm3, 0.0, %v1991_v53  ;;  %vm9827_vm3 = vcmp.ne.f32.partialorder %v9826_v12, %v9826_v12  ;;  %v9838_v12 = vld [vmem:[#allocation242_spill] sm:$0xff] }
 0x2cb   :  { %9807 = vst [vmem:[#allocation401_spill] sm:$0xff] %v5762_v35  ;;  %v5786_v35 = vsel %vm9818_vm5, 0.0, %v1991_v53  ;;  %vm9830_vm5 = vcmp.ne.f32.partialorder %v9829_v20, %v9829_v20  ;;  %v9841_v20 = vld [vmem:[#allocation243_spill] sm:$0xff] }
 0x2cc   :  { %9810 = vst [vmem:[#allocation405_spill] sm:$0xff] %v5768_v60  ;;  %v5792_v60 = vsel %vm9821_vm11, 0.0, %v1991_v53  ;;  %vm9833_vm11 = vcmp.ne.f32.partialorder %v9832_v15, %v9832_v15  ;;  %v9844_v15 = vld [vmem:[#allocation244_spill] sm:$0xff] }
 0x2cd   :  { %9813 = vst [vmem:[#allocation406_spill] sm:$0xff] %v5774_v10  ;;  %v5798_v10 = vsel %vm9824_vm6, 0.0, %v1991_v53  ;;  %vm9836_vm6 = vcmp.ne.f32.partialorder %v9835_v54, %v9835_v54  ;;  %v9847_v54 = vld [vmem:[#allocation245_spill] sm:$0xff] }
 0x2ce   :  { %9816 = vst [vmem:[#allocation407_spill] sm:$0xff] %v5780_v41  ;;  %v5804_v41 = vsel %vm9827_vm3, 0.0, %v1991_v53  ;;  %vm9839_vm3 = vcmp.ne.f32.partialorder %v9838_v12, %v9838_v12  ;;  %v9850_v12 = vld [vmem:[#allocation250_spill] sm:$0xff] }
 0x2cf   :  { %9819 = vst [vmem:[#allocation408_spill] sm:$0xff] %v5786_v35  ;;  %v5810_v35 = vsel %vm9830_vm5, 0.0, %v1991_v53  ;;  %vm9842_vm5 = vcmp.ne.f32.partialorder %v9841_v20, %v9841_v20  ;;  %v9853_v20 = vld [vmem:[#allocation251_spill] sm:$0xff] }
 0x2d0   :  { %9822 = vst [vmem:[#allocation409_spill] sm:$0xff] %v5792_v60  ;;  %v5816_v60 = vsel %vm9833_vm11, 0.0, %v1991_v53  ;;  %vm9845_vm11 = vcmp.ne.f32.partialorder %v9844_v15, %v9844_v15  ;;  %v9856_v15 = vld [vmem:[#allocation252_spill] sm:$0xff] }
 0x2d1   :  { %9825 = vst [vmem:[#allocation410_spill] sm:$0xff] %v5798_v10  ;;  %v5822_v10 = vsel %vm9836_vm6, 0.0, %v1991_v53  ;;  %vm9848_vm6 = vcmp.ne.f32.partialorder %v9847_v54, %v9847_v54  ;;  %v9859_v54 = vld [vmem:[#allocation253_spill] sm:$0xff] }
 0x2d2   :  { %9828 = vst [vmem:[#allocation411_spill] sm:$0xff] %v5804_v41  ;;  %v5828_v41 = vsel %vm9839_vm3, 0.0, %v1991_v53  ;;  %vm9851_vm3 = vcmp.ne.f32.partialorder %v9850_v12, %v9850_v12 }
 0x2d3   :  { %9831 = vst [vmem:[#allocation412_spill] sm:$0xff] %v5810_v35  ;;  %v5834_v35 = vsel %vm9842_vm5, 0.0, %v1991_v53  ;;  %vm9854_vm5 = vcmp.ne.f32.partialorder %v9853_v20, %v9853_v20  ;;  %v9864_v20 = vld [vmem:[#allocation259_spill] sm:$0xff] }
 0x2d4   :  { %9834 = vst [vmem:[#allocation413_spill] sm:$0xff] %v5816_v60  ;;  %v5840_v60 = vsel %vm9845_vm11, 0.0, %v1991_v53  ;;  %vm9857_vm11 = vcmp.ne.f32.partialorder %v9856_v15, %v9856_v15  ;;  %v9867_v15 = vld [vmem:[#allocation260_spill] sm:$0xff] }
 0x2d5   :  { %9837 = vst [vmem:[#allocation414_spill] sm:$0xff] %v5822_v10  ;;  %v5846_v10 = vsel %vm9848_vm6, 0.0, %v1991_v53  ;;  %vm9860_vm6 = vcmp.ne.f32.partialorder %v9859_v54, %v9859_v54  ;;  %v9870_v54 = vld [vmem:[#allocation261_spill] sm:$0xff] }
 0x2d6   :  { %9840 = vst [vmem:[#allocation98_spill] sm:$0xff] %v5828_v41  ;;  %v5852_v41 = vsel %vm9851_vm3, 0.0, %v1991_v53  ;;  %vm9862_vm3 = vcmp.ne.f32.partialorder %v9004_v9, %v9004_v9 }
 0x2d7   :  { %9843 = vst [vmem:[#allocation99_spill] sm:$0xff] %v5834_v35  ;;  %v5858_v35 = vsel %vm9854_vm5, 0.0, %v1991_v53  ;;  %v5876_v12 = vsel %vm9862_vm3, 0.0, %v1991_v53  ;;  %vm9865_vm5 = vcmp.ne.f32.partialorder %v9864_v20, %v9864_v20  ;;  %vm9873_vm3 = vcmp.ne.f32.partialorder %v9024_v21, %v9024_v21 }
 0x2d8   :  { %9846 = vst [vmem:[#allocation100_spill] sm:$0xff] %v5840_v60  ;;  %v5864_v60 = vsel %vm9857_vm11, 0.0, %v1991_v53  ;;  %vm9868_vm11 = vcmp.ne.f32.partialorder %v9867_v15, %v9867_v15  ;;  %v5900_v9 = vsel %vm9873_vm3, 0.0, %v1991_v53  ;;  %vm9882_vm3 = vcmp.ne.f32.partialorder %v9044_v52, %v9044_v52  ;;  %v9893_v52 = vld [vmem:[#allocation282_spill] sm:$0xff] }
 0x2d9   :  { %9849 = vst [vmem:[#allocation101_spill] sm:$0xff] %v5846_v10  ;;  %v5870_v10 = vsel %vm9860_vm6, 0.0, %v1991_v53  ;;  %vm9871_vm6 = vcmp.ne.f32.partialorder %v9870_v54, %v9870_v54  ;;  %v9879_v54 = vld [vmem:[#allocation269_spill] sm:$0xff]  ;;  %v5924_v21 = vsel %vm9882_vm3, 0.0, %v1991_v53  ;;  %vm9894_vm3 = vcmp.ne.f32.partialorder %v9893_v52, %v9893_v52  ;;  %v9905_v52 = vld [vmem:[#allocation290_spill] sm:$0xff] }
 0x2da   :  { %9852 = vst [vmem:[#allocation106_spill] sm:$0xff] %v5852_v41  ;;  %v10079_v41 = vld [vmem:[#allocation90_spill] sm:$0xff] }
 0x2db   :  { %9855 = vst [vmem:[#allocation107_spill] sm:$0xff] %v5858_v35  ;;  %v5882_v35 = vsel %vm9865_vm5, 0.0, %v1991_v53  ;;  %vm9875_vm5 = vcmp.ne.f32.partialorder %v9025_v3, %v9025_v3  ;;  %v9884_v3 = vld [vmem:[#allocation275_spill] sm:$0xff] }
 0x2dc   :  { %9858 = vst [vmem:[#allocation108_spill] sm:$0xff] %v5864_v60  ;;  %v5888_v60 = vsel %vm9868_vm11, 0.0, %v1991_v53  ;;  %v5906_v20 = vsel %vm9875_vm5, 0.0, %v1991_v53  ;;  %vm9877_vm11 = vcmp.ne.f32.partialorder %v9026_v33, %v9026_v33  ;;  %vm9885_vm5 = vcmp.ne.f32.partialorder %v9884_v3, %v9884_v3  ;;  %v9887_v33 = vld [vmem:[#allocation276_spill] sm:$0xff]  ;;  %v9896_v3 = vld [vmem:[#allocation283_spill] sm:$0xff] }
 0x2dd   :  { %9861 = vst [vmem:[#allocation109_spill] sm:$0xff] %v5870_v10  ;;  %v5894_v10 = vsel %vm9871_vm6, 0.0, %v1991_v53  ;;  %v5912_v15 = vsel %vm9877_vm11, 0.0, %v1991_v53  ;;  %vm9880_vm6 = vcmp.ne.f32.partialorder %v9879_v54, %v9879_v54  ;;  %vm9888_vm11 = vcmp.ne.f32.partialorder %v9887_v33, %v9887_v33  ;;  %v9890_v54 = vld [vmem:[#allocation277_spill] sm:$0xff]  ;;  %v9899_v33 = vld [vmem:[#allocation284_spill] sm:$0xff] }
 0x2de   :  { %9863 = vst [vmem:[#allocation114_spill] sm:$0xff] %v5876_v12  ;;  %v10077_v12 = vld [vmem:[#allocation86_spill] sm:$0xff] }
 0x2df   :  { %9866 = vst [vmem:[#allocation115_spill] sm:$0xff] %v5882_v35  ;;  %v10075_v35 = vld [vmem:[#allocation85_spill] sm:$0xff] }
 0x2e0   :  { %9869 = vst [vmem:[#allocation116_spill] sm:$0xff] %v5888_v60  ;;  %v10073_v60 = vld [vmem:[#allocation81_spill] sm:$0xff] }
 0x2e1   :  { %9872 = vst [vmem:[#allocation117_spill] sm:$0xff] %v5894_v10  ;;  %v5918_v10 = vsel %vm9880_vm6, 0.0, %v1991_v53  ;;  %vm9891_vm6 = vcmp.ne.f32.partialorder %v9890_v54, %v9890_v54  ;;  %v9902_v54 = vld [vmem:[#allocation285_spill] sm:$0xff] }
 0x2e2   :  { %9874 = vst [vmem:[#allocation122_spill] sm:$0xff] %v5900_v9  ;;  %v10071_v9 = vld [vmem:[#allocation84_spill] sm:$0xff] }
 0x2e3   :  { %9876 = vst [vmem:[#allocation123_spill] sm:$0xff] %v5906_v20  ;;  %v5930_v20 = vsel %vm9885_vm5, 0.0, %v1991_v53  ;;  %vm9897_vm5 = vcmp.ne.f32.partialorder %v9896_v3, %v9896_v3  ;;  %v9908_v3 = vld [vmem:[#allocation291_spill] sm:$0xff] }
 0x2e4   :  { %9878 = vst [vmem:[#allocation124_spill] sm:$0xff] %v5912_v15  ;;  %v5936_v15 = vsel %vm9888_vm11, 0.0, %v1991_v53  ;;  %vm9900_vm11 = vcmp.ne.f32.partialorder %v9899_v33, %v9899_v33  ;;  %v9911_v33 = vld [vmem:[#allocation292_spill] sm:$0xff] }
 0x2e5   :  { %9881 = vst [vmem:[#allocation125_spill] sm:$0xff] %v5918_v10  ;;  %v5942_v10 = vsel %vm9891_vm6, 0.0, %v1991_v53  ;;  %vm9903_vm6 = vcmp.ne.f32.partialorder %v9902_v54, %v9902_v54  ;;  %v9914_v54 = vld [vmem:[#allocation293_spill] sm:$0xff] }
 0x2e6   :  { %9883 = vst [vmem:[#allocation130_spill] sm:$0xff] %v5924_v21  ;;  %v5948_v21 = vsel %vm9894_vm3, 0.0, %v1991_v53  ;;  %vm9906_vm3 = vcmp.ne.f32.partialorder %v9905_v52, %v9905_v52  ;;  %v9917_v52 = vld [vmem:[#allocation298_spill] sm:$0xff] }
 0x2e7   :  { %9886 = vst [vmem:[#allocation131_spill] sm:$0xff] %v5930_v20  ;;  %v5954_v20 = vsel %vm9897_vm5, 0.0, %v1991_v53  ;;  %vm9909_vm5 = vcmp.ne.f32.partialorder %v9908_v3, %v9908_v3  ;;  %v9920_v3 = vld [vmem:[#allocation299_spill] sm:$0xff] }
 0x2e8   :  { %9889 = vst [vmem:[#allocation132_spill] sm:$0xff] %v5936_v15  ;;  %v5960_v15 = vsel %vm9900_vm11, 0.0, %v1991_v53  ;;  %vm9912_vm11 = vcmp.ne.f32.partialorder %v9911_v33, %v9911_v33  ;;  %v9923_v33 = vld [vmem:[#allocation300_spill] sm:$0xff] }
 0x2e9   :  { %9892 = vst [vmem:[#allocation133_spill] sm:$0xff] %v5942_v10  ;;  %v5966_v10 = vsel %vm9903_vm6, 0.0, %v1991_v53  ;;  %vm9915_vm6 = vcmp.ne.f32.partialorder %v9914_v54, %v9914_v54  ;;  %v9926_v54 = vld [vmem:[#allocation301_spill] sm:$0xff] }
 0x2ea   :  { %9895 = vst [vmem:[#allocation138_spill] sm:$0xff] %v5948_v21  ;;  %v5972_v21 = vsel %vm9906_vm3, 0.0, %v1991_v53  ;;  %vm9918_vm3 = vcmp.ne.f32.partialorder %v9917_v52, %v9917_v52 }
 0x2eb   :  { %9898 = vst [vmem:[#allocation139_spill] sm:$0xff] %v5954_v20  ;;  %v5978_v20 = vsel %vm9909_vm5, 0.0, %v1991_v53  ;;  %vm9921_vm5 = vcmp.ne.f32.partialorder %v9920_v3, %v9920_v3 }
 0x2ec   :  { %9901 = vst [vmem:[#allocation140_spill] sm:$0xff] %v5960_v15  ;;  %v5984_v15 = vsel %vm9912_vm11, 0.0, %v1991_v53  ;;  %vm9924_vm11 = vcmp.ne.f32.partialorder %v9923_v33, %v9923_v33 }
 0x2ed   :  { %9904 = vst [vmem:[#allocation141_spill] sm:$0xff] %v5966_v10  ;;  %v5990_v10 = vsel %vm9915_vm6, 0.0, %v1991_v53  ;;  %vm9927_vm6 = vcmp.ne.f32.partialorder %v9926_v54, %v9926_v54 }
 0x2ee   :  { %9907 = vst [vmem:[#allocation146_spill] sm:$0xff] %v5972_v21  ;;  %v5996_v21 = vsel %vm9918_vm3, 0.0, %v1991_v53  ;;  %vm9929_vm3 = vcmp.ne.f32.partialorder %v9114_v39, %v9114_v39 }
 0x2ef   :  { %9910 = vst [vmem:[#allocation147_spill] sm:$0xff] %v5978_v20  ;;  %v6002_v20 = vsel %vm9921_vm5, 0.0, %v1991_v53  ;;  %v6020_v52 = vsel %vm9929_vm3, 0.0, %v1991_v53  ;;  %vm9931_vm5 = vcmp.ne.f32.partialorder %v9115_v26, %v9115_v26  ;;  %vm9937_vm3 = vcmp.ne.f32.partialorder %v9134_v58, %v9134_v58 }
 0x2f0   :  { %9913 = vst [vmem:[#allocation148_spill] sm:$0xff] %v5984_v15  ;;  %v6008_v15 = vsel %vm9924_vm11, 0.0, %v1991_v53  ;;  %v6026_v3 = vsel %vm9931_vm5, 0.0, %v1991_v53  ;;  %vm9933_vm11 = vcmp.ne.f32.partialorder %v9116_v29, %v9116_v29  ;;  %v6044_v39 = vsel %vm9937_vm3, 0.0, %v1991_v53 }
 0x2f1   :  { %9916 = vst [vmem:[#allocation149_spill] sm:$0xff] %v5990_v10  ;;  %v6014_v10 = vsel %vm9927_vm6, 0.0, %v1991_v53  ;;  %v6032_v33 = vsel %vm9933_vm11, 0.0, %v1991_v53  ;;  %vm9935_vm6 = vcmp.ne.f32.partialorder %v9117_v44, %v9117_v44  ;;  %vm9939_vm5 = vcmp.ne.f32.partialorder %v9135_v25, %v9135_v25 }
 0x2f2   :  { %9919 = vst [vmem:[#allocation154_spill] sm:$0xff] %v5996_v21  ;;  %v6038_v54 = vsel %vm9935_vm6, 0.0, %v1991_v53  ;;  %v6050_v26 = vsel %vm9939_vm5, 0.0, %v1991_v53  ;;  %vm9941_vm11 = vcmp.ne.f32.partialorder %v9136_v32, %v9136_v32  ;;  %vm9943_vm6 = vcmp.ne.f32.partialorder %v9137_v23, %v9137_v23  ;;  %v10069_v21 = vld [vmem:[#allocation80_spill] sm:$0xff] }
 0x2f3   :  { %9922 = vst [vmem:[#allocation155_spill] sm:$0xff] %v6002_v20  ;;  %v6056_v29 = vsel %vm9941_vm11, 0.0, %v1991_v53  ;;  %v6062_v44 = vsel %vm9943_vm6, 0.0, %v1991_v53  ;;  %vm9945_vm3 = vcmp.ne.f32.partialorder %v9154_v24, %v9154_v24  ;;  %vm9947_vm5 = vcmp.ne.f32.partialorder %v9155_v49, %v9155_v49  ;;  %v10067_v20 = vld [vmem:[#allocation83_spill] sm:$0xff] }
 0x2f4   :  { %9925 = vst [vmem:[#allocation156_spill] sm:$0xff] %v6008_v15  ;;  %v6068_v58 = vsel %vm9945_vm3, 0.0, %v1991_v53  ;;  %v6074_v25 = vsel %vm9947_vm5, 0.0, %v1991_v53  ;;  %vm9949_vm11 = vcmp.ne.f32.partialorder %v9156_v40, %v9156_v40  ;;  %vm9951_vm6 = vcmp.ne.f32.partialorder %v9157_v6, %v9157_v6  ;;  %v10065_v15 = vld [vmem:[#allocation79_spill] sm:$0xff] }
 0x2f5   :  { %9928 = vst [vmem:[#allocation157_spill] sm:$0xff] %v6014_v10  ;;  %v6080_v32 = vsel %vm9949_vm11, 0.0, %v1991_v53  ;;  %v6086_v23 = vsel %vm9951_vm6, 0.0, %v1991_v53  ;;  %vm9953_vm3 = vcmp.ne.f32.partialorder %v9174_v16, %v9174_v16  ;;  %vm9955_vm5 = vcmp.ne.f32.partialorder %v9175_v55, %v9175_v55  ;;  %v10063_v10 = vld [vmem:[#allocation82_spill] sm:$0xff] }
 0x2f6   :  { %9930 = vst [vmem:[#allocation162_spill] sm:$0xff] %v6020_v52  ;;  %v6092_v24 = vsel %vm9953_vm3, 0.0, %v1991_v53  ;;  %v6098_v49 = vsel %vm9955_vm5, 0.0, %v1991_v53  ;;  %vm9957_vm11 = vcmp.ne.f32.partialorder %v9176_v50, %v9176_v50  ;;  %vm9959_vm6 = vcmp.ne.f32.partialorder %v9177_v5, %v9177_v5  ;;  %v10061_v52 = vld [vmem:[#allocation78_spill] sm:$0xff] }
 0x2f7   :  { %9932 = vst [vmem:[#allocation163_spill] sm:$0xff] %v6026_v3  ;;  %v6104_v40 = vsel %vm9957_vm11, 0.0, %v1991_v53  ;;  %v6110_v6 = vsel %vm9959_vm6, 0.0, %v1991_v53  ;;  %vm9961_vm3 = vcmp.ne.f32.partialorder %v9194_v28, %v9194_v28  ;;  %vm9963_vm5 = vcmp.ne.f32.partialorder %v9195_v2, %v9195_v2  ;;  %v10059_v3 = vld [vmem:[#allocation77_spill] sm:$0xff] }
 0x2f8   :  { %9934 = vst [vmem:[#allocation164_spill] sm:$0xff] %v6032_v33  ;;  %v6116_v16 = vsel %vm9961_vm3, 0.0, %v1991_v53  ;;  %v6122_v55 = vsel %vm9963_vm5, 0.0, %v1991_v53  ;;  %vm9965_vm11 = vcmp.ne.f32.partialorder %v9196_v14, %v9196_v14  ;;  %vm9967_vm6 = vcmp.ne.f32.partialorder %v9197_v59, %v9197_v59  ;;  %v10058_v33 = vld [vmem:[#allocation73_spill] sm:$0xff] }
 0x2f9   :  { %9936 = vst [vmem:[#allocation165_spill] sm:$0xff] %v6038_v54  ;;  %v6128_v50 = vsel %vm9965_vm11, 0.0, %v1991_v53  ;;  %v6134_v5 = vsel %vm9967_vm6, 0.0, %v1991_v53  ;;  %v6140_v28 = vsel %vm621_vm12, 0.0, %v1991_v53  ;;  %vm9970_vm3 = vcmp.ne.f32.partialorder %v9215_v30, %v9215_v30  ;;  %v10057_v54 = vld [vmem:[#allocation76_spill] sm:$0xff] }
 0x2fa   :  { %9938 = vst [vmem:[#allocation170_spill] sm:$0xff] %v6044_v39  ;;  %v6146_v2 = vsel %vm9970_vm3, 0.0, %v1991_v53  ;;  %vm9972_vm5 = vcmp.ne.f32.partialorder %v9216_v61, %v9216_v61  ;;  %vm9974_vm11 = vcmp.ne.f32.partialorder %v9217_v13, %v9217_v13  ;;  %vm9977_vm12 = vcmp.ne.f32.partialorder %v9234_v37, %v9234_v37  ;;  %v10056_v39 = vld [vmem:[#allocation72_spill] sm:$0xff] }
 0x2fb   :  { %9940 = vst [vmem:[#allocation171_spill] sm:$0xff] %v6050_v26  ;;  %v6152_v14 = vsel %vm9972_vm5, 0.0, %v1991_v53  ;;  %v6158_v59 = vsel %vm9974_vm11, 0.0, %v1991_v53  ;;  %v6170_v30 = vsel %vm9977_vm12, 0.0, %v1991_v53  ;;  %vm9979_vm6 = vcmp.ne.f32.partialorder %v9235_v43, %v9235_v43  ;;  %v10055_v26 = vld [vmem:[#allocation75_spill] sm:$0xff] }
 0x2fc   :  { %9942 = vst [vmem:[#allocation172_spill] sm:$0xff] %v6056_v29  ;;  %v6176_v61 = vsel %vm9979_vm6, 0.0, %v1991_v53  ;;  %vm9981_vm3 = vcmp.ne.f32.partialorder %v9236_v56, %v9236_v56  ;;  %v6194_v37 = vsel %vm9984_vm0, 0.0, %v1991_v53  ;;  %vm9986_vm5 = vcmp.ne.f32.partialorder %v3056_v17, %v3056_v17  ;;  %v10054_v29 = vld [vmem:[#allocation71_spill] sm:$0xff] }
 0x2fd   :  { %9944 = vst [vmem:[#allocation173_spill] sm:$0xff] %v6062_v44  ;;  %v6182_v13 = vsel %vm9981_vm3, 0.0, %v1991_v53  ;;  %v6200_v43 = vsel %vm9986_vm5, 0.0, %v1991_v53  ;;  %vm9988_vm11 = vcmp.ne.f32.partialorder %v9252_v34, %v9252_v34  ;;  %v6224_v17 = vsel %vm635_vm14, 0.0, %v1991_v53  ;;  %v10053_v44 = vld [vmem:[#allocation74_spill] sm:$0xff] }
 0x2fe   :  { %9946 = vst [vmem:[#allocation178_spill] sm:$0xff] %v6068_v58  ;;  %v6206_v56 = vsel %vm9988_vm11, 0.0, %v1991_v53  ;;  %v6230_v34 = vsel %vm9993_vm9, 0.0, %v1991_v53  ;;  %vm10001_vm14 = vcmp.ne.f32.partialorder %v9301_v18, %v9301_v18  ;;  %v10052_v58 = vld [vmem:[#allocation70_spill] sm:$0xff] }
 0x2ff   :  { %9948 = vst [vmem:[#allocation179_spill] sm:$0xff] %v6074_v25  ;;  %v6266_v36 = vsel %vm10001_vm14, 0.0, %v1991_v53  ;;  %v10051_v25 = vld [vmem:[#allocation69_spill] sm:$0xff] }
 0x300   :  { %9950 = vst [vmem:[#allocation180_spill] sm:$0xff] %v6080_v32  ;;  %v10050_v32 = vld [vmem:[#allocation65_spill] sm:$0xff] }
 0x301   :  { %9952 = vst [vmem:[#allocation181_spill] sm:$0xff] %v6086_v23  ;;  %v10049_v23 = vld [vmem:[#allocation68_spill] sm:$0xff] }
 0x302   :  { %9954 = vst [vmem:[#allocation186_spill] sm:$0xff] %v6092_v24  ;;  %v10048_v24 = vld [vmem:[#allocation64_spill] sm:$0xff] }
 0x303   :  { %9956 = vst [vmem:[#allocation187_spill] sm:$0xff] %v6098_v49  ;;  %v10047_v49 = vld [vmem:[#allocation67_spill] sm:$0xff] }
 0x304   :  { %9958 = vst [vmem:[#allocation188_spill] sm:$0xff] %v6104_v40  ;;  %v10046_v40 = vld [vmem:[#allocation63_spill] sm:$0xff] }
 0x305   :  { %9960 = vst [vmem:[#allocation189_spill] sm:$0xff] %v6110_v6  ;;  %v10045_v6 = vld [vmem:[#allocation66_spill] sm:$0xff] }
 0x306   :  { %9962 = vst [vmem:[#allocation194_spill] sm:$0xff] %v6116_v16  ;;  %v10044_v16 = vld [vmem:[#allocation62_spill] sm:$0xff] }
 0x307   :  { %9964 = vst [vmem:[#allocation195_spill] sm:$0xff] %v6122_v55  ;;  %v10043_v55 = vld [vmem:[#allocation61_spill] sm:$0xff] }
 0x308   :  { %9966 = vst [vmem:[#allocation196_spill] sm:$0xff] %v6128_v50  ;;  %v10042_v50 = vld [vmem:[#allocation57_spill] sm:$0xff] }
 0x309   :  { %9968 = vst [vmem:[#allocation197_spill] sm:$0xff] %v6134_v5  ;;  %v10041_v5 = vld [vmem:[#allocation60_spill] sm:$0xff] }
 0x30a   :  { %9969 = vst [vmem:[#allocation202_spill] sm:$0xff] %v6140_v28  ;;  %v10040_v28 = vld [vmem:[#allocation56_spill] sm:$0xff] }
 0x30b   :  { %9971 = vst [vmem:[#allocation203_spill] sm:$0xff] %v6146_v2  ;;  %v10039_v2 = vld [vmem:[#allocation59_spill] sm:$0xff] }
 0x30c   :  { %9973 = vst [vmem:[#allocation204_spill] sm:$0xff] %v6152_v14  ;;  %v10038_v14 = vld [vmem:[#allocation55_spill] sm:$0xff] }
 0x30d   :  { %9975 = vst [vmem:[#allocation205_spill] sm:$0xff] %v6158_v59  ;;  %v10037_v59 = vld [vmem:[#allocation58_spill] sm:$0xff] }
 0x30e   :  { %9976 = vst [vmem:[#allocation210_spill] sm:$0xff] %v6164_v31  ;;  %v10036_v31 = vld [vmem:[#allocation54_spill] sm:$0xff] }
 0x30f   :  { %9978 = vst [vmem:[#allocation211_spill] sm:$0xff] %v6170_v30  ;;  %v10035_v30 = vld [vmem:[#allocation53_spill] sm:$0xff] }
 0x310   :  { %9980 = vst [vmem:[#allocation212_spill] sm:$0xff] %v6176_v61  ;;  %v10034_v61 = vld [vmem:[#allocation49_spill] sm:$0xff] }
 0x311   :  { %9982 = vst [vmem:[#allocation213_spill] sm:$0xff] %v6182_v13  ;;  %v10033_v13 = vld [vmem:[#allocation52_spill] sm:$0xff] }
 0x312   :  { %9983 = vst [vmem:[#allocation218_spill] sm:$0xff] %v6188_v51  ;;  %v10032_v51 = vld [vmem:[#allocation48_spill] sm:$0xff] }
 0x313   :  { %9985 = vst [vmem:[#allocation219_spill] sm:$0xff] %v6194_v37  ;;  %v10031_v37 = vld [vmem:[#allocation51_spill] sm:$0xff] }
 0x314   :  { %9987 = vst [vmem:[#allocation220_spill] sm:$0xff] %v6200_v43  ;;  %v10030_v43 = vld [vmem:[#allocation47_spill] sm:$0xff] }
 0x315   :  { %9989 = vst [vmem:[#allocation221_spill] sm:$0xff] %v6206_v56  ;;  %v10029_v56 = vld [vmem:[#allocation50_spill] sm:$0xff] }
 0x316   :  { %9990 = vst [vmem:[#allocation226_spill] sm:$0xff] %v6212_v1  ;;  %v10028_v1 = vld [vmem:[#allocation46_spill] sm:$0xff] }
 0x317   :  { %9991 = vst [vmem:[#allocation227_spill] sm:$0xff] %v6218_v62  ;;  %v10027_v62 = vld [vmem:[#allocation41_spill] sm:$0xff] }
 0x318   :  { %9992 = vst [vmem:[#allocation228_spill] sm:$0xff] %v6224_v17  ;;  %v10026_v17 = vld [vmem:[#allocation40_spill] sm:$0xff] }
 0x319   :  { %9994 = vst [vmem:[#allocation229_spill] sm:$0xff] %v6230_v34  ;;  %v10025_v34 = vld [vmem:[#allocation39_spill] sm:$0xff] }
 0x31a   :  { %9995 = vst [vmem:[#allocation234_spill] sm:$0xff] %v6236_v11  ;;  %v10024_v11 = vld [vmem:[#allocation38_spill] sm:$0xff] }
 0x31b   :  { %9996 = vst [vmem:[#allocation235_spill] sm:$0xff] %v6242_v22  ;;  %v10023_v22 = vld [vmem:[#allocation33_spill] sm:$0xff] }
 0x31c   :  { %9997 = vst [vmem:[#allocation236_spill] sm:$0xff] %v6248_v4  ;;  %v10022_v4 = vld [vmem:[#allocation32_spill] sm:$0xff] }
 0x31d   :  { %9998 = vst [vmem:[#allocation237_spill] sm:$0xff] %v6254_v19  ;;  %v10019_v19 = vld [vmem:[#allocation25_spill] sm:$0xff] }
 0x31e   :  { %10000 = vst [vmem:[#allocation242_spill] sm:$0xff] %v6260_v47 }
 0x31f   :  { %10002 = vst [vmem:[#allocation243_spill] sm:$0xff] %v6266_v36  ;;  %v6290_v36 = vsel %vm646_vm8, 0.0, %v1991_v53 }
 0x320   :  { %10004 = vst [vmem:[#allocation244_spill] sm:$0xff] %v6272_v57  ;;  %v10016_v57 = vld [vmem:[#allocation22_spill] sm:$0xff] }
 0x321   :  { %10006 = vst [vmem:[#allocation245_spill] sm:$0xff] %v6278_v7  ;;  %v6302_v7 = vsel %vm10013_vm4, 0.0, %v1991_v53  ;;  %v6310_v18 = vmul.f32 %v10016_v57, %v10016_v57  ;;  %v6322_v53 = vmul.f32 %v10019_v19, %v10019_v19  ;;  %v6342_v19 = vmul.f32 %v10024_v11, %v10024_v11 }
 0x322   :  { %10007 = vst [vmem:[#allocation250_spill] sm:$0xff] %v6284_v63  ;;  %v6306_v63 = vmul.f32 %v10015_v27, %v10015_v27  ;;  %v6326_v27 = vmul.f32 %v10020_v48, %v10020_v48  ;;  %v6346_v48 = vmul.f32 %v10025_v34, %v10025_v34  ;;  %v6362_v11 = vmul.f32 %v10029_v56, %v10029_v56 }
 0x323   :  { %10009 = vst [vmem:[#allocation251_spill] sm:$0xff] %v6290_v36  ;;  %v10017_v36 = vld [vmem:[#allocation23_spill] sm:$0xff]  ;;  %v6366_v34 = vmul.f32 %v10030_v43, %v10030_v43  ;;  %v6382_v56 = vmul.f32 %v10034_v61, %v10034_v61  ;;  %v6386_v43 = vmul.f32 %v10035_v30, %v10035_v30  ;;  %v6402_v61 = vmul.f32 %v10039_v2, %v10039_v2 }
 0x324   :  { %10011 = vst [vmem:[#allocation252_spill] sm:$0xff] %v6296_v8  ;;  %v6314_v47 = vmul.f32 %v10017_v36, %v10017_v36  ;;  %v6318_v8 = vmul.f32 %v10018_v0, %v10018_v0  ;;  %v6334_v36 = vmul.f32 %v10022_v4, %v10022_v4  ;;  %v6338_v0 = vmul.f32 %v10023_v22, %v10023_v22 }
 0x325   :  { %10014 = vst [vmem:[#allocation253_spill] sm:$0xff] %v6302_v7  ;;  %v10021_v7 = vld [vmem:[#allocation31_spill] sm:$0xff]  ;;  %v6354_v4 = vmul.f32 %v10027_v62, %v10027_v62  ;;  %v6358_v22 = vmul.f32 %v10028_v1, %v10028_v1  ;;  %v6374_v62 = vmul.f32 %v10032_v51, %v10032_v51  ;;  %v6378_v1 = vmul.f32 %v10033_v13, %v10033_v13 }
 0x326   :  { %v6330_v57 = vmul.f32 %v10021_v7, %v10021_v7  ;;  %v6350_v7 = vmul.f32 %v10026_v17, %v10026_v17  ;;  %v6370_v17 = vmul.f32 %v10031_v37, %v10031_v37  ;;  %v6390_v37 = vmul.f32 %v10036_v31, %v10036_v31 }
 0x327   :  { %v6394_v51 = vmul.f32 %v10037_v59, %v10037_v59  ;;  %v6398_v13 = vmul.f32 %v10038_v14, %v10038_v14  ;;  %v6406_v30 = vmul.f32 %v10040_v28, %v10040_v28  ;;  %v6410_v31 = vmul.f32 %v10041_v5, %v10041_v5 }
 0x328   :  { %v6414_v59 = vmul.f32 %v10042_v50, %v10042_v50  ;;  %v6418_v14 = vmul.f32 %v10043_v55, %v10043_v55  ;;  %v6422_v2 = vmul.f32 %v10044_v16, %v10044_v16  ;;  %v6426_v28 = vmul.f32 %v10045_v6, %v10045_v6 }
 0x329   :  { %v6430_v5 = vmul.f32 %v10046_v40, %v10046_v40  ;;  %v6434_v50 = vmul.f32 %v10047_v49, %v10047_v49  ;;  %v6438_v55 = vmul.f32 %v10048_v24, %v10048_v24  ;;  %v6442_v16 = vmul.f32 %v10049_v23, %v10049_v23 }
 0x32a   :  { %v6446_v6 = vmul.f32 %v10050_v32, %v10050_v32  ;;  %v6450_v40 = vmul.f32 %v10051_v25, %v10051_v25  ;;  %v6454_v49 = vmul.f32 %v10052_v58, %v10052_v58  ;;  %v6458_v24 = vmul.f32 %v10053_v44, %v10053_v44 }
 0x32b   :  { %v6462_v23 = vmul.f32 %v10054_v29, %v10054_v29  ;;  %v6466_v32 = vmul.f32 %v10055_v26, %v10055_v26  ;;  %v6470_v25 = vmul.f32 %v10056_v39, %v10056_v39  ;;  %v6474_v58 = vmul.f32 %v10057_v54, %v10057_v54 }
 0x32c   :  { %v6478_v44 = vmul.f32 %v10058_v33, %v10058_v33  ;;  %v6482_v29 = vmul.f32 %v10059_v3, %v10059_v3  ;;  %v6486_v26 = vmul.f32 %v10061_v52, %v10061_v52  ;;  %v6490_v39 = vmul.f32 %v10063_v10, %v10063_v10 }
 0x32d   :  { %v6494_v54 = vmul.f32 %v10065_v15, %v10065_v15  ;;  %v6498_v33 = vmul.f32 %v10067_v20, %v10067_v20  ;;  %v6502_v3 = vmul.f32 %v10069_v21, %v10069_v21  ;;  %v6506_v52 = vmul.f32 %v10071_v9, %v10071_v9 }
 0x32e   :  { %10060 = vst [vmem:[#allocation259_spill] sm:$0xff] %v6482_v29  ;;  %v6510_v10 = vmul.f32 %v10073_v60, %v10073_v60  ;;  %v6514_v15 = vmul.f32 %v10075_v35, %v10075_v35  ;;  %v6518_v20 = vmul.f32 %v10077_v12, %v10077_v12  ;;  %v6522_v21 = vmul.f32 %v10079_v41, %v10079_v41  ;;  %v10360_v29 = vld [vmem:[#allocation289_spill] sm:$0xff] }
 0x32f   :  { %10062 = vst [vmem:[#allocation260_spill] sm:$0xff] %v6486_v26 }
 0x330   :  { %10064 = vst [vmem:[#allocation261_spill] sm:$0xff] %v6490_v39 }
 0x331   :  { %10066 = vst [vmem:[#allocation269_spill] sm:$0xff] %v6494_v54 }
 0x332   :  { %10068 = vst [vmem:[#allocation275_spill] sm:$0xff] %v6498_v33  ;;  %v10353_v33 = vld [vmem:[#allocation379_spill] sm:$0xff] }
 0x333   :  { %10070 = vst [vmem:[#allocation276_spill] sm:$0xff] %v6502_v3  ;;  %v10081_v3 = vld [vmem:[#allocation87_spill] sm:$0xff] }
 0x334   :  { %10072 = vst [vmem:[#allocation277_spill] sm:$0xff] %v6506_v52  ;;  %v6526_v9 = vmul.f32 %v10081_v3, %v10081_v3  ;;  %v10083_v52 = vld [vmem:[#allocation91_spill] sm:$0xff] }
 0x335   :  { %10074 = vst [vmem:[#allocation282_spill] sm:$0xff] %v6510_v10  ;;  %v6530_v60 = vmul.f32 %v10083_v52, %v10083_v52  ;;  %v10085_v10 = vld [vmem:[#allocation88_spill] sm:$0xff] }
 0x336   :  { %10076 = vst [vmem:[#allocation283_spill] sm:$0xff] %v6514_v15  ;;  %v6534_v35 = vmul.f32 %v10085_v10, %v10085_v10  ;;  %v10087_v15 = vld [vmem:[#allocation92_spill] sm:$0xff] }
 0x337   :  { %10078 = vst [vmem:[#allocation284_spill] sm:$0xff] %v6518_v20  ;;  %v6538_v12 = vmul.f32 %v10087_v15, %v10087_v15  ;;  %v10089_v20 = vld [vmem:[#allocation89_spill] sm:$0xff] }
 0x338   :  { %10080 = vst [vmem:[#allocation285_spill] sm:$0xff] %v6522_v21  ;;  %v6542_v41 = vmul.f32 %v10089_v20, %v10089_v20  ;;  %v10091_v21 = vld [vmem:[#allocation93_spill] sm:$0xff] }
 0x339   :  { %10082 = vst [vmem:[#allocation290_spill] sm:$0xff] %v6526_v9  ;;  %v6546_v3 = vmul.f32 %v10091_v21, %v10091_v21  ;;  %v10093_v9 = vld [vmem:[#allocation94_spill] sm:$0xff] }
 0x33a   :  { %10084 = vst [vmem:[#allocation291_spill] sm:$0xff] %v6530_v60  ;;  %v6550_v52 = vmul.f32 %v10093_v9, %v10093_v9  ;;  %v10095_v60 = vld [vmem:[#allocation95_spill] sm:$0xff] }
 0x33b   :  { %10086 = vst [vmem:[#allocation292_spill] sm:$0xff] %v6534_v35  ;;  %v6554_v10 = vmul.f32 %v10095_v60, %v10095_v60  ;;  %v10097_v35 = vld [vmem:[#allocation96_spill] sm:$0xff] }
 0x33c   :  { %10088 = vst [vmem:[#allocation293_spill] sm:$0xff] %v6538_v12  ;;  %v6558_v15 = vmul.f32 %v10097_v35, %v10097_v35  ;;  %v10099_v12 = vld [vmem:[#allocation97_spill] sm:$0xff] }
 0x33d   :  { %10090 = vst [vmem:[#allocation298_spill] sm:$0xff] %v6542_v41  ;;  %v6562_v20 = vmul.f32 %v10099_v12, %v10099_v12  ;;  %v10101_v41 = vld [vmem:[#allocation102_spill] sm:$0xff] }
 0x33e   :  { %10092 = vst [vmem:[#allocation299_spill] sm:$0xff] %v6546_v3  ;;  %v6566_v21 = vmul.f32 %v10101_v41, %v10101_v41  ;;  %v10103_v3 = vld [vmem:[#allocation103_spill] sm:$0xff] }
 0x33f   :  { %10094 = vst [vmem:[#allocation300_spill] sm:$0xff] %v6550_v52  ;;  %v6570_v9 = vmul.f32 %v10103_v3, %v10103_v3  ;;  %v10105_v52 = vld [vmem:[#allocation104_spill] sm:$0xff] }
 0x340   :  { %10096 = vst [vmem:[#allocation301_spill] sm:$0xff] %v6554_v10  ;;  %v6574_v60 = vmul.f32 %v10105_v52, %v10105_v52  ;;  %v10107_v10 = vld [vmem:[#allocation105_spill] sm:$0xff] }
 0x341   :  { %10098 = vst [vmem:[#allocation402_spill] sm:$0xff] %v6558_v15  ;;  %v6578_v35 = vmul.f32 %v10107_v10, %v10107_v10  ;;  %v10109_v15 = vld [vmem:[#allocation110_spill] sm:$0xff] }
 0x342   :  { %10100 = vst [vmem:[#allocation404_spill] sm:$0xff] %v6562_v20  ;;  %v6582_v12 = vmul.f32 %v10109_v15, %v10109_v15  ;;  %v10111_v20 = vld [vmem:[#allocation111_spill] sm:$0xff] }
 0x343   :  { %10102 = vst [vmem:[#allocation17_spill] sm:$0xff] %v6566_v21  ;;  %v6586_v41 = vmul.f32 %v10111_v20, %v10111_v20  ;;  %v10113_v21 = vld [vmem:[#allocation112_spill] sm:$0xff] }
 0x344   :  { %10104 = vst [vmem:[#allocation22_spill] sm:$0xff] %v6570_v9  ;;  %v6590_v3 = vmul.f32 %v10113_v21, %v10113_v21  ;;  %v10115_v9 = vld [vmem:[#allocation113_spill] sm:$0xff] }
 0x345   :  { %10106 = vst [vmem:[#allocation23_spill] sm:$0xff] %v6574_v60  ;;  %v6594_v52 = vmul.f32 %v10115_v9, %v10115_v9  ;;  %v10117_v60 = vld [vmem:[#allocation118_spill] sm:$0xff] }
 0x346   :  { %10108 = vst [vmem:[#allocation24_spill] sm:$0xff] %v6578_v35  ;;  %v6598_v10 = vmul.f32 %v10117_v60, %v10117_v60  ;;  %v10119_v35 = vld [vmem:[#allocation119_spill] sm:$0xff] }
 0x347   :  { %10110 = vst [vmem:[#allocation25_spill] sm:$0xff] %v6582_v12  ;;  %v6602_v15 = vmul.f32 %v10119_v35, %v10119_v35  ;;  %v10121_v12 = vld [vmem:[#allocation120_spill] sm:$0xff] }
 0x348   :  { %10112 = vst [vmem:[#allocation30_spill] sm:$0xff] %v6586_v41  ;;  %v6606_v20 = vmul.f32 %v10121_v12, %v10121_v12  ;;  %v10123_v41 = vld [vmem:[#allocation121_spill] sm:$0xff] }
 0x349   :  { %10114 = vst [vmem:[#allocation31_spill] sm:$0xff] %v6590_v3  ;;  %v6610_v21 = vmul.f32 %v10123_v41, %v10123_v41  ;;  %v10125_v3 = vld [vmem:[#allocation126_spill] sm:$0xff] }
 0x34a   :  { %10116 = vst [vmem:[#allocation32_spill] sm:$0xff] %v6594_v52  ;;  %v6614_v9 = vmul.f32 %v10125_v3, %v10125_v3  ;;  %v10127_v52 = vld [vmem:[#allocation127_spill] sm:$0xff] }
 0x34b   :  { %10118 = vst [vmem:[#allocation33_spill] sm:$0xff] %v6598_v10  ;;  %v6618_v60 = vmul.f32 %v10127_v52, %v10127_v52  ;;  %v10129_v10 = vld [vmem:[#allocation128_spill] sm:$0xff] }
 0x34c   :  { %10120 = vst [vmem:[#allocation38_spill] sm:$0xff] %v6602_v15  ;;  %v6622_v35 = vmul.f32 %v10129_v10, %v10129_v10  ;;  %v10131_v15 = vld [vmem:[#allocation129_spill] sm:$0xff] }
 0x34d   :  { %10122 = vst [vmem:[#allocation39_spill] sm:$0xff] %v6606_v20  ;;  %v6626_v12 = vmul.f32 %v10131_v15, %v10131_v15  ;;  %v10133_v20 = vld [vmem:[#allocation134_spill] sm:$0xff] }
 0x34e   :  { %10124 = vst [vmem:[#allocation40_spill] sm:$0xff] %v6610_v21  ;;  %v6630_v41 = vmul.f32 %v10133_v20, %v10133_v20  ;;  %v10135_v21 = vld [vmem:[#allocation135_spill] sm:$0xff] }
 0x34f   :  { %10126 = vst [vmem:[#allocation41_spill] sm:$0xff] %v6614_v9  ;;  %v6634_v3 = vmul.f32 %v10135_v21, %v10135_v21  ;;  %v10137_v9 = vld [vmem:[#allocation136_spill] sm:$0xff] }
 0x350   :  { %10128 = vst [vmem:[#allocation46_spill] sm:$0xff] %v6618_v60  ;;  %v6638_v52 = vmul.f32 %v10137_v9, %v10137_v9  ;;  %v10139_v60 = vld [vmem:[#allocation137_spill] sm:$0xff] }
 0x351   :  { %10130 = vst [vmem:[#allocation50_spill] sm:$0xff] %v6622_v35  ;;  %v6642_v10 = vmul.f32 %v10139_v60, %v10139_v60  ;;  %v10141_v35 = vld [vmem:[#allocation142_spill] sm:$0xff] }
 0x352   :  { %10132 = vst [vmem:[#allocation47_spill] sm:$0xff] %v6626_v12  ;;  %v6646_v15 = vmul.f32 %v10141_v35, %v10141_v35  ;;  %v10143_v12 = vld [vmem:[#allocation143_spill] sm:$0xff] }
 0x353   :  { %10134 = vst [vmem:[#allocation51_spill] sm:$0xff] %v6630_v41  ;;  %v6650_v20 = vmul.f32 %v10143_v12, %v10143_v12  ;;  %v10145_v41 = vld [vmem:[#allocation144_spill] sm:$0xff] }
 0x354   :  { %10136 = vst [vmem:[#allocation48_spill] sm:$0xff] %v6634_v3  ;;  %v6654_v21 = vmul.f32 %v10145_v41, %v10145_v41  ;;  %v10147_v3 = vld [vmem:[#allocation145_spill] sm:$0xff] }
 0x355   :  { %10138 = vst [vmem:[#allocation52_spill] sm:$0xff] %v6638_v52  ;;  %v6658_v9 = vmul.f32 %v10147_v3, %v10147_v3  ;;  %v10149_v52 = vld [vmem:[#allocation150_spill] sm:$0xff] }
 0x356   :  { %10140 = vst [vmem:[#allocation49_spill] sm:$0xff] %v6642_v10  ;;  %v6662_v60 = vmul.f32 %v10149_v52, %v10149_v52  ;;  %v10151_v10 = vld [vmem:[#allocation151_spill] sm:$0xff] }
 0x357   :  { %10142 = vst [vmem:[#allocation53_spill] sm:$0xff] %v6646_v15  ;;  %v6666_v35 = vmul.f32 %v10151_v10, %v10151_v10  ;;  %v10153_v15 = vld [vmem:[#allocation152_spill] sm:$0xff] }
 0x358   :  { %10144 = vst [vmem:[#allocation54_spill] sm:$0xff] %v6650_v20  ;;  %v6670_v12 = vmul.f32 %v10153_v15, %v10153_v15  ;;  %v10155_v20 = vld [vmem:[#allocation153_spill] sm:$0xff] }
 0x359   :  { %10146 = vst [vmem:[#allocation58_spill] sm:$0xff] %v6654_v21  ;;  %v6674_v41 = vmul.f32 %v10155_v20, %v10155_v20  ;;  %v10157_v21 = vld [vmem:[#allocation158_spill] sm:$0xff] }
 0x35a   :  { %10148 = vst [vmem:[#allocation55_spill] sm:$0xff] %v6658_v9  ;;  %v6678_v3 = vmul.f32 %v10157_v21, %v10157_v21  ;;  %v10159_v9 = vld [vmem:[#allocation159_spill] sm:$0xff] }
 0x35b   :  { %10150 = vst [vmem:[#allocation59_spill] sm:$0xff] %v6662_v60  ;;  %v6682_v52 = vmul.f32 %v10159_v9, %v10159_v9  ;;  %v10161_v60 = vld [vmem:[#allocation160_spill] sm:$0xff] }
 0x35c   :  { %10152 = vst [vmem:[#allocation56_spill] sm:$0xff] %v6666_v35  ;;  %v6686_v10 = vmul.f32 %v10161_v60, %v10161_v60  ;;  %v10163_v35 = vld [vmem:[#allocation161_spill] sm:$0xff] }
 0x35d   :  { %10154 = vst [vmem:[#allocation60_spill] sm:$0xff] %v6670_v12  ;;  %v6690_v15 = vmul.f32 %v10163_v35, %v10163_v35  ;;  %v10165_v12 = vld [vmem:[#allocation258_spill] sm:$0xff] }
 0x35e   :  { %10156 = vst [vmem:[#allocation57_spill] sm:$0xff] %v6674_v41  ;;  %v6694_v20 = vmul.f32 %v10165_v12, %v10165_v12  ;;  %v10167_v41 = vld [vmem:[#allocation166_spill] sm:$0xff] }
 0x35f   :  { %10158 = vst [vmem:[#allocation61_spill] sm:$0xff] %v6678_v3  ;;  %v6698_v21 = vmul.f32 %v10167_v41, %v10167_v41  ;;  %v10169_v3 = vld [vmem:[#allocation167_spill] sm:$0xff] }
 0x360   :  { %10160 = vst [vmem:[#allocation62_spill] sm:$0xff] %v6682_v52  ;;  %v6702_v9 = vmul.f32 %v10169_v3, %v10169_v3  ;;  %v10171_v52 = vld [vmem:[#allocation168_spill] sm:$0xff] }
 0x361   :  { %10162 = vst [vmem:[#allocation66_spill] sm:$0xff] %v6686_v10  ;;  %v6706_v60 = vmul.f32 %v10171_v52, %v10171_v52  ;;  %v10173_v10 = vld [vmem:[#allocation169_spill] sm:$0xff] }
 0x362   :  { %10164 = vst [vmem:[#allocation63_spill] sm:$0xff] %v6690_v15  ;;  %v6710_v35 = vmul.f32 %v10173_v10, %v10173_v10  ;;  %v10175_v15 = vld [vmem:[#allocation266_spill] sm:$0xff] }
 0x363   :  { %10166 = vst [vmem:[#allocation67_spill] sm:$0xff] %v6694_v20  ;;  %v6714_v12 = vmul.f32 %v10175_v15, %v10175_v15  ;;  %v10177_v20 = vld [vmem:[#allocation267_spill] sm:$0xff] }
 0x364   :  { %10168 = vst [vmem:[#allocation64_spill] sm:$0xff] %v6698_v21  ;;  %v6718_v41 = vmul.f32 %v10177_v20, %v10177_v20  ;;  %v10179_v21 = vld [vmem:[#allocation268_spill] sm:$0xff] }
 0x365   :  { %10170 = vst [vmem:[#allocation68_spill] sm:$0xff] %v6702_v9  ;;  %v6722_v3 = vmul.f32 %v10179_v21, %v10179_v21  ;;  %v10181_v9 = vld [vmem:[#allocation174_spill] sm:$0xff] }
 0x366   :  { %10172 = vst [vmem:[#allocation65_spill] sm:$0xff] %v6706_v60  ;;  %v6726_v52 = vmul.f32 %v10181_v9, %v10181_v9  ;;  %v10183_v60 = vld [vmem:[#allocation175_spill] sm:$0xff] }
 0x367   :  { %10174 = vst [vmem:[#allocation69_spill] sm:$0xff] %v6710_v35  ;;  %v6730_v10 = vmul.f32 %v10183_v60, %v10183_v60  ;;  %v10185_v35 = vld [vmem:[#allocation176_spill] sm:$0xff] }
 0x368   :  { %10176 = vst [vmem:[#allocation70_spill] sm:$0xff] %v6714_v12  ;;  %v6734_v15 = vmul.f32 %v10185_v35, %v10185_v35  ;;  %v10187_v12 = vld [vmem:[#allocation177_spill] sm:$0xff] }
 0x369   :  { %10178 = vst [vmem:[#allocation74_spill] sm:$0xff] %v6718_v41  ;;  %v6738_v20 = vmul.f32 %v10187_v12, %v10187_v12  ;;  %v10189_v41 = vld [vmem:[#allocation274_spill] sm:$0xff] }
 0x36a   :  { %10180 = vst [vmem:[#allocation71_spill] sm:$0xff] %v6722_v3  ;;  %v6742_v21 = vmul.f32 %v10189_v41, %v10189_v41  ;;  %v10191_v3 = vld [vmem:[#allocation182_spill] sm:$0xff] }
 0x36b   :  { %10182 = vst [vmem:[#allocation75_spill] sm:$0xff] %v6726_v52  ;;  %v6746_v9 = vmul.f32 %v10191_v3, %v10191_v3  ;;  %v10193_v52 = vld [vmem:[#allocation183_spill] sm:$0xff] }
 0x36c   :  { %10184 = vst [vmem:[#allocation72_spill] sm:$0xff] %v6730_v10  ;;  %v6750_v60 = vmul.f32 %v10193_v52, %v10193_v52  ;;  %v10195_v10 = vld [vmem:[#allocation184_spill] sm:$0xff] }
 0x36d   :  { %10186 = vst [vmem:[#allocation76_spill] sm:$0xff] %v6734_v15  ;;  %v6754_v35 = vmul.f32 %v10195_v10, %v10195_v10  ;;  %v10197_v15 = vld [vmem:[#allocation185_spill] sm:$0xff] }
 0x36e   :  { %10188 = vst [vmem:[#allocation73_spill] sm:$0xff] %v6738_v20  ;;  %v6758_v12 = vmul.f32 %v10197_v15, %v10197_v15  ;;  %v10199_v20 = vld [vmem:[#allocation190_spill] sm:$0xff] }
 0x36f   :  { %10190 = vst [vmem:[#allocation77_spill] sm:$0xff] %v6742_v21  ;;  %v6762_v41 = vmul.f32 %v10199_v20, %v10199_v20  ;;  %v10201_v21 = vld [vmem:[#allocation191_spill] sm:$0xff] }
 0x370   :  { %10192 = vst [vmem:[#allocation78_spill] sm:$0xff] %v6746_v9  ;;  %v6766_v3 = vmul.f32 %v10201_v21, %v10201_v21  ;;  %v10203_v9 = vld [vmem:[#allocation192_spill] sm:$0xff] }
 0x371   :  { %10194 = vst [vmem:[#allocation82_spill] sm:$0xff] %v6750_v60  ;;  %v6770_v52 = vmul.f32 %v10203_v9, %v10203_v9  ;;  %v10205_v60 = vld [vmem:[#allocation193_spill] sm:$0xff] }
 0x372   :  { %10196 = vst [vmem:[#allocation79_spill] sm:$0xff] %v6754_v35  ;;  %v6774_v10 = vmul.f32 %v10205_v60, %v10205_v60  ;;  %v10207_v35 = vld [vmem:[#allocation198_spill] sm:$0xff] }
 0x373   :  { %10198 = vst [vmem:[#allocation83_spill] sm:$0xff] %v6758_v12  ;;  %v6778_v15 = vmul.f32 %v10207_v35, %v10207_v35  ;;  %v10209_v12 = vld [vmem:[#allocation199_spill] sm:$0xff] }
 0x374   :  { %10200 = vst [vmem:[#allocation80_spill] sm:$0xff] %v6762_v41  ;;  %v6782_v20 = vmul.f32 %v10209_v12, %v10209_v12  ;;  %v10211_v41 = vld [vmem:[#allocation200_spill] sm:$0xff] }
 0x375   :  { %10202 = vst [vmem:[#allocation84_spill] sm:$0xff] %v6766_v3  ;;  %v6786_v21 = vmul.f32 %v10211_v41, %v10211_v41  ;;  %v10213_v3 = vld [vmem:[#allocation201_spill] sm:$0xff] }
 0x376   :  { %10204 = vst [vmem:[#allocation81_spill] sm:$0xff] %v6770_v52  ;;  %v6790_v9 = vmul.f32 %v10213_v3, %v10213_v3  ;;  %v10215_v52 = vld [vmem:[#allocation206_spill] sm:$0xff] }
 0x377   :  { %10206 = vst [vmem:[#allocation85_spill] sm:$0xff] %v6774_v10  ;;  %v6794_v60 = vmul.f32 %v10215_v52, %v10215_v52  ;;  %v10217_v10 = vld [vmem:[#allocation207_spill] sm:$0xff] }
 0x378   :  { %10208 = vst [vmem:[#allocation86_spill] sm:$0xff] %v6778_v15  ;;  %v6798_v35 = vmul.f32 %v10217_v10, %v10217_v10  ;;  %v10219_v15 = vld [vmem:[#allocation208_spill] sm:$0xff] }
 0x379   :  { %10210 = vst [vmem:[#allocation90_spill] sm:$0xff] %v6782_v20  ;;  %v6802_v12 = vmul.f32 %v10219_v15, %v10219_v15  ;;  %v10221_v20 = vld [vmem:[#allocation209_spill] sm:$0xff] }
 0x37a   :  { %10212 = vst [vmem:[#allocation87_spill] sm:$0xff] %v6786_v21  ;;  %v6806_v41 = vmul.f32 %v10221_v20, %v10221_v20  ;;  %v10223_v21 = vld [vmem:[#allocation306_spill] sm:$0xff] }
 0x37b   :  { %10214 = vst [vmem:[#allocation91_spill] sm:$0xff] %v6790_v9  ;;  %v6810_v3 = vmul.f32 %v10223_v21, %v10223_v21  ;;  %v10225_v9 = vld [vmem:[#allocation307_spill] sm:$0xff] }
 0x37c   :  { %10216 = vst [vmem:[#allocation88_spill] sm:$0xff] %v6794_v60  ;;  %v6814_v52 = vmul.f32 %v10225_v9, %v10225_v9  ;;  %v10227_v60 = vld [vmem:[#allocation308_spill] sm:$0xff] }
 0x37d   :  { %10218 = vst [vmem:[#allocation92_spill] sm:$0xff] %v6798_v35  ;;  %v6818_v10 = vmul.f32 %v10227_v60, %v10227_v60  ;;  %v10229_v35 = vld [vmem:[#allocation309_spill] sm:$0xff] }
 0x37e   :  { %10220 = vst [vmem:[#allocation89_spill] sm:$0xff] %v6802_v12  ;;  %v6822_v15 = vmul.f32 %v10229_v35, %v10229_v35  ;;  %v10231_v12 = vld [vmem:[#allocation214_spill] sm:$0xff] }
 0x37f   :  { %10222 = vst [vmem:[#allocation93_spill] sm:$0xff] %v6806_v41  ;;  %v6826_v20 = vmul.f32 %v10231_v12, %v10231_v12  ;;  %v10233_v41 = vld [vmem:[#allocation215_spill] sm:$0xff] }
 0x380   :  { %10224 = vst [vmem:[#allocation94_spill] sm:$0xff] %v6810_v3  ;;  %v6830_v21 = vmul.f32 %v10233_v41, %v10233_v41  ;;  %v10235_v3 = vld [vmem:[#allocation216_spill] sm:$0xff] }
 0x381   :  { %10226 = vst [vmem:[#allocation95_spill] sm:$0xff] %v6814_v52  ;;  %v6834_v9 = vmul.f32 %v10235_v3, %v10235_v3  ;;  %v10237_v52 = vld [vmem:[#allocation217_spill] sm:$0xff] }
 0x382   :  { %10228 = vst [vmem:[#allocation96_spill] sm:$0xff] %v6818_v10  ;;  %v6838_v60 = vmul.f32 %v10237_v52, %v10237_v52  ;;  %v10239_v10 = vld [vmem:[#allocation314_spill] sm:$0xff] }
 0x383   :  { %10230 = vst [vmem:[#allocation97_spill] sm:$0xff] %v6822_v15  ;;  %v6842_v35 = vmul.f32 %v10239_v10, %v10239_v10  ;;  %v10241_v15 = vld [vmem:[#allocation315_spill] sm:$0xff] }
 0x384   :  { %10232 = vst [vmem:[#allocation102_spill] sm:$0xff] %v6826_v20  ;;  %v6846_v12 = vmul.f32 %v10241_v15, %v10241_v15  ;;  %v10243_v20 = vld [vmem:[#allocation316_spill] sm:$0xff] }
 0x385   :  { %10234 = vst [vmem:[#allocation103_spill] sm:$0xff] %v6830_v21  ;;  %v6850_v41 = vmul.f32 %v10243_v20, %v10243_v20  ;;  %v10245_v21 = vld [vmem:[#allocation317_spill] sm:$0xff] }
 0x386   :  { %10236 = vst [vmem:[#allocation104_spill] sm:$0xff] %v6834_v9  ;;  %v6854_v3 = vmul.f32 %v10245_v21, %v10245_v21  ;;  %v10247_v9 = vld [vmem:[#allocation222_spill] sm:$0xff] }
 0x387   :  { %10238 = vst [vmem:[#allocation105_spill] sm:$0xff] %v6838_v60  ;;  %v6858_v52 = vmul.f32 %v10247_v9, %v10247_v9  ;;  %v10249_v60 = vld [vmem:[#allocation223_spill] sm:$0xff] }
 0x388   :  { %10240 = vst [vmem:[#allocation110_spill] sm:$0xff] %v6842_v35  ;;  %v6862_v10 = vmul.f32 %v10249_v60, %v10249_v60  ;;  %v10251_v35 = vld [vmem:[#allocation224_spill] sm:$0xff] }
 0x389   :  { %10242 = vst [vmem:[#allocation111_spill] sm:$0xff] %v6846_v12  ;;  %v6866_v15 = vmul.f32 %v10251_v35, %v10251_v35  ;;  %v10253_v12 = vld [vmem:[#allocation225_spill] sm:$0xff] }
 0x38a   :  { %10244 = vst [vmem:[#allocation112_spill] sm:$0xff] %v6850_v41  ;;  %v6870_v20 = vmul.f32 %v10253_v12, %v10253_v12  ;;  %v10255_v41 = vld [vmem:[#allocation322_spill] sm:$0xff] }
 0x38b   :  { %10246 = vst [vmem:[#allocation113_spill] sm:$0xff] %v6854_v3  ;;  %v6874_v21 = vmul.f32 %v10255_v41, %v10255_v41  ;;  %v10257_v3 = vld [vmem:[#allocation323_spill] sm:$0xff] }
 0x38c   :  { %10248 = vst [vmem:[#allocation118_spill] sm:$0xff] %v6858_v52  ;;  %v6878_v9 = vmul.f32 %v10257_v3, %v10257_v3  ;;  %v10259_v52 = vld [vmem:[#allocation324_spill] sm:$0xff] }
 0x38d   :  { %10250 = vst [vmem:[#allocation119_spill] sm:$0xff] %v6862_v10  ;;  %v6882_v60 = vmul.f32 %v10259_v52, %v10259_v52  ;;  %v10261_v10 = vld [vmem:[#allocation325_spill] sm:$0xff] }
 0x38e   :  { %10252 = vst [vmem:[#allocation120_spill] sm:$0xff] %v6866_v15  ;;  %v6886_v35 = vmul.f32 %v10261_v10, %v10261_v10  ;;  %v10263_v15 = vld [vmem:[#allocation230_spill] sm:$0xff] }
 0x38f   :  { %10254 = vst [vmem:[#allocation121_spill] sm:$0xff] %v6870_v20  ;;  %v6890_v12 = vmul.f32 %v10263_v15, %v10263_v15  ;;  %v10265_v20 = vld [vmem:[#allocation231_spill] sm:$0xff] }
 0x390   :  { %10256 = vst [vmem:[#allocation126_spill] sm:$0xff] %v6874_v21  ;;  %v6894_v41 = vmul.f32 %v10265_v20, %v10265_v20  ;;  %v10267_v21 = vld [vmem:[#allocation232_spill] sm:$0xff] }
 0x391   :  { %10258 = vst [vmem:[#allocation127_spill] sm:$0xff] %v6878_v9  ;;  %v6898_v3 = vmul.f32 %v10267_v21, %v10267_v21  ;;  %v10269_v9 = vld [vmem:[#allocation233_spill] sm:$0xff] }
 0x392   :  { %10260 = vst [vmem:[#allocation128_spill] sm:$0xff] %v6882_v60  ;;  %v6902_v52 = vmul.f32 %v10269_v9, %v10269_v9  ;;  %v10271_v60 = vld [vmem:[#allocation330_spill] sm:$0xff] }
 0x393   :  { %10262 = vst [vmem:[#allocation129_spill] sm:$0xff] %v6886_v35  ;;  %v6906_v10 = vmul.f32 %v10271_v60, %v10271_v60  ;;  %v10273_v35 = vld [vmem:[#allocation331_spill] sm:$0xff] }
 0x394   :  { %10264 = vst [vmem:[#allocation134_spill] sm:$0xff] %v6890_v12  ;;  %v6910_v15 = vmul.f32 %v10273_v35, %v10273_v35  ;;  %v10275_v12 = vld [vmem:[#allocation332_spill] sm:$0xff] }
 0x395   :  { %10266 = vst [vmem:[#allocation135_spill] sm:$0xff] %v6894_v41  ;;  %v6914_v20 = vmul.f32 %v10275_v12, %v10275_v12  ;;  %v10277_v41 = vld [vmem:[#allocation333_spill] sm:$0xff] }
 0x396   :  { %10268 = vst [vmem:[#allocation136_spill] sm:$0xff] %v6898_v3  ;;  %v6918_v21 = vmul.f32 %v10277_v41, %v10277_v41  ;;  %v10279_v3 = vld [vmem:[#allocation238_spill] sm:$0xff] }
 0x397   :  { %10270 = vst [vmem:[#allocation137_spill] sm:$0xff] %v6902_v52  ;;  %v6922_v9 = vmul.f32 %v10279_v3, %v10279_v3  ;;  %v10281_v52 = vld [vmem:[#allocation239_spill] sm:$0xff] }
 0x398   :  { %10272 = vst [vmem:[#allocation142_spill] sm:$0xff] %v6906_v10  ;;  %v6926_v60 = vmul.f32 %v10281_v52, %v10281_v52  ;;  %v10283_v10 = vld [vmem:[#allocation240_spill] sm:$0xff] }
 0x399   :  { %10274 = vst [vmem:[#allocation143_spill] sm:$0xff] %v6910_v15  ;;  %v6930_v35 = vmul.f32 %v10283_v10, %v10283_v10  ;;  %v10285_v15 = vld [vmem:[#allocation241_spill] sm:$0xff] }
 0x39a   :  { %10276 = vst [vmem:[#allocation144_spill] sm:$0xff] %v6914_v20  ;;  %v6934_v12 = vmul.f32 %v10285_v15, %v10285_v15  ;;  %v10287_v20 = vld [vmem:[#allocation338_spill] sm:$0xff] }
 0x39b   :  { %10278 = vst [vmem:[#allocation145_spill] sm:$0xff] %v6918_v21  ;;  %v6938_v41 = vmul.f32 %v10287_v20, %v10287_v20  ;;  %v10289_v21 = vld [vmem:[#allocation339_spill] sm:$0xff] }
 0x39c   :  { %10280 = vst [vmem:[#allocation150_spill] sm:$0xff] %v6922_v9  ;;  %v6942_v3 = vmul.f32 %v10289_v21, %v10289_v21  ;;  %v10291_v9 = vld [vmem:[#allocation340_spill] sm:$0xff] }
 0x39d   :  { %10282 = vst [vmem:[#allocation151_spill] sm:$0xff] %v6926_v60  ;;  %v6946_v52 = vmul.f32 %v10291_v9, %v10291_v9  ;;  %v10293_v60 = vld [vmem:[#allocation341_spill] sm:$0xff] }
 0x39e   :  { %10284 = vst [vmem:[#allocation152_spill] sm:$0xff] %v6930_v35  ;;  %v6950_v10 = vmul.f32 %v10293_v60, %v10293_v60  ;;  %v10295_v35 = vld [vmem:[#allocation246_spill] sm:$0xff] }
 0x39f   :  { %10286 = vst [vmem:[#allocation153_spill] sm:$0xff] %v6934_v12  ;;  %v6954_v15 = vmul.f32 %v10295_v35, %v10295_v35  ;;  %v10297_v12 = vld [vmem:[#allocation247_spill] sm:$0xff] }
 0x3a0   :  { %10288 = vst [vmem:[#allocation158_spill] sm:$0xff] %v6938_v41  ;;  %v6958_v20 = vmul.f32 %v10297_v12, %v10297_v12  ;;  %v10299_v41 = vld [vmem:[#allocation248_spill] sm:$0xff] }
 0x3a1   :  { %10290 = vst [vmem:[#allocation159_spill] sm:$0xff] %v6942_v3  ;;  %v6962_v21 = vmul.f32 %v10299_v41, %v10299_v41  ;;  %v10301_v3 = vld [vmem:[#allocation249_spill] sm:$0xff] }
 0x3a2   :  { %10292 = vst [vmem:[#allocation160_spill] sm:$0xff] %v6946_v52  ;;  %v6966_v9 = vmul.f32 %v10301_v3, %v10301_v3  ;;  %v10303_v52 = vld [vmem:[#allocation346_spill] sm:$0xff] }
 0x3a3   :  { %10294 = vst [vmem:[#allocation161_spill] sm:$0xff] %v6950_v10  ;;  %v6970_v60 = vmul.f32 %v10303_v52, %v10303_v52  ;;  %v10305_v10 = vld [vmem:[#allocation347_spill] sm:$0xff] }
 0x3a4   :  { %10296 = vst [vmem:[#allocation258_spill] sm:$0xff] %v6954_v15  ;;  %v6974_v35 = vmul.f32 %v10305_v10, %v10305_v10  ;;  %v10307_v15 = vld [vmem:[#allocation348_spill] sm:$0xff] }
 0x3a5   :  { %10298 = vst [vmem:[#allocation166_spill] sm:$0xff] %v6958_v20  ;;  %v6978_v12 = vmul.f32 %v10307_v15, %v10307_v15  ;;  %v10309_v20 = vld [vmem:[#allocation349_spill] sm:$0xff] }
 0x3a6   :  { %10300 = vst [vmem:[#allocation167_spill] sm:$0xff] %v6962_v21  ;;  %v6982_v41 = vmul.f32 %v10309_v20, %v10309_v20  ;;  %v10311_v21 = vld [vmem:[#allocation254_spill] sm:$0xff] }
 0x3a7   :  { %10302 = vst [vmem:[#allocation168_spill] sm:$0xff] %v6966_v9  ;;  %v6986_v3 = vmul.f32 %v10311_v21, %v10311_v21  ;;  %v10313_v9 = vld [vmem:[#allocation255_spill] sm:$0xff] }
 0x3a8   :  { %10304 = vst [vmem:[#allocation169_spill] sm:$0xff] %v6970_v60  ;;  %v6990_v52 = vmul.f32 %v10313_v9, %v10313_v9  ;;  %v10315_v60 = vld [vmem:[#allocation256_spill] sm:$0xff] }
 0x3a9   :  { %10306 = vst [vmem:[#allocation266_spill] sm:$0xff] %v6974_v35  ;;  %v6994_v10 = vmul.f32 %v10315_v60, %v10315_v60  ;;  %v10317_v35 = vld [vmem:[#allocation257_spill] sm:$0xff] }
 0x3aa   :  { %10308 = vst [vmem:[#allocation267_spill] sm:$0xff] %v6978_v12  ;;  %v6998_v15 = vmul.f32 %v10317_v35, %v10317_v35  ;;  %v10319_v12 = vld [vmem:[#allocation354_spill] sm:$0xff] }
 0x3ab   :  { %10310 = vst [vmem:[#allocation268_spill] sm:$0xff] %v6982_v41  ;;  %v7002_v20 = vmul.f32 %v10319_v12, %v10319_v12  ;;  %v10321_v41 = vld [vmem:[#allocation355_spill] sm:$0xff] }
 0x3ac   :  { %10312 = vst [vmem:[#allocation174_spill] sm:$0xff] %v6986_v3  ;;  %v7006_v21 = vmul.f32 %v10321_v41, %v10321_v41  ;;  %v10323_v3 = vld [vmem:[#allocation360_spill] sm:$0xff] }
 0x3ad   :  { %10314 = vst [vmem:[#allocation175_spill] sm:$0xff] %v6990_v52  ;;  %v7010_v9 = vmul.f32 %v10323_v3, %v10323_v3  ;;  %v10325_v52 = vld [vmem:[#allocation262_spill] sm:$0xff] }
 0x3ae   :  { %10316 = vst [vmem:[#allocation176_spill] sm:$0xff] %v6994_v10  ;;  %v7014_v60 = vmul.f32 %v10325_v52, %v10325_v52  ;;  %v10327_v10 = vld [vmem:[#allocation263_spill] sm:$0xff] }
 0x3af   :  { %10318 = vst [vmem:[#allocation177_spill] sm:$0xff] %v6998_v15  ;;  %v7018_v35 = vmul.f32 %v10327_v10, %v10327_v10  ;;  %v10329_v15 = vld [vmem:[#allocation264_spill] sm:$0xff] }
 0x3b0   :  { %10320 = vst [vmem:[#allocation274_spill] sm:$0xff] %v7002_v20  ;;  %v7022_v12 = vmul.f32 %v10329_v15, %v10329_v15  ;;  %v10331_v20 = vld [vmem:[#allocation265_spill] sm:$0xff] }
 0x3b1   :  { %10322 = vst [vmem:[#allocation182_spill] sm:$0xff] %v7006_v21  ;;  %v7026_v41 = vmul.f32 %v10331_v20, %v10331_v20  ;;  %v10333_v21 = vld [vmem:[#allocation365_spill] sm:$0xff] }
 0x3b2   :  { %10324 = vst [vmem:[#allocation183_spill] sm:$0xff] %v7010_v9  ;;  %v7030_v3 = vmul.f32 %v10333_v21, %v10333_v21  ;;  %v10335_v9 = vld [vmem:[#allocation270_spill] sm:$0xff] }
 0x3b3   :  { %10326 = vst [vmem:[#allocation184_spill] sm:$0xff] %v7014_v60  ;;  %v7034_v52 = vmul.f32 %v10335_v9, %v10335_v9  ;;  %v10337_v60 = vld [vmem:[#allocation271_spill] sm:$0xff] }
 0x3b4   :  { %10328 = vst [vmem:[#allocation185_spill] sm:$0xff] %v7018_v35  ;;  %v7038_v10 = vmul.f32 %v10337_v60, %v10337_v60  ;;  %v10339_v35 = vld [vmem:[#allocation272_spill] sm:$0xff]  ;;  %v7058_v60 = vmul.f32 %v5138_v45, %v5138_v45  ;;  %v10354_v45 = vld [vmem:[#allocation281_spill] sm:$0xff] }
 0x3b5   :  { %10330 = vst [vmem:[#allocation190_spill] sm:$0xff] %v7022_v12  ;;  %v7042_v15 = vmul.f32 %v10339_v35, %v10339_v35  ;;  %v10341_v12 = vld [vmem:[#allocation273_spill] sm:$0xff]  ;;  %v1421_v35 = vadd.f32 %v6310_v18, %v5142_v46 }
 0x3b6   :  { %10332 = vst [vmem:[#allocation191_spill] sm:$0xff] %v7026_v41  ;;  %v7046_v20 = vmul.f32 %v10341_v12, %v10341_v12  ;;  %v10343_v41 = vld [vmem:[#allocation370_spill] sm:$0xff] }
 0x3b7   :  { %10334 = vst [vmem:[#allocation192_spill] sm:$0xff] %v7030_v3  ;;  %v7050_v21 = vmul.f32 %v10343_v41, %v10343_v41  ;;  %v10345_v3 = vld [vmem:[#allocation371_spill] sm:$0xff]  ;;  %v10349_v12 = vld [vmem:[#allocation278_spill] sm:$0xff]  ;;  %v1562_v41 = vadd.f32 %v6322_v53, %v6306_v63  ;;  %v1422_v46 = vadd.f32 %v1421_v35, %v6326_v27 }
 0x3b8   :  { %10336 = vst [vmem:[#allocation193_spill] sm:$0xff] %v7034_v52  ;;  %v7054_v9 = vmul.f32 %v10345_v3, %v10345_v3  ;;  %v10351_v52 = vld [vmem:[#allocation378_spill] sm:$0xff]  ;;  %v10358_v53 = vld [vmem:[#allocation287_spill] sm:$0xff] }
 0x3b9   :  { %10338 = vst [vmem:[#allocation198_spill] sm:$0xff] %v7038_v10  ;;  %v1563_v63 = vadd.f32 %v1562_v41, %v6338_v0  ;;  %v10364_v41 = vld [vmem:[#allocation396_spill] sm:$0xff] }
 0x3ba   :  { %10340 = vst [vmem:[#allocation199_spill] sm:$0xff] %v7042_v15  ;;  %v10348_v15 = vld [vmem:[#allocation372_spill] sm:$0xff] }
 0x3bb   :  { %10342 = vst [vmem:[#allocation200_spill] sm:$0xff] %v7046_v20  ;;  %v1468_v10 = vadd.f32 %v6314_v47, %v10348_v15  ;;  %v1515_v20 = vadd.f32 %v6318_v8, %v10349_v12  ;;  %v10356_v15 = vld [vmem:[#allocation377_spill] sm:$0xff]  ;;  %v10357_v8 = vld [vmem:[#allocation286_spill] sm:$0xff] }
 0x3bc   :  { %10344 = vst [vmem:[#allocation201_spill] sm:$0xff] %v7050_v21  ;;  %v10350_v21 = vld [vmem:[#allocation279_spill] sm:$0xff]  ;;  %v1762_v12 = vadd.f32 %v10357_v8, %v10356_v15  ;;  %v10368_v15 = vld [vmem:[#allocation297_spill] sm:$0xff] }
 0x3bd   :  { %10346 = vst [vmem:[#allocation206_spill] sm:$0xff] %v7054_v9  ;;  %v1621_v3 = vadd.f32 %v10351_v52, %v10350_v21  ;;  %v10352_v9 = vld [vmem:[#allocation280_spill] sm:$0xff]  ;;  %v1469_v18 = vadd.f32 %v1468_v10, %v6330_v57  ;;  %v1516_v47 = vadd.f32 %v1515_v20, %v6334_v36  ;;  %v10361_v57 = vld [vmem:[#allocation389_spill] sm:$0xff]  ;;  %v1564_v36 = vadd.f32 %v1563_v63, %v6354_v4  ;;  %v10362_v20 = vld [vmem:[#allocation390_spill] sm:$0xff] }
 0x3be   :  { %10347 = vst [vmem:[#allocation207_spill] sm:$0xff] %v7058_v60  ;;  %v1668_v54 = vadd.f32 %v10353_v33, %v10352_v9  ;;  %v10355_v60 = vld [vmem:[#allocation388_spill] sm:$0xff]  ;;  %v1423_v9 = vadd.f32 %v1422_v46, %v6342_v19  ;;  %v1763_v10 = vadd.f32 %v1762_v12, %v10361_v57  ;;  %v10366_v46 = vld [vmem:[#allocation295_spill] sm:$0xff]  ;;  %v10369_v63 = vld [vmem:[#allocation397_spill] sm:$0xff] }
 0x3bf   :  { %v1715_v39 = vadd.f32 %v10355_v60, %v10354_v45  ;;  %v1622_v26 = vadd.f32 %v1621_v3, %v10358_v53  ;;  %v10359_v52 = vld [vmem:[#allocation288_spill] sm:$0xff]  ;;  %v1470_v60 = vadd.f32 %v1469_v18, %v6346_v48  ;;  %v1517_v27 = vadd.f32 %v1516_v47, %v6350_v7  ;;  %v10363_v45 = vld [vmem:[#allocation395_spill] sm:$0xff] }
 0x3c0   :  { %v1669_v21 = vadd.f32 %v1668_v54, %v10359_v52  ;;  %v1424_v54 = vadd.f32 %v1423_v9, %v6358_v22  ;;  %v1565_v7 = vadd.f32 %v1564_v36, %v6370_v17  ;;  %v10367_v47 = vld [vmem:[#allocation296_spill] sm:$0xff]  ;;  %v10370_v53 = vld [vmem:[#allocation403_spill] sm:$0xff] }
 0x3c1   :  { %v1716_v33 = vadd.f32 %v1715_v39, %v10360_v29  ;;  %v1623_v35 = vadd.f32 %v1622_v26, %v10362_v20  ;;  %v1471_v29 = vadd.f32 %v1470_v60, %v6362_v11  ;;  %v1518_v19 = vadd.f32 %v1517_v27, %v6366_v34  ;;  %v10365_v39 = vld [vmem:[#allocation294_spill] sm:$0xff]  ;;  %v10373_v57 = vld [vmem:[#allocation304_spill] sm:$0xff] }
 0x3c2   :  { %v1670_v0 = vadd.f32 %v1669_v21, %v10363_v45  ;;  %v1764_v48 = vadd.f32 %v1763_v10, %v10365_v39  ;;  %v1425_v8 = vadd.f32 %v1424_v54, %v6374_v62  ;;  %v1566_v34 = vadd.f32 %v1565_v7, %v6386_v43  ;;  %v10371_v21 = vld [vmem:[#allocation302_spill] sm:$0xff]  ;;  %v10374_v10 = vld [vmem:[#allocation305_spill] sm:$0xff]  ;;  %v10380_v39 = vld [vmem:[#allocation319_spill] sm:$0xff] }
 0x3c3   :  { %v1717_v3 = vadd.f32 %v1716_v33, %v10364_v41  ;;  %v1624_v18 = vadd.f32 %v1623_v35, %v10366_v46  ;;  %v1472_v12 = vadd.f32 %v1471_v29, %v6378_v1  ;;  %v1519_v22 = vadd.f32 %v1518_v19, %v6382_v56  ;;  %v10372_v33 = vld [vmem:[#allocation303_spill] sm:$0xff]  ;;  %v10375_v20 = vld [vmem:[#allocation310_spill] sm:$0xff]  ;;  %v10378_v54 = vld [vmem:[#allocation313_spill] sm:$0xff] }
 0x3c4   :  { %v1671_v4 = vadd.f32 %v1670_v0, %v10367_v47  ;;  %v1765_v11 = vadd.f32 %v1764_v48, %v10369_v63  ;;  %v1426_v60 = vadd.f32 %v1425_v8, %v6390_v37  ;;  %v1567_v56 = vadd.f32 %v1566_v34, %v6402_v61  ;;  %v10376_v35 = vld [vmem:[#allocation311_spill] sm:$0xff]  ;;  %v10379_v19 = vld [vmem:[#allocation318_spill] sm:$0xff]  ;;  %v10382_v47 = vld [vmem:[#allocation321_spill] sm:$0xff] }
 0x3c5   :  { %v1718_v26 = vadd.f32 %v1717_v3, %v10368_v15  ;;  %v1625_v52 = vadd.f32 %v1624_v18, %v10370_v53  ;;  %v1473_v27 = vadd.f32 %v1472_v12, %v6394_v51  ;;  %v1520_v62 = vadd.f32 %v1519_v22, %v6398_v13  ;;  %v10377_v3 = vld [vmem:[#allocation312_spill] sm:$0xff]  ;;  %v10383_v12 = vld [vmem:[#allocation326_spill] sm:$0xff]  ;;  %v10384_v22 = vld [vmem:[#allocation327_spill] sm:$0xff] }
 0x3c6   :  { %v1672_v17 = vadd.f32 %v1671_v4, %v10371_v21  ;;  %v1766_v1 = vadd.f32 %v1765_v11, %v10373_v57  ;;  %v1427_v0 = vadd.f32 %v1426_v60, %v6406_v30  ;;  %v1568_v13 = vadd.f32 %v1567_v56, %v6418_v14  ;;  %v10381_v18 = vld [vmem:[#allocation320_spill] sm:$0xff]  ;;  %v10386_v34 = vld [vmem:[#allocation329_spill] sm:$0xff]  ;;  %v10388_v21 = vld [vmem:[#allocation335_spill] sm:$0xff] }
 0x3c7   :  { %v1719_v9 = vadd.f32 %v1718_v26, %v10372_v33  ;;  %v1626_v36 = vadd.f32 %v1625_v52, %v10374_v10  ;;  %v1474_v41 = vadd.f32 %v1473_v27, %v6410_v31  ;;  %v1521_v37 = vadd.f32 %v1520_v62, %v6414_v59  ;;  %v10385_v11 = vld [vmem:[#allocation328_spill] sm:$0xff]  ;;  %v10387_v52 = vld [vmem:[#allocation334_spill] sm:$0xff]  ;;  %v10393_v56 = vld [vmem:[#allocation343_spill] sm:$0xff] }
 0x3c8   :  { %v1673_v43 = vadd.f32 %v1672_v17, %v10375_v20  ;;  %v1767_v51 = vadd.f32 %v1766_v1, %v10377_v3  ;;  %v1428_v7 = vadd.f32 %v1427_v0, %v6422_v2  ;;  %v1569_v59 = vadd.f32 %v1568_v13, %v6434_v50  ;;  %v10389_v33 = vld [vmem:[#allocation336_spill] sm:$0xff]  ;;  %v10391_v57 = vld [vmem:[#allocation342_spill] sm:$0xff]  ;;  %v10392_v1 = vld [vmem:[#allocation259_spill] sm:$0xff] }
 0x3c9   :  { %v1720_v45 = vadd.f32 %v1719_v9, %v10376_v35  ;;  %v1627_v29 = vadd.f32 %v1626_v36, %v10378_v54  ;;  %v1475_v46 = vadd.f32 %v1474_v41, %v6426_v28  ;;  %v1522_v30 = vadd.f32 %v1521_v37, %v6430_v5  ;;  %v10390_v9 = vld [vmem:[#allocation337_spill] sm:$0xff]  ;;  %v10394_v36 = vld [vmem:[#allocation344_spill] sm:$0xff]  ;;  %v10399_v3 = vld [vmem:[#allocation350_spill] sm:$0xff] }
 0x3ca   :  { %v1674_v61 = vadd.f32 %v1673_v43, %v10379_v19  ;;  %v1768_v31 = vadd.f32 %v1767_v51, %v10381_v18  ;;  %v1429_v26 = vadd.f32 %v1428_v7, %v6438_v55  ;;  %v1570_v5 = vadd.f32 %v1569_v59, %v6450_v40  ;;  %v10395_v20 = vld [vmem:[#allocation345_spill] sm:$0xff]  ;;  %v10396_v35 = vld [vmem:[#allocation260_spill] sm:$0xff]  ;;  %v10400_v51 = vld [vmem:[#allocation275_spill] sm:$0xff] }
 0x3cb   :  { %v1721_v48 = vadd.f32 %v1720_v45, %v10380_v39  ;;  %v1628_v4 = vadd.f32 %v1627_v29, %v10382_v47  ;;  %v1476_v8 = vadd.f32 %v1475_v46, %v6442_v16  ;;  %v1523_v2 = vadd.f32 %v1522_v30, %v6446_v6  ;;  %v10397_v0 = vld [vmem:[#allocation261_spill] sm:$0xff]  ;;  %v10401_v13 = vld [vmem:[#allocation351_spill] sm:$0xff]  ;;  %v10402_v29 = vld [vmem:[#allocation352_spill] sm:$0xff] }
 0x3cc   :  { %v1675_v14 = vadd.f32 %v1674_v61, %v5354_v42  ;;  %v1769_v28 = vadd.f32 %v1768_v31, %v10383_v12  ;;  %v1430_v42 = vadd.f32 %v1429_v26, %v6454_v49  ;;  %v1571_v6 = vadd.f32 %v1570_v5, %v6466_v32  ;;  %v10398_v37 = vld [vmem:[#allocation269_spill] sm:$0xff]  ;;  %v10406_v18 = vld [vmem:[#allocation282_spill] sm:$0xff]  ;;  %v10407_v59 = vld [vmem:[#allocation356_spill] sm:$0xff] }
 0x3cd   :  { %v1722_v15 = vadd.f32 %v1721_v48, %v5360_v38  ;;  %v1629_v63 = vadd.f32 %v1628_v4, %v10384_v22  ;;  %v1477_v38 = vadd.f32 %v1476_v8, %v6458_v24  ;;  %v1524_v55 = vadd.f32 %v1523_v2, %v6462_v23  ;;  %v10403_v61 = vld [vmem:[#allocation353_spill] sm:$0xff]  ;;  %v10404_v48 = vld [vmem:[#allocation276_spill] sm:$0xff]  ;;  %v10408_v4 = vld [vmem:[#allocation283_spill] sm:$0xff] }
 0x3ce   :  { %v1676_v50 = vadd.f32 %v1675_v14, %v10385_v11  ;;  %v1770_v16 = vadd.f32 %v1769_v28, %v10387_v52  ;;  %v1431_v27 = vadd.f32 %v1430_v42, %v6470_v25  ;;  %v1572_v23 = vadd.f32 %v1571_v6, %v10392_v1  ;;  %v10405_v46 = vld [vmem:[#allocation277_spill] sm:$0xff]  ;;  %v10410_v8 = vld [vmem:[#allocation358_spill] sm:$0xff]  ;;  %v10411_v12 = vld [vmem:[#allocation359_spill] sm:$0xff] }
 0x3cf   :  { %v1723_v53 = vadd.f32 %v1722_v15, %v10386_v34  ;;  %v1630_v17 = vadd.f32 %v1629_v63, %v10388_v21  ;;  %v1478_v62 = vadd.f32 %v1477_v38, %v6474_v58  ;;  %v1525_v49 = vadd.f32 %v1524_v55, %v6478_v44  ;;  %v10409_v15 = vld [vmem:[#allocation357_spill] sm:$0xff]  ;;  %v10412_v5 = vld [vmem:[#allocation284_spill] sm:$0xff]  ;;  %v10416_v38 = vld [vmem:[#allocation291_spill] sm:$0xff] }
 0x3d0   :  { %v1677_v40 = vadd.f32 %v1676_v50, %v10389_v33  ;;  %v1771_v24 = vadd.f32 %v1770_v16, %v10391_v57  ;;  %v1432_v45 = vadd.f32 %v1431_v27, %v10396_v35  ;;  %v1573_v44 = vadd.f32 %v1572_v23, %v10400_v51  ;;  %v10413_v63 = vld [vmem:[#allocation285_spill] sm:$0xff]  ;;  %v10414_v50 = vld [vmem:[#allocation290_spill] sm:$0xff]  ;;  %v10418_v6 = vld [vmem:[#allocation363_spill] sm:$0xff] }
 0x3d1   :  { %v1724_v60 = vadd.f32 %v1723_v53, %v10390_v9  ;;  %v1631_v10 = vadd.f32 %v1630_v17, %v10393_v56  ;;  %v1479_v41 = vadd.f32 %v1478_v62, %v10397_v0  ;;  %v1526_v25 = vadd.f32 %v1525_v49, %v10398_v37  ;;  %v10415_v53 = vld [vmem:[#allocation361_spill] sm:$0xff]  ;;  %v10417_v52 = vld [vmem:[#allocation362_spill] sm:$0xff]  ;;  %v10419_v17 = vld [vmem:[#allocation364_spill] sm:$0xff] }
 0x3d2   :  { %v1678_v32 = vadd.f32 %v1677_v40, %v10394_v36  ;;  %v1772_v58 = vadd.f32 %v1771_v24, %v10399_v3  ;;  %v1433_v7 = vadd.f32 %v1432_v45, %v10404_v48  ;;  %v1574_v14 = vadd.f32 %v1573_v44, %v10408_v4  ;;  %v10420_v40 = vld [vmem:[#allocation292_spill] sm:$0xff]  ;;  %v10422_v62 = vld [vmem:[#allocation298_spill] sm:$0xff]  ;;  %v10424_v1 = vld [vmem:[#allocation299_spill] sm:$0xff] }
 0x3d3   :  { %v1725_v43 = vadd.f32 %v1724_v60, %v10395_v20  ;;  %v1632_v54 = vadd.f32 %v1631_v10, %v10401_v13  ;;  %v1480_v30 = vadd.f32 %v1479_v41, %v10405_v46  ;;  %v1527_v31 = vadd.f32 %v1526_v25, %v10406_v18  ;;  %v10421_v60 = vld [vmem:[#allocation293_spill] sm:$0xff]  ;;  %v10423_v57 = vld [vmem:[#allocation366_spill] sm:$0xff]  ;;  %v10425_v56 = vld [vmem:[#allocation367_spill] sm:$0xff] }
 0x3d4   :  { %v1679_v19 = vadd.f32 %v1678_v32, %v10402_v29  ;;  %v1773_v47 = vadd.f32 %v1772_v58, %v10407_v59  ;;  %v1434_v22 = vadd.f32 %v1433_v7, %v10412_v5  ;;  %v1575_v55 = vadd.f32 %v1574_v14, %v10416_v38  ;;  %v10426_v36 = vld [vmem:[#allocation368_spill] sm:$0xff]  ;;  %v10427_v20 = vld [vmem:[#allocation369_spill] sm:$0xff]  ;;  %v10430_v37 = vld [vmem:[#allocation402_spill] sm:$0xff] }
 0x3d5   :  { %v1726_v39 = vadd.f32 %v1725_v43, %v10403_v61  ;;  %v1633_v26 = vadd.f32 %v1632_v54, %v10409_v15  ;;  %v1481_v11 = vadd.f32 %v1480_v30, %v10413_v63  ;;  %v1528_v34 = vadd.f32 %v1527_v31, %v10414_v50  ;;  %v10428_v35 = vld [vmem:[#allocation300_spill] sm:$0xff]  ;;  %v10429_v0 = vld [vmem:[#allocation301_spill] sm:$0xff]  ;;  %v10433_v13 = vld [vmem:[#allocation374_spill] sm:$0xff] }
 0x3d6   :  { %v1680_v2 = vadd.f32 %v1679_v19, %v10410_v8  ;;  %v1774_v42 = vadd.f32 %v1773_v47, %v10415_v53  ;;  %v1435_v9 = vadd.f32 %v1434_v22, %v10420_v40  ;;  %v1576_v23 = vadd.f32 %v1575_v55, %v10424_v1  ;;  %v10431_v3 = vld [vmem:[#allocation373_spill] sm:$0xff]  ;;  %v10432_v51 = vld [vmem:[#allocation404_spill] sm:$0xff]  ;;  %v10434_v29 = vld [vmem:[#allocation375_spill] sm:$0xff] }
 0x3d7   :  { %v1727_v28 = vadd.f32 %v1726_v39, %v10411_v12  ;;  %v1634_v16 = vadd.f32 %v1633_v26, %v10417_v52  ;;  %v1482_v27 = vadd.f32 %v1481_v11, %v10421_v60  ;;  %v1529_v49 = vadd.f32 %v1528_v34, %v10422_v62  ;;  %v10435_v61 = vld [vmem:[#allocation376_spill] sm:$0xff]  ;;  %v10436_v48 = vld [vmem:[#allocation17_spill] sm:$0xff]  ;;  %v10437_v46 = vld [vmem:[#allocation22_spill] sm:$0xff] }
 0x3d8   :  { %v1681_v21 = vadd.f32 %v1680_v2, %v10418_v6  ;;  %v1775_v24 = vadd.f32 %v1774_v42, %v10423_v57  ;;  %v1436_v45 = vadd.f32 %v1435_v9, %v10428_v35  ;;  %v1577_v44 = vadd.f32 %v1576_v23, %v10432_v51  ;;  %v10438_v18 = vld [vmem:[#allocation23_spill] sm:$0xff]  ;;  %v10439_v59 = vld [vmem:[#allocation384_spill] sm:$0xff]  ;;  %v10441_v15 = vld [vmem:[#allocation385_spill] sm:$0xff] }
 0x3d9   :  { %v1728_v33 = vadd.f32 %v1727_v28, %v10419_v17  ;;  %v1635_v10 = vadd.f32 %v1634_v16, %v10425_v56  ;;  %v1483_v41 = vadd.f32 %v1482_v27, %v10429_v0  ;;  %v1530_v25 = vadd.f32 %v1529_v49, %v10430_v37  ;;  %v10440_v4 = vld [vmem:[#allocation24_spill] sm:$0xff]  ;;  %v10442_v8 = vld [vmem:[#allocation386_spill] sm:$0xff]  ;;  %v10443_v12 = vld [vmem:[#allocation387_spill] sm:$0xff] }
 0x3da   :  { %v1682_v32 = vadd.f32 %v1681_v21, %v10426_v36  ;;  %v1776_v58 = vadd.f32 %v1775_v24, %v10431_v3  ;;  %v1437_v7 = vadd.f32 %v1436_v45, %v10436_v48  ;;  %v1578_v14 = vadd.f32 %v1577_v44, %v10440_v4  ;;  %v10444_v5 = vld [vmem:[#allocation25_spill] sm:$0xff]  ;;  %v10445_v63 = vld [vmem:[#allocation30_spill] sm:$0xff]  ;;  %v10446_v50 = vld [vmem:[#allocation31_spill] sm:$0xff] }
 0x3db   :  { %v1729_v43 = vadd.f32 %v1728_v33, %v10427_v20  ;;  %v1636_v54 = vadd.f32 %v1635_v10, %v10433_v13  ;;  %v1484_v30 = vadd.f32 %v1483_v41, %v10437_v46  ;;  %v1531_v31 = vadd.f32 %v1530_v25, %v10438_v18  ;;  %v10447_v53 = vld [vmem:[#allocation14_spill] sm:$0xff]  ;;  %v10448_v38 = vld [vmem:[#allocation32_spill] sm:$0xff]  ;;  %v10449_v52 = vld [vmem:[#allocation15_spill] sm:$0xff] }
 0x3dc   :  { %v1683_v19 = vadd.f32 %v1682_v32, %v10434_v29  ;;  %v1777_v47 = vadd.f32 %v1776_v58, %v10439_v59  ;;  %v1438_v22 = vadd.f32 %v1437_v7, %v10444_v5  ;;  %v1579_v55 = vadd.f32 %v1578_v14, %v10448_v38  ;;  %v10450_v6 = vld [vmem:[#allocation16_spill] sm:$0xff]  ;;  %v10451_v17 = vld [vmem:[#allocation18_spill] sm:$0xff]  ;;  %v10452_v40 = vld [vmem:[#allocation33_spill] sm:$0xff] }
 0x3dd   :  { %v1730_v39 = vadd.f32 %v1729_v43, %v10435_v61  ;;  %v1637_v26 = vadd.f32 %v1636_v54, %v10441_v15  ;;  %v1485_v11 = vadd.f32 %v1484_v30, %v10445_v63  ;;  %v1532_v34 = vadd.f32 %v1531_v31, %v10446_v50  ;;  %v10453_v60 = vld [vmem:[#allocation38_spill] sm:$0xff]  ;;  %v10454_v62 = vld [vmem:[#allocation39_spill] sm:$0xff]  ;;  %v10456_v1 = vld [vmem:[#allocation40_spill] sm:$0xff] }
 0x3de   :  { %v1684_v2 = vadd.f32 %v1683_v19, %v10442_v8  ;;  %v1778_v42 = vadd.f32 %v1777_v47, %v10447_v53  ;;  %v1439_v9 = vadd.f32 %v1438_v22, %v10452_v40  ;;  %v10455_v57 = vld [vmem:[#allocation19_spill] sm:$0xff]  ;;  %v1580_v23 = vadd.f32 %v1579_v55, %v10456_v1  ;;  %v10457_v56 = vld [vmem:[#allocation20_spill] sm:$0xff]  ;;  %v10458_v36 = vld [vmem:[#allocation21_spill] sm:$0xff] }
 0x3df   :  { %v1731_v28 = vadd.f32 %v1730_v39, %v10443_v12  ;;  %v1638_v16 = vadd.f32 %v1637_v26, %v10449_v52  ;;  %v1486_v27 = vadd.f32 %v1485_v11, %v10453_v60  ;;  %v1533_v49 = vadd.f32 %v1532_v34, %v10454_v62  ;;  %v10459_v20 = vld [vmem:[#allocation26_spill] sm:$0xff]  ;;  %v10460_v35 = vld [vmem:[#allocation41_spill] sm:$0xff]  ;;  %v10463_v3 = vld [vmem:[#allocation27_spill] sm:$0xff] }
 0x3e0   :  { %v1685_v21 = vadd.f32 %v1684_v2, %v10450_v6  ;;  %v1779_v24 = vadd.f32 %v1778_v42, %v10455_v57  ;;  %v1440_v45 = vadd.f32 %v1439_v9, %v10460_v35  ;;  %v10461_v0 = vld [vmem:[#allocation46_spill] sm:$0xff]  ;;  %v10464_v51 = vld [vmem:[#allocation47_spill] sm:$0xff]  ;;  %v10465_v13 = vld [vmem:[#allocation28_spill] sm:$0xff] }
 0x3e1   :  { %v1732_v33 = vadd.f32 %v1731_v28, %v10451_v17  ;;  %v1639_v10 = vadd.f32 %v1638_v16, %v10457_v56  ;;  %v1487_v41 = vadd.f32 %v1486_v27, %v10461_v0  ;;  %v10462_v37 = vld [vmem:[#allocation50_spill] sm:$0xff]  ;;  %v1581_v44 = vadd.f32 %v1580_v23, %v10464_v51  ;;  %v10466_v29 = vld [vmem:[#allocation29_spill] sm:$0xff]  ;;  %v10468_v48 = vld [vmem:[#allocation51_spill] sm:$0xff] }
 0x3e2   :  { %v1686_v32 = vadd.f32 %v1685_v21, %v10458_v36  ;;  %v1534_v25 = vadd.f32 %v1533_v49, %v10462_v37  ;;  %v1780_v58 = vadd.f32 %v1779_v24, %v10463_v3  ;;  %v10467_v61 = vld [vmem:[#allocation34_spill] sm:$0xff]  ;;  %v1441_v7 = vadd.f32 %v1440_v45, %v10468_v48  ;;  %v10469_v46 = vld [vmem:[#allocation48_spill] sm:$0xff]  ;;  %v10471_v59 = vld [vmem:[#allocation35_spill] sm:$0xff] }
 0x3e3   :  { %v1733_v43 = vadd.f32 %v1732_v33, %v10459_v20  ;;  %v1640_v54 = vadd.f32 %v1639_v10, %v10465_v13  ;;  %v1488_v30 = vadd.f32 %v1487_v41, %v10469_v46  ;;  %v10470_v18 = vld [vmem:[#allocation52_spill] sm:$0xff]  ;;  %v10472_v4 = vld [vmem:[#allocation49_spill] sm:$0xff]  ;;  %v10475_v12 = vld [vmem:[#allocation42_spill] sm:$0xff] }
 0x3e4   :  { %v1687_v19 = vadd.f32 %v1686_v32, %v10466_v29  ;;  %v1535_v31 = vadd.f32 %v1534_v25, %v10470_v18  ;;  %v1781_v47 = vadd.f32 %v1780_v58, %v10471_v59  ;;  %v1582_v14 = vadd.f32 %v1581_v44, %v10472_v4  ;;  %v10473_v15 = vld [vmem:[#allocation36_spill] sm:$0xff]  ;;  %v10474_v8 = vld [vmem:[#allocation37_spill] sm:$0xff]  ;;  %v10477_v63 = vld [vmem:[#allocation54_spill] sm:$0xff] }
 0x3e5   :  { %v1734_v39 = vadd.f32 %v1733_v43, %v10467_v61  ;;  %v1641_v26 = vadd.f32 %v1640_v54, %v10473_v15  ;;  %v10476_v5 = vld [vmem:[#allocation53_spill] sm:$0xff]  ;;  %v1489_v11 = vadd.f32 %v1488_v30, %v10477_v63  ;;  %v10478_v50 = vld [vmem:[#allocation58_spill] sm:$0xff]  ;;  %v10479_v53 = vld [vmem:[#allocation43_spill] sm:$0xff] }
 0x3e6   :  { %v1688_v2 = vadd.f32 %v1687_v19, %v10474_v8  ;;  %v1442_v22 = vadd.f32 %v1441_v7, %v10476_v5  ;;  %v1536_v34 = vadd.f32 %v1535_v31, %v10478_v50  ;;  %v1782_v42 = vadd.f32 %v1781_v47, %v10479_v53  ;;  %v10480_v38 = vld [vmem:[#allocation55_spill] sm:$0xff]  ;;  %v10481_v52 = vld [vmem:[#allocation44_spill] sm:$0xff]  ;;  %v10482_v6 = vld [vmem:[#allocation45_spill] sm:$0xff] }
 0x3e7   :  { %v1735_v28 = vadd.f32 %v1734_v39, %v10475_v12  ;;  %v1583_v55 = vadd.f32 %v1582_v14, %v10480_v38  ;;  %v1642_v16 = vadd.f32 %v1641_v26, %v10481_v52  ;;  %v10483_v17 = vld [vmem:[#allocation380_spill] sm:$0xff]  ;;  %v10484_v40 = vld [vmem:[#allocation59_spill] sm:$0xff]  ;;  %v10487_v57 = vld [vmem:[#allocation381_spill] sm:$0xff] }
 0x3e8   :  { %v1689_v21 = vadd.f32 %v1688_v2, %v10482_v6  ;;  %v1443_v9 = vadd.f32 %v1442_v22, %v10484_v40  ;;  %v10485_v60 = vld [vmem:[#allocation56_spill] sm:$0xff]  ;;  %v1783_v24 = vadd.f32 %v1782_v42, %v10487_v57  ;;  %v10488_v1 = vld [vmem:[#allocation57_spill] sm:$0xff]  ;;  %v10489_v56 = vld [vmem:[#allocation382_spill] sm:$0xff] }
 0x3e9   :  { %v1736_v33 = vadd.f32 %v1735_v28, %v10483_v17  ;;  %v1490_v27 = vadd.f32 %v1489_v11, %v10485_v60  ;;  %v10486_v62 = vld [vmem:[#allocation60_spill] sm:$0xff]  ;;  %v1584_v23 = vadd.f32 %v1583_v55, %v10488_v1  ;;  %v1643_v10 = vadd.f32 %v1642_v16, %v10489_v56  ;;  %v10490_v36 = vld [vmem:[#allocation383_spill] sm:$0xff]  ;;  %v10492_v35 = vld [vmem:[#allocation61_spill] sm:$0xff] }
 0x3ea   :  { %v1537_v49 = vadd.f32 %v1536_v34, %v10486_v62  ;;  %v1690_v32 = vadd.f32 %v1689_v21, %v10490_v36  ;;  %v10491_v20 = vld [vmem:[#allocation391_spill] sm:$0xff]  ;;  %v1444_v45 = vadd.f32 %v1443_v9, %v10492_v35  ;;  %v10493_v0 = vld [vmem:[#allocation62_spill] sm:$0xff]  ;;  %v10495_v3 = vld [vmem:[#allocation392_spill] sm:$0xff] }
 0x3eb   :  { %v1737_v43 = vadd.f32 %v1736_v33, %v10491_v20  ;;  %v1491_v41 = vadd.f32 %v1490_v27, %v10493_v0  ;;  %v10494_v37 = vld [vmem:[#allocation66_spill] sm:$0xff]  ;;  %v1784_v58 = vadd.f32 %v1783_v24, %v10495_v3  ;;  %v10496_v51 = vld [vmem:[#allocation63_spill] sm:$0xff]  ;;  %v10497_v13 = vld [vmem:[#allocation393_spill] sm:$0xff] }
 0x3ec   :  { %v1538_v25 = vadd.f32 %v1537_v49, %v10494_v37  ;;  %v1585_v44 = vadd.f32 %v1584_v23, %v10496_v51  ;;  %v1644_v54 = vadd.f32 %v1643_v10, %v10497_v13  ;;  %v10498_v29 = vld [vmem:[#allocation394_spill] sm:$0xff]  ;;  %v10500_v48 = vld [vmem:[#allocation67_spill] sm:$0xff]  ;;  %v10501_v46 = vld [vmem:[#allocation64_spill] sm:$0xff] }
 0x3ed   :  { %v1691_v19 = vadd.f32 %v1690_v32, %v10498_v29  ;;  %v10499_v61 = vld [vmem:[#allocation398_spill] sm:$0xff]  ;;  %v1445_v7 = vadd.f32 %v1444_v45, %v10500_v48  ;;  %v1492_v30 = vadd.f32 %v1491_v41, %v10501_v46  ;;  %v10502_v18 = vld [vmem:[#allocation68_spill] sm:$0xff]  ;;  %v10503_v59 = vld [vmem:[#allocation399_spill] sm:$0xff] }
 0x3ee   :  { %v1738_v39 = vadd.f32 %v1737_v43, %v10499_v61  ;;  %v1539_v31 = vadd.f32 %v1538_v25, %v10502_v18  ;;  %v1785_v47 = vadd.f32 %v1784_v58, %v10503_v59  ;;  %v10504_v4 = vld [vmem:[#allocation65_spill] sm:$0xff]  ;;  %v10505_v15 = vld [vmem:[#allocation400_spill] sm:$0xff]  ;;  %v10509_v63 = vld [vmem:[#allocation70_spill] sm:$0xff] }
 0x3ef   :  { %v1586_v14 = vadd.f32 %v1585_v44, %v10504_v4  ;;  %v1645_v26 = vadd.f32 %v1644_v54, %v10505_v15  ;;  %v10506_v8 = vld [vmem:[#allocation401_spill] sm:$0xff]  ;;  %v1493_v11 = vadd.f32 %v1492_v30, %v10509_v63  ;;  %v10510_v50 = vld [vmem:[#allocation74_spill] sm:$0xff]  ;;  %v10512_v38 = vld [vmem:[#allocation71_spill] sm:$0xff] }
 0x3f0   :  { %v1692_v2 = vadd.f32 %v1691_v19, %v10506_v8  ;;  %v10507_v12 = vld [vmem:[#allocation405_spill] sm:$0xff]  ;;  %v1540_v34 = vadd.f32 %v1539_v31, %v10510_v50  ;;  %v10511_v53 = vld [vmem:[#allocation406_spill] sm:$0xff]  ;;  %v10513_v52 = vld [vmem:[#allocation407_spill] sm:$0xff] }
 0x3f1   :  { %v1739_v28 = vadd.f32 %v1738_v39, %v10507_v12  ;;  %v10508_v5 = vld [vmem:[#allocation69_spill] sm:$0xff]  ;;  %v1786_v42 = vadd.f32 %v1785_v47, %v10511_v53  ;;  %v1587_v55 = vadd.f32 %v1586_v14, %v10512_v38  ;;  %v1646_v16 = vadd.f32 %v1645_v26, %v10513_v52  ;;  %v10514_v6 = vld [vmem:[#allocation408_spill] sm:$0xff]  ;;  %v10516_v40 = vld [vmem:[#allocation75_spill] sm:$0xff] }
 0x3f2   :  { %v1446_v22 = vadd.f32 %v1445_v7, %v10508_v5  ;;  %v1693_v21 = vadd.f32 %v1692_v2, %v10514_v6  ;;  %v10515_v17 = vld [vmem:[#allocation409_spill] sm:$0xff]  ;;  %v10517_v60 = vld [vmem:[#allocation72_spill] sm:$0xff]  ;;  %v10519_v57 = vld [vmem:[#allocation410_spill] sm:$0xff] }
 0x3f3   :  { %v1740_v33 = vadd.f32 %v1739_v28, %v10515_v17  ;;  %v1494_v27 = vadd.f32 %v1493_v11, %v10517_v60  ;;  %v10518_v62 = vld [vmem:[#allocation76_spill] sm:$0xff]  ;;  %v1787_v24 = vadd.f32 %v1786_v42, %v10519_v57  ;;  %v10520_v1 = vld [vmem:[#allocation73_spill] sm:$0xff]  ;;  %v10521_v56 = vld [vmem:[#allocation411_spill] sm:$0xff] }
 0x3f4   :  { %v1447_v9 = vadd.f32 %v1446_v22, %v10516_v40  ;;  %v1541_v49 = vadd.f32 %v1540_v34, %v10518_v62  ;;  %v1588_v23 = vadd.f32 %v1587_v55, %v10520_v1  ;;  %v1647_v10 = vadd.f32 %v1646_v16, %v10521_v56  ;;  %v10522_v36 = vld [vmem:[#allocation412_spill] sm:$0xff]  ;;  %v10523_v20 = vld [vmem:[#allocation413_spill] sm:$0xff]  ;;  %v10525_v0 = vld [vmem:[#allocation78_spill] sm:$0xff] }
 0x3f5   :  { %v1694_v32 = vadd.f32 %v1693_v21, %v10522_v36  ;;  %v1741_v43 = vadd.f32 %v1740_v33, %v10523_v20  ;;  %v10524_v35 = vld [vmem:[#allocation77_spill] sm:$0xff]  ;;  %v1495_v41 = vadd.f32 %v1494_v27, %v10525_v0  ;;  %v10526_v37 = vld [vmem:[#allocation82_spill] sm:$0xff]  ;;  %v10528_v51 = vld [vmem:[#allocation79_spill] sm:$0xff] }
 0x3f6   :  { %v1448_v45 = vadd.f32 %v1447_v9, %v10524_v35  ;;  %v1542_v25 = vadd.f32 %v1541_v49, %v10526_v37  ;;  %v10527_v3 = vld [vmem:[#allocation414_spill] sm:$0xff]  ;;  %v1589_v44 = vadd.f32 %v1588_v23, %v10528_v51  ;;  %v10530_v29 = vld [vmem:[#allocation99_spill] sm:$0xff]  ;;  %v10531_v61 = vld [vmem:[#allocation100_spill] sm:$0xff] }
 0x3f7   :  { %v1788_v58 = vadd.f32 %v1787_v24, %v10527_v3  ;;  %v10529_v13 = vld [vmem:[#allocation98_spill] sm:$0xff]  ;;  %v1695_v19 = vadd.f32 %v1694_v32, %v10530_v29  ;;  %v1742_v39 = vadd.f32 %v1741_v43, %v10531_v61  ;;  %v10532_v48 = vld [vmem:[#allocation83_spill] sm:$0xff]  ;;  %v10533_v46 = vld [vmem:[#allocation80_spill] sm:$0xff] }
 0x3f8   :  { %v1648_v54 = vadd.f32 %v1647_v10, %v10529_v13  ;;  %v1449_v7 = vadd.f32 %v1448_v45, %v10532_v48  ;;  %v1496_v30 = vadd.f32 %v1495_v41, %v10533_v46  ;;  %v10534_v18 = vld [vmem:[#allocation84_spill] sm:$0xff]  ;;  %v10535_v59 = vld [vmem:[#allocation101_spill] sm:$0xff]  ;;  %v10537_v15 = vld [vmem:[#allocation106_spill] sm:$0xff] }
 0x3f9   :  { %v1543_v31 = vadd.f32 %v1542_v25, %v10534_v18  ;;  %v1789_v47 = vadd.f32 %v1788_v58, %v10535_v59  ;;  %v10536_v4 = vld [vmem:[#allocation81_spill] sm:$0xff]  ;;  %v10538_v8 = vld [vmem:[#allocation107_spill] sm:$0xff]  ;;  %v10539_v12 = vld [vmem:[#allocation108_spill] sm:$0xff] }
 0x3fa   :  { %v1590_v14 = vadd.f32 %v1589_v44, %v10536_v4  ;;  %v1649_v26 = vadd.f32 %v1648_v54, %v10537_v15  ;;  %v1696_v2 = vadd.f32 %v1695_v19, %v10538_v8  ;;  %v1743_v28 = vadd.f32 %v1742_v39, %v10539_v12  ;;  %v10540_v5 = vld [vmem:[#allocation85_spill] sm:$0xff]  ;;  %v10541_v63 = vld [vmem:[#allocation86_spill] sm:$0xff]  ;;  %v10544_v38 = vld [vmem:[#allocation87_spill] sm:$0xff] }
 0x3fb   :  { %v1450_v22 = vadd.f32 %v1449_v7, %v10540_v5  ;;  %v1497_v11 = vadd.f32 %v1496_v30, %v10541_v63  ;;  %v10542_v50 = vld [vmem:[#allocation90_spill] sm:$0xff]  ;;  %v10543_v53 = vld [vmem:[#allocation109_spill] sm:$0xff]  ;;  %v10546_v6 = vld [vmem:[#allocation115_spill] sm:$0xff] }
 0x3fc   :  { %v1544_v34 = vadd.f32 %v1543_v31, %v10542_v50  ;;  %v1790_v42 = vadd.f32 %v1789_v47, %v10543_v53  ;;  %v1591_v55 = vadd.f32 %v1590_v14, %v10544_v38  ;;  %v10545_v52 = vld [vmem:[#allocation114_spill] sm:$0xff]  ;;  %v1697_v21 = vadd.f32 %v1696_v2, %v10546_v6  ;;  %v10547_v17 = vld [vmem:[#allocation116_spill] sm:$0xff]  ;;  %v10548_v40 = vld [vmem:[#allocation91_spill] sm:$0xff] }
 0x3fd   :  { %v1650_v16 = vadd.f32 %v1649_v26, %v10545_v52  ;;  %v1744_v33 = vadd.f32 %v1743_v28, %v10547_v17  ;;  %v1451_v9 = vadd.f32 %v1450_v22, %v10548_v40  ;;  %v10549_v60 = vld [vmem:[#allocation88_spill] sm:$0xff]  ;;  %v10551_v57 = vld [vmem:[#allocation117_spill] sm:$0xff]  ;;  %v10553_v56 = vld [vmem:[#allocation122_spill] sm:$0xff] }
 0x3fe   :  { %v1498_v27 = vadd.f32 %v1497_v11, %v10549_v60  ;;  %v10550_v62 = vld [vmem:[#allocation92_spill] sm:$0xff]  ;;  %v1791_v24 = vadd.f32 %v1790_v42, %v10551_v57  ;;  %v10552_v1 = vld [vmem:[#allocation89_spill] sm:$0xff]  ;;  %v10554_v36 = vld [vmem:[#allocation123_spill] sm:$0xff] }
 0x3ff   :  { %v1545_v49 = vadd.f32 %v1544_v34, %v10550_v62  ;;  %v1592_v23 = vadd.f32 %v1591_v55, %v10552_v1  ;;  %v1651_v10 = vadd.f32 %v1650_v16, %v10553_v56  ;;  %v1698_v32 = vadd.f32 %v1697_v21, %v10554_v36  ;;  %v10555_v20 = vld [vmem:[#allocation124_spill] sm:$0xff]  ;;  %v10556_v35 = vld [vmem:[#allocation93_spill] sm:$0xff]  ;;  %v10557_v0 = vld [vmem:[#allocation94_spill] sm:$0xff] }
 0x400   :  { %v1745_v43 = vadd.f32 %v1744_v33, %v10555_v20  ;;  %v1452_v45 = vadd.f32 %v1451_v9, %v10556_v35  ;;  %v1499_v41 = vadd.f32 %v1498_v27, %v10557_v0  ;;  %v10558_v37 = vld [vmem:[#allocation95_spill] sm:$0xff]  ;;  %v10559_v3 = vld [vmem:[#allocation125_spill] sm:$0xff]  ;;  %v10560_v51 = vld [vmem:[#allocation96_spill] sm:$0xff] }
 0x401   :  { %v1546_v25 = vadd.f32 %v1545_v49, %v10558_v37  ;;  %v1792_v58 = vadd.f32 %v1791_v24, %v10559_v3  ;;  %v1593_v44 = vadd.f32 %v1592_v23, %v10560_v51  ;;  %v10561_v13 = vld [vmem:[#allocation130_spill] sm:$0xff]  ;;  %v10562_v29 = vld [vmem:[#allocation131_spill] sm:$0xff]  ;;  %v10563_v61 = vld [vmem:[#allocation132_spill] sm:$0xff] }
 0x402   :  { %v1652_v54 = vadd.f32 %v1651_v10, %v10561_v13  ;;  %v1699_v19 = vadd.f32 %v1698_v32, %v10562_v29  ;;  %v1746_v39 = vadd.f32 %v1745_v43, %v10563_v61  ;;  %v10564_v48 = vld [vmem:[#allocation97_spill] sm:$0xff]  ;;  %v10565_v46 = vld [vmem:[#allocation102_spill] sm:$0xff]  ;;  %v10566_v18 = vld [vmem:[#allocation103_spill] sm:$0xff] }
 0x403   :  { %v1453_v7 = vadd.f32 %v1452_v45, %v10564_v48  ;;  %v1500_v30 = vadd.f32 %v1499_v41, %v10565_v46  ;;  %v1547_v31 = vadd.f32 %v1546_v25, %v10566_v18  ;;  %v10567_v59 = vld [vmem:[#allocation133_spill] sm:$0xff]  ;;  %v10568_v4 = vld [vmem:[#allocation104_spill] sm:$0xff]  ;;  %v10569_v15 = vld [vmem:[#allocation138_spill] sm:$0xff] }
 0x404   :  { %v1793_v47 = vadd.f32 %v1792_v58, %v10567_v59  ;;  %v1594_v14 = vadd.f32 %v1593_v44, %v10568_v4  ;;  %v1653_v26 = vadd.f32 %v1652_v54, %v10569_v15  ;;  %v10570_v8 = vld [vmem:[#allocation139_spill] sm:$0xff]  ;;  %v10571_v12 = vld [vmem:[#allocation140_spill] sm:$0xff]  ;;  %v10572_v5 = vld [vmem:[#allocation105_spill] sm:$0xff] }
 0x405   :  { %v1700_v2 = vadd.f32 %v1699_v19, %v10570_v8  ;;  %v1747_v28 = vadd.f32 %v1746_v39, %v10571_v12  ;;  %v1454_v22 = vadd.f32 %v1453_v7, %v10572_v5  ;;  %v10573_v63 = vld [vmem:[#allocation110_spill] sm:$0xff]  ;;  %v10574_v50 = vld [vmem:[#allocation111_spill] sm:$0xff]  ;;  %v10575_v53 = vld [vmem:[#allocation141_spill] sm:$0xff] }
 0x406   :  { %v1501_v11 = vadd.f32 %v1500_v30, %v10573_v63  ;;  %v1548_v34 = vadd.f32 %v1547_v31, %v10574_v50  ;;  %v1794_v42 = vadd.f32 %v1793_v47, %v10575_v53  ;;  %v10576_v38 = vld [vmem:[#allocation112_spill] sm:$0xff]  ;;  %v10577_v52 = vld [vmem:[#allocation146_spill] sm:$0xff]  ;;  %v10578_v6 = vld [vmem:[#allocation147_spill] sm:$0xff] }
 0x407   :  { %v1595_v55 = vadd.f32 %v1594_v14, %v10576_v38  ;;  %v1654_v16 = vadd.f32 %v1653_v26, %v10577_v52  ;;  %v1701_v21 = vadd.f32 %v1700_v2, %v10578_v6  ;;  %v10579_v17 = vld [vmem:[#allocation148_spill] sm:$0xff]  ;;  %v10580_v40 = vld [vmem:[#allocation113_spill] sm:$0xff]  ;;  %v10581_v60 = vld [vmem:[#allocation118_spill] sm:$0xff] }
 0x408   :  { %v1748_v33 = vadd.f32 %v1747_v28, %v10579_v17  ;;  %v1455_v9 = vadd.f32 %v1454_v22, %v10580_v40  ;;  %v1502_v27 = vadd.f32 %v1501_v11, %v10581_v60  ;;  %v10582_v62 = vld [vmem:[#allocation119_spill] sm:$0xff]  ;;  %v10583_v57 = vld [vmem:[#allocation149_spill] sm:$0xff]  ;;  %v10584_v1 = vld [vmem:[#allocation120_spill] sm:$0xff] }
 0x409   :  { %v1549_v49 = vadd.f32 %v1548_v34, %v10582_v62  ;;  %v1795_v24 = vadd.f32 %v1794_v42, %v10583_v57  ;;  %v1596_v23 = vadd.f32 %v1595_v55, %v10584_v1  ;;  %v10585_v56 = vld [vmem:[#allocation154_spill] sm:$0xff]  ;;  %v10586_v36 = vld [vmem:[#allocation155_spill] sm:$0xff]  ;;  %v10587_v20 = vld [vmem:[#allocation156_spill] sm:$0xff] }
 0x40a   :  { %v1655_v10 = vadd.f32 %v1654_v16, %v10585_v56  ;;  %v1702_v32 = vadd.f32 %v1701_v21, %v10586_v36  ;;  %v1749_v43 = vadd.f32 %v1748_v33, %v10587_v20  ;;  %v10588_v35 = vld [vmem:[#allocation121_spill] sm:$0xff]  ;;  %v10589_v0 = vld [vmem:[#allocation126_spill] sm:$0xff]  ;;  %v10590_v37 = vld [vmem:[#allocation127_spill] sm:$0xff] }
 0x40b   :  { %v1456_v45 = vadd.f32 %v1455_v9, %v10588_v35  ;;  %v1503_v41 = vadd.f32 %v1502_v27, %v10589_v0  ;;  %v1550_v25 = vadd.f32 %v1549_v49, %v10590_v37  ;;  %v10591_v3 = vld [vmem:[#allocation157_spill] sm:$0xff]  ;;  %v10592_v51 = vld [vmem:[#allocation128_spill] sm:$0xff]  ;;  %v10593_v13 = vld [vmem:[#allocation162_spill] sm:$0xff] }
 0x40c   :  { %v1796_v58 = vadd.f32 %v1795_v24, %v10591_v3  ;;  %v1597_v44 = vadd.f32 %v1596_v23, %v10592_v51  ;;  %v1656_v54 = vadd.f32 %v1655_v10, %v10593_v13  ;;  %v10594_v29 = vld [vmem:[#allocation163_spill] sm:$0xff]  ;;  %v10595_v61 = vld [vmem:[#allocation164_spill] sm:$0xff]  ;;  %v10596_v48 = vld [vmem:[#allocation129_spill] sm:$0xff] }
 0x40d   :  { %v1703_v19 = vadd.f32 %v1702_v32, %v10594_v29  ;;  %v1750_v39 = vadd.f32 %v1749_v43, %v10595_v61  ;;  %v1457_v7 = vadd.f32 %v1456_v45, %v10596_v48  ;;  %v10597_v46 = vld [vmem:[#allocation134_spill] sm:$0xff]  ;;  %v10598_v18 = vld [vmem:[#allocation135_spill] sm:$0xff]  ;;  %v10599_v59 = vld [vmem:[#allocation165_spill] sm:$0xff] }
 0x40e   :  { %v1504_v30 = vadd.f32 %v1503_v41, %v10597_v46  ;;  %v1551_v31 = vadd.f32 %v1550_v25, %v10598_v18  ;;  %v1797_v47 = vadd.f32 %v1796_v58, %v10599_v59  ;;  %v10600_v4 = vld [vmem:[#allocation136_spill] sm:$0xff]  ;;  %v10601_v15 = vld [vmem:[#allocation170_spill] sm:$0xff]  ;;  %v10602_v8 = vld [vmem:[#allocation171_spill] sm:$0xff] }
 0x40f   :  { %v1598_v14 = vadd.f32 %v1597_v44, %v10600_v4  ;;  %v1657_v26 = vadd.f32 %v1656_v54, %v10601_v15  ;;  %v1704_v2 = vadd.f32 %v1703_v19, %v10602_v8  ;;  %v10603_v12 = vld [vmem:[#allocation172_spill] sm:$0xff]  ;;  %v10604_v5 = vld [vmem:[#allocation137_spill] sm:$0xff]  ;;  %v10605_v63 = vld [vmem:[#allocation142_spill] sm:$0xff] }
 0x410   :  { %v1751_v28 = vadd.f32 %v1750_v39, %v10603_v12  ;;  %v1458_v22 = vadd.f32 %v1457_v7, %v10604_v5  ;;  %v1505_v11 = vadd.f32 %v1504_v30, %v10605_v63  ;;  %v10606_v50 = vld [vmem:[#allocation143_spill] sm:$0xff]  ;;  %v10607_v53 = vld [vmem:[#allocation173_spill] sm:$0xff]  ;;  %v10608_v38 = vld [vmem:[#allocation144_spill] sm:$0xff] }
 0x411   :  { %v1552_v34 = vadd.f32 %v1551_v31, %v10606_v50  ;;  %v1798_v42 = vadd.f32 %v1797_v47, %v10607_v53  ;;  %v1599_v55 = vadd.f32 %v1598_v14, %v10608_v38  ;;  %v10609_v52 = vld [vmem:[#allocation178_spill] sm:$0xff]  ;;  %v10610_v6 = vld [vmem:[#allocation179_spill] sm:$0xff]  ;;  %v10611_v17 = vld [vmem:[#allocation180_spill] sm:$0xff] }
 0x412   :  { %v1658_v16 = vadd.f32 %v1657_v26, %v10609_v52  ;;  %v1705_v21 = vadd.f32 %v1704_v2, %v10610_v6  ;;  %v1752_v33 = vadd.f32 %v1751_v28, %v10611_v17  ;;  %v10612_v40 = vld [vmem:[#allocation145_spill] sm:$0xff]  ;;  %v10613_v60 = vld [vmem:[#allocation150_spill] sm:$0xff]  ;;  %v10614_v62 = vld [vmem:[#allocation151_spill] sm:$0xff] }
 0x413   :  { %v1459_v9 = vadd.f32 %v1458_v22, %v10612_v40  ;;  %v1506_v27 = vadd.f32 %v1505_v11, %v10613_v60  ;;  %v1553_v49 = vadd.f32 %v1552_v34, %v10614_v62  ;;  %v10615_v57 = vld [vmem:[#allocation181_spill] sm:$0xff]  ;;  %v10616_v1 = vld [vmem:[#allocation152_spill] sm:$0xff]  ;;  %v10617_v56 = vld [vmem:[#allocation186_spill] sm:$0xff] }
 0x414   :  { %v1799_v24 = vadd.f32 %v1798_v42, %v10615_v57  ;;  %v1600_v23 = vadd.f32 %v1599_v55, %v10616_v1  ;;  %v1659_v10 = vadd.f32 %v1658_v16, %v10617_v56  ;;  %v10618_v36 = vld [vmem:[#allocation187_spill] sm:$0xff]  ;;  %v10619_v20 = vld [vmem:[#allocation188_spill] sm:$0xff]  ;;  %v10620_v35 = vld [vmem:[#allocation153_spill] sm:$0xff] }
 0x415   :  { %v1706_v32 = vadd.f32 %v1705_v21, %v10618_v36  ;;  %v1753_v43 = vadd.f32 %v1752_v33, %v10619_v20  ;;  %v1460_v45 = vadd.f32 %v1459_v9, %v10620_v35  ;;  %v10621_v0 = vld [vmem:[#allocation158_spill] sm:$0xff]  ;;  %v10622_v37 = vld [vmem:[#allocation159_spill] sm:$0xff]  ;;  %v10623_v3 = vld [vmem:[#allocation189_spill] sm:$0xff] }
 0x416   :  { %v1507_v41 = vadd.f32 %v1506_v27, %v10621_v0  ;;  %v1554_v25 = vadd.f32 %v1553_v49, %v10622_v37  ;;  %v1800_v58 = vadd.f32 %v1799_v24, %v10623_v3  ;;  %v10624_v51 = vld [vmem:[#allocation160_spill] sm:$0xff]  ;;  %v10625_v13 = vld [vmem:[#allocation194_spill] sm:$0xff]  ;;  %v10626_v29 = vld [vmem:[#allocation195_spill] sm:$0xff] }
 0x417   :  { %v1601_v44 = vadd.f32 %v1600_v23, %v10624_v51  ;;  %v1660_v54 = vadd.f32 %v1659_v10, %v10625_v13  ;;  %v1707_v19 = vadd.f32 %v1706_v32, %v10626_v29  ;;  %v10627_v61 = vld [vmem:[#allocation196_spill] sm:$0xff]  ;;  %v10628_v48 = vld [vmem:[#allocation161_spill] sm:$0xff]  ;;  %v10629_v46 = vld [vmem:[#allocation258_spill] sm:$0xff] }
 0x418   :  { %v1754_v39 = vadd.f32 %v1753_v43, %v10627_v61  ;;  %v1461_v7 = vadd.f32 %v1460_v45, %v10628_v48  ;;  %v1508_v30 = vadd.f32 %v1507_v41, %v10629_v46  ;;  %v10630_v18 = vld [vmem:[#allocation166_spill] sm:$0xff]  ;;  %v10631_v59 = vld [vmem:[#allocation197_spill] sm:$0xff]  ;;  %v10632_v4 = vld [vmem:[#allocation167_spill] sm:$0xff] }
 0x419   :  { %v1555_v31 = vadd.f32 %v1554_v25, %v10630_v18  ;;  %v1801_v47 = vadd.f32 %v1800_v58, %v10631_v59  ;;  %v1602_v14 = vadd.f32 %v1601_v44, %v10632_v4  ;;  %v10633_v15 = vld [vmem:[#allocation202_spill] sm:$0xff]  ;;  %v10634_v8 = vld [vmem:[#allocation203_spill] sm:$0xff]  ;;  %v10635_v12 = vld [vmem:[#allocation204_spill] sm:$0xff] }
 0x41a   :  { %v1661_v26 = vadd.f32 %v1660_v54, %v10633_v15  ;;  %v1708_v2 = vadd.f32 %v1707_v19, %v10634_v8  ;;  %v1755_v28 = vadd.f32 %v1754_v39, %v10635_v12  ;;  %v10636_v5 = vld [vmem:[#allocation168_spill] sm:$0xff]  ;;  %v10637_v63 = vld [vmem:[#allocation169_spill] sm:$0xff]  ;;  %v10638_v50 = vld [vmem:[#allocation266_spill] sm:$0xff] }
 0x41b   :  { %v1462_v22 = vadd.f32 %v1461_v7, %v10636_v5  ;;  %v1509_v11 = vadd.f32 %v1508_v30, %v10637_v63  ;;  %v1556_v34 = vadd.f32 %v1555_v31, %v10638_v50  ;;  %v10639_v53 = vld [vmem:[#allocation205_spill] sm:$0xff]  ;;  %v10640_v38 = vld [vmem:[#allocation267_spill] sm:$0xff]  ;;  %v10641_v52 = vld [vmem:[#allocation210_spill] sm:$0xff] }
 0x41c   :  { %v1802_v42 = vadd.f32 %v1801_v47, %v10639_v53  ;;  %v1603_v55 = vadd.f32 %v1602_v14, %v10640_v38  ;;  %v1662_v16 = vadd.f32 %v1661_v26, %v10641_v52  ;;  %v10642_v6 = vld [vmem:[#allocation211_spill] sm:$0xff]  ;;  %v10643_v17 = vld [vmem:[#allocation212_spill] sm:$0xff]  ;;  %v10645_v60 = vld [vmem:[#allocation174_spill] sm:$0xff] }
 0x41d   :  { %v1709_v21 = vadd.f32 %v1708_v2, %v10642_v6  ;;  %v1756_v33 = vadd.f32 %v1755_v28, %v10643_v17  ;;  %v10644_v40 = vld [vmem:[#allocation268_spill] sm:$0xff]  ;;  %v1510_v27 = vadd.f32 %v1509_v11, %v10645_v60  ;;  %v10646_v62 = vld [vmem:[#allocation175_spill] sm:$0xff]  ;;  %v10647_v57 = vld [vmem:[#allocation213_spill] sm:$0xff] }
 0x41e   :  { %v1463_v9 = vadd.f32 %v1462_v22, %v10644_v40  ;;  %v1557_v49 = vadd.f32 %v1556_v34, %v10646_v62  ;;  %v1803_v24 = vadd.f32 %v1802_v42, %v10647_v57  ;;  %v10648_v1 = vld [vmem:[#allocation176_spill] sm:$0xff]  ;;  %v10649_v56 = vld [vmem:[#allocation218_spill] sm:$0xff]  ;;  %v10650_v36 = vld [vmem:[#allocation219_spill] sm:$0xff] }
 0x41f   :  { %v1604_v23 = vadd.f32 %v1603_v55, %v10648_v1  ;;  %v1663_v10 = vadd.f32 %v1662_v16, %v10649_v56  ;;  %v1710_v32 = vadd.f32 %v1709_v21, %v10650_v36  ;;  %v10651_v20 = vld [vmem:[#allocation220_spill] sm:$0xff]  ;;  %v10652_v35 = vld [vmem:[#allocation177_spill] sm:$0xff]  ;;  %v10653_v0 = vld [vmem:[#allocation274_spill] sm:$0xff] }
 0x420   :  { %v1757_v43 = vadd.f32 %v1756_v33, %v10651_v20  ;;  %v1464_v45 = vadd.f32 %v1463_v9, %v10652_v35  ;;  %v1511_v41 = vadd.f32 %v1510_v27, %v10653_v0  ;;  %v10654_v37 = vld [vmem:[#allocation182_spill] sm:$0xff]  ;;  %v10655_v3 = vld [vmem:[#allocation221_spill] sm:$0xff]  ;;  %v10656_v51 = vld [vmem:[#allocation183_spill] sm:$0xff] }
 0x421   :  { %v1558_v25 = vadd.f32 %v1557_v49, %v10654_v37  ;;  %v1804_v58 = vadd.f32 %v1803_v24, %v10655_v3  ;;  %v1605_v44 = vadd.f32 %v1604_v23, %v10656_v51  ;;  %v10657_v13 = vld [vmem:[#allocation226_spill] sm:$0xff]  ;;  %v10658_v29 = vld [vmem:[#allocation227_spill] sm:$0xff]  ;;  %v10659_v61 = vld [vmem:[#allocation228_spill] sm:$0xff] }
 0x422   :  { %v1664_v54 = vadd.f32 %v1663_v10, %v10657_v13  ;;  %v1711_v19 = vadd.f32 %v1710_v32, %v10658_v29  ;;  %v1758_v39 = vadd.f32 %v1757_v43, %v10659_v61  ;;  %v10660_v48 = vld [vmem:[#allocation184_spill] sm:$0xff]  ;;  %v10661_v46 = vld [vmem:[#allocation185_spill] sm:$0xff]  ;;  %v10662_v18 = vld [vmem:[#allocation190_spill] sm:$0xff] }
 0x423   :  { %v1465_v7 = vadd.f32 %v1464_v45, %v10660_v48  ;;  %v1512_v30 = vadd.f32 %v1511_v41, %v10661_v46  ;;  %v1559_v31 = vadd.f32 %v1558_v25, %v10662_v18  ;;  %v10663_v59 = vld [vmem:[#allocation229_spill] sm:$0xff]  ;;  %v10664_v4 = vld [vmem:[#allocation191_spill] sm:$0xff]  ;;  %v10665_v15 = vld [vmem:[#allocation234_spill] sm:$0xff] }
 0x424   :  { %v1805_v47 = vadd.f32 %v1804_v58, %v10663_v59  ;;  %v1606_v14 = vadd.f32 %v1605_v44, %v10664_v4  ;;  %v1665_v26 = vadd.f32 %v1664_v54, %v10665_v15  ;;  %v10666_v8 = vld [vmem:[#allocation235_spill] sm:$0xff]  ;;  %v10667_v12 = vld [vmem:[#allocation236_spill] sm:$0xff]  ;;  %v10669_v63 = vld [vmem:[#allocation193_spill] sm:$0xff] }
 0x425   :  { %v1712_v2 = vadd.f32 %v1711_v19, %v10666_v8  ;;  %v1759_v28 = vadd.f32 %v1758_v39, %v10667_v12  ;;  %v10668_v5 = vld [vmem:[#allocation192_spill] sm:$0xff]  ;;  %v1513_v11 = vadd.f32 %v1512_v30, %v10669_v63  ;;  %v10670_v50 = vld [vmem:[#allocation198_spill] sm:$0xff]  ;;  %v10671_v53 = vld [vmem:[#allocation237_spill] sm:$0xff] }
 0x426   :  { %v1466_v22 = vadd.f32 %v1465_v7, %v10668_v5  ;;  %v1560_v34 = vadd.f32 %v1559_v31, %v10670_v50  ;;  %v1806_v42 = vadd.f32 %v1805_v47, %v10671_v53  ;;  %v10672_v38 = vld [vmem:[#allocation199_spill] sm:$0xff]  ;;  %v10673_v52 = vld [vmem:[#allocation242_spill] sm:$0xff]  ;;  %v10675_v17 = vld [vmem:[#allocation244_spill] sm:$0xff] }
 0x427   :  { %v1607_v55 = vadd.f32 %v1606_v14, %v10672_v38  ;;  %v1666_v16 = vadd.f32 %v1665_v26, %v10673_v52  ;;  %v10674_v6 = vld [vmem:[#allocation243_spill] sm:$0xff]  ;;  %v1760_v33 = vadd.f32 %v1759_v28, %v10675_v17  ;;  %v10676_v40 = vld [vmem:[#allocation200_spill] sm:$0xff]  ;;  %v10677_v60 = vld [vmem:[#allocation201_spill] sm:$0xff] }
 0x428   :  { %v1713_v21 = vadd.f32 %v1712_v2, %v10674_v6  ;;  %v1467_v9 = vadd.f32 %v1466_v22, %v10676_v40  ;;  %v1514_v27 = vadd.f32 %v1513_v11, %v10677_v60  ;;  %v10678_v62 = vld [vmem:[#allocation206_spill] sm:$0xff]  ;;  %v10679_v57 = vld [vmem:[#allocation245_spill] sm:$0xff]  ;;  %v10680_v1 = vld [vmem:[#allocation207_spill] sm:$0xff] }
 0x429   :  { %v1561_v49 = vadd.f32 %v1560_v34, %v10678_v62  ;;  %v1807_v24 = vadd.f32 %v1806_v42, %v10679_v57  ;;  %v1608_v23 = vadd.f32 %v1607_v55, %v10680_v1  ;;  %v10681_v56 = vld [vmem:[#allocation250_spill] sm:$0xff]  ;;  %v10682_v36 = vld [vmem:[#allocation251_spill] sm:$0xff]  ;;  %v10683_v20 = vld [vmem:[#allocation252_spill] sm:$0xff] }
 0x42a   :  { %v1667_v10 = vadd.f32 %v1666_v16, %v10681_v56  ;;  %v1714_v32 = vadd.f32 %v1713_v21, %v10682_v36  ;;  %v1761_v43 = vadd.f32 %v1760_v33, %v10683_v20  ;;  %v10684_v35 = vld [vmem:[#allocation253_spill] sm:$0xff]  ;;  %1613 = vst [vmem:[#allocation7] sm:$0xff] %v1467_v9 }
 0x42b   :  { %v1808_v45 = vadd.f32 %v1807_v24, %v10684_v35  ;;  %1614 = vst [vmem:[#allocation7 + $0x8] sm:$0xff] %v1514_v27 }
 0x42c   :  { %1615 = vst [vmem:[#allocation7 + $0x10] sm:$0xff] %v1561_v49 }
 0x42d   :  { %1616 = vst [vmem:[#allocation7 + $0x18] sm:$0xff] %v1608_v23 }
 0x42e   :  { %1813 = vst [vmem:[#allocation8] sm:$0xff] %v1667_v10  ;;  %1827 = dma.vmem_to_hbm [thread:$0]  %s1823_s1, 512, %s1825_s26, [#allocation4]  }
 0x42f   :  { %1814 = vst [vmem:[#allocation8 + $0x8] sm:$0xff] %v1714_v32 }
 0x430   :  { %1815 = vst [vmem:[#allocation8 + $0x10] sm:$0xff] %v1761_v43 }
 0x431   :  { %1816 = vst [vmem:[#allocation8 + $0x18] sm:$0xff] %v1808_v45 }
 0x432   :  { %1838 = dma.vmem_to_hbm [thread:$0]  %s1834_s28, 512, %s1836_s4, [#allocation9]  }
 0x433   :  { %1983 = dma.done.wait [#allocation4], 512  }
 0x434   :  { %1984 = vsyncadd [#allocation4], 4294966784 }
 0x435   :  { %1985 = dma.done.wait [#allocation9], 512  }
 0x436   :  { %1986 = vsyncadd [#allocation9], 4294966784 }
 0x437   :  { %1847 = vsyncpa [#allocation3], 1 }
 0x438   :  { %1848 = vsyncpa [#allocation6], 1 }
 0x439   :  { %1849 = vsyncpa [#allocation4], 1 }
 0x43a   :  { %1850 = vsyncpa [#allocation9], 1 }

</bundles_post_ra>
